<compile_context>
chip_gen: v5e
topology: v5e:2x2
jax: 0.10.0
libtpu: 0.0.40
codegen_flags: <defaults>
</compile_context>

<pallas_src>
import functools

import jax
import jax.numpy as jnp
from jax.experimental import pallas as pl
from jax.experimental.pallas import tpu as pltpu


# ----------------------------- Pallas kernels ------------------------------

def _make_conv_stats_kernel(KH, KW, OH, OW, Cin, stride):
    """Fused conv (via in-VMEM im2col + one MXU matmul) + BN batch-stat partials."""
    KTOT = KH * KW * Cin

    def kernel(x_ref, w_ref, conv_ref, stats_ref, pscratch):
        # x_ref:     (1, Hp, Wp, Cin)        bf16  spatially padded image
        # w_ref:     (KH*KW*Cin, Coutp)      bf16  conv weights, Cout padded to 128
        # conv_ref:  (1, OH*OW, Coutp)       f32   conv output (pre-BN)
        # stats_ref: (1, 2, Coutp)           f32   row0 = sum, row1 = sum of squares
        # pscratch:  (OH*OW, KH*KW*Cin)      bf16  VMEM-only patch matrix
        for kh in range(KH):
            for kw in range(KW):
                col = (kh * KW + kw) * Cin
                wslice = pl.ds(kw, OW) if stride == 1 else pl.ds(kw, OW, stride)
                for oh in range(OH):
                    src = x_ref[0, oh * stride + kh, wslice, :]   # (OW, Cin)
                    pscratch[oh * OW:(oh + 1) * OW, col:col + Cin] = src

        # Single lane-dense matmul per image: bf16 inputs, f32 accumulation.
        acc = jnp.dot(pscratch[...], w_ref[...],
                      preferred_element_type=jnp.float32)         # (OH*OW, Coutp)
        conv_ref[0] = acc

        # Fused per-image BN partial statistics (reduced in the wrapper).
        s = jnp.sum(acc, axis=0, keepdims=True)                   # (1, Coutp)
        sq = jnp.sum(acc * acc, axis=0, keepdims=True)            # (1, Coutp)
        stats_ref[0] = jnp.concatenate([s, sq], axis=0)

    return kernel


def _bn_mish_kernel(y_ref, scale_ref, shift_ref, o_ref):
    # Fused batch-norm affine + Mish: x * tanh(softplus(x)).
    y = y_ref[...] * scale_ref[...] + shift_ref[...]
    # tanh(softplus(y)) = ((1 + e^y)^2 - 1) / ((1 + e^y)^2 + 1)
    # (clamp: for y > 20 the ratio is 1.0 to f32 precision; avoids overflow of u)
    e = jnp.exp(jnp.minimum(y, 20.0))
    u = (1.0 + e) * (1.0 + e)
    t = (u - 1.0) * pl.reciprocal(u + 1.0, approx=True)
    o_ref[...] = (y * t).astype(o_ref.dtype)


# ------------------------------ glue / wrapper ------------------------------

@functools.partial(jax.jit, static_argnames=("stride", "eps"))
def conv_bn_act(x_nchw, weight, bias, gamma, beta, *, stride=1, eps=1e-5):
    """Forward of Conv_BN_Act with activation='mish', bn=True, bias=True.

    BatchNorm2d runs in training mode (batch statistics, biased variance),
    which is what a freshly-constructed PyTorch module does in forward().
    """
    Cout, Cin, KH, KW = weight.shape
    pad = (KH - 1) // 2
    N, _, H, W = x_nchw.shape
    OH = (H + 2 * pad - KH) // stride + 1
    OW = (W + 2 * pad - KW) // stride + 1
    OHOW = OH * OW
    Hp, Wp = H + 2 * pad, W + 2 * pad
    Coutp = ((Cout + 127) // 128) * 128            # lane-dense output channels
    KTOT = KH * KW * Cin

    # NHWC, spatially padded, bf16 for the MXU (accumulation stays f32 in-kernel).
    x_nhwc = jnp.transpose(x_nchw, (0, 2, 3, 1)).astype(jnp.bfloat16)
    x_pad = jnp.pad(x_nhwc, ((0, 0), (pad, pad), (pad, pad), (0, 0)))

    # (Cout, Cin, KH, KW) -> (KH*KW*Cin, Coutp), matching [kh, kw, cin] patch order.
    w_mat = jnp.transpose(weight, (2, 3, 1, 0)).reshape(KTOT, Cout)
    w_mat = jnp.pad(w_mat, ((0, 0), (0, Coutp - Cout))).astype(jnp.bfloat16)

    conv_kernel = _make_conv_stats_kernel(KH, KW, OH, OW, Cin, stride)

    # 1) Fused convolution + per-image BN statistic partials.
    conv_out, stats = pl.pallas_call(
        conv_kernel,
        out_shape=(jax.ShapeDtypeStruct((N, OHOW, Coutp), jnp.float32),
                   jax.ShapeDtypeStruct((N, 2, Coutp), jnp.float32)),
        grid_spec=pltpu.PrefetchScalarGridSpec(
            num_scalar_prefetch=0, grid=(N,),
            in_specs=[pl.BlockSpec((1, Hp, Wp, Cin), lambda n: (n, 0, 0, 0)),
                      pl.BlockSpec((KTOT, Coutp), lambda n: (0, 0))],
            out_specs=[pl.BlockSpec((1, OHOW, Coutp), lambda n: (n, 0, 0)),
                       pl.BlockSpec((1, 2, Coutp), lambda n: (n, 0, 0))],
            scratch_shapes=[pltpu.VMEM((OHOW, KTOT), jnp.bfloat16)]),
        compiler_params=pltpu.CompilerParams(
            dimension_semantics=("parallel",),
            vmem_limit_bytes=32 * 1024 * 1024),
    )(x_pad, w_mat)

    # 2) Reduce partials -> batch mean / biased variance (PyTorch train-mode BN).
    M = N * OHOW
    sums = jnp.sum(stats, axis=0)                          # (2, Coutp)
    mean = sums[0] / M
    var = jnp.maximum(sums[1] / M - mean * mean, 0.0)      # cancellation guard

    gamma_p = jnp.pad(gamma.astype(jnp.float32), (0, Coutp - Cout))
    beta_p = jnp.pad(beta.astype(jnp.float32), (0, Coutp - Cout))
    scale = gamma_p / jnp.sqrt(var + eps)
    # BN of (conv + bias): ((conv + bias) - (mean_conv + bias)) * scale + beta
    # -> the conv bias cancels exactly under training-mode batch norm.
    del bias
    shift = beta_p - mean * scale

    # 3) Fused BN affine + Mish; conv_out aliased into the output buffer.
    out = pl.pallas_call(
        _bn_mish_kernel,
        out_shape=jax.ShapeDtypeStruct((N, OHOW, Coutp), jnp.float32),
        grid_spec=pltpu.PrefetchScalarGridSpec(
            num_scalar_prefetch=0, grid=(N,),
            in_specs=[pl.BlockSpec((1, OHOW, Coutp), lambda n: (n, 0, 0)),
                      pl.BlockSpec((1, 1, Coutp), lambda n: (0, 0, 0)),
                      pl.BlockSpec((1, 1, Coutp), lambda n: (0, 0, 0))],
            out_specs=pl.BlockSpec((1, OHOW, Coutp), lambda n: (n, 0, 0))),
        compiler_params=pltpu.CompilerParams(
            dimension_semantics=("parallel",),
            vmem_limit_bytes=32 * 1024 * 1024),
        input_output_aliases={0: 0},
    )(conv_out, scale.reshape(1, 1, Coutp), shift.reshape(1, 1, Coutp))

    out = out[:, :, :Cout].reshape(N, OH, OW, Cout)
    return jnp.transpose(out, (0, 3, 1, 2))                # back to NCHW


# ------------------------------- reference ---------------------------------

def reference(x, weight, bias, gamma, beta, *, stride=1, eps=1e-5):
    pad = (weight.shape[2] - 1) // 2
    y = jax.lax.conv_general_dilated(
        x, weight, (stride, stride), [(pad, pad), (pad, pad)],
        dimension_numbers=("NCHW", "OIHW", "NCHW"),
        precision=jax.lax.Precision.HIGHEST)
    y = y + bias.reshape(1, -1, 1, 1)
    mean = jnp.mean(y, axis=(0, 2, 3), keepdims=True)
    var = jnp.var(y, axis=(0, 2, 3), keepdims=True)
    y = (y - mean) / jnp.sqrt(var + eps) * gamma.reshape(1, -1, 1, 1) \
        + beta.reshape(1, -1, 1, 1)
    sp = jnp.maximum(y, 0.0) + jnp.log1p(jnp.exp(-jnp.abs(y)))
    return y * jnp.tanh(sp)


# --------------------------------- main -------------------------------------

if __name__ == "__main__":
    # Small shapes consistent with Conv_BN_Act(in=4, out=8, k=3, stride=1, 'mish').
    N, Cin, H, W = 2, 4, 16, 16
    Cout, ksize, stride = 8, 3, 1

    key = jax.random.PRNGKey(0)
    kx, k_w, kb, kg, kbt = jax.random.split(key, 5)
    x = jax.random.normal(kx, (N, Cin, H, W), dtype=jnp.float32)
    weight = 0.1 * jax.random.normal(k_w, (Cout, Cin, ksize, ksize), dtype=jnp.float32)
    bias = 0.1 * jax.random.normal(kb, (Cout,), dtype=jnp.float32)
    gamma = 1.0 + 0.1 * jax.random.normal(kg, (Cout,), dtype=jnp.float32)
    beta = 0.1 * jax.random.normal(kbt, (Cout,), dtype=jnp.float32)

    out = conv_bn_act(x, weight, bias, gamma, beta, stride=stride)
    out = jax.block_until_ready(out)

    ref = reference(x, weight, bias, gamma, beta, stride=stride)
    assert out.shape == (N, Cout, H, W)
    # bf16 MXU inputs (f32 accumulation) -> slightly looser tolerance than pure f32.
    assert jnp.allclose(out, ref, atol=2e-2, rtol=2e-2), \
        f"max abs err {jnp.max(jnp.abs(out - ref))}"

    print("KERNEL_OK")
</pallas_src>

<mosaic_0001>
module attributes {stable_mosaic.version = 11 : i64} {
  func.func @_bn_mish_kernel(%arg0: i32, %arg1: memref<1x256x128xf32, #tpu.memory_space<vmem>>, %arg2: memref<1x1x128xf32, #tpu.memory_space<vmem>>, %arg3: memref<1x1x128xf32, #tpu.memory_space<vmem>>, %arg4: memref<1x256x128xf32, #tpu.memory_space<vmem>>) attributes {dimension_semantics = [#tpu.dimension_semantics<parallel>], iteration_bounds = array<i64: 2>, scalar_prefetch = 0 : i64, scratch_operands = 0 : i64, tpu.core_type = #tpu.core_type<tc>, window_params = [{transform_indices = @transform_0, window_bounds = array<i64: 1, 256, 128>}, {pipeline_mode = #tpu.pipeline_mode<synchronous>, transform_indices = @transform_1, window_bounds = array<i64: 1, 1, 128>}, {pipeline_mode = #tpu.pipeline_mode<synchronous>, transform_indices = @transform_2, window_bounds = array<i64: 1, 1, 128>}, {transform_indices = @transform_3, window_bounds = array<i64: 1, 256, 128>}]} {
    %c0 = arith.constant 0 : index
    %c0_0 = arith.constant 0 : index
    %c0_1 = arith.constant 0 : index
    %0 = vector.load %arg1[%c0, %c0_0, %c0_1] : memref<1x256x128xf32, #tpu.memory_space<vmem>>, vector<1x256x128xf32>
    %c0_2 = arith.constant 0 : index
    %c0_3 = arith.constant 0 : index
    %c0_4 = arith.constant 0 : index
    %1 = vector.load %arg2[%c0_2, %c0_3, %c0_4] : memref<1x1x128xf32, #tpu.memory_space<vmem>>, vector<1x1x128xf32>
    %2 = vector.broadcast %1 : vector<1x1x128xf32> to vector<1x256x128xf32>
    %3 = arith.mulf %0, %2 : vector<1x256x128xf32>
    %c0_5 = arith.constant 0 : index
    %c0_6 = arith.constant 0 : index
    %c0_7 = arith.constant 0 : index
    %4 = vector.load %arg3[%c0_5, %c0_6, %c0_7] : memref<1x1x128xf32, #tpu.memory_space<vmem>>, vector<1x1x128xf32>
    %5 = vector.broadcast %4 : vector<1x1x128xf32> to vector<1x256x128xf32>
    %6 = arith.addf %3, %5 : vector<1x256x128xf32>
    %cst = arith.constant 2.000000e+01 : f32
    %7 = vector.broadcast %cst : f32 to vector<1x256x128xf32>
    %8 = arith.minimumf %6, %7 : vector<1x256x128xf32>
    %9 = math.exp %8 : vector<1x256x128xf32>
    %cst_8 = arith.constant 1.000000e+00 : f32
    %10 = vector.broadcast %cst_8 : f32 to vector<1x256x128xf32>
    %11 = arith.addf %10, %9 : vector<1x256x128xf32>
    %cst_9 = arith.constant 1.000000e+00 : f32
    %12 = vector.broadcast %cst_9 : f32 to vector<1x256x128xf32>
    %13 = arith.addf %12, %9 : vector<1x256x128xf32>
    %14 = arith.mulf %11, %13 : vector<1x256x128xf32>
    %cst_10 = arith.constant 1.000000e+00 : f32
    %15 = vector.broadcast %cst_10 : f32 to vector<1x256x128xf32>
    %16 = arith.subf %14, %15 : vector<1x256x128xf32>
    %cst_11 = arith.constant 1.000000e+00 : f32
    %17 = vector.broadcast %cst_11 : f32 to vector<1x256x128xf32>
    %18 = arith.addf %14, %17 : vector<1x256x128xf32>
    %19 = tpu.reciprocal %18 {approx = true} : vector<1x256x128xf32> -> vector<1x256x128xf32>
    %20 = arith.mulf %16, %19 : vector<1x256x128xf32>
    %21 = arith.mulf %6, %20 : vector<1x256x128xf32>
    %c0_12 = arith.constant 0 : index
    %c0_13 = arith.constant 0 : index
    %c0_14 = arith.constant 0 : index
    %22 = vector.load %arg4[%c0_12, %c0_13, %c0_14] : memref<1x256x128xf32, #tpu.memory_space<vmem>>, vector<1x256x128xf32>
    tpu.vector_store %arg4[%c0_12, %c0_13, %c0_14], %21 {strides = array<i32>} : memref<1x256x128xf32, #tpu.memory_space<vmem>>, vector<1x256x128xf32>,
    return
  }
  func.func @transform_0(%arg0: i32) -> (i32, i32, i32) {
    %c0_i32 = arith.constant 0 : i32
    %c0_i32_0 = arith.constant 0 : i32
    %c0_i32_1 = arith.constant 0 : i32
    return %arg0, %c0_i32, %c0_i32_0 : i32, i32, i32
  }
  func.func @transform_1(%arg0: i32) -> (i32, i32, i32) {
    %c0_i32 = arith.constant 0 : i32
    %c0_i32_0 = arith.constant 0 : i32
    %c0_i32_1 = arith.constant 0 : i32
    %c0_i32_2 = arith.constant 0 : i32
    return %c0_i32, %c0_i32_0, %c0_i32_1 : i32, i32, i32
  }
  func.func @transform_2(%arg0: i32) -> (i32, i32, i32) {
    %c0_i32 = arith.constant 0 : i32
    %c0_i32_0 = arith.constant 0 : i32
    %c0_i32_1 = arith.constant 0 : i32
    %c0_i32_2 = arith.constant 0 : i32
    return %c0_i32, %c0_i32_0, %c0_i32_1 : i32, i32, i32
  }
  func.func @transform_3(%arg0: i32) -> (i32, i32, i32) {
    %c0_i32 = arith.constant 0 : i32
    %c0_i32_0 = arith.constant 0 : i32
    %c0_i32_1 = arith.constant 0 : i32
    return %arg0, %c0_i32, %c0_i32_0 : i32, i32, i32
  }
}

module attributes {stable_mosaic.version = 11 : i64} {
  func.func @kernel(%arg0: i32, %arg1: memref<1x18x18x4xbf16, #tpu.memory_space<vmem>>, %arg2: memref<36x128xbf16, #tpu.memory_space<vmem>>, %arg3: memref<1x256x128xf32, #tpu.memory_space<vmem>>, %arg4: memref<1x2x128xf32, #tpu.memory_space<vmem>>, %arg5: memref<256x36xbf16, #tpu.memory_space<vmem>>) attributes {dimension_semantics = [#tpu.dimension_semantics<parallel>], iteration_bounds = array<i64: 2>, scalar_prefetch = 0 : i64, scratch_operands = 1 : i64, tpu.core_type = #tpu.core_type<tc>, window_params = [{transform_indices = @transform_0, window_bounds = array<i64: 1, 18, 18, 4>}, {pipeline_mode = #tpu.pipeline_mode<synchronous>, transform_indices = @transform_1, window_bounds = array<i64: 36, 128>}, {transform_indices = @transform_2, window_bounds = array<i64: 1, 256, 128>}, {transform_indices = @transform_3, window_bounds = array<i64: 1, 2, 128>}]} {
    %c0 = arith.constant 0 : index
    %c0_0 = arith.constant 0 : index
    %c0_1 = arith.constant 0 : index
    %c0_2 = arith.constant 0 : index
    %0 = vector.load %arg1[%c0, %c0_0, %c0_1, %c0_2] : memref<1x18x18x4xbf16, #tpu.memory_space<vmem>>, vector<1x1x16x4xbf16>
    %1 = vector.shape_cast %0 : vector<1x1x16x4xbf16> to vector<16x4xbf16>
    %c0_3 = arith.constant 0 : index
    %c0_4 = arith.constant 0 : index
    %2 = vector.load %arg5[%c0_3, %c0_4] : memref<256x36xbf16, #tpu.memory_space<vmem>>, vector<16x4xbf16>
    tpu.vector_store %arg5[%c0_3, %c0_4], %1 {strides = array<i32>} : memref<256x36xbf16, #tpu.memory_space<vmem>>, vector<16x4xbf16>,
    %c0_5 = arith.constant 0 : index
    %c1 = arith.constant 1 : index
    %c0_6 = arith.constant 0 : index
    %c0_7 = arith.constant 0 : index
    %3 = vector.load %arg1[%c0_5, %c1, %c0_6, %c0_7] : memref<1x18x18x4xbf16, #tpu.memory_space<vmem>>, vector<1x1x16x4xbf16>
    %4 = vector.shape_cast %3 : vector<1x1x16x4xbf16> to vector<16x4xbf16>
    %c16 = arith.constant 16 : index
    %c0_8 = arith.constant 0 : index
    %5 = vector.load %arg5[%c16, %c0_8] : memref<256x36xbf16, #tpu.memory_space<vmem>>, vector<16x4xbf16>
    tpu.vector_store %arg5[%c16, %c0_8], %4 {strides = array<i32>} : memref<256x36xbf16, #tpu.memory_space<vmem>>, vector<16x4xbf16>,
    %c0_9 = arith.constant 0 : index
    %c2 = arith.constant 2 : index
    %c0_10 = arith.constant 0 : index
    %c0_11 = arith.constant 0 : index
    %6 = vector.load %arg1[%c0_9, %c2, %c0_10, %c0_11] : memref<1x18x18x4xbf16, #tpu.memory_space<vmem>>, vector<1x1x16x4xbf16>
    %7 = vector.shape_cast %6 : vector<1x1x16x4xbf16> to vector<16x4xbf16>
    %c32 = arith.constant 32 : index
    %c0_12 = arith.constant 0 : index
    %8 = vector.load %arg5[%c32, %c0_12] : memref<256x36xbf16, #tpu.memory_space<vmem>>, vector<16x4xbf16>
    tpu.vector_store %arg5[%c32, %c0_12], %7 {strides = array<i32>} : memref<256x36xbf16, #tpu.memory_space<vmem>>, vector<16x4xbf16>,
    %c0_13 = arith.constant 0 : index
    %c3 = arith.constant 3 : index
    %c0_14 = arith.constant 0 : index
    %c0_15 = arith.constant 0 : index
    %9 = vector.load %arg1[%c0_13, %c3, %c0_14, %c0_15] : memref<1x18x18x4xbf16, #tpu.memory_space<vmem>>, vector<1x1x16x4xbf16>
    %10 = vector.shape_cast %9 : vector<1x1x16x4xbf16> to vector<16x4xbf16>
    %c48 = arith.constant 48 : index
    %c0_16 = arith.constant 0 : index
    %11 = vector.load %arg5[%c48, %c0_16] : memref<256x36xbf16, #tpu.memory_space<vmem>>, vector<16x4xbf16>
    tpu.vector_store %arg5[%c48, %c0_16], %10 {strides = array<i32>} : memref<256x36xbf16, #tpu.memory_space<vmem>>, vector<16x4xbf16>,
    %c0_17 = arith.constant 0 : index
    %c4 = arith.constant 4 : index
    %c0_18 = arith.constant 0 : index
    %c0_19 = arith.constant 0 : index
    %12 = vector.load %arg1[%c0_17, %c4, %c0_18, %c0_19] : memref<1x18x18x4xbf16, #tpu.memory_space<vmem>>, vector<1x1x16x4xbf16>
    %13 = vector.shape_cast %12 : vector<1x1x16x4xbf16> to vector<16x4xbf16>
    %c64 = arith.constant 64 : index
    %c0_20 = arith.constant 0 : index
    %14 = vector.load %arg5[%c64, %c0_20] : memref<256x36xbf16, #tpu.memory_space<vmem>>, vector<16x4xbf16>
    tpu.vector_store %arg5[%c64, %c0_20], %13 {strides = array<i32>} : memref<256x36xbf16, #tpu.memory_space<vmem>>, vector<16x4xbf16>,
    %c0_21 = arith.constant 0 : index
    %c5 = arith.constant 5 : index
    %c0_22 = arith.constant 0 : index
    %c0_23 = arith.constant 0 : index
    %15 = vector.load %arg1[%c0_21, %c5, %c0_22, %c0_23] : memref<1x18x18x4xbf16, #tpu.memory_space<vmem>>, vector<1x1x16x4xbf16>
    %16 = vector.shape_cast %15 : vector<1x1x16x4xbf16> to vector<16x4xbf16>
    %c80 = arith.constant 80 : index
    %c0_24 = arith.constant 0 : index
    %17 = vector.load %arg5[%c80, %c0_24] : memref<256x36xbf16, #tpu.memory_space<vmem>>, vector<16x4xbf16>
    tpu.vector_store %arg5[%c80, %c0_24], %16 {strides = array<i32>} : memref<256x36xbf16, #tpu.memory_space<vmem>>, vector<16x4xbf16>,
    %c0_25 = arith.constant 0 : index
    %c6 = arith.constant 6 : index
    %c0_26 = arith.constant 0 : index
    %c0_27 = arith.constant 0 : index
    %18 = vector.load %arg1[%c0_25, %c6, %c0_26, %c0_27] : memref<1x18x18x4xbf16, #tpu.memory_space<vmem>>, vector<1x1x16x4xbf16>
    %19 = vector.shape_cast %18 : vector<1x1x16x4xbf16> to vector<16x4xbf16>
    %c96 = arith.constant 96 : index
    %c0_28 = arith.constant 0 : index
    %20 = vector.load %arg5[%c96, %c0_28] : memref<256x36xbf16, #tpu.memory_space<vmem>>, vector<16x4xbf16>
    tpu.vector_store %arg5[%c96, %c0_28], %19 {strides = array<i32>} : memref<256x36xbf16, #tpu.memory_space<vmem>>, vector<16x4xbf16>,
    %c0_29 = arith.constant 0 : index
    %c7 = arith.constant 7 : index
    %c0_30 = arith.constant 0 : index
    %c0_31 = arith.constant 0 : index
    %21 = vector.load %arg1[%c0_29, %c7, %c0_30, %c0_31] : memref<1x18x18x4xbf16, #tpu.memory_space<vmem>>, vector<1x1x16x4xbf16>
    %22 = vector.shape_cast %21 : vector<1x1x16x4xbf16> to vector<16x4xbf16>
    %c112 = arith.constant 112 : index
    %c0_32 = arith.constant 0 : index
    %23 = vector.load %arg5[%c112, %c0_32] : memref<256x36xbf16, #tpu.memory_space<vmem>>, vector<16x4xbf16>
    tpu.vector_store %arg5[%c112, %c0_32], %22 {strides = array<i32>} : memref<256x36xbf16, #tpu.memory_space<vmem>>, vector<16x4xbf16>,
    %c0_33 = arith.constant 0 : index
    %c8 = arith.constant 8 : index
    %c0_34 = arith.constant 0 : index
    %c0_35 = arith.constant 0 : index
    %24 = vector.load %arg1[%c0_33, %c8, %c0_34, %c0_35] : memref<1x18x18x4xbf16, #tpu.memory_space<vmem>>, vector<1x1x16x4xbf16>
    %25 = vector.shape_cast %24 : vector<1x1x16x4xbf16> to vector<16x4xbf16>
    %c128 = arith.constant 128 : index
    %c0_36 = arith.constant 0 : index
    %26 = vector.load %arg5[%c128, %c0_36] : memref<256x36xbf16, #tpu.memory_space<vmem>>, vector<16x4xbf16>
    tpu.vector_store %arg5[%c128, %c0_36], %25 {strides = array<i32>} : memref<256x36xbf16, #tpu.memory_space<vmem>>, vector<16x4xbf16>,
    %c0_37 = arith.constant 0 : index
    %c9 = arith.constant 9 : index
    %c0_38 = arith.constant 0 : index
    %c0_39 = arith.constant 0 : index
    %27 = vector.load %arg1[%c0_37, %c9, %c0_38, %c0_39] : memref<1x18x18x4xbf16, #tpu.memory_space<vmem>>, vector<1x1x16x4xbf16>
    %28 = vector.shape_cast %27 : vector<1x1x16x4xbf16> to vector<16x4xbf16>
    %c144 = arith.constant 144 : index
    %c0_40 = arith.constant 0 : index
    %29 = vector.load %arg5[%c144, %c0_40] : memref<256x36xbf16, #tpu.memory_space<vmem>>, vector<16x4xbf16>
    tpu.vector_store %arg5[%c144, %c0_40], %28 {strides = array<i32>} : memref<256x36xbf16, #tpu.memory_space<vmem>>, vector<16x4xbf16>,
    %c0_41 = arith.constant 0 : index
    %c10 = arith.constant 10 : index
    %c0_42 = arith.constant 0 : index
    %c0_43 = arith.constant 0 : index
    %30 = vector.load %arg1[%c0_41, %c10, %c0_42, %c0_43] : memref<1x18x18x4xbf16, #tpu.memory_space<vmem>>, vector<1x1x16x4xbf16>
    %31 = vector.shape_cast %30 : vector<1x1x16x4xbf16> to vector<16x4xbf16>
    %c160 = arith.constant 160 : index
    %c0_44 = arith.constant 0 : index
    %32 = vector.load %arg5[%c160, %c0_44] : memref<256x36xbf16, #tpu.memory_space<vmem>>, vector<16x4xbf16>
    tpu.vector_store %arg5[%c160, %c0_44], %31 {strides = array<i32>} : memref<256x36xbf16, #tpu.memory_space<vmem>>, vector<16x4xbf16>,
    %c0_45 = arith.constant 0 : index
    %c11 = arith.constant 11 : index
    %c0_46 = arith.constant 0 : index
    %c0_47 = arith.constant 0 : index
    %33 = vector.load %arg1[%c0_45, %c11, %c0_46, %c0_47] : memref<1x18x18x4xbf16, #tpu.memory_space<vmem>>, vector<1x1x16x4xbf16>
    %34 = vector.shape_cast %33 : vector<1x1x16x4xbf16> to vector<16x4xbf16>
    %c176 = arith.constant 176 : index
    %c0_48 = arith.constant 0 : index
    %35 = vector.load %arg5[%c176, %c0_48] : memref<256x36xbf16, #tpu.memory_space<vmem>>, vector<16x4xbf16>
    tpu.vector_store %arg5[%c176, %c0_48], %34 {strides = array<i32>} : memref<256x36xbf16, #tpu.memory_space<vmem>>, vector<16x4xbf16>,
    %c0_49 = arith.constant 0 : index
    %c12 = arith.constant 12 : index
    %c0_50 = arith.constant 0 : index
    %c0_51 = arith.constant 0 : index
    %36 = vector.load %arg1[%c0_49, %c12, %c0_50, %c0_51] : memref<1x18x18x4xbf16, #tpu.memory_space<vmem>>, vector<1x1x16x4xbf16>
    %37 = vector.shape_cast %36 : vector<1x1x16x4xbf16> to vector<16x4xbf16>
    %c192 = arith.constant 192 : index
    %c0_52 = arith.constant 0 : index
    %38 = vector.load %arg5[%c192, %c0_52] : memref<256x36xbf16, #tpu.memory_space<vmem>>, vector<16x4xbf16>
    tpu.vector_store %arg5[%c192, %c0_52], %37 {strides = array<i32>} : memref<256x36xbf16, #tpu.memory_space<vmem>>, vector<16x4xbf16>,
    %c0_53 = arith.constant 0 : index
    %c13 = arith.constant 13 : index
    %c0_54 = arith.constant 0 : index
    %c0_55 = arith.constant 0 : index
    %39 = vector.load %arg1[%c0_53, %c13, %c0_54, %c0_55] : memref<1x18x18x4xbf16, #tpu.memory_space<vmem>>, vector<1x1x16x4xbf16>
    %40 = vector.shape_cast %39 : vector<1x1x16x4xbf16> to vector<16x4xbf16>
    %c208 = arith.constant 208 : index
    %c0_56 = arith.constant 0 : index
    %41 = vector.load %arg5[%c208, %c0_56] : memref<256x36xbf16, #tpu.memory_space<vmem>>, vector<16x4xbf16>
    tpu.vector_store %arg5[%c208, %c0_56], %40 {strides = array<i32>} : memref<256x36xbf16, #tpu.memory_space<vmem>>, vector<16x4xbf16>,
    %c0_57 = arith.constant 0 : index
    %c14 = arith.constant 14 : index
    %c0_58 = arith.constant 0 : index
    %c0_59 = arith.constant 0 : index
    %42 = vector.load %arg1[%c0_57, %c14, %c0_58, %c0_59] : memref<1x18x18x4xbf16, #tpu.memory_space<vmem>>, vector<1x1x16x4xbf16>
    %43 = vector.shape_cast %42 : vector<1x1x16x4xbf16> to vector<16x4xbf16>
    %c224 = arith.constant 224 : index
    %c0_60 = arith.constant 0 : index
    %44 = vector.load %arg5[%c224, %c0_60] : memref<256x36xbf16, #tpu.memory_space<vmem>>, vector<16x4xbf16>
    tpu.vector_store %arg5[%c224, %c0_60], %43 {strides = array<i32>} : memref<256x36xbf16, #tpu.memory_space<vmem>>, vector<16x4xbf16>,
    %c0_61 = arith.constant 0 : index
    %c15 = arith.constant 15 : index
    %c0_62 = arith.constant 0 : index
    %c0_63 = arith.constant 0 : index
    %45 = vector.load %arg1[%c0_61, %c15, %c0_62, %c0_63] : memref<1x18x18x4xbf16, #tpu.memory_space<vmem>>, vector<1x1x16x4xbf16>
    %46 = vector.shape_cast %45 : vector<1x1x16x4xbf16> to vector<16x4xbf16>
    %c240 = arith.constant 240 : index
    %c0_64 = arith.constant 0 : index
    %47 = vector.load %arg5[%c240, %c0_64] : memref<256x36xbf16, #tpu.memory_space<vmem>>, vector<16x4xbf16>
    tpu.vector_store %arg5[%c240, %c0_64], %46 {strides = array<i32>} : memref<256x36xbf16, #tpu.memory_space<vmem>>, vector<16x4xbf16>,
    %c0_65 = arith.constant 0 : index
    %c0_66 = arith.constant 0 : index
    %c1_67 = arith.constant 1 : index
    %c0_68 = arith.constant 0 : index
    %48 = vector.load %arg1[%c0_65, %c0_66, %c1_67, %c0_68] : memref<1x18x18x4xbf16, #tpu.memory_space<vmem>>, vector<1x1x16x4xbf16>
    %49 = vector.shape_cast %48 : vector<1x1x16x4xbf16> to vector<16x4xbf16>
    %c0_69 = arith.constant 0 : index
    %c4_70 = arith.constant 4 : index
    %50 = vector.load %arg5[%c0_69, %c4_70] : memref<256x36xbf16, #tpu.memory_space<vmem>>, vector<16x4xbf16>
    tpu.vector_store %arg5[%c0_69, %c4_70], %49 {strides = array<i32>} : memref<256x36xbf16, #tpu.memory_space<vmem>>, vector<16x4xbf16>,
    %c0_71 = arith.constant 0 : index
    %c1_72 = arith.constant 1 : index
    %c1_73 = arith.constant 1 : index
    %c0_74 = arith.constant 0 : index
    %51 = vector.load %arg1[%c0_71, %c1_72, %c1_73, %c0_74] : memref<1x18x18x4xbf16, #tpu.memory_space<vmem>>, vector<1x1x16x4xbf16>
    %52 = vector.shape_cast %51 : vector<1x1x16x4xbf16> to vector<16x4xbf16>
    %c16_75 = arith.constant 16 : index
    %c4_76 = arith.constant 4 : index
    %53 = vector.load %arg5[%c16_75, %c4_76] : memref<256x36xbf16, #tpu.memory_space<vmem>>, vector<16x4xbf16>
    tpu.vector_store %arg5[%c16_75, %c4_76], %52 {strides = array<i32>} : memref<256x36xbf16, #tpu.memory_space<vmem>>, vector<16x4xbf16>,
    %c0_77 = arith.constant 0 : index
    %c2_78 = arith.constant 2 : index
    %c1_79 = arith.constant 1 : index
    %c0_80 = arith.constant 0 : index
    %54 = vector.load %arg1[%c0_77, %c2_78, %c1_79, %c0_80] : memref<1x18x18x4xbf16, #tpu.memory_space<vmem>>, vector<1x1x16x4xbf16>
    %55 = vector.shape_cast %54 : vector<1x1x16x4xbf16> to vector<16x4xbf16>
    %c32_81 = arith.constant 32 : index
    %c4_82 = arith.constant 4 : index
    %56 = vector.load %arg5[%c32_81, %c4_82] : memref<256x36xbf16, #tpu.memory_space<vmem>>, vector<16x4xbf16>
    tpu.vector_store %arg5[%c32_81, %c4_82], %55 {strides = array<i32>} : memref<256x36xbf16, #tpu.memory_space<vmem>>, vector<16x4xbf16>,
    %c0_83 = arith.constant 0 : index
    %c3_84 = arith.constant 3 : index
    %c1_85 = arith.constant 1 : index
    %c0_86 = arith.constant 0 : index
    %57 = vector.load %arg1[%c0_83, %c3_84, %c1_85, %c0_86] : memref<1x18x18x4xbf16, #tpu.memory_space<vmem>>, vector<1x1x16x4xbf16>
    %58 = vector.shape_cast %57 : vector<1x1x16x4xbf16> to vector<16x4xbf16>
    %c48_87 = arith.constant 48 : index
    %c4_88 = arith.constant 4 : index
    %59 = vector.load %arg5[%c48_87, %c4_88] : memref<256x36xbf16, #tpu.memory_space<vmem>>, vector<16x4xbf16>
    tpu.vector_store %arg5[%c48_87, %c4_88], %58 {strides = array<i32>} : memref<256x36xbf16, #tpu.memory_space<vmem>>, vector<16x4xbf16>,
    %c0_89 = arith.constant 0 : index
    %c4_90 = arith.constant 4 : index
    %c1_91 = arith.constant 1 : index
    %c0_92 = arith.constant 0 : index
    %60 = vector.load %arg1[%c0_89, %c4_90, %c1_91, %c0_92] : memref<1x18x18x4xbf16, #tpu.memory_space<vmem>>, vector<1x1x16x4xbf16>
    %61 = vector.shape_cast %60 : vector<1x1x16x4xbf16> to vector<16x4xbf16>
    %c64_93 = arith.constant 64 : index
    %c4_94 = arith.constant 4 : index
    %62 = vector.load %arg5[%c64_93, %c4_94] : memref<256x36xbf16, #tpu.memory_space<vmem>>, vector<16x4xbf16>
    tpu.vector_store %arg5[%c64_93, %c4_94], %61 {strides = array<i32>} : memref<256x36xbf16, #tpu.memory_space<vmem>>, vector<16x4xbf16>,
    %c0_95 = arith.constant 0 : index
    %c5_96 = arith.constant 5 : index
    %c1_97 = arith.constant 1 : index
    %c0_98 = arith.constant 0 : index
    %63 = vector.load %arg1[%c0_95, %c5_96, %c1_97, %c0_98] : memref<1x18x18x4xbf16, #tpu.memory_space<vmem>>, vector<1x1x16x4xbf16>
    %64 = vector.shape_cast %63 : vector<1x1x16x4xbf16> to vector<16x4xbf16>
    %c80_99 = arith.constant 80 : index
    %c4_100 = arith.constant 4 : index
    %65 = vector.load %arg5[%c80_99, %c4_100] : memref<256x36xbf16, #tpu.memory_space<vmem>>, vector<16x4xbf16>
    tpu.vector_store %arg5[%c80_99, %c4_100], %64 {strides = array<i32>} : memref<256x36xbf16, #tpu.memory_space<vmem>>, vector<16x4xbf16>,
    %c0_101 = arith.constant 0 : index
    %c6_102 = arith.constant 6 : index
    %c1_103 = arith.constant 1 : index
    %c0_104 = arith.constant 0 : index
    %66 = vector.load %arg1[%c0_101, %c6_102, %c1_103, %c0_104] : memref<1x18x18x4xbf16, #tpu.memory_space<vmem>>, vector<1x1x16x4xbf16>
    %67 = vector.shape_cast %66 : vector<1x1x16x4xbf16> to vector<16x4xbf16>
    %c96_105 = arith.constant 96 : index
    %c4_106 = arith.constant 4 : index
    %68 = vector.load %arg5[%c96_105, %c4_106] : memref<256x36xbf16, #tpu.memory_space<vmem>>, vector<16x4xbf16>
    tpu.vector_store %arg5[%c96_105, %c4_106], %67 {strides = array<i32>} : memref<256x36xbf16, #tpu.memory_space<vmem>>, vector<16x4xbf16>,
    %c0_107 = arith.constant 0 : index
    %c7_108 = arith.constant 7 : index
    %c1_109 = arith.constant 1 : index
    %c0_110 = arith.constant 0 : index
    %69 = vector.load %arg1[%c0_107, %c7_108, %c1_109, %c0_110] : memref<1x18x18x4xbf16, #tpu.memory_space<vmem>>, vector<1x1x16x4xbf16>
    %70 = vector.shape_cast %69 : vector<1x1x16x4xbf16> to vector<16x4xbf16>
    %c112_111 = arith.constant 112 : index
    %c4_112 = arith.constant 4 : index
    %71 = vector.load %arg5[%c112_111, %c4_112] : memref<256x36xbf16, #tpu.memory_space<vmem>>, vector<16x4xbf16>
    tpu.vector_store %arg5[%c112_111, %c4_112], %70 {strides = array<i32>} : memref<256x36xbf16, #tpu.memory_space<vmem>>, vector<16x4xbf16>,
    %c0_113 = arith.constant 0 : index
    %c8_114 = arith.constant 8 : index
    %c1_115 = arith.constant 1 : index
    %c0_116 = arith.constant 0 : index
    %72 = vector.load %arg1[%c0_113, %c8_114, %c1_115, %c0_116] : memref<1x18x18x4xbf16, #tpu.memory_space<vmem>>, vector<1x1x16x4xbf16>
    %73 = vector.shape_cast %72 : vector<1x1x16x4xbf16> to vector<16x4xbf16>
    %c128_117 = arith.constant 128 : index
    %c4_118 = arith.constant 4 : index
    %74 = vector.load %arg5[%c128_117, %c4_118] : memref<256x36xbf16, #tpu.memory_space<vmem>>, vector<16x4xbf16>
    tpu.vector_store %arg5[%c128_117, %c4_118], %73 {strides = array<i32>} : memref<256x36xbf16, #tpu.memory_space<vmem>>, vector<16x4xbf16>,
    %c0_119 = arith.constant 0 : index
    %c9_120 = arith.constant 9 : index
    %c1_121 = arith.constant 1 : index
    %c0_122 = arith.constant 0 : index
    %75 = vector.load %arg1[%c0_119, %c9_120, %c1_121, %c0_122] : memref<1x18x18x4xbf16, #tpu.memory_space<vmem>>, vector<1x1x16x4xbf16>
    %76 = vector.shape_cast %75 : vector<1x1x16x4xbf16> to vector<16x4xbf16>
    %c144_123 = arith.constant 144 : index
    %c4_124 = arith.constant 4 : index
    %77 = vector.load %arg5[%c144_123, %c4_124] : memref<256x36xbf16, #tpu.memory_space<vmem>>, vector<16x4xbf16>
    tpu.vector_store %arg5[%c144_123, %c4_124], %76 {strides = array<i32>} : memref<256x36xbf16, #tpu.memory_space<vmem>>, vector<16x4xbf16>,
    %c0_125 = arith.constant 0 : index
    %c10_126 = arith.constant 10 : index
    %c1_127 = arith.constant 1 : index
    %c0_128 = arith.constant 0 : index
    %78 = vector.load %arg1[%c0_125, %c10_126, %c1_127, %c0_128] : memref<1x18x18x4xbf16, #tpu.memory_space<vmem>>, vector<1x1x16x4xbf16>
    %79 = vector.shape_cast %78 : vector<1x1x16x4xbf16> to vector<16x4xbf16>
    %c160_129 = arith.constant 160 : index
    %c4_130 = arith.constant 4 : index
    %80 = vector.load %arg5[%c160_129, %c4_130] : memref<256x36xbf16, #tpu.memory_space<vmem>>, vector<16x4xbf16>
    tpu.vector_store %arg5[%c160_129, %c4_130], %79 {strides = array<i32>} : memref<256x36xbf16, #tpu.memory_space<vmem>>, vector<16x4xbf16>,
    %c0_131 = arith.constant 0 : index
    %c11_132 = arith.constant 11 : index
    %c1_133 = arith.constant 1 : index
    %c0_134 = arith.constant 0 : index
    %81 = vector.load %arg1[%c0_131, %c11_132, %c1_133, %c0_134] : memref<1x18x18x4xbf16, #tpu.memory_space<vmem>>, vector<1x1x16x4xbf16>
    %82 = vector.shape_cast %81 : vector<1x1x16x4xbf16> to vector<16x4xbf16>
    %c176_135 = arith.constant 176 : index
    %c4_136 = arith.constant 4 : index
    %83 = vector.load %arg5[%c176_135, %c4_136] : memref<256x36xbf16, #tpu.memory_space<vmem>>, vector<16x4xbf16>
    tpu.vector_store %arg5[%c176_135, %c4_136], %82 {strides = array<i32>} : memref<256x36xbf16, #tpu.memory_space<vmem>>, vector<16x4xbf16>,
    %c0_137 = arith.constant 0 : index
    %c12_138 = arith.constant 12 : index
    %c1_139 = arith.constant 1 : index
    %c0_140 = arith.constant 0 : index
    %84 = vector.load %arg1[%c0_137, %c12_138, %c1_139, %c0_140] : memref<1x18x18x4xbf16, #tpu.memory_space<vmem>>, vector<1x1x16x4xbf16>
    %85 = vector.shape_cast %84 : vector<1x1x16x4xbf16> to vector<16x4xbf16>
    %c192_141 = arith.constant 192 : index
    %c4_142 = arith.constant 4 : index
    %86 = vector.load %arg5[%c192_141, %c4_142] : memref<256x36xbf16, #tpu.memory_space<vmem>>, vector<16x4xbf16>
    tpu.vector_store %arg5[%c192_141, %c4_142], %85 {strides = array<i32>} : memref<256x36xbf16, #tpu.memory_space<vmem>>, vector<16x4xbf16>,
    %c0_143 = arith.constant 0 : index
    %c13_144 = arith.constant 13 : index
    %c1_145 = arith.constant 1 : index
    %c0_146 = arith.constant 0 : index
    %87 = vector.load %arg1[%c0_143, %c13_144, %c1_145, %c0_146] : memref<1x18x18x4xbf16, #tpu.memory_space<vmem>>, vector<1x1x16x4xbf16>
    %88 = vector.shape_cast %87 : vector<1x1x16x4xbf16> to vector<16x4xbf16>
    %c208_147 = arith.constant 208 : index
    %c4_148 = arith.constant 4 : index
    %89 = vector.load %arg5[%c208_147, %c4_148] : memref<256x36xbf16, #tpu.memory_space<vmem>>, vector<16x4xbf16>
    tpu.vector_store %arg5[%c208_147, %c4_148], %88 {strides = array<i32>} : memref<256x36xbf16, #tpu.memory_space<vmem>>, vector<16x4xbf16>,
    %c0_149 = arith.constant 0 : index
    %c14_150 = arith.constant 14 : index
    %c1_151 = arith.constant 1 : index
    %c0_152 = arith.constant 0 : index
    %90 = vector.load %arg1[%c0_149, %c14_150, %c1_151, %c0_152] : memref<1x18x18x4xbf16, #tpu.memory_space<vmem>>, vector<1x1x16x4xbf16>
    %91 = vector.shape_cast %90 : vector<1x1x16x4xbf16> to vector<16x4xbf16>
    %c224_153 = arith.constant 224 : index
    %c4_154 = arith.constant 4 : index
    %92 = vector.load %arg5[%c224_153, %c4_154] : memref<256x36xbf16, #tpu.memory_space<vmem>>, vector<16x4xbf16>
    tpu.vector_store %arg5[%c224_153, %c4_154], %91 {strides = array<i32>} : memref<256x36xbf16, #tpu.memory_space<vmem>>, vector<16x4xbf16>,
    %c0_155 = arith.constant 0 : index
    %c15_156 = arith.constant 15 : index
    %c1_157 = arith.constant 1 : index
    %c0_158 = arith.constant 0 : index
    %93 = vector.load %arg1[%c0_155, %c15_156, %c1_157, %c0_158] : memref<1x18x18x4xbf16, #tpu.memory_space<vmem>>, vector<1x1x16x4xbf16>
    %94 = vector.shape_cast %93 : vector<1x1x16x4xbf16> to vector<16x4xbf16>
    %c240_159 = arith.constant 240 : index
    %c4_160 = arith.constant 4 : index
    %95 = vector.load %arg5[%c240_159, %c4_160] : memref<256x36xbf16, #tpu.memory_space<vmem>>, vector<16x4xbf16>
    tpu.vector_store %arg5[%c240_159, %c4_160], %94 {strides = array<i32>} : memref<256x36xbf16, #tpu.memory_space<vmem>>, vector<16x4xbf16>,
    %c0_161 = arith.constant 0 : index
    %c0_162 = arith.constant 0 : index
    %c2_163 = arith.constant 2 : index
    %c0_164 = arith.constant 0 : index
    %96 = vector.load %arg1[%c0_161, %c0_162, %c2_163, %c0_164] : memref<1x18x18x4xbf16, #tpu.memory_space<vmem>>, vector<1x1x16x4xbf16>
    %97 = vector.shape_cast %96 : vector<1x1x16x4xbf16> to vector<16x4xbf16>
    %c0_165 = arith.constant 0 : index
    %c8_166 = arith.constant 8 : index
    %98 = vector.load %arg5[%c0_165, %c8_166] : memref<256x36xbf16, #tpu.memory_space<vmem>>, vector<16x4xbf16>
    tpu.vector_store %arg5[%c0_165, %c8_166], %97 {strides = array<i32>} : memref<256x36xbf16, #tpu.memory_space<vmem>>, vector<16x4xbf16>,
    %c0_167 = arith.constant 0 : index
    %c1_168 = arith.constant 1 : index
    %c2_169 = arith.constant 2 : index
    %c0_170 = arith.constant 0 : index
    %99 = vector.load %arg1[%c0_167, %c1_168, %c2_169, %c0_170] : memref<1x18x18x4xbf16, #tpu.memory_space<vmem>>, vector<1x1x16x4xbf16>
    %100 = vector.shape_cast %99 : vector<1x1x16x4xbf16> to vector<16x4xbf16>
    %c16_171 = arith.constant 16 : index
    %c8_172 = arith.constant 8 : index
    %101 = vector.load %arg5[%c16_171, %c8_172] : memref<256x36xbf16, #tpu.memory_space<vmem>>, vector<16x4xbf16>
    tpu.vector_store %arg5[%c16_171, %c8_172], %100 {strides = array<i32>} : memref<256x36xbf16, #tpu.memory_space<vmem>>, vector<16x4xbf16>,
    %c0_173 = arith.constant 0 : index
    %c2_174 = arith.constant 2 : index
    %c2_175 = arith.constant 2 : index
    %c0_176 = arith.constant 0 : index
    %102 = vector.load %arg1[%c0_173, %c2_174, %c2_175, %c0_176] : memref<1x18x18x4xbf16, #tpu.memory_space<vmem>>, vector<1x1x16x4xbf16>
    %103 = vector.shape_cast %102 : vector<1x1x16x4xbf16> to vector<16x4xbf16>
    %c32_177 = arith.constant 32 : index
    %c8_178 = arith.constant 8 : index
    %104 = vector.load %arg5[%c32_177, %c8_178] : memref<256x36xbf16, #tpu.memory_space<vmem>>, vector<16x4xbf16>
    tpu.vector_store %arg5[%c32_177, %c8_178], %103 {strides = array<i32>} : memref<256x36xbf16, #tpu.memory_space<vmem>>, vector<16x4xbf16>,
    %c0_179 = arith.constant 0 : index
    %c3_180 = arith.constant 3 : index
    %c2_181 = arith.constant 2 : index
    %c0_182 = arith.constant 0 : index
    %105 = vector.load %arg1[%c0_179, %c3_180, %c2_181, %c0_182] : memref<1x18x18x4xbf16, #tpu.memory_space<vmem>>, vector<1x1x16x4xbf16>
    %106 = vector.shape_cast %105 : vector<1x1x16x4xbf16> to vector<16x4xbf16>
    %c48_183 = arith.constant 48 : index
    %c8_184 = arith.constant 8 : index
    %107 = vector.load %arg5[%c48_183, %c8_184] : memref<256x36xbf16, #tpu.memory_space<vmem>>, vector<16x4xbf16>
    tpu.vector_store %arg5[%c48_183, %c8_184], %106 {strides = array<i32>} : memref<256x36xbf16, #tpu.memory_space<vmem>>, vector<16x4xbf16>,
    %c0_185 = arith.constant 0 : index
    %c4_186 = arith.constant 4 : index
    %c2_187 = arith.constant 2 : index
    %c0_188 = arith.constant 0 : index
    %108 = vector.load %arg1[%c0_185, %c4_186, %c2_187, %c0_188] : memref<1x18x18x4xbf16, #tpu.memory_space<vmem>>, vector<1x1x16x4xbf16>
    %109 = vector.shape_cast %108 : vector<1x1x16x4xbf16> to vector<16x4xbf16>
    %c64_189 = arith.constant 64 : index
    %c8_190 = arith.constant 8 : index
    %110 = vector.load %arg5[%c64_189, %c8_190] : memref<256x36xbf16, #tpu.memory_space<vmem>>, vector<16x4xbf16>
    tpu.vector_store %arg5[%c64_189, %c8_190], %109 {strides = array<i32>} : memref<256x36xbf16, #tpu.memory_space<vmem>>, vector<16x4xbf16>,
    %c0_191 = arith.constant 0 : index
    %c5_192 = arith.constant 5 : index
    %c2_193 = arith.constant 2 : index
    %c0_194 = arith.constant 0 : index
    %111 = vector.load %arg1[%c0_191, %c5_192, %c2_193, %c0_194] : memref<1x18x18x4xbf16, #tpu.memory_space<vmem>>, vector<1x1x16x4xbf16>
    %112 = vector.shape_cast %111 : vector<1x1x16x4xbf16> to vector<16x4xbf16>
    %c80_195 = arith.constant 80 : index
    %c8_196 = arith.constant 8 : index
    %113 = vector.load %arg5[%c80_195, %c8_196] : memref<256x36xbf16, #tpu.memory_space<vmem>>, vector<16x4xbf16>
    tpu.vector_store %arg5[%c80_195, %c8_196], %112 {strides = array<i32>} : memref<256x36xbf16, #tpu.memory_space<vmem>>, vector<16x4xbf16>,
    %c0_197 = arith.constant 0 : index
    %c6_198 = arith.constant 6 : index
    %c2_199 = arith.constant 2 : index
    %c0_200 = arith.constant 0 : index
    %114 = vector.load %arg1[%c0_197, %c6_198, %c2_199, %c0_200] : memref<1x18x18x4xbf16, #tpu.memory_space<vmem>>, vector<1x1x16x4xbf16>
    %115 = vector.shape_cast %114 : vector<1x1x16x4xbf16> to vector<16x4xbf16>
    %c96_201 = arith.constant 96 : index
    %c8_202 = arith.constant 8 : index
    %116 = vector.load %arg5[%c96_201, %c8_202] : memref<256x36xbf16, #tpu.memory_space<vmem>>, vector<16x4xbf16>
    tpu.vector_store %arg5[%c96_201, %c8_202], %115 {strides = array<i32>} : memref<256x36xbf16, #tpu.memory_space<vmem>>, vector<16x4xbf16>,
    %c0_203 = arith.constant 0 : index
    %c7_204 = arith.constant 7 : index
    %c2_205 = arith.constant 2 : index
    %c0_206 = arith.constant 0 : index
    %117 = vector.load %arg1[%c0_203, %c7_204, %c2_205, %c0_206] : memref<1x18x18x4xbf16, #tpu.memory_space<vmem>>, vector<1x1x16x4xbf16>
    %118 = vector.shape_cast %117 : vector<1x1x16x4xbf16> to vector<16x4xbf16>
    %c112_207 = arith.constant 112 : index
    %c8_208 = arith.constant 8 : index
    %119 = vector.load %arg5[%c112_207, %c8_208] : memref<256x36xbf16, #tpu.memory_space<vmem>>, vector<16x4xbf16>
    tpu.vector_store %arg5[%c112_207, %c8_208], %118 {strides = array<i32>} : memref<256x36xbf16, #tpu.memory_space<vmem>>, vector<16x4xbf16>,
    %c0_209 = arith.constant 0 : index
    %c8_210 = arith.constant 8 : index
    %c2_211 = arith.constant 2 : index
    %c0_212 = arith.constant 0 : index
    %120 = vector.load %arg1[%c0_209, %c8_210, %c2_211, %c0_212] : memref<1x18x18x4xbf16, #tpu.memory_space<vmem>>, vector<1x1x16x4xbf16>
    %121 = vector.shape_cast %120 : vector<1x1x16x4xbf16> to vector<16x4xbf16>
    %c128_213 = arith.constant 128 : index
    %c8_214 = arith.constant 8 : index
    %122 = vector.load %arg5[%c128_213, %c8_214] : memref<256x36xbf16, #tpu.memory_space<vmem>>, vector<16x4xbf16>
    tpu.vector_store %arg5[%c128_213, %c8_214], %121 {strides = array<i32>} : memref<256x36xbf16, #tpu.memory_space<vmem>>, vector<16x4xbf16>,
    %c0_215 = arith.constant 0 : index
    %c9_216 = arith.constant 9 : index
    %c2_217 = arith.constant 2 : index
    %c0_218 = arith.constant 0 : index
    %123 = vector.load %arg1[%c0_215, %c9_216, %c2_217, %c0_218] : memref<1x18x18x4xbf16, #tpu.memory_space<vmem>>, vector<1x1x16x4xbf16>
    %124 = vector.shape_cast %123 : vector<1x1x16x4xbf16> to vector<16x4xbf16>
    %c144_219 = arith.constant 144 : index
    %c8_220 = arith.constant 8 : index
    %125 = vector.load %arg5[%c144_219, %c8_220] : memref<256x36xbf16, #tpu.memory_space<vmem>>, vector<16x4xbf16>
    tpu.vector_store %arg5[%c144_219, %c8_220], %124 {strides = array<i32>} : memref<256x36xbf16, #tpu.memory_space<vmem>>, vector<16x4xbf16>,
    %c0_221 = arith.constant 0 : index
    %c10_222 = arith.constant 10 : index
    %c2_223 = arith.constant 2 : index
    %c0_224 = arith.constant 0 : index
    %126 = vector.load %arg1[%c0_221, %c10_222, %c2_223, %c0_224] : memref<1x18x18x4xbf16, #tpu.memory_space<vmem>>, vector<1x1x16x4xbf16>
    %127 = vector.shape_cast %126 : vector<1x1x16x4xbf16> to vector<16x4xbf16>
    %c160_225 = arith.constant 160 : index
    %c8_226 = arith.constant 8 : index
    %128 = vector.load %arg5[%c160_225, %c8_226] : memref<256x36xbf16, #tpu.memory_space<vmem>>, vector<16x4xbf16>
    tpu.vector_store %arg5[%c160_225, %c8_226], %127 {strides = array<i32>} : memref<256x36xbf16, #tpu.memory_space<vmem>>, vector<16x4xbf16>,
    %c0_227 = arith.constant 0 : index
    %c11_228 = arith.constant 11 : index
    %c2_229 = arith.constant 2 : index
    %c0_230 = arith.constant 0 : index
    %129 = vector.load %arg1[%c0_227, %c11_228, %c2_229, %c0_230] : memref<1x18x18x4xbf16, #tpu.memory_space<vmem>>, vector<1x1x16x4xbf16>
    %130 = vector.shape_cast %129 : vector<1x1x16x4xbf16> to vector<16x4xbf16>
    %c176_231 = arith.constant 176 : index
    %c8_232 = arith.constant 8 : index
    %131 = vector.load %arg5[%c176_231, %c8_232] : memref<256x36xbf16, #tpu.memory_space<vmem>>, vector<16x4xbf16>
    tpu.vector_store %arg5[%c176_231, %c8_232], %130 {strides = array<i32>} : memref<256x36xbf16, #tpu.memory_space<vmem>>, vector<16x4xbf16>,
    %c0_233 = arith.constant 0 : index
    %c12_234 = arith.constant 12 : index
    %c2_235 = arith.constant 2 : index
    %c0_236 = arith.constant 0 : index
    %132 = vector.load %arg1[%c0_233, %c12_234, %c2_235, %c0_236] : memref<1x18x18x4xbf16, #tpu.memory_space<vmem>>, vector<1x1x16x4xbf16>
    %133 = vector.shape_cast %132 : vector<1x1x16x4xbf16> to vector<16x4xbf16>
    %c192_237 = arith.constant 192 : index
    %c8_238 = arith.constant 8 : index
    %134 = vector.load %arg5[%c192_237, %c8_238] : memref<256x36xbf16, #tpu.memory_space<vmem>>, vector<16x4xbf16>
    tpu.vector_store %arg5[%c192_237, %c8_238], %133 {strides = array<i32>} : memref<256x36xbf16, #tpu.memory_space<vmem>>, vector<16x4xbf16>,
    %c0_239 = arith.constant 0 : index
    %c13_240 = arith.constant 13 : index
    %c2_241 = arith.constant 2 : index
    %c0_242 = arith.constant 0 : index
    %135 = vector.load %arg1[%c0_239, %c13_240, %c2_241, %c0_242] : memref<1x18x18x4xbf16, #tpu.memory_space<vmem>>, vector<1x1x16x4xbf16>
    %136 = vector.shape_cast %135 : vector<1x1x16x4xbf16> to vector<16x4xbf16>
    %c208_243 = arith.constant 208 : index
    %c8_244 = arith.constant 8 : index
    %137 = vector.load %arg5[%c208_243, %c8_244] : memref<256x36xbf16, #tpu.memory_space<vmem>>, vector<16x4xbf16>
    tpu.vector_store %arg5[%c208_243, %c8_244], %136 {strides = array<i32>} : memref<256x36xbf16, #tpu.memory_space<vmem>>, vector<16x4xbf16>,
    %c0_245 = arith.constant 0 : index
    %c14_246 = arith.constant 14 : index
    %c2_247 = arith.constant 2 : index
    %c0_248 = arith.constant 0 : index
    %138 = vector.load %arg1[%c0_245, %c14_246, %c2_247, %c0_248] : memref<1x18x18x4xbf16, #tpu.memory_space<vmem>>, vector<1x1x16x4xbf16>
    %139 = vector.shape_cast %138 : vector<1x1x16x4xbf16> to vector<16x4xbf16>
    %c224_249 = arith.constant 224 : index
    %c8_250 = arith.constant 8 : index
    %140 = vector.load %arg5[%c224_249, %c8_250] : memref<256x36xbf16, #tpu.memory_space<vmem>>, vector<16x4xbf16>
    tpu.vector_store %arg5[%c224_249, %c8_250], %139 {strides = array<i32>} : memref<256x36xbf16, #tpu.memory_space<vmem>>, vector<16x4xbf16>,
    %c0_251 = arith.constant 0 : index
    %c15_252 = arith.constant 15 : index
    %c2_253 = arith.constant 2 : index
    %c0_254 = arith.constant 0 : index
    %141 = vector.load %arg1[%c0_251, %c15_252, %c2_253, %c0_254] : memref<1x18x18x4xbf16, #tpu.memory_space<vmem>>, vector<1x1x16x4xbf16>
    %142 = vector.shape_cast %141 : vector<1x1x16x4xbf16> to vector<16x4xbf16>
    %c240_255 = arith.constant 240 : index
    %c8_256 = arith.constant 8 : index
    %143 = vector.load %arg5[%c240_255, %c8_256] : memref<256x36xbf16, #tpu.memory_space<vmem>>, vector<16x4xbf16>
    tpu.vector_store %arg5[%c240_255, %c8_256], %142 {strides = array<i32>} : memref<256x36xbf16, #tpu.memory_space<vmem>>, vector<16x4xbf16>,
    %c0_257 = arith.constant 0 : index
    %c1_258 = arith.constant 1 : index
    %c0_259 = arith.constant 0 : index
    %c0_260 = arith.constant 0 : index
    %144 = vector.load %arg1[%c0_257, %c1_258, %c0_259, %c0_260] : memref<1x18x18x4xbf16, #tpu.memory_space<vmem>>, vector<1x1x16x4xbf16>
    %145 = vector.shape_cast %144 : vector<1x1x16x4xbf16> to vector<16x4xbf16>
    %c0_261 = arith.constant 0 : index
    %c12_262 = arith.constant 12 : index
    %146 = vector.load %arg5[%c0_261, %c12_262] : memref<256x36xbf16, #tpu.memory_space<vmem>>, vector<16x4xbf16>
    tpu.vector_store %arg5[%c0_261, %c12_262], %145 {strides = array<i32>} : memref<256x36xbf16, #tpu.memory_space<vmem>>, vector<16x4xbf16>,
    %c0_263 = arith.constant 0 : index
    %c2_264 = arith.constant 2 : index
    %c0_265 = arith.constant 0 : index
    %c0_266 = arith.constant 0 : index
    %147 = vector.load %arg1[%c0_263, %c2_264, %c0_265, %c0_266] : memref<1x18x18x4xbf16, #tpu.memory_space<vmem>>, vector<1x1x16x4xbf16>
    %148 = vector.shape_cast %147 : vector<1x1x16x4xbf16> to vector<16x4xbf16>
    %c16_267 = arith.constant 16 : index
    %c12_268 = arith.constant 12 : index
    %149 = vector.load %arg5[%c16_267, %c12_268] : memref<256x36xbf16, #tpu.memory_space<vmem>>, vector<16x4xbf16>
    tpu.vector_store %arg5[%c16_267, %c12_268], %148 {strides = array<i32>} : memref<256x36xbf16, #tpu.memory_space<vmem>>, vector<16x4xbf16>,
    %c0_269 = arith.constant 0 : index
    %c3_270 = arith.constant 3 : index
    %c0_271 = arith.constant 0 : index
    %c0_272 = arith.constant 0 : index
    %150 = vector.load %arg1[%c0_269, %c3_270, %c0_271, %c0_272] : memref<1x18x18x4xbf16, #tpu.memory_space<vmem>>, vector<1x1x16x4xbf16>
    %151 = vector.shape_cast %150 : vector<1x1x16x4xbf16> to vector<16x4xbf16>
    %c32_273 = arith.constant 32 : index
    %c12_274 = arith.constant 12 : index
    %152 = vector.load %arg5[%c32_273, %c12_274] : memref<256x36xbf16, #tpu.memory_space<vmem>>, vector<16x4xbf16>
    tpu.vector_store %arg5[%c32_273, %c12_274], %151 {strides = array<i32>} : memref<256x36xbf16, #tpu.memory_space<vmem>>, vector<16x4xbf16>,
    %c0_275 = arith.constant 0 : index
    %c4_276 = arith.constant 4 : index
    %c0_277 = arith.constant 0 : index
    %c0_278 = arith.constant 0 : index
    %153 = vector.load %arg1[%c0_275, %c4_276, %c0_277, %c0_278] : memref<1x18x18x4xbf16, #tpu.memory_space<vmem>>, vector<1x1x16x4xbf16>
    %154 = vector.shape_cast %153 : vector<1x1x16x4xbf16> to vector<16x4xbf16>
    %c48_279 = arith.constant 48 : index
    %c12_280 = arith.constant 12 : index
    %155 = vector.load %arg5[%c48_279, %c12_280] : memref<256x36xbf16, #tpu.memory_space<vmem>>, vector<16x4xbf16>
    tpu.vector_store %arg5[%c48_279, %c12_280], %154 {strides = array<i32>} : memref<256x36xbf16, #tpu.memory_space<vmem>>, vector<16x4xbf16>,
    %c0_281 = arith.constant 0 : index
    %c5_282 = arith.constant 5 : index
    %c0_283 = arith.constant 0 : index
    %c0_284 = arith.constant 0 : index
    %156 = vector.load %arg1[%c0_281, %c5_282, %c0_283, %c0_284] : memref<1x18x18x4xbf16, #tpu.memory_space<vmem>>, vector<1x1x16x4xbf16>
    %157 = vector.shape_cast %156 : vector<1x1x16x4xbf16> to vector<16x4xbf16>
    %c64_285 = arith.constant 64 : index
    %c12_286 = arith.constant 12 : index
    %158 = vector.load %arg5[%c64_285, %c12_286] : memref<256x36xbf16, #tpu.memory_space<vmem>>, vector<16x4xbf16>
    tpu.vector_store %arg5[%c64_285, %c12_286], %157 {strides = array<i32>} : memref<256x36xbf16, #tpu.memory_space<vmem>>, vector<16x4xbf16>,
    %c0_287 = arith.constant 0 : index
    %c6_288 = arith.constant 6 : index
    %c0_289 = arith.constant 0 : index
    %c0_290 = arith.constant 0 : index
    %159 = vector.load %arg1[%c0_287, %c6_288, %c0_289, %c0_290] : memref<1x18x18x4xbf16, #tpu.memory_space<vmem>>, vector<1x1x16x4xbf16>
    %160 = vector.shape_cast %159 : vector<1x1x16x4xbf16> to vector<16x4xbf16>
    %c80_291 = arith.constant 80 : index
    %c12_292 = arith.constant 12 : index
    %161 = vector.load %arg5[%c80_291, %c12_292] : memref<256x36xbf16, #tpu.memory_space<vmem>>, vector<16x4xbf16>
    tpu.vector_store %arg5[%c80_291, %c12_292], %160 {strides = array<i32>} : memref<256x36xbf16, #tpu.memory_space<vmem>>, vector<16x4xbf16>,
    %c0_293 = arith.constant 0 : index
    %c7_294 = arith.constant 7 : index
    %c0_295 = arith.constant 0 : index
    %c0_296 = arith.constant 0 : index
    %162 = vector.load %arg1[%c0_293, %c7_294, %c0_295, %c0_296] : memref<1x18x18x4xbf16, #tpu.memory_space<vmem>>, vector<1x1x16x4xbf16>
    %163 = vector.shape_cast %162 : vector<1x1x16x4xbf16> to vector<16x4xbf16>
    %c96_297 = arith.constant 96 : index
    %c12_298 = arith.constant 12 : index
    %164 = vector.load %arg5[%c96_297, %c12_298] : memref<256x36xbf16, #tpu.memory_space<vmem>>, vector<16x4xbf16>
    tpu.vector_store %arg5[%c96_297, %c12_298], %163 {strides = array<i32>} : memref<256x36xbf16, #tpu.memory_space<vmem>>, vector<16x4xbf16>,
    %c0_299 = arith.constant 0 : index
    %c8_300 = arith.constant 8 : index
    %c0_301 = arith.constant 0 : index
    %c0_302 = arith.constant 0 : index
    %165 = vector.load %arg1[%c0_299, %c8_300, %c0_301, %c0_302] : memref<1x18x18x4xbf16, #tpu.memory_space<vmem>>, vector<1x1x16x4xbf16>
    %166 = vector.shape_cast %165 : vector<1x1x16x4xbf16> to vector<16x4xbf16>
    %c112_303 = arith.constant 112 : index
    %c12_304 = arith.constant 12 : index
    %167 = vector.load %arg5[%c112_303, %c12_304] : memref<256x36xbf16, #tpu.memory_space<vmem>>, vector<16x4xbf16>
    tpu.vector_store %arg5[%c112_303, %c12_304], %166 {strides = array<i32>} : memref<256x36xbf16, #tpu.memory_space<vmem>>, vector<16x4xbf16>,
    %c0_305 = arith.constant 0 : index
    %c9_306 = arith.constant 9 : index
    %c0_307 = arith.constant 0 : index
    %c0_308 = arith.constant 0 : index
    %168 = vector.load %arg1[%c0_305, %c9_306, %c0_307, %c0_308] : memref<1x18x18x4xbf16, #tpu.memory_space<vmem>>, vector<1x1x16x4xbf16>
    %169 = vector.shape_cast %168 : vector<1x1x16x4xbf16> to vector<16x4xbf16>
    %c128_309 = arith.constant 128 : index
    %c12_310 = arith.constant 12 : index
    %170 = vector.load %arg5[%c128_309, %c12_310] : memref<256x36xbf16, #tpu.memory_space<vmem>>, vector<16x4xbf16>
    tpu.vector_store %arg5[%c128_309, %c12_310], %169 {strides = array<i32>} : memref<256x36xbf16, #tpu.memory_space<vmem>>, vector<16x4xbf16>,
    %c0_311 = arith.constant 0 : index
    %c10_312 = arith.constant 10 : index
    %c0_313 = arith.constant 0 : index
    %c0_314 = arith.constant 0 : index
    %171 = vector.load %arg1[%c0_311, %c10_312, %c0_313, %c0_314] : memref<1x18x18x4xbf16, #tpu.memory_space<vmem>>, vector<1x1x16x4xbf16>
    %172 = vector.shape_cast %171 : vector<1x1x16x4xbf16> to vector<16x4xbf16>
    %c144_315 = arith.constant 144 : index
    %c12_316 = arith.constant 12 : index
    %173 = vector.load %arg5[%c144_315, %c12_316] : memref<256x36xbf16, #tpu.memory_space<vmem>>, vector<16x4xbf16>
    tpu.vector_store %arg5[%c144_315, %c12_316], %172 {strides = array<i32>} : memref<256x36xbf16, #tpu.memory_space<vmem>>, vector<16x4xbf16>,
    %c0_317 = arith.constant 0 : index
    %c11_318 = arith.constant 11 : index
    %c0_319 = arith.constant 0 : index
    %c0_320 = arith.constant 0 : index
    %174 = vector.load %arg1[%c0_317, %c11_318, %c0_319, %c0_320] : memref<1x18x18x4xbf16, #tpu.memory_space<vmem>>, vector<1x1x16x4xbf16>
    %175 = vector.shape_cast %174 : vector<1x1x16x4xbf16> to vector<16x4xbf16>
    %c160_321 = arith.constant 160 : index
    %c12_322 = arith.constant 12 : index
    %176 = vector.load %arg5[%c160_321, %c12_322] : memref<256x36xbf16, #tpu.memory_space<vmem>>, vector<16x4xbf16>
    tpu.vector_store %arg5[%c160_321, %c12_322], %175 {strides = array<i32>} : memref<256x36xbf16, #tpu.memory_space<vmem>>, vector<16x4xbf16>,
    %c0_323 = arith.constant 0 : index
    %c12_324 = arith.constant 12 : index
    %c0_325 = arith.constant 0 : index
    %c0_326 = arith.constant 0 : index
    %177 = vector.load %arg1[%c0_323, %c12_324, %c0_325, %c0_326] : memref<1x18x18x4xbf16, #tpu.memory_space<vmem>>, vector<1x1x16x4xbf16>
    %178 = vector.shape_cast %177 : vector<1x1x16x4xbf16> to vector<16x4xbf16>
    %c176_327 = arith.constant 176 : index
    %c12_328 = arith.constant 12 : index
    %179 = vector.load %arg5[%c176_327, %c12_328] : memref<256x36xbf16, #tpu.memory_space<vmem>>, vector<16x4xbf16>
    tpu.vector_store %arg5[%c176_327, %c12_328], %178 {strides = array<i32>} : memref<256x36xbf16, #tpu.memory_space<vmem>>, vector<16x4xbf16>,
    %c0_329 = arith.constant 0 : index
    %c13_330 = arith.constant 13 : index
    %c0_331 = arith.constant 0 : index
    %c0_332 = arith.constant 0 : index
    %180 = vector.load %arg1[%c0_329, %c13_330, %c0_331, %c0_332] : memref<1x18x18x4xbf16, #tpu.memory_space<vmem>>, vector<1x1x16x4xbf16>
    %181 = vector.shape_cast %180 : vector<1x1x16x4xbf16> to vector<16x4xbf16>
    %c192_333 = arith.constant 192 : index
    %c12_334 = arith.constant 12 : index
    %182 = vector.load %arg5[%c192_333, %c12_334] : memref<256x36xbf16, #tpu.memory_space<vmem>>, vector<16x4xbf16>
    tpu.vector_store %arg5[%c192_333, %c12_334], %181 {strides = array<i32>} : memref<256x36xbf16, #tpu.memory_space<vmem>>, vector<16x4xbf16>,
    %c0_335 = arith.constant 0 : index
    %c14_336 = arith.constant 14 : index
    %c0_337 = arith.constant 0 : index
    %c0_338 = arith.constant 0 : index
    %183 = vector.load %arg1[%c0_335, %c14_336, %c0_337, %c0_338] : memref<1x18x18x4xbf16, #tpu.memory_space<vmem>>, vector<1x1x16x4xbf16>
    %184 = vector.shape_cast %183 : vector<1x1x16x4xbf16> to vector<16x4xbf16>
    %c208_339 = arith.constant 208 : index
    %c12_340 = arith.constant 12 : index
    %185 = vector.load %arg5[%c208_339, %c12_340] : memref<256x36xbf16, #tpu.memory_space<vmem>>, vector<16x4xbf16>
    tpu.vector_store %arg5[%c208_339, %c12_340], %184 {strides = array<i32>} : memref<256x36xbf16, #tpu.memory_space<vmem>>, vector<16x4xbf16>,
    %c0_341 = arith.constant 0 : index
    %c15_342 = arith.constant 15 : index
    %c0_343 = arith.constant 0 : index
    %c0_344 = arith.constant 0 : index
    %186 = vector.load %arg1[%c0_341, %c15_342, %c0_343, %c0_344] : memref<1x18x18x4xbf16, #tpu.memory_space<vmem>>, vector<1x1x16x4xbf16>
    %187 = vector.shape_cast %186 : vector<1x1x16x4xbf16> to vector<16x4xbf16>
    %c224_345 = arith.constant 224 : index
    %c12_346 = arith.constant 12 : index
    %188 = vector.load %arg5[%c224_345, %c12_346] : memref<256x36xbf16, #tpu.memory_space<vmem>>, vector<16x4xbf16>
    tpu.vector_store %arg5[%c224_345, %c12_346], %187 {strides = array<i32>} : memref<256x36xbf16, #tpu.memory_space<vmem>>, vector<16x4xbf16>,
    %c0_347 = arith.constant 0 : index
    %c16_348 = arith.constant 16 : index
    %c0_349 = arith.constant 0 : index
    %c0_350 = arith.constant 0 : index
    %189 = vector.load %arg1[%c0_347, %c16_348, %c0_349, %c0_350] : memref<1x18x18x4xbf16, #tpu.memory_space<vmem>>, vector<1x1x16x4xbf16>
    %190 = vector.shape_cast %189 : vector<1x1x16x4xbf16> to vector<16x4xbf16>
    %c240_351 = arith.constant 240 : index
    %c12_352 = arith.constant 12 : index
    %191 = vector.load %arg5[%c240_351, %c12_352] : memref<256x36xbf16, #tpu.memory_space<vmem>>, vector<16x4xbf16>
    tpu.vector_store %arg5[%c240_351, %c12_352], %190 {strides = array<i32>} : memref<256x36xbf16, #tpu.memory_space<vmem>>, vector<16x4xbf16>,
    %c0_353 = arith.constant 0 : index
    %c1_354 = arith.constant 1 : index
    %c1_355 = arith.constant 1 : index
    %c0_356 = arith.constant 0 : index
    %192 = vector.load %arg1[%c0_353, %c1_354, %c1_355, %c0_356] : memref<1x18x18x4xbf16, #tpu.memory_space<vmem>>, vector<1x1x16x4xbf16>
    %193 = vector.shape_cast %192 : vector<1x1x16x4xbf16> to vector<16x4xbf16>
    %c0_357 = arith.constant 0 : index
    %c16_358 = arith.constant 16 : index
    %194 = vector.load %arg5[%c0_357, %c16_358] : memref<256x36xbf16, #tpu.memory_space<vmem>>, vector<16x4xbf16>
    tpu.vector_store %arg5[%c0_357, %c16_358], %193 {strides = array<i32>} : memref<256x36xbf16, #tpu.memory_space<vmem>>, vector<16x4xbf16>,
    %c0_359 = arith.constant 0 : index
    %c2_360 = arith.constant 2 : index
    %c1_361 = arith.constant 1 : index
    %c0_362 = arith.constant 0 : index
    %195 = vector.load %arg1[%c0_359, %c2_360, %c1_361, %c0_362] : memref<1x18x18x4xbf16, #tpu.memory_space<vmem>>, vector<1x1x16x4xbf16>
    %196 = vector.shape_cast %195 : vector<1x1x16x4xbf16> to vector<16x4xbf16>
    %c16_363 = arith.constant 16 : index
    %c16_364 = arith.constant 16 : index
    %197 = vector.load %arg5[%c16_363, %c16_364] : memref<256x36xbf16, #tpu.memory_space<vmem>>, vector<16x4xbf16>
    tpu.vector_store %arg5[%c16_363, %c16_364], %196 {strides = array<i32>} : memref<256x36xbf16, #tpu.memory_space<vmem>>, vector<16x4xbf16>,
    %c0_365 = arith.constant 0 : index
    %c3_366 = arith.constant 3 : index
    %c1_367 = arith.constant 1 : index
    %c0_368 = arith.constant 0 : index
    %198 = vector.load %arg1[%c0_365, %c3_366, %c1_367, %c0_368] : memref<1x18x18x4xbf16, #tpu.memory_space<vmem>>, vector<1x1x16x4xbf16>
    %199 = vector.shape_cast %198 : vector<1x1x16x4xbf16> to vector<16x4xbf16>
    %c32_369 = arith.constant 32 : index
    %c16_370 = arith.constant 16 : index
    %200 = vector.load %arg5[%c32_369, %c16_370] : memref<256x36xbf16, #tpu.memory_space<vmem>>, vector<16x4xbf16>
    tpu.vector_store %arg5[%c32_369, %c16_370], %199 {strides = array<i32>} : memref<256x36xbf16, #tpu.memory_space<vmem>>, vector<16x4xbf16>,
    %c0_371 = arith.constant 0 : index
    %c4_372 = arith.constant 4 : index
    %c1_373 = arith.constant 1 : index
    %c0_374 = arith.constant 0 : index
    %201 = vector.load %arg1[%c0_371, %c4_372, %c1_373, %c0_374] : memref<1x18x18x4xbf16, #tpu.memory_space<vmem>>, vector<1x1x16x4xbf16>
    %202 = vector.shape_cast %201 : vector<1x1x16x4xbf16> to vector<16x4xbf16>
    %c48_375 = arith.constant 48 : index
    %c16_376 = arith.constant 16 : index
    %203 = vector.load %arg5[%c48_375, %c16_376] : memref<256x36xbf16, #tpu.memory_space<vmem>>, vector<16x4xbf16>
    tpu.vector_store %arg5[%c48_375, %c16_376], %202 {strides = array<i32>} : memref<256x36xbf16, #tpu.memory_space<vmem>>, vector<16x4xbf16>,
    %c0_377 = arith.constant 0 : index
    %c5_378 = arith.constant 5 : index
    %c1_379 = arith.constant 1 : index
    %c0_380 = arith.constant 0 : index
    %204 = vector.load %arg1[%c0_377, %c5_378, %c1_379, %c0_380] : memref<1x18x18x4xbf16, #tpu.memory_space<vmem>>, vector<1x1x16x4xbf16>
    %205 = vector.shape_cast %204 : vector<1x1x16x4xbf16> to vector<16x4xbf16>
    %c64_381 = arith.constant 64 : index
    %c16_382 = arith.constant 16 : index
    %206 = vector.load %arg5[%c64_381, %c16_382] : memref<256x36xbf16, #tpu.memory_space<vmem>>, vector<16x4xbf16>
    tpu.vector_store %arg5[%c64_381, %c16_382], %205 {strides = array<i32>} : memref<256x36xbf16, #tpu.memory_space<vmem>>, vector<16x4xbf16>,
    %c0_383 = arith.constant 0 : index
    %c6_384 = arith.constant 6 : index
    %c1_385 = arith.constant 1 : index
    %c0_386 = arith.constant 0 : index
    %207 = vector.load %arg1[%c0_383, %c6_384, %c1_385, %c0_386] : memref<1x18x18x4xbf16, #tpu.memory_space<vmem>>, vector<1x1x16x4xbf16>
    %208 = vector.shape_cast %207 : vector<1x1x16x4xbf16> to vector<16x4xbf16>
    %c80_387 = arith.constant 80 : index
    %c16_388 = arith.constant 16 : index
    %209 = vector.load %arg5[%c80_387, %c16_388] : memref<256x36xbf16, #tpu.memory_space<vmem>>, vector<16x4xbf16>
    tpu.vector_store %arg5[%c80_387, %c16_388], %208 {strides = array<i32>} : memref<256x36xbf16, #tpu.memory_space<vmem>>, vector<16x4xbf16>,
    %c0_389 = arith.constant 0 : index
    %c7_390 = arith.constant 7 : index
    %c1_391 = arith.constant 1 : index
    %c0_392 = arith.constant 0 : index
    %210 = vector.load %arg1[%c0_389, %c7_390, %c1_391, %c0_392] : memref<1x18x18x4xbf16, #tpu.memory_space<vmem>>, vector<1x1x16x4xbf16>
    %211 = vector.shape_cast %210 : vector<1x1x16x4xbf16> to vector<16x4xbf16>
    %c96_393 = arith.constant 96 : index
    %c16_394 = arith.constant 16 : index
    %212 = vector.load %arg5[%c96_393, %c16_394] : memref<256x36xbf16, #tpu.memory_space<vmem>>, vector<16x4xbf16>
    tpu.vector_store %arg5[%c96_393, %c16_394], %211 {strides = array<i32>} : memref<256x36xbf16, #tpu.memory_space<vmem>>, vector<16x4xbf16>,
    %c0_395 = arith.constant 0 : index
    %c8_396 = arith.constant 8 : index
    %c1_397 = arith.constant 1 : index
    %c0_398 = arith.constant 0 : index
    %213 = vector.load %arg1[%c0_395, %c8_396, %c1_397, %c0_398] : memref<1x18x18x4xbf16, #tpu.memory_space<vmem>>, vector<1x1x16x4xbf16>
    %214 = vector.shape_cast %213 : vector<1x1x16x4xbf16> to vector<16x4xbf16>
    %c112_399 = arith.constant 112 : index
    %c16_400 = arith.constant 16 : index
    %215 = vector.load %arg5[%c112_399, %c16_400] : memref<256x36xbf16, #tpu.memory_space<vmem>>, vector<16x4xbf16>
    tpu.vector_store %arg5[%c112_399, %c16_400], %214 {strides = array<i32>} : memref<256x36xbf16, #tpu.memory_space<vmem>>, vector<16x4xbf16>,
    %c0_401 = arith.constant 0 : index
    %c9_402 = arith.constant 9 : index
    %c1_403 = arith.constant 1 : index
    %c0_404 = arith.constant 0 : index
    %216 = vector.load %arg1[%c0_401, %c9_402, %c1_403, %c0_404] : memref<1x18x18x4xbf16, #tpu.memory_space<vmem>>, vector<1x1x16x4xbf16>
    %217 = vector.shape_cast %216 : vector<1x1x16x4xbf16> to vector<16x4xbf16>
    %c128_405 = arith.constant 128 : index
    %c16_406 = arith.constant 16 : index
    %218 = vector.load %arg5[%c128_405, %c16_406] : memref<256x36xbf16, #tpu.memory_space<vmem>>, vector<16x4xbf16>
    tpu.vector_store %arg5[%c128_405, %c16_406], %217 {strides = array<i32>} : memref<256x36xbf16, #tpu.memory_space<vmem>>, vector<16x4xbf16>,
    %c0_407 = arith.constant 0 : index
    %c10_408 = arith.constant 10 : index
    %c1_409 = arith.constant 1 : index
    %c0_410 = arith.constant 0 : index
    %219 = vector.load %arg1[%c0_407, %c10_408, %c1_409, %c0_410] : memref<1x18x18x4xbf16, #tpu.memory_space<vmem>>, vector<1x1x16x4xbf16>
    %220 = vector.shape_cast %219 : vector<1x1x16x4xbf16> to vector<16x4xbf16>
    %c144_411 = arith.constant 144 : index
    %c16_412 = arith.constant 16 : index
    %221 = vector.load %arg5[%c144_411, %c16_412] : memref<256x36xbf16, #tpu.memory_space<vmem>>, vector<16x4xbf16>
    tpu.vector_store %arg5[%c144_411, %c16_412], %220 {strides = array<i32>} : memref<256x36xbf16, #tpu.memory_space<vmem>>, vector<16x4xbf16>,
    %c0_413 = arith.constant 0 : index
    %c11_414 = arith.constant 11 : index
    %c1_415 = arith.constant 1 : index
    %c0_416 = arith.constant 0 : index
    %222 = vector.load %arg1[%c0_413, %c11_414, %c1_415, %c0_416] : memref<1x18x18x4xbf16, #tpu.memory_space<vmem>>, vector<1x1x16x4xbf16>
    %223 = vector.shape_cast %222 : vector<1x1x16x4xbf16> to vector<16x4xbf16>
    %c160_417 = arith.constant 160 : index
    %c16_418 = arith.constant 16 : index
    %224 = vector.load %arg5[%c160_417, %c16_418] : memref<256x36xbf16, #tpu.memory_space<vmem>>, vector<16x4xbf16>
    tpu.vector_store %arg5[%c160_417, %c16_418], %223 {strides = array<i32>} : memref<256x36xbf16, #tpu.memory_space<vmem>>, vector<16x4xbf16>,
    %c0_419 = arith.constant 0 : index
    %c12_420 = arith.constant 12 : index
    %c1_421 = arith.constant 1 : index
    %c0_422 = arith.constant 0 : index
    %225 = vector.load %arg1[%c0_419, %c12_420, %c1_421, %c0_422] : memref<1x18x18x4xbf16, #tpu.memory_space<vmem>>, vector<1x1x16x4xbf16>
    %226 = vector.shape_cast %225 : vector<1x1x16x4xbf16> to vector<16x4xbf16>
    %c176_423 = arith.constant 176 : index
    %c16_424 = arith.constant 16 : index
    %227 = vector.load %arg5[%c176_423, %c16_424] : memref<256x36xbf16, #tpu.memory_space<vmem>>, vector<16x4xbf16>
    tpu.vector_store %arg5[%c176_423, %c16_424], %226 {strides = array<i32>} : memref<256x36xbf16, #tpu.memory_space<vmem>>, vector<16x4xbf16>,
    %c0_425 = arith.constant 0 : index
    %c13_426 = arith.constant 13 : index
    %c1_427 = arith.constant 1 : index
    %c0_428 = arith.constant 0 : index
    %228 = vector.load %arg1[%c0_425, %c13_426, %c1_427, %c0_428] : memref<1x18x18x4xbf16, #tpu.memory_space<vmem>>, vector<1x1x16x4xbf16>
    %229 = vector.shape_cast %228 : vector<1x1x16x4xbf16> to vector<16x4xbf16>
    %c192_429 = arith.constant 192 : index
    %c16_430 = arith.constant 16 : index
    %230 = vector.load %arg5[%c192_429, %c16_430] : memref<256x36xbf16, #tpu.memory_space<vmem>>, vector<16x4xbf16>
    tpu.vector_store %arg5[%c192_429, %c16_430], %229 {strides = array<i32>} : memref<256x36xbf16, #tpu.memory_space<vmem>>, vector<16x4xbf16>,
    %c0_431 = arith.constant 0 : index
    %c14_432 = arith.constant 14 : index
    %c1_433 = arith.constant 1 : index
    %c0_434 = arith.constant 0 : index
    %231 = vector.load %arg1[%c0_431, %c14_432, %c1_433, %c0_434] : memref<1x18x18x4xbf16, #tpu.memory_space<vmem>>, vector<1x1x16x4xbf16>
    %232 = vector.shape_cast %231 : vector<1x1x16x4xbf16> to vector<16x4xbf16>
    %c208_435 = arith.constant 208 : index
    %c16_436 = arith.constant 16 : index
    %233 = vector.load %arg5[%c208_435, %c16_436] : memref<256x36xbf16, #tpu.memory_space<vmem>>, vector<16x4xbf16>
    tpu.vector_store %arg5[%c208_435, %c16_436], %232 {strides = array<i32>} : memref<256x36xbf16, #tpu.memory_space<vmem>>, vector<16x4xbf16>,
    %c0_437 = arith.constant 0 : index
    %c15_438 = arith.constant 15 : index
    %c1_439 = arith.constant 1 : index
    %c0_440 = arith.constant 0 : index
    %234 = vector.load %arg1[%c0_437, %c15_438, %c1_439, %c0_440] : memref<1x18x18x4xbf16, #tpu.memory_space<vmem>>, vector<1x1x16x4xbf16>
    %235 = vector.shape_cast %234 : vector<1x1x16x4xbf16> to vector<16x4xbf16>
    %c224_441 = arith.constant 224 : index
    %c16_442 = arith.constant 16 : index
    %236 = vector.load %arg5[%c224_441, %c16_442] : memref<256x36xbf16, #tpu.memory_space<vmem>>, vector<16x4xbf16>
    tpu.vector_store %arg5[%c224_441, %c16_442], %235 {strides = array<i32>} : memref<256x36xbf16, #tpu.memory_space<vmem>>, vector<16x4xbf16>,
    %c0_443 = arith.constant 0 : index
    %c16_444 = arith.constant 16 : index
    %c1_445 = arith.constant 1 : index
    %c0_446 = arith.constant 0 : index
    %237 = vector.load %arg1[%c0_443, %c16_444, %c1_445, %c0_446] : memref<1x18x18x4xbf16, #tpu.memory_space<vmem>>, vector<1x1x16x4xbf16>
    %238 = vector.shape_cast %237 : vector<1x1x16x4xbf16> to vector<16x4xbf16>
    %c240_447 = arith.constant 240 : index
    %c16_448 = arith.constant 16 : index
    %239 = vector.load %arg5[%c240_447, %c16_448] : memref<256x36xbf16, #tpu.memory_space<vmem>>, vector<16x4xbf16>
    tpu.vector_store %arg5[%c240_447, %c16_448], %238 {strides = array<i32>} : memref<256x36xbf16, #tpu.memory_space<vmem>>, vector<16x4xbf16>,
    %c0_449 = arith.constant 0 : index
    %c1_450 = arith.constant 1 : index
    %c2_451 = arith.constant 2 : index
    %c0_452 = arith.constant 0 : index
    %240 = vector.load %arg1[%c0_449, %c1_450, %c2_451, %c0_452] : memref<1x18x18x4xbf16, #tpu.memory_space<vmem>>, vector<1x1x16x4xbf16>
    %241 = vector.shape_cast %240 : vector<1x1x16x4xbf16> to vector<16x4xbf16>
    %c0_453 = arith.constant 0 : index
    %c20 = arith.constant 20 : index
    %242 = vector.load %arg5[%c0_453, %c20] : memref<256x36xbf16, #tpu.memory_space<vmem>>, vector<16x4xbf16>
    tpu.vector_store %arg5[%c0_453, %c20], %241 {strides = array<i32>} : memref<256x36xbf16, #tpu.memory_space<vmem>>, vector<16x4xbf16>,
    %c0_454 = arith.constant 0 : index
    %c2_455 = arith.constant 2 : index
    %c2_456 = arith.constant 2 : index
    %c0_457 = arith.constant 0 : index
    %243 = vector.load %arg1[%c0_454, %c2_455, %c2_456, %c0_457] : memref<1x18x18x4xbf16, #tpu.memory_space<vmem>>, vector<1x1x16x4xbf16>
    %244 = vector.shape_cast %243 : vector<1x1x16x4xbf16> to vector<16x4xbf16>
    %c16_458 = arith.constant 16 : index
    %c20_459 = arith.constant 20 : index
    %245 = vector.load %arg5[%c16_458, %c20_459] : memref<256x36xbf16, #tpu.memory_space<vmem>>, vector<16x4xbf16>
    tpu.vector_store %arg5[%c16_458, %c20_459], %244 {strides = array<i32>} : memref<256x36xbf16, #tpu.memory_space<vmem>>, vector<16x4xbf16>,
    %c0_460 = arith.constant 0 : index
    %c3_461 = arith.constant 3 : index
    %c2_462 = arith.constant 2 : index
    %c0_463 = arith.constant 0 : index
    %246 = vector.load %arg1[%c0_460, %c3_461, %c2_462, %c0_463] : memref<1x18x18x4xbf16, #tpu.memory_space<vmem>>, vector<1x1x16x4xbf16>
    %247 = vector.shape_cast %246 : vector<1x1x16x4xbf16> to vector<16x4xbf16>
    %c32_464 = arith.constant 32 : index
    %c20_465 = arith.constant 20 : index
    %248 = vector.load %arg5[%c32_464, %c20_465] : memref<256x36xbf16, #tpu.memory_space<vmem>>, vector<16x4xbf16>
    tpu.vector_store %arg5[%c32_464, %c20_465], %247 {strides = array<i32>} : memref<256x36xbf16, #tpu.memory_space<vmem>>, vector<16x4xbf16>,
    %c0_466 = arith.constant 0 : index
    %c4_467 = arith.constant 4 : index
    %c2_468 = arith.constant 2 : index
    %c0_469 = arith.constant 0 : index
    %249 = vector.load %arg1[%c0_466, %c4_467, %c2_468, %c0_469] : memref<1x18x18x4xbf16, #tpu.memory_space<vmem>>, vector<1x1x16x4xbf16>
    %250 = vector.shape_cast %249 : vector<1x1x16x4xbf16> to vector<16x4xbf16>
    %c48_470 = arith.constant 48 : index
    %c20_471 = arith.constant 20 : index
    %251 = vector.load %arg5[%c48_470, %c20_471] : memref<256x36xbf16, #tpu.memory_space<vmem>>, vector<16x4xbf16>
    tpu.vector_store %arg5[%c48_470, %c20_471], %250 {strides = array<i32>} : memref<256x36xbf16, #tpu.memory_space<vmem>>, vector<16x4xbf16>,
    %c0_472 = arith.constant 0 : index
    %c5_473 = arith.constant 5 : index
    %c2_474 = arith.constant 2 : index
    %c0_475 = arith.constant 0 : index
    %252 = vector.load %arg1[%c0_472, %c5_473, %c2_474, %c0_475] : memref<1x18x18x4xbf16, #tpu.memory_space<vmem>>, vector<1x1x16x4xbf16>
    %253 = vector.shape_cast %252 : vector<1x1x16x4xbf16> to vector<16x4xbf16>
    %c64_476 = arith.constant 64 : index
    %c20_477 = arith.constant 20 : index
    %254 = vector.load %arg5[%c64_476, %c20_477] : memref<256x36xbf16, #tpu.memory_space<vmem>>, vector<16x4xbf16>
    tpu.vector_store %arg5[%c64_476, %c20_477], %253 {strides = array<i32>} : memref<256x36xbf16, #tpu.memory_space<vmem>>, vector<16x4xbf16>,
    %c0_478 = arith.constant 0 : index
    %c6_479 = arith.constant 6 : index
    %c2_480 = arith.constant 2 : index
    %c0_481 = arith.constant 0 : index
    %255 = vector.load %arg1[%c0_478, %c6_479, %c2_480, %c0_481] : memref<1x18x18x4xbf16, #tpu.memory_space<vmem>>, vector<1x1x16x4xbf16>
    %256 = vector.shape_cast %255 : vector<1x1x16x4xbf16> to vector<16x4xbf16>
    %c80_482 = arith.constant 80 : index
    %c20_483 = arith.constant 20 : index
    %257 = vector.load %arg5[%c80_482, %c20_483] : memref<256x36xbf16, #tpu.memory_space<vmem>>, vector<16x4xbf16>
    tpu.vector_store %arg5[%c80_482, %c20_483], %256 {strides = array<i32>} : memref<256x36xbf16, #tpu.memory_space<vmem>>, vector<16x4xbf16>,
    %c0_484 = arith.constant 0 : index
    %c7_485 = arith.constant 7 : index
    %c2_486 = arith.constant 2 : index
    %c0_487 = arith.constant 0 : index
    %258 = vector.load %arg1[%c0_484, %c7_485, %c2_486, %c0_487] : memref<1x18x18x4xbf16, #tpu.memory_space<vmem>>, vector<1x1x16x4xbf16>
    %259 = vector.shape_cast %258 : vector<1x1x16x4xbf16> to vector<16x4xbf16>
    %c96_488 = arith.constant 96 : index
    %c20_489 = arith.constant 20 : index
    %260 = vector.load %arg5[%c96_488, %c20_489] : memref<256x36xbf16, #tpu.memory_space<vmem>>, vector<16x4xbf16>
    tpu.vector_store %arg5[%c96_488, %c20_489], %259 {strides = array<i32>} : memref<256x36xbf16, #tpu.memory_space<vmem>>, vector<16x4xbf16>,
    %c0_490 = arith.constant 0 : index
    %c8_491 = arith.constant 8 : index
    %c2_492 = arith.constant 2 : index
    %c0_493 = arith.constant 0 : index
    %261 = vector.load %arg1[%c0_490, %c8_491, %c2_492, %c0_493] : memref<1x18x18x4xbf16, #tpu.memory_space<vmem>>, vector<1x1x16x4xbf16>
    %262 = vector.shape_cast %261 : vector<1x1x16x4xbf16> to vector<16x4xbf16>
    %c112_494 = arith.constant 112 : index
    %c20_495 = arith.constant 20 : index
    %263 = vector.load %arg5[%c112_494, %c20_495] : memref<256x36xbf16, #tpu.memory_space<vmem>>, vector<16x4xbf16>
    tpu.vector_store %arg5[%c112_494, %c20_495], %262 {strides = array<i32>} : memref<256x36xbf16, #tpu.memory_space<vmem>>, vector<16x4xbf16>,
    %c0_496 = arith.constant 0 : index
    %c9_497 = arith.constant 9 : index
    %c2_498 = arith.constant 2 : index
    %c0_499 = arith.constant 0 : index
    %264 = vector.load %arg1[%c0_496, %c9_497, %c2_498, %c0_499] : memref<1x18x18x4xbf16, #tpu.memory_space<vmem>>, vector<1x1x16x4xbf16>
    %265 = vector.shape_cast %264 : vector<1x1x16x4xbf16> to vector<16x4xbf16>
    %c128_500 = arith.constant 128 : index
    %c20_501 = arith.constant 20 : index
    %266 = vector.load %arg5[%c128_500, %c20_501] : memref<256x36xbf16, #tpu.memory_space<vmem>>, vector<16x4xbf16>
    tpu.vector_store %arg5[%c128_500, %c20_501], %265 {strides = array<i32>} : memref<256x36xbf16, #tpu.memory_space<vmem>>, vector<16x4xbf16>,
    %c0_502 = arith.constant 0 : index
    %c10_503 = arith.constant 10 : index
    %c2_504 = arith.constant 2 : index
    %c0_505 = arith.constant 0 : index
    %267 = vector.load %arg1[%c0_502, %c10_503, %c2_504, %c0_505] : memref<1x18x18x4xbf16, #tpu.memory_space<vmem>>, vector<1x1x16x4xbf16>
    %268 = vector.shape_cast %267 : vector<1x1x16x4xbf16> to vector<16x4xbf16>
    %c144_506 = arith.constant 144 : index
    %c20_507 = arith.constant 20 : index
    %269 = vector.load %arg5[%c144_506, %c20_507] : memref<256x36xbf16, #tpu.memory_space<vmem>>, vector<16x4xbf16>
    tpu.vector_store %arg5[%c144_506, %c20_507], %268 {strides = array<i32>} : memref<256x36xbf16, #tpu.memory_space<vmem>>, vector<16x4xbf16>,
    %c0_508 = arith.constant 0 : index
    %c11_509 = arith.constant 11 : index
    %c2_510 = arith.constant 2 : index
    %c0_511 = arith.constant 0 : index
    %270 = vector.load %arg1[%c0_508, %c11_509, %c2_510, %c0_511] : memref<1x18x18x4xbf16, #tpu.memory_space<vmem>>, vector<1x1x16x4xbf16>
    %271 = vector.shape_cast %270 : vector<1x1x16x4xbf16> to vector<16x4xbf16>
    %c160_512 = arith.constant 160 : index
    %c20_513 = arith.constant 20 : index
    %272 = vector.load %arg5[%c160_512, %c20_513] : memref<256x36xbf16, #tpu.memory_space<vmem>>, vector<16x4xbf16>
    tpu.vector_store %arg5[%c160_512, %c20_513], %271 {strides = array<i32>} : memref<256x36xbf16, #tpu.memory_space<vmem>>, vector<16x4xbf16>,
    %c0_514 = arith.constant 0 : index
    %c12_515 = arith.constant 12 : index
    %c2_516 = arith.constant 2 : index
    %c0_517 = arith.constant 0 : index
    %273 = vector.load %arg1[%c0_514, %c12_515, %c2_516, %c0_517] : memref<1x18x18x4xbf16, #tpu.memory_space<vmem>>, vector<1x1x16x4xbf16>
    %274 = vector.shape_cast %273 : vector<1x1x16x4xbf16> to vector<16x4xbf16>
    %c176_518 = arith.constant 176 : index
    %c20_519 = arith.constant 20 : index
    %275 = vector.load %arg5[%c176_518, %c20_519] : memref<256x36xbf16, #tpu.memory_space<vmem>>, vector<16x4xbf16>
    tpu.vector_store %arg5[%c176_518, %c20_519], %274 {strides = array<i32>} : memref<256x36xbf16, #tpu.memory_space<vmem>>, vector<16x4xbf16>,
    %c0_520 = arith.constant 0 : index
    %c13_521 = arith.constant 13 : index
    %c2_522 = arith.constant 2 : index
    %c0_523 = arith.constant 0 : index
    %276 = vector.load %arg1[%c0_520, %c13_521, %c2_522, %c0_523] : memref<1x18x18x4xbf16, #tpu.memory_space<vmem>>, vector<1x1x16x4xbf16>
    %277 = vector.shape_cast %276 : vector<1x1x16x4xbf16> to vector<16x4xbf16>
    %c192_524 = arith.constant 192 : index
    %c20_525 = arith.constant 20 : index
    %278 = vector.load %arg5[%c192_524, %c20_525] : memref<256x36xbf16, #tpu.memory_space<vmem>>, vector<16x4xbf16>
    tpu.vector_store %arg5[%c192_524, %c20_525], %277 {strides = array<i32>} : memref<256x36xbf16, #tpu.memory_space<vmem>>, vector<16x4xbf16>,
    %c0_526 = arith.constant 0 : index
    %c14_527 = arith.constant 14 : index
    %c2_528 = arith.constant 2 : index
    %c0_529 = arith.constant 0 : index
    %279 = vector.load %arg1[%c0_526, %c14_527, %c2_528, %c0_529] : memref<1x18x18x4xbf16, #tpu.memory_space<vmem>>, vector<1x1x16x4xbf16>
    %280 = vector.shape_cast %279 : vector<1x1x16x4xbf16> to vector<16x4xbf16>
    %c208_530 = arith.constant 208 : index
    %c20_531 = arith.constant 20 : index
    %281 = vector.load %arg5[%c208_530, %c20_531] : memref<256x36xbf16, #tpu.memory_space<vmem>>, vector<16x4xbf16>
    tpu.vector_store %arg5[%c208_530, %c20_531], %280 {strides = array<i32>} : memref<256x36xbf16, #tpu.memory_space<vmem>>, vector<16x4xbf16>,
    %c0_532 = arith.constant 0 : index
    %c15_533 = arith.constant 15 : index
    %c2_534 = arith.constant 2 : index
    %c0_535 = arith.constant 0 : index
    %282 = vector.load %arg1[%c0_532, %c15_533, %c2_534, %c0_535] : memref<1x18x18x4xbf16, #tpu.memory_space<vmem>>, vector<1x1x16x4xbf16>
    %283 = vector.shape_cast %282 : vector<1x1x16x4xbf16> to vector<16x4xbf16>
    %c224_536 = arith.constant 224 : index
    %c20_537 = arith.constant 20 : index
    %284 = vector.load %arg5[%c224_536, %c20_537] : memref<256x36xbf16, #tpu.memory_space<vmem>>, vector<16x4xbf16>
    tpu.vector_store %arg5[%c224_536, %c20_537], %283 {strides = array<i32>} : memref<256x36xbf16, #tpu.memory_space<vmem>>, vector<16x4xbf16>,
    %c0_538 = arith.constant 0 : index
    %c16_539 = arith.constant 16 : index
    %c2_540 = arith.constant 2 : index
    %c0_541 = arith.constant 0 : index
    %285 = vector.load %arg1[%c0_538, %c16_539, %c2_540, %c0_541] : memref<1x18x18x4xbf16, #tpu.memory_space<vmem>>, vector<1x1x16x4xbf16>
    %286 = vector.shape_cast %285 : vector<1x1x16x4xbf16> to vector<16x4xbf16>
    %c240_542 = arith.constant 240 : index
    %c20_543 = arith.constant 20 : index
    %287 = vector.load %arg5[%c240_542, %c20_543] : memref<256x36xbf16, #tpu.memory_space<vmem>>, vector<16x4xbf16>
    tpu.vector_store %arg5[%c240_542, %c20_543], %286 {strides = array<i32>} : memref<256x36xbf16, #tpu.memory_space<vmem>>, vector<16x4xbf16>,
    %c0_544 = arith.constant 0 : index
    %c2_545 = arith.constant 2 : index
    %c0_546 = arith.constant 0 : index
    %c0_547 = arith.constant 0 : index
    %288 = vector.load %arg1[%c0_544, %c2_545, %c0_546, %c0_547] : memref<1x18x18x4xbf16, #tpu.memory_space<vmem>>, vector<1x1x16x4xbf16>
    %289 = vector.shape_cast %288 : vector<1x1x16x4xbf16> to vector<16x4xbf16>
    %c0_548 = arith.constant 0 : index
    %c24 = arith.constant 24 : index
    %290 = vector.load %arg5[%c0_548, %c24] : memref<256x36xbf16, #tpu.memory_space<vmem>>, vector<16x4xbf16>
    tpu.vector_store %arg5[%c0_548, %c24], %289 {strides = array<i32>} : memref<256x36xbf16, #tpu.memory_space<vmem>>, vector<16x4xbf16>,
    %c0_549 = arith.constant 0 : index
    %c3_550 = arith.constant 3 : index
    %c0_551 = arith.constant 0 : index
    %c0_552 = arith.constant 0 : index
    %291 = vector.load %arg1[%c0_549, %c3_550, %c0_551, %c0_552] : memref<1x18x18x4xbf16, #tpu.memory_space<vmem>>, vector<1x1x16x4xbf16>
    %292 = vector.shape_cast %291 : vector<1x1x16x4xbf16> to vector<16x4xbf16>
    %c16_553 = arith.constant 16 : index
    %c24_554 = arith.constant 24 : index
    %293 = vector.load %arg5[%c16_553, %c24_554] : memref<256x36xbf16, #tpu.memory_space<vmem>>, vector<16x4xbf16>
    tpu.vector_store %arg5[%c16_553, %c24_554], %292 {strides = array<i32>} : memref<256x36xbf16, #tpu.memory_space<vmem>>, vector<16x4xbf16>,
    %c0_555 = arith.constant 0 : index
    %c4_556 = arith.constant 4 : index
    %c0_557 = arith.constant 0 : index
    %c0_558 = arith.constant 0 : index
    %294 = vector.load %arg1[%c0_555, %c4_556, %c0_557, %c0_558] : memref<1x18x18x4xbf16, #tpu.memory_space<vmem>>, vector<1x1x16x4xbf16>
    %295 = vector.shape_cast %294 : vector<1x1x16x4xbf16> to vector<16x4xbf16>
    %c32_559 = arith.constant 32 : index
    %c24_560 = arith.constant 24 : index
    %296 = vector.load %arg5[%c32_559, %c24_560] : memref<256x36xbf16, #tpu.memory_space<vmem>>, vector<16x4xbf16>
    tpu.vector_store %arg5[%c32_559, %c24_560], %295 {strides = array<i32>} : memref<256x36xbf16, #tpu.memory_space<vmem>>, vector<16x4xbf16>,
    %c0_561 = arith.constant 0 : index
    %c5_562 = arith.constant 5 : index
    %c0_563 = arith.constant 0 : index
    %c0_564 = arith.constant 0 : index
    %297 = vector.load %arg1[%c0_561, %c5_562, %c0_563, %c0_564] : memref<1x18x18x4xbf16, #tpu.memory_space<vmem>>, vector<1x1x16x4xbf16>
    %298 = vector.shape_cast %297 : vector<1x1x16x4xbf16> to vector<16x4xbf16>
    %c48_565 = arith.constant 48 : index
    %c24_566 = arith.constant 24 : index
    %299 = vector.load %arg5[%c48_565, %c24_566] : memref<256x36xbf16, #tpu.memory_space<vmem>>, vector<16x4xbf16>
    tpu.vector_store %arg5[%c48_565, %c24_566], %298 {strides = array<i32>} : memref<256x36xbf16, #tpu.memory_space<vmem>>, vector<16x4xbf16>,
    %c0_567 = arith.constant 0 : index
    %c6_568 = arith.constant 6 : index
    %c0_569 = arith.constant 0 : index
    %c0_570 = arith.constant 0 : index
    %300 = vector.load %arg1[%c0_567, %c6_568, %c0_569, %c0_570] : memref<1x18x18x4xbf16, #tpu.memory_space<vmem>>, vector<1x1x16x4xbf16>
    %301 = vector.shape_cast %300 : vector<1x1x16x4xbf16> to vector<16x4xbf16>
    %c64_571 = arith.constant 64 : index
    %c24_572 = arith.constant 24 : index
    %302 = vector.load %arg5[%c64_571, %c24_572] : memref<256x36xbf16, #tpu.memory_space<vmem>>, vector<16x4xbf16>
    tpu.vector_store %arg5[%c64_571, %c24_572], %301 {strides = array<i32>} : memref<256x36xbf16, #tpu.memory_space<vmem>>, vector<16x4xbf16>,
    %c0_573 = arith.constant 0 : index
    %c7_574 = arith.constant 7 : index
    %c0_575 = arith.constant 0 : index
    %c0_576 = arith.constant 0 : index
    %303 = vector.load %arg1[%c0_573, %c7_574, %c0_575, %c0_576] : memref<1x18x18x4xbf16, #tpu.memory_space<vmem>>, vector<1x1x16x4xbf16>
    %304 = vector.shape_cast %303 : vector<1x1x16x4xbf16> to vector<16x4xbf16>
    %c80_577 = arith.constant 80 : index
    %c24_578 = arith.constant 24 : index
    %305 = vector.load %arg5[%c80_577, %c24_578] : memref<256x36xbf16, #tpu.memory_space<vmem>>, vector<16x4xbf16>
    tpu.vector_store %arg5[%c80_577, %c24_578], %304 {strides = array<i32>} : memref<256x36xbf16, #tpu.memory_space<vmem>>, vector<16x4xbf16>,
    %c0_579 = arith.constant 0 : index
    %c8_580 = arith.constant 8 : index
    %c0_581 = arith.constant 0 : index
    %c0_582 = arith.constant 0 : index
    %306 = vector.load %arg1[%c0_579, %c8_580, %c0_581, %c0_582] : memref<1x18x18x4xbf16, #tpu.memory_space<vmem>>, vector<1x1x16x4xbf16>
    %307 = vector.shape_cast %306 : vector<1x1x16x4xbf16> to vector<16x4xbf16>
    %c96_583 = arith.constant 96 : index
    %c24_584 = arith.constant 24 : index
    %308 = vector.load %arg5[%c96_583, %c24_584] : memref<256x36xbf16, #tpu.memory_space<vmem>>, vector<16x4xbf16>
    tpu.vector_store %arg5[%c96_583, %c24_584], %307 {strides = array<i32>} : memref<256x36xbf16, #tpu.memory_space<vmem>>, vector<16x4xbf16>,
    %c0_585 = arith.constant 0 : index
    %c9_586 = arith.constant 9 : index
    %c0_587 = arith.constant 0 : index
    %c0_588 = arith.constant 0 : index
    %309 = vector.load %arg1[%c0_585, %c9_586, %c0_587, %c0_588] : memref<1x18x18x4xbf16, #tpu.memory_space<vmem>>, vector<1x1x16x4xbf16>
    %310 = vector.shape_cast %309 : vector<1x1x16x4xbf16> to vector<16x4xbf16>
    %c112_589 = arith.constant 112 : index
    %c24_590 = arith.constant 24 : index
    %311 = vector.load %arg5[%c112_589, %c24_590] : memref<256x36xbf16, #tpu.memory_space<vmem>>, vector<16x4xbf16>
    tpu.vector_store %arg5[%c112_589, %c24_590], %310 {strides = array<i32>} : memref<256x36xbf16, #tpu.memory_space<vmem>>, vector<16x4xbf16>,
    %c0_591 = arith.constant 0 : index
    %c10_592 = arith.constant 10 : index
    %c0_593 = arith.constant 0 : index
    %c0_594 = arith.constant 0 : index
    %312 = vector.load %arg1[%c0_591, %c10_592, %c0_593, %c0_594] : memref<1x18x18x4xbf16, #tpu.memory_space<vmem>>, vector<1x1x16x4xbf16>
    %313 = vector.shape_cast %312 : vector<1x1x16x4xbf16> to vector<16x4xbf16>
    %c128_595 = arith.constant 128 : index
    %c24_596 = arith.constant 24 : index
    %314 = vector.load %arg5[%c128_595, %c24_596] : memref<256x36xbf16, #tpu.memory_space<vmem>>, vector<16x4xbf16>
    tpu.vector_store %arg5[%c128_595, %c24_596], %313 {strides = array<i32>} : memref<256x36xbf16, #tpu.memory_space<vmem>>, vector<16x4xbf16>,
    %c0_597 = arith.constant 0 : index
    %c11_598 = arith.constant 11 : index
    %c0_599 = arith.constant 0 : index
    %c0_600 = arith.constant 0 : index
    %315 = vector.load %arg1[%c0_597, %c11_598, %c0_599, %c0_600] : memref<1x18x18x4xbf16, #tpu.memory_space<vmem>>, vector<1x1x16x4xbf16>
    %316 = vector.shape_cast %315 : vector<1x1x16x4xbf16> to vector<16x4xbf16>
    %c144_601 = arith.constant 144 : index
    %c24_602 = arith.constant 24 : index
    %317 = vector.load %arg5[%c144_601, %c24_602] : memref<256x36xbf16, #tpu.memory_space<vmem>>, vector<16x4xbf16>
    tpu.vector_store %arg5[%c144_601, %c24_602], %316 {strides = array<i32>} : memref<256x36xbf16, #tpu.memory_space<vmem>>, vector<16x4xbf16>,
    %c0_603 = arith.constant 0 : index
    %c12_604 = arith.constant 12 : index
    %c0_605 = arith.constant 0 : index
    %c0_606 = arith.constant 0 : index
    %318 = vector.load %arg1[%c0_603, %c12_604, %c0_605, %c0_606] : memref<1x18x18x4xbf16, #tpu.memory_space<vmem>>, vector<1x1x16x4xbf16>
    %319 = vector.shape_cast %318 : vector<1x1x16x4xbf16> to vector<16x4xbf16>
    %c160_607 = arith.constant 160 : index
    %c24_608 = arith.constant 24 : index
    %320 = vector.load %arg5[%c160_607, %c24_608] : memref<256x36xbf16, #tpu.memory_space<vmem>>, vector<16x4xbf16>
    tpu.vector_store %arg5[%c160_607, %c24_608], %319 {strides = array<i32>} : memref<256x36xbf16, #tpu.memory_space<vmem>>, vector<16x4xbf16>,
    %c0_609 = arith.constant 0 : index
    %c13_610 = arith.constant 13 : index
    %c0_611 = arith.constant 0 : index
    %c0_612 = arith.constant 0 : index
    %321 = vector.load %arg1[%c0_609, %c13_610, %c0_611, %c0_612] : memref<1x18x18x4xbf16, #tpu.memory_space<vmem>>, vector<1x1x16x4xbf16>
    %322 = vector.shape_cast %321 : vector<1x1x16x4xbf16> to vector<16x4xbf16>
    %c176_613 = arith.constant 176 : index
    %c24_614 = arith.constant 24 : index
    %323 = vector.load %arg5[%c176_613, %c24_614] : memref<256x36xbf16, #tpu.memory_space<vmem>>, vector<16x4xbf16>
    tpu.vector_store %arg5[%c176_613, %c24_614], %322 {strides = array<i32>} : memref<256x36xbf16, #tpu.memory_space<vmem>>, vector<16x4xbf16>,
    %c0_615 = arith.constant 0 : index
    %c14_616 = arith.constant 14 : index
    %c0_617 = arith.constant 0 : index
    %c0_618 = arith.constant 0 : index
    %324 = vector.load %arg1[%c0_615, %c14_616, %c0_617, %c0_618] : memref<1x18x18x4xbf16, #tpu.memory_space<vmem>>, vector<1x1x16x4xbf16>
    %325 = vector.shape_cast %324 : vector<1x1x16x4xbf16> to vector<16x4xbf16>
    %c192_619 = arith.constant 192 : index
    %c24_620 = arith.constant 24 : index
    %326 = vector.load %arg5[%c192_619, %c24_620] : memref<256x36xbf16, #tpu.memory_space<vmem>>, vector<16x4xbf16>
    tpu.vector_store %arg5[%c192_619, %c24_620], %325 {strides = array<i32>} : memref<256x36xbf16, #tpu.memory_space<vmem>>, vector<16x4xbf16>,
    %c0_621 = arith.constant 0 : index
    %c15_622 = arith.constant 15 : index
    %c0_623 = arith.constant 0 : index
    %c0_624 = arith.constant 0 : index
    %327 = vector.load %arg1[%c0_621, %c15_622, %c0_623, %c0_624] : memref<1x18x18x4xbf16, #tpu.memory_space<vmem>>, vector<1x1x16x4xbf16>
    %328 = vector.shape_cast %327 : vector<1x1x16x4xbf16> to vector<16x4xbf16>
    %c208_625 = arith.constant 208 : index
    %c24_626 = arith.constant 24 : index
    %329 = vector.load %arg5[%c208_625, %c24_626] : memref<256x36xbf16, #tpu.memory_space<vmem>>, vector<16x4xbf16>
    tpu.vector_store %arg5[%c208_625, %c24_626], %328 {strides = array<i32>} : memref<256x36xbf16, #tpu.memory_space<vmem>>, vector<16x4xbf16>,
    %c0_627 = arith.constant 0 : index
    %c16_628 = arith.constant 16 : index
    %c0_629 = arith.constant 0 : index
    %c0_630 = arith.constant 0 : index
    %330 = vector.load %arg1[%c0_627, %c16_628, %c0_629, %c0_630] : memref<1x18x18x4xbf16, #tpu.memory_space<vmem>>, vector<1x1x16x4xbf16>
    %331 = vector.shape_cast %330 : vector<1x1x16x4xbf16> to vector<16x4xbf16>
    %c224_631 = arith.constant 224 : index
    %c24_632 = arith.constant 24 : index
    %332 = vector.load %arg5[%c224_631, %c24_632] : memref<256x36xbf16, #tpu.memory_space<vmem>>, vector<16x4xbf16>
    tpu.vector_store %arg5[%c224_631, %c24_632], %331 {strides = array<i32>} : memref<256x36xbf16, #tpu.memory_space<vmem>>, vector<16x4xbf16>,
    %c0_633 = arith.constant 0 : index
    %c17 = arith.constant 17 : index
    %c0_634 = arith.constant 0 : index
    %c0_635 = arith.constant 0 : index
    %333 = vector.load %arg1[%c0_633, %c17, %c0_634, %c0_635] : memref<1x18x18x4xbf16, #tpu.memory_space<vmem>>, vector<1x1x16x4xbf16>
    %334 = vector.shape_cast %333 : vector<1x1x16x4xbf16> to vector<16x4xbf16>
    %c240_636 = arith.constant 240 : index
    %c24_637 = arith.constant 24 : index
    %335 = vector.load %arg5[%c240_636, %c24_637] : memref<256x36xbf16, #tpu.memory_space<vmem>>, vector<16x4xbf16>
    tpu.vector_store %arg5[%c240_636, %c24_637], %334 {strides = array<i32>} : memref<256x36xbf16, #tpu.memory_space<vmem>>, vector<16x4xbf16>,
    %c0_638 = arith.constant 0 : index
    %c2_639 = arith.constant 2 : index
    %c1_640 = arith.constant 1 : index
    %c0_641 = arith.constant 0 : index
    %336 = vector.load %arg1[%c0_638, %c2_639, %c1_640, %c0_641] : memref<1x18x18x4xbf16, #tpu.memory_space<vmem>>, vector<1x1x16x4xbf16>
    %337 = vector.shape_cast %336 : vector<1x1x16x4xbf16> to vector<16x4xbf16>
    %c0_642 = arith.constant 0 : index
    %c28 = arith.constant 28 : index
    %338 = vector.load %arg5[%c0_642, %c28] : memref<256x36xbf16, #tpu.memory_space<vmem>>, vector<16x4xbf16>
    tpu.vector_store %arg5[%c0_642, %c28], %337 {strides = array<i32>} : memref<256x36xbf16, #tpu.memory_space<vmem>>, vector<16x4xbf16>,
    %c0_643 = arith.constant 0 : index
    %c3_644 = arith.constant 3 : index
    %c1_645 = arith.constant 1 : index
    %c0_646 = arith.constant 0 : index
    %339 = vector.load %arg1[%c0_643, %c3_644, %c1_645, %c0_646] : memref<1x18x18x4xbf16, #tpu.memory_space<vmem>>, vector<1x1x16x4xbf16>
    %340 = vector.shape_cast %339 : vector<1x1x16x4xbf16> to vector<16x4xbf16>
    %c16_647 = arith.constant 16 : index
    %c28_648 = arith.constant 28 : index
    %341 = vector.load %arg5[%c16_647, %c28_648] : memref<256x36xbf16, #tpu.memory_space<vmem>>, vector<16x4xbf16>
    tpu.vector_store %arg5[%c16_647, %c28_648], %340 {strides = array<i32>} : memref<256x36xbf16, #tpu.memory_space<vmem>>, vector<16x4xbf16>,
    %c0_649 = arith.constant 0 : index
    %c4_650 = arith.constant 4 : index
    %c1_651 = arith.constant 1 : index
    %c0_652 = arith.constant 0 : index
    %342 = vector.load %arg1[%c0_649, %c4_650, %c1_651, %c0_652] : memref<1x18x18x4xbf16, #tpu.memory_space<vmem>>, vector<1x1x16x4xbf16>
    %343 = vector.shape_cast %342 : vector<1x1x16x4xbf16> to vector<16x4xbf16>
    %c32_653 = arith.constant 32 : index
    %c28_654 = arith.constant 28 : index
    %344 = vector.load %arg5[%c32_653, %c28_654] : memref<256x36xbf16, #tpu.memory_space<vmem>>, vector<16x4xbf16>
    tpu.vector_store %arg5[%c32_653, %c28_654], %343 {strides = array<i32>} : memref<256x36xbf16, #tpu.memory_space<vmem>>, vector<16x4xbf16>,
    %c0_655 = arith.constant 0 : index
    %c5_656 = arith.constant 5 : index
    %c1_657 = arith.constant 1 : index
    %c0_658 = arith.constant 0 : index
    %345 = vector.load %arg1[%c0_655, %c5_656, %c1_657, %c0_658] : memref<1x18x18x4xbf16, #tpu.memory_space<vmem>>, vector<1x1x16x4xbf16>
    %346 = vector.shape_cast %345 : vector<1x1x16x4xbf16> to vector<16x4xbf16>
    %c48_659 = arith.constant 48 : index
    %c28_660 = arith.constant 28 : index
    %347 = vector.load %arg5[%c48_659, %c28_660] : memref<256x36xbf16, #tpu.memory_space<vmem>>, vector<16x4xbf16>
    tpu.vector_store %arg5[%c48_659, %c28_660], %346 {strides = array<i32>} : memref<256x36xbf16, #tpu.memory_space<vmem>>, vector<16x4xbf16>,
    %c0_661 = arith.constant 0 : index
    %c6_662 = arith.constant 6 : index
    %c1_663 = arith.constant 1 : index
    %c0_664 = arith.constant 0 : index
    %348 = vector.load %arg1[%c0_661, %c6_662, %c1_663, %c0_664] : memref<1x18x18x4xbf16, #tpu.memory_space<vmem>>, vector<1x1x16x4xbf16>
    %349 = vector.shape_cast %348 : vector<1x1x16x4xbf16> to vector<16x4xbf16>
    %c64_665 = arith.constant 64 : index
    %c28_666 = arith.constant 28 : index
    %350 = vector.load %arg5[%c64_665, %c28_666] : memref<256x36xbf16, #tpu.memory_space<vmem>>, vector<16x4xbf16>
    tpu.vector_store %arg5[%c64_665, %c28_666], %349 {strides = array<i32>} : memref<256x36xbf16, #tpu.memory_space<vmem>>, vector<16x4xbf16>,
    %c0_667 = arith.constant 0 : index
    %c7_668 = arith.constant 7 : index
    %c1_669 = arith.constant 1 : index
    %c0_670 = arith.constant 0 : index
    %351 = vector.load %arg1[%c0_667, %c7_668, %c1_669, %c0_670] : memref<1x18x18x4xbf16, #tpu.memory_space<vmem>>, vector<1x1x16x4xbf16>
    %352 = vector.shape_cast %351 : vector<1x1x16x4xbf16> to vector<16x4xbf16>
    %c80_671 = arith.constant 80 : index
    %c28_672 = arith.constant 28 : index
    %353 = vector.load %arg5[%c80_671, %c28_672] : memref<256x36xbf16, #tpu.memory_space<vmem>>, vector<16x4xbf16>
    tpu.vector_store %arg5[%c80_671, %c28_672], %352 {strides = array<i32>} : memref<256x36xbf16, #tpu.memory_space<vmem>>, vector<16x4xbf16>,
    %c0_673 = arith.constant 0 : index
    %c8_674 = arith.constant 8 : index
    %c1_675 = arith.constant 1 : index
    %c0_676 = arith.constant 0 : index
    %354 = vector.load %arg1[%c0_673, %c8_674, %c1_675, %c0_676] : memref<1x18x18x4xbf16, #tpu.memory_space<vmem>>, vector<1x1x16x4xbf16>
    %355 = vector.shape_cast %354 : vector<1x1x16x4xbf16> to vector<16x4xbf16>
    %c96_677 = arith.constant 96 : index
    %c28_678 = arith.constant 28 : index
    %356 = vector.load %arg5[%c96_677, %c28_678] : memref<256x36xbf16, #tpu.memory_space<vmem>>, vector<16x4xbf16>
    tpu.vector_store %arg5[%c96_677, %c28_678], %355 {strides = array<i32>} : memref<256x36xbf16, #tpu.memory_space<vmem>>, vector<16x4xbf16>,
    %c0_679 = arith.constant 0 : index
    %c9_680 = arith.constant 9 : index
    %c1_681 = arith.constant 1 : index
    %c0_682 = arith.constant 0 : index
    %357 = vector.load %arg1[%c0_679, %c9_680, %c1_681, %c0_682] : memref<1x18x18x4xbf16, #tpu.memory_space<vmem>>, vector<1x1x16x4xbf16>
    %358 = vector.shape_cast %357 : vector<1x1x16x4xbf16> to vector<16x4xbf16>
    %c112_683 = arith.constant 112 : index
    %c28_684 = arith.constant 28 : index
    %359 = vector.load %arg5[%c112_683, %c28_684] : memref<256x36xbf16, #tpu.memory_space<vmem>>, vector<16x4xbf16>
    tpu.vector_store %arg5[%c112_683, %c28_684], %358 {strides = array<i32>} : memref<256x36xbf16, #tpu.memory_space<vmem>>, vector<16x4xbf16>,
    %c0_685 = arith.constant 0 : index
    %c10_686 = arith.constant 10 : index
    %c1_687 = arith.constant 1 : index
    %c0_688 = arith.constant 0 : index
    %360 = vector.load %arg1[%c0_685, %c10_686, %c1_687, %c0_688] : memref<1x18x18x4xbf16, #tpu.memory_space<vmem>>, vector<1x1x16x4xbf16>
    %361 = vector.shape_cast %360 : vector<1x1x16x4xbf16> to vector<16x4xbf16>
    %c128_689 = arith.constant 128 : index
    %c28_690 = arith.constant 28 : index
    %362 = vector.load %arg5[%c128_689, %c28_690] : memref<256x36xbf16, #tpu.memory_space<vmem>>, vector<16x4xbf16>
    tpu.vector_store %arg5[%c128_689, %c28_690], %361 {strides = array<i32>} : memref<256x36xbf16, #tpu.memory_space<vmem>>, vector<16x4xbf16>,
    %c0_691 = arith.constant 0 : index
    %c11_692 = arith.constant 11 : index
    %c1_693 = arith.constant 1 : index
    %c0_694 = arith.constant 0 : index
    %363 = vector.load %arg1[%c0_691, %c11_692, %c1_693, %c0_694] : memref<1x18x18x4xbf16, #tpu.memory_space<vmem>>, vector<1x1x16x4xbf16>
    %364 = vector.shape_cast %363 : vector<1x1x16x4xbf16> to vector<16x4xbf16>
    %c144_695 = arith.constant 144 : index
    %c28_696 = arith.constant 28 : index
    %365 = vector.load %arg5[%c144_695, %c28_696] : memref<256x36xbf16, #tpu.memory_space<vmem>>, vector<16x4xbf16>
    tpu.vector_store %arg5[%c144_695, %c28_696], %364 {strides = array<i32>} : memref<256x36xbf16, #tpu.memory_space<vmem>>, vector<16x4xbf16>,
    %c0_697 = arith.constant 0 : index
    %c12_698 = arith.constant 12 : index
    %c1_699 = arith.constant 1 : index
    %c0_700 = arith.constant 0 : index
    %366 = vector.load %arg1[%c0_697, %c12_698, %c1_699, %c0_700] : memref<1x18x18x4xbf16, #tpu.memory_space<vmem>>, vector<1x1x16x4xbf16>
    %367 = vector.shape_cast %366 : vector<1x1x16x4xbf16> to vector<16x4xbf16>
    %c160_701 = arith.constant 160 : index
    %c28_702 = arith.constant 28 : index
    %368 = vector.load %arg5[%c160_701, %c28_702] : memref<256x36xbf16, #tpu.memory_space<vmem>>, vector<16x4xbf16>
    tpu.vector_store %arg5[%c160_701, %c28_702], %367 {strides = array<i32>} : memref<256x36xbf16, #tpu.memory_space<vmem>>, vector<16x4xbf16>,
    %c0_703 = arith.constant 0 : index
    %c13_704 = arith.constant 13 : index
    %c1_705 = arith.constant 1 : index
    %c0_706 = arith.constant 0 : index
    %369 = vector.load %arg1[%c0_703, %c13_704, %c1_705, %c0_706] : memref<1x18x18x4xbf16, #tpu.memory_space<vmem>>, vector<1x1x16x4xbf16>
    %370 = vector.shape_cast %369 : vector<1x1x16x4xbf16> to vector<16x4xbf16>
    %c176_707 = arith.constant 176 : index
    %c28_708 = arith.constant 28 : index
    %371 = vector.load %arg5[%c176_707, %c28_708] : memref<256x36xbf16, #tpu.memory_space<vmem>>, vector<16x4xbf16>
    tpu.vector_store %arg5[%c176_707, %c28_708], %370 {strides = array<i32>} : memref<256x36xbf16, #tpu.memory_space<vmem>>, vector<16x4xbf16>,
    %c0_709 = arith.constant 0 : index
    %c14_710 = arith.constant 14 : index
    %c1_711 = arith.constant 1 : index
    %c0_712 = arith.constant 0 : index
    %372 = vector.load %arg1[%c0_709, %c14_710, %c1_711, %c0_712] : memref<1x18x18x4xbf16, #tpu.memory_space<vmem>>, vector<1x1x16x4xbf16>
    %373 = vector.shape_cast %372 : vector<1x1x16x4xbf16> to vector<16x4xbf16>
    %c192_713 = arith.constant 192 : index
    %c28_714 = arith.constant 28 : index
    %374 = vector.load %arg5[%c192_713, %c28_714] : memref<256x36xbf16, #tpu.memory_space<vmem>>, vector<16x4xbf16>
    tpu.vector_store %arg5[%c192_713, %c28_714], %373 {strides = array<i32>} : memref<256x36xbf16, #tpu.memory_space<vmem>>, vector<16x4xbf16>,
    %c0_715 = arith.constant 0 : index
    %c15_716 = arith.constant 15 : index
    %c1_717 = arith.constant 1 : index
    %c0_718 = arith.constant 0 : index
    %375 = vector.load %arg1[%c0_715, %c15_716, %c1_717, %c0_718] : memref<1x18x18x4xbf16, #tpu.memory_space<vmem>>, vector<1x1x16x4xbf16>
    %376 = vector.shape_cast %375 : vector<1x1x16x4xbf16> to vector<16x4xbf16>
    %c208_719 = arith.constant 208 : index
    %c28_720 = arith.constant 28 : index
    %377 = vector.load %arg5[%c208_719, %c28_720] : memref<256x36xbf16, #tpu.memory_space<vmem>>, vector<16x4xbf16>
    tpu.vector_store %arg5[%c208_719, %c28_720], %376 {strides = array<i32>} : memref<256x36xbf16, #tpu.memory_space<vmem>>, vector<16x4xbf16>,
    %c0_721 = arith.constant 0 : index
    %c16_722 = arith.constant 16 : index
    %c1_723 = arith.constant 1 : index
    %c0_724 = arith.constant 0 : index
    %378 = vector.load %arg1[%c0_721, %c16_722, %c1_723, %c0_724] : memref<1x18x18x4xbf16, #tpu.memory_space<vmem>>, vector<1x1x16x4xbf16>
    %379 = vector.shape_cast %378 : vector<1x1x16x4xbf16> to vector<16x4xbf16>
    %c224_725 = arith.constant 224 : index
    %c28_726 = arith.constant 28 : index
    %380 = vector.load %arg5[%c224_725, %c28_726] : memref<256x36xbf16, #tpu.memory_space<vmem>>, vector<16x4xbf16>
    tpu.vector_store %arg5[%c224_725, %c28_726], %379 {strides = array<i32>} : memref<256x36xbf16, #tpu.memory_space<vmem>>, vector<16x4xbf16>,
    %c0_727 = arith.constant 0 : index
    %c17_728 = arith.constant 17 : index
    %c1_729 = arith.constant 1 : index
    %c0_730 = arith.constant 0 : index
    %381 = vector.load %arg1[%c0_727, %c17_728, %c1_729, %c0_730] : memref<1x18x18x4xbf16, #tpu.memory_space<vmem>>, vector<1x1x16x4xbf16>
    %382 = vector.shape_cast %381 : vector<1x1x16x4xbf16> to vector<16x4xbf16>
    %c240_731 = arith.constant 240 : index
    %c28_732 = arith.constant 28 : index
    %383 = vector.load %arg5[%c240_731, %c28_732] : memref<256x36xbf16, #tpu.memory_space<vmem>>, vector<16x4xbf16>
    tpu.vector_store %arg5[%c240_731, %c28_732], %382 {strides = array<i32>} : memref<256x36xbf16, #tpu.memory_space<vmem>>, vector<16x4xbf16>,
    %c0_733 = arith.constant 0 : index
    %c2_734 = arith.constant 2 : index
    %c2_735 = arith.constant 2 : index
    %c0_736 = arith.constant 0 : index
    %384 = vector.load %arg1[%c0_733, %c2_734, %c2_735, %c0_736] : memref<1x18x18x4xbf16, #tpu.memory_space<vmem>>, vector<1x1x16x4xbf16>
    %385 = vector.shape_cast %384 : vector<1x1x16x4xbf16> to vector<16x4xbf16>
    %c0_737 = arith.constant 0 : index
    %c32_738 = arith.constant 32 : index
    %386 = vector.load %arg5[%c0_737, %c32_738] : memref<256x36xbf16, #tpu.memory_space<vmem>>, vector<16x4xbf16>
    tpu.vector_store %arg5[%c0_737, %c32_738], %385 {strides = array<i32>} : memref<256x36xbf16, #tpu.memory_space<vmem>>, vector<16x4xbf16>,
    %c0_739 = arith.constant 0 : index
    %c3_740 = arith.constant 3 : index
    %c2_741 = arith.constant 2 : index
    %c0_742 = arith.constant 0 : index
    %387 = vector.load %arg1[%c0_739, %c3_740, %c2_741, %c0_742] : memref<1x18x18x4xbf16, #tpu.memory_space<vmem>>, vector<1x1x16x4xbf16>
    %388 = vector.shape_cast %387 : vector<1x1x16x4xbf16> to vector<16x4xbf16>
    %c16_743 = arith.constant 16 : index
    %c32_744 = arith.constant 32 : index
    %389 = vector.load %arg5[%c16_743, %c32_744] : memref<256x36xbf16, #tpu.memory_space<vmem>>, vector<16x4xbf16>
    tpu.vector_store %arg5[%c16_743, %c32_744], %388 {strides = array<i32>} : memref<256x36xbf16, #tpu.memory_space<vmem>>, vector<16x4xbf16>,
    %c0_745 = arith.constant 0 : index
    %c4_746 = arith.constant 4 : index
    %c2_747 = arith.constant 2 : index
    %c0_748 = arith.constant 0 : index
    %390 = vector.load %arg1[%c0_745, %c4_746, %c2_747, %c0_748] : memref<1x18x18x4xbf16, #tpu.memory_space<vmem>>, vector<1x1x16x4xbf16>
    %391 = vector.shape_cast %390 : vector<1x1x16x4xbf16> to vector<16x4xbf16>
    %c32_749 = arith.constant 32 : index
    %c32_750 = arith.constant 32 : index
    %392 = vector.load %arg5[%c32_749, %c32_750] : memref<256x36xbf16, #tpu.memory_space<vmem>>, vector<16x4xbf16>
    tpu.vector_store %arg5[%c32_749, %c32_750], %391 {strides = array<i32>} : memref<256x36xbf16, #tpu.memory_space<vmem>>, vector<16x4xbf16>,
    %c0_751 = arith.constant 0 : index
    %c5_752 = arith.constant 5 : index
    %c2_753 = arith.constant 2 : index
    %c0_754 = arith.constant 0 : index
    %393 = vector.load %arg1[%c0_751, %c5_752, %c2_753, %c0_754] : memref<1x18x18x4xbf16, #tpu.memory_space<vmem>>, vector<1x1x16x4xbf16>
    %394 = vector.shape_cast %393 : vector<1x1x16x4xbf16> to vector<16x4xbf16>
    %c48_755 = arith.constant 48 : index
    %c32_756 = arith.constant 32 : index
    %395 = vector.load %arg5[%c48_755, %c32_756] : memref<256x36xbf16, #tpu.memory_space<vmem>>, vector<16x4xbf16>
    tpu.vector_store %arg5[%c48_755, %c32_756], %394 {strides = array<i32>} : memref<256x36xbf16, #tpu.memory_space<vmem>>, vector<16x4xbf16>,
    %c0_757 = arith.constant 0 : index
    %c6_758 = arith.constant 6 : index
    %c2_759 = arith.constant 2 : index
    %c0_760 = arith.constant 0 : index
    %396 = vector.load %arg1[%c0_757, %c6_758, %c2_759, %c0_760] : memref<1x18x18x4xbf16, #tpu.memory_space<vmem>>, vector<1x1x16x4xbf16>
    %397 = vector.shape_cast %396 : vector<1x1x16x4xbf16> to vector<16x4xbf16>
    %c64_761 = arith.constant 64 : index
    %c32_762 = arith.constant 32 : index
    %398 = vector.load %arg5[%c64_761, %c32_762] : memref<256x36xbf16, #tpu.memory_space<vmem>>, vector<16x4xbf16>
    tpu.vector_store %arg5[%c64_761, %c32_762], %397 {strides = array<i32>} : memref<256x36xbf16, #tpu.memory_space<vmem>>, vector<16x4xbf16>,
    %c0_763 = arith.constant 0 : index
    %c7_764 = arith.constant 7 : index
    %c2_765 = arith.constant 2 : index
    %c0_766 = arith.constant 0 : index
    %399 = vector.load %arg1[%c0_763, %c7_764, %c2_765, %c0_766] : memref<1x18x18x4xbf16, #tpu.memory_space<vmem>>, vector<1x1x16x4xbf16>
    %400 = vector.shape_cast %399 : vector<1x1x16x4xbf16> to vector<16x4xbf16>
    %c80_767 = arith.constant 80 : index
    %c32_768 = arith.constant 32 : index
    %401 = vector.load %arg5[%c80_767, %c32_768] : memref<256x36xbf16, #tpu.memory_space<vmem>>, vector<16x4xbf16>
    tpu.vector_store %arg5[%c80_767, %c32_768], %400 {strides = array<i32>} : memref<256x36xbf16, #tpu.memory_space<vmem>>, vector<16x4xbf16>,
    %c0_769 = arith.constant 0 : index
    %c8_770 = arith.constant 8 : index
    %c2_771 = arith.constant 2 : index
    %c0_772 = arith.constant 0 : index
    %402 = vector.load %arg1[%c0_769, %c8_770, %c2_771, %c0_772] : memref<1x18x18x4xbf16, #tpu.memory_space<vmem>>, vector<1x1x16x4xbf16>
    %403 = vector.shape_cast %402 : vector<1x1x16x4xbf16> to vector<16x4xbf16>
    %c96_773 = arith.constant 96 : index
    %c32_774 = arith.constant 32 : index
    %404 = vector.load %arg5[%c96_773, %c32_774] : memref<256x36xbf16, #tpu.memory_space<vmem>>, vector<16x4xbf16>
    tpu.vector_store %arg5[%c96_773, %c32_774], %403 {strides = array<i32>} : memref<256x36xbf16, #tpu.memory_space<vmem>>, vector<16x4xbf16>,
    %c0_775 = arith.constant 0 : index
    %c9_776 = arith.constant 9 : index
    %c2_777 = arith.constant 2 : index
    %c0_778 = arith.constant 0 : index
    %405 = vector.load %arg1[%c0_775, %c9_776, %c2_777, %c0_778] : memref<1x18x18x4xbf16, #tpu.memory_space<vmem>>, vector<1x1x16x4xbf16>
    %406 = vector.shape_cast %405 : vector<1x1x16x4xbf16> to vector<16x4xbf16>
    %c112_779 = arith.constant 112 : index
    %c32_780 = arith.constant 32 : index
    %407 = vector.load %arg5[%c112_779, %c32_780] : memref<256x36xbf16, #tpu.memory_space<vmem>>, vector<16x4xbf16>
    tpu.vector_store %arg5[%c112_779, %c32_780], %406 {strides = array<i32>} : memref<256x36xbf16, #tpu.memory_space<vmem>>, vector<16x4xbf16>,
    %c0_781 = arith.constant 0 : index
    %c10_782 = arith.constant 10 : index
    %c2_783 = arith.constant 2 : index
    %c0_784 = arith.constant 0 : index
    %408 = vector.load %arg1[%c0_781, %c10_782, %c2_783, %c0_784] : memref<1x18x18x4xbf16, #tpu.memory_space<vmem>>, vector<1x1x16x4xbf16>
    %409 = vector.shape_cast %408 : vector<1x1x16x4xbf16> to vector<16x4xbf16>
    %c128_785 = arith.constant 128 : index
    %c32_786 = arith.constant 32 : index
    %410 = vector.load %arg5[%c128_785, %c32_786] : memref<256x36xbf16, #tpu.memory_space<vmem>>, vector<16x4xbf16>
    tpu.vector_store %arg5[%c128_785, %c32_786], %409 {strides = array<i32>} : memref<256x36xbf16, #tpu.memory_space<vmem>>, vector<16x4xbf16>,
    %c0_787 = arith.constant 0 : index
    %c11_788 = arith.constant 11 : index
    %c2_789 = arith.constant 2 : index
    %c0_790 = arith.constant 0 : index
    %411 = vector.load %arg1[%c0_787, %c11_788, %c2_789, %c0_790] : memref<1x18x18x4xbf16, #tpu.memory_space<vmem>>, vector<1x1x16x4xbf16>
    %412 = vector.shape_cast %411 : vector<1x1x16x4xbf16> to vector<16x4xbf16>
    %c144_791 = arith.constant 144 : index
    %c32_792 = arith.constant 32 : index
    %413 = vector.load %arg5[%c144_791, %c32_792] : memref<256x36xbf16, #tpu.memory_space<vmem>>, vector<16x4xbf16>
    tpu.vector_store %arg5[%c144_791, %c32_792], %412 {strides = array<i32>} : memref<256x36xbf16, #tpu.memory_space<vmem>>, vector<16x4xbf16>,
    %c0_793 = arith.constant 0 : index
    %c12_794 = arith.constant 12 : index
    %c2_795 = arith.constant 2 : index
    %c0_796 = arith.constant 0 : index
    %414 = vector.load %arg1[%c0_793, %c12_794, %c2_795, %c0_796] : memref<1x18x18x4xbf16, #tpu.memory_space<vmem>>, vector<1x1x16x4xbf16>
    %415 = vector.shape_cast %414 : vector<1x1x16x4xbf16> to vector<16x4xbf16>
    %c160_797 = arith.constant 160 : index
    %c32_798 = arith.constant 32 : index
    %416 = vector.load %arg5[%c160_797, %c32_798] : memref<256x36xbf16, #tpu.memory_space<vmem>>, vector<16x4xbf16>
    tpu.vector_store %arg5[%c160_797, %c32_798], %415 {strides = array<i32>} : memref<256x36xbf16, #tpu.memory_space<vmem>>, vector<16x4xbf16>,
    %c0_799 = arith.constant 0 : index
    %c13_800 = arith.constant 13 : index
    %c2_801 = arith.constant 2 : index
    %c0_802 = arith.constant 0 : index
    %417 = vector.load %arg1[%c0_799, %c13_800, %c2_801, %c0_802] : memref<1x18x18x4xbf16, #tpu.memory_space<vmem>>, vector<1x1x16x4xbf16>
    %418 = vector.shape_cast %417 : vector<1x1x16x4xbf16> to vector<16x4xbf16>
    %c176_803 = arith.constant 176 : index
    %c32_804 = arith.constant 32 : index
    %419 = vector.load %arg5[%c176_803, %c32_804] : memref<256x36xbf16, #tpu.memory_space<vmem>>, vector<16x4xbf16>
    tpu.vector_store %arg5[%c176_803, %c32_804], %418 {strides = array<i32>} : memref<256x36xbf16, #tpu.memory_space<vmem>>, vector<16x4xbf16>,
    %c0_805 = arith.constant 0 : index
    %c14_806 = arith.constant 14 : index
    %c2_807 = arith.constant 2 : index
    %c0_808 = arith.constant 0 : index
    %420 = vector.load %arg1[%c0_805, %c14_806, %c2_807, %c0_808] : memref<1x18x18x4xbf16, #tpu.memory_space<vmem>>, vector<1x1x16x4xbf16>
    %421 = vector.shape_cast %420 : vector<1x1x16x4xbf16> to vector<16x4xbf16>
    %c192_809 = arith.constant 192 : index
    %c32_810 = arith.constant 32 : index
    %422 = vector.load %arg5[%c192_809, %c32_810] : memref<256x36xbf16, #tpu.memory_space<vmem>>, vector<16x4xbf16>
    tpu.vector_store %arg5[%c192_809, %c32_810], %421 {strides = array<i32>} : memref<256x36xbf16, #tpu.memory_space<vmem>>, vector<16x4xbf16>,
    %c0_811 = arith.constant 0 : index
    %c15_812 = arith.constant 15 : index
    %c2_813 = arith.constant 2 : index
    %c0_814 = arith.constant 0 : index
    %423 = vector.load %arg1[%c0_811, %c15_812, %c2_813, %c0_814] : memref<1x18x18x4xbf16, #tpu.memory_space<vmem>>, vector<1x1x16x4xbf16>
    %424 = vector.shape_cast %423 : vector<1x1x16x4xbf16> to vector<16x4xbf16>
    %c208_815 = arith.constant 208 : index
    %c32_816 = arith.constant 32 : index
    %425 = vector.load %arg5[%c208_815, %c32_816] : memref<256x36xbf16, #tpu.memory_space<vmem>>, vector<16x4xbf16>
    tpu.vector_store %arg5[%c208_815, %c32_816], %424 {strides = array<i32>} : memref<256x36xbf16, #tpu.memory_space<vmem>>, vector<16x4xbf16>,
    %c0_817 = arith.constant 0 : index
    %c16_818 = arith.constant 16 : index
    %c2_819 = arith.constant 2 : index
    %c0_820 = arith.constant 0 : index
    %426 = vector.load %arg1[%c0_817, %c16_818, %c2_819, %c0_820] : memref<1x18x18x4xbf16, #tpu.memory_space<vmem>>, vector<1x1x16x4xbf16>
    %427 = vector.shape_cast %426 : vector<1x1x16x4xbf16> to vector<16x4xbf16>
    %c224_821 = arith.constant 224 : index
    %c32_822 = arith.constant 32 : index
    %428 = vector.load %arg5[%c224_821, %c32_822] : memref<256x36xbf16, #tpu.memory_space<vmem>>, vector<16x4xbf16>
    tpu.vector_store %arg5[%c224_821, %c32_822], %427 {strides = array<i32>} : memref<256x36xbf16, #tpu.memory_space<vmem>>, vector<16x4xbf16>,
    %c0_823 = arith.constant 0 : index
    %c17_824 = arith.constant 17 : index
    %c2_825 = arith.constant 2 : index
    %c0_826 = arith.constant 0 : index
    %429 = vector.load %arg1[%c0_823, %c17_824, %c2_825, %c0_826] : memref<1x18x18x4xbf16, #tpu.memory_space<vmem>>, vector<1x1x16x4xbf16>
    %430 = vector.shape_cast %429 : vector<1x1x16x4xbf16> to vector<16x4xbf16>
    %c240_827 = arith.constant 240 : index
    %c32_828 = arith.constant 32 : index
    %431 = vector.load %arg5[%c240_827, %c32_828] : memref<256x36xbf16, #tpu.memory_space<vmem>>, vector<16x4xbf16>
    tpu.vector_store %arg5[%c240_827, %c32_828], %430 {strides = array<i32>} : memref<256x36xbf16, #tpu.memory_space<vmem>>, vector<16x4xbf16>,
    %c0_829 = arith.constant 0 : index
    %c0_830 = arith.constant 0 : index
    %432 = vector.load %arg5[%c0_829, %c0_830] : memref<256x36xbf16, #tpu.memory_space<vmem>>, vector<256x36xbf16>
    %c0_831 = arith.constant 0 : index
    %c0_832 = arith.constant 0 : index
    %433 = vector.load %arg2[%c0_831, %c0_832] : memref<36x128xbf16, #tpu.memory_space<vmem>>, vector<36x128xbf16>
    %cst = arith.constant dense<0.000000e+00> : vector<256x128xf32>
    %434 = tpu.matmul %432, %433, %cst {dimension_numbers = #tpu.dot_dimension_numbers<[1], [0], [0], [1], [0, 0, 1, 1], [], []>} : vector<256x36xbf16>, vector<36x128xbf16>, vector<256x128xf32> -> vector<256x128xf32>
    %c0_833 = arith.constant 0 : index
    %c0_834 = arith.constant 0 : index
    %c0_835 = arith.constant 0 : index
    %435 = vector.load %arg3[%c0_833, %c0_834, %c0_835] : memref<1x256x128xf32, #tpu.memory_space<vmem>>, vector<1x256x128xf32>
    %436 = vector.shape_cast %435 : vector<1x256x128xf32> to vector<256x128xf32>
    %437 = vector.shape_cast %434 : vector<256x128xf32> to vector<1x256x128xf32>
    tpu.vector_store %arg3[%c0_833, %c0_834, %c0_835], %437 {strides = array<i32>} : memref<1x256x128xf32, #tpu.memory_space<vmem>>, vector<1x256x128xf32>,
    %cst_836 = arith.constant dense<0.000000e+00> : vector<128xf32>
    %438 = vector.multi_reduction <add>, %434, %cst_836 [0] : vector<256x128xf32> to vector<128xf32>
    %439 = vector.shape_cast %438 : vector<128xf32> to vector<1x128xf32>
    %440 = arith.mulf %434, %434 : vector<256x128xf32>
    %cst_837 = arith.constant dense<0.000000e+00> : vector<128xf32>
    %441 = vector.multi_reduction <add>, %440, %cst_837 [0] : vector<256x128xf32> to vector<128xf32>
    %442 = vector.shape_cast %441 : vector<128xf32> to vector<1x128xf32>
    %443 = tpu.concatenate %439, %442 in 0 : vector<1x128xf32>, vector<1x128xf32> -> vector<2x128xf32>
    %c0_838 = arith.constant 0 : index
    %c0_839 = arith.constant 0 : index
    %c0_840 = arith.constant 0 : index
    %444 = vector.load %arg4[%c0_838, %c0_839, %c0_840] : memref<1x2x128xf32, #tpu.memory_space<vmem>>, vector<1x2x128xf32>
    %445 = vector.shape_cast %444 : vector<1x2x128xf32> to vector<2x128xf32>
    %446 = vector.shape_cast %443 : vector<2x128xf32> to vector<1x2x128xf32>
    tpu.vector_store %arg4[%c0_838, %c0_839, %c0_840], %446 {strides = array<i32>} : memref<1x2x128xf32, #tpu.memory_space<vmem>>, vector<1x2x128xf32>,
    return
  }
  func.func @transform_0(%arg0: i32) -> (i32, i32, i32, i32) {
    %c0_i32 = arith.constant 0 : i32
    %c0_i32_0 = arith.constant 0 : i32
    %c0_i32_1 = arith.constant 0 : i32
    %c0_i32_2 = arith.constant 0 : i32
    return %arg0, %c0_i32, %c0_i32_0, %c0_i32_1 : i32, i32, i32, i32
  }
  func.func @transform_1(%arg0: i32) -> (i32, i32) {
    %c0_i32 = arith.constant 0 : i32
    %c0_i32_0 = arith.constant 0 : i32
    %c0_i32_1 = arith.constant 0 : i32
    return %c0_i32, %c0_i32_0 : i32, i32
  }
  func.func @transform_2(%arg0: i32) -> (i32, i32, i32) {
    %c0_i32 = arith.constant 0 : i32
    %c0_i32_0 = arith.constant 0 : i32
    %c0_i32_1 = arith.constant 0 : i32
    return %arg0, %c0_i32, %c0_i32_0 : i32, i32, i32
  }
  func.func @transform_3(%arg0: i32) -> (i32, i32, i32) {
    %c0_i32 = arith.constant 0 : i32
    %c0_i32_0 = arith.constant 0 : i32
    %c0_i32_1 = arith.constant 0 : i32
    return %arg0, %c0_i32, %c0_i32_0 : i32, i32, i32
  }
}

</mosaic_0001>

<bundles_post_ra>
// kernel: conv_bn_act.3
= control target key start
LH: loop header
LB: loop body
LE: loop exit
PB: predicated region body
PF: predicated region fallthrough
CT: control target
= control target key end

     0   :  { %s893_s12 = smov 0   ;;  %s1250_s0 = inlined_call_operand.vmem [shape: f32[2,256,128], index: 0, kind: input, shape index: {}, may-alias: {0,3}]   ;;  %s1251_s1 = inlined_call_operand.vmem [shape: f32[1,1,128], index: 1, kind: input, shape index: {}]   ;;  %s1252_s2 = inlined_call_operand.vmem [shape: f32[1,1,128], index: 2, kind: input, shape index: {}]   ;;  %s1253_s3 = inlined_call_operand.vmem [shape: f32[2,256,128], index: 3, kind: output, shape index: {}, may-alias: {0,3}]  }
   0x1 LB: > { %s682_s13 = sadd.s32 4294967295, %s871_s12   ;;  %p686_p0 = scmp.ge.s32.totalorder %s871_s12, 1  ;;  %s871_s12 = sphi %s893_s12, %s13_s12  }
   0x2   : > { %p137_p1 = scmp.lt.s32.totalorder %s871_s12, 3 }
   0x4   : > { %p138_p2 = pnand %p686_p0, %p137_p1 }
   0x5   : > { %p161_p3 = scmp.lt.s32.totalorder (!%p138_p2), %s682_s13, 1 }
   0x6   : > { %141 = sbr.rel (%p138_p2) target bundleno = 127 (0x7f), region = 32 }
   0xb   : > { %s1255_s13 = smov (!%p161_p3, %s682_s13), 1  ;;  %v906_v0 = vld [vmem:[%s1251_s1] ss:$0 sm:$0xff] }
   0xc   : > { %s725_s16 = sshll.u32 %s1255_s13, 8  ;;  %v919_v1 = vld [vmem:[%s1252_s2] ss:$0 sm:$0xff] }
   0xd   : > { %s914_s19 = scalar_lea.vmem %s1250_s0, %s725_s16  ;;  %s1028_s24 = scalar_lea.vmem %s1253_s3, %s725_s16 }
   0xe   : > { %v171_v2 = vld [vmem:[%s914_s19] sm:$0xff]  ;;  %v172_v3 = vld [vmem:[%s914_s19 + $0x8] sm:$0xff]  ;;  %v173_v4 = vld [vmem:[%s914_s19 + $0x10] sm:$0xff] }
   0xf   : > { %v174_v5 = vld [vmem:[%s914_s19 + $0x18] sm:$0xff]  ;;  %v175_v6 = vld [vmem:[%s914_s19 + $0x20] sm:$0xff]  ;;  %v176_v7 = vld [vmem:[%s914_s19 + $0x28] sm:$0xff]  ;;  %v207_v8 = vmul.f32 %v906_v0, %v171_v2  ;;  %v208_v9 = vmul.f32 %v906_v0, %v172_v3  ;;  %v209_v10 = vmul.f32 %v906_v0, %v173_v4 }
  0x10   : > { %v177_v11 = vld [vmem:[%s914_s19 + $0x30] sm:$0xff]  ;;  %v178_v12 = vld [vmem:[%s914_s19 + $0x38] sm:$0xff]  ;;  %v210_v13 = vmul.f32 %v906_v0, %v174_v5  ;;  %v211_v14 = vmul.f32 %v906_v0, %v175_v6  ;;  %v212_v15 = vmul.f32 %v906_v0, %v176_v7  ;;  %v179_v20 = vld [vmem:[%s914_s19 + $0x40] sm:$0xff] }
  0x11   : > { %v936_v16 = vadd.f32 %v919_v1, %v207_v8  ;;  %v939_v17 = vadd.f32 %v919_v1, %v208_v9  ;;  %v942_v18 = vadd.f32 %v919_v1, %v209_v10  ;;  %v213_v19 = vmul.f32 %v906_v0, %v177_v11  ;;  %v180_v21 = vld [vmem:[%s914_s19 + $0x48] sm:$0xff]  ;;  %v181_v26 = vld [vmem:[%s914_s19 + $0x50] sm:$0xff]  ;;  %v182_v27 = vld [vmem:[%s914_s19 + $0x58] sm:$0xff] }
  0x12   : > { %v948_v22 = vadd.f32 %v919_v1, %v210_v13  ;;  %v951_v23 = vadd.f32 %v919_v1, %v211_v14  ;;  %v954_v24 = vadd.f32 %v919_v1, %v212_v15  ;;  %v214_v25 = vmul.f32 %v906_v0, %v178_v12  ;;  %v183_v47 = vld [vmem:[%s914_s19 + $0x60] sm:$0xff]  ;;  %v184_v48 = vld [vmem:[%s914_s19 + $0x68] sm:$0xff]  ;;  %v185_v58 = vld [vmem:[%s914_s19 + $0x70] sm:$0xff] }
  0x13   : > { %v275_v28 = vmin.f32 %v936_v16, 20.0  ;;  %v276_v29 = vmin.f32 %v939_v17, 20.0  ;;  %v277_v30 = vmin.f32 %v942_v18, 20.0  ;;  %v963_v31 = vadd.f32 %v919_v1, %v213_v19  ;;  %v186_v59 = vld [vmem:[%s914_s19 + $0x78] sm:$0xff] }
  0x14   : > { %v278_v32 = vmin.f32 %v948_v22, 20.0  ;;  %v279_v33 = vmin.f32 %v951_v23, 20.0  ;;  %v280_v34 = vmin.f32 %v954_v24, 20.0  ;;  %v969_v35 = vadd.f32 %v919_v1, %v214_v25 }
  0x15   : > { %v307_v36 = vmul.f32 1.442695, %v275_v28  ;;  %v281_v37 = vmin.f32 %v963_v31, 20.0  ;;  %v215_v38 = vmul.f32 %v906_v0, %v179_v20  ;;  %v216_v39 = vmul.f32 %v906_v0, %v180_v21 }
  0x16   : > { %v309_v40 = vmul.f32 1.442695, %v276_v29  ;;  %v282_v41 = vmin.f32 %v969_v35, 20.0  ;;  %v217_v42 = vmul.f32 %v906_v0, %v181_v26  ;;  %v218_v43 = vmul.f32 %v906_v0, %v182_v27 }
  0x17   : > { %737 = vpow2.f32 %v307_v36  ;;  %v311_v44 = vmul.f32 1.442695, %v277_v30  ;;  %v978_v45 = vadd.f32 %v919_v1, %v215_v38  ;;  %v981_v46 = vadd.f32 %v919_v1, %v216_v39 }
  0x18   : > { %739 = vpow2.f32 %v309_v40  ;;  %v313_v49 = vmul.f32 1.442695, %v278_v32  ;;  %v315_v50 = vmul.f32 1.442695, %v279_v33  ;;  %v986_v51 = vadd.f32 %v919_v1, %v217_v42 }
  0x19   : > { %741 = vpow2.f32 %v311_v44  ;;  %v317_v52 = vmul.f32 1.442695, %v280_v34  ;;  %v319_v53 = vmul.f32 1.442695, %v281_v37  ;;  %v321_v54 = vmul.f32 1.442695, %v282_v41 }
  0x1a   : > { %743 = vpow2.f32 %v313_v49  ;;  %v283_v55 = vmin.f32 %v978_v45, 20.0  ;;  %v284_v56 = vmin.f32 %v981_v46, 20.0  ;;  %v285_v57 = vmin.f32 %v986_v51, 20.0 }
  0x1b   : > { %745 = vpow2.f32 %v315_v50  ;;  %v994_v60 = vadd.f32 %v919_v1, %v218_v43  ;;  %v219_v61 = vmul.f32 %v906_v0, %v183_v47  ;;  %v220_v62 = vmul.f32 %v906_v0, %v184_v48 }
  0x1c   : > { %747 = vpow2.f32 %v317_v52  ;;  %v323_v63 = vmul.f32 1.442695, %v283_v55  ;;  %v325_v2 = vmul.f32 1.442695, %v284_v56  ;;  %v327_v3 = vmul.f32 1.442695, %v285_v57 }
  0x1d   : > { %v738_v4 = vpop.eup %737  ;;  %749 = vpow2.f32 %v319_v53  ;;  %v286_v5 = vmin.f32 %v994_v60, 20.0  ;;  %v1000_v6 = vadd.f32 %v919_v1, %v219_v61  ;;  %v1003_v7 = vadd.f32 %v919_v1, %v220_v62 }
  0x1e   : > { %v740_v8 = vpop.eup %739  ;;  %v371_v9 = vadd.f32 1.0, %v738_v4  ;;  %751 = vpow2.f32 %v321_v54  ;;  %v1006_v10 = vmul.f32 %v906_v0, %v185_v58  ;;  %v1009_v11 = vmul.f32 %v906_v0, %v186_v59 }
  0x1f   : > { %v742_v12 = vpop.eup %741  ;;  %v372_v13 = vadd.f32 1.0, %v740_v8  ;;  %753 = vpow2.f32 %v323_v63  ;;  %v1011_v14 = vmul.f32 1.442695, %v286_v5  ;;  %v287_v15 = vmin.f32 %v1000_v6, 20.0 }
  0x20   : > { %v744_v19 = vpop.eup %743  ;;  %v403_v20 = vmul.f32 %v371_v9, %v371_v9  ;;  %v373_v21 = vadd.f32 1.0, %v742_v12  ;;  %755 = vpow2.f32 %v325_v2  ;;  %v288_v25 = vmin.f32 %v1003_v7, 20.0 }
  0x21   : > { %v746_v26 = vpop.eup %745  ;;  %v404_v27 = vmul.f32 %v372_v13, %v372_v13  ;;  %v374_v28 = vadd.f32 1.0, %v744_v19  ;;  %757 = vpow2.f32 %v327_v3  ;;  %v1015_v29 = vmul.f32 1.442695, %v287_v15 }
  0x22   : > { %v748_v30 = vpop.eup %747  ;;  %v691_v32 = vadd.f32 -1.0, %v403_v20  ;;  %v467_v33 = vadd.f32 1.0, %v403_v20  ;;  %v405_v34 = vmul.f32 %v373_v21, %v373_v21  ;;  %v375_v36 = vadd.f32 1.0, %v746_v26 }
  0x23   : > { %v750_v37 = vpop.eup %749  ;;  %v692_v38 = vadd.f32 -1.0, %v404_v27  ;;  %v468_v39 = vadd.f32 1.0, %v404_v27  ;;  %v406_v40 = vmul.f32 %v374_v28, %v374_v28  ;;  %v376_v41 = vadd.f32 1.0, %v748_v30  ;;  %v187_v28 = vld [vmem:[%s914_s19 + $0x80] sm:$0xff]  ;;  %v188_v30 = vld [vmem:[%s914_s19 + $0x88] sm:$0xff] }
  0x24   : > { %v752_v42 = vpop.eup %751  ;;  %759 = vrcp.f32 %v467_v33  ;;  %v693_v43 = vadd.f32 -1.0, %v405_v34  ;;  %v469_v44 = vadd.f32 1.0, %v405_v34  ;;  %v407_v47 = vmul.f32 %v375_v36, %v375_v36  ;;  %v1033_v33 = vld [vmem:[%s914_s19 + $0x90] sm:$0xff]  ;;  %v1036_v34 = vld [vmem:[%s914_s19 + $0x98] sm:$0xff]  ;;  %v1042_v36 = vld [vmem:[%s914_s19 + $0xa8] sm:$0xff] }
  0x25   : > { %v754_v48 = vpop.eup %753  ;;  %761 = vrcp.f32 %v468_v39  ;;  %v694_v49 = vadd.f32 -1.0, %v406_v40  ;;  %v470_v50 = vadd.f32 1.0, %v406_v40  ;;  %v408_v52 = vmul.f32 %v376_v41, %v376_v41  ;;  %v1048_v39 = vld [vmem:[%s914_s19 + $0xb8] sm:$0xff]  ;;  %v1051_v40 = vld [vmem:[%s914_s19 + $0xc0] sm:$0xff]  ;;  %v1054_v41 = vld [vmem:[%s914_s19 + $0xc8] sm:$0xff] }
  0x26   : > { %v756_v53 = vpop.eup %755  ;;  %763 = vrcp.f32 %v469_v44  ;;  %v695_v54 = vadd.f32 -1.0, %v407_v47  ;;  %v471_v55 = vadd.f32 1.0, %v407_v47  ;;  %v377_v56 = vadd.f32 1.0, %v750_v37  ;;  %v1045_v37 = vld [vmem:[%s914_s19 + $0xb0] sm:$0xff] }
  0x27   : > { %v758_v57 = vpop.eup %757  ;;  %765 = vrcp.f32 %v470_v50  ;;  %v696_v58 = vadd.f32 -1.0, %v408_v52  ;;  %v472_v59 = vadd.f32 1.0, %v408_v52  ;;  %v378_v61 = vadd.f32 1.0, %v752_v42  ;;  %v1057_v50 = vld [vmem:[%s914_s19 + $0xd0] sm:$0xff]  ;;  %v1060_v52 = vld [vmem:[%s914_s19 + $0xd8] sm:$0xff] }
  0x28   : > { %767 = vrcp.f32 %v471_v55  ;;  %v409_v62 = vmul.f32 %v377_v56, %v377_v56  ;;  %v379_v63 = vadd.f32 1.0, %v754_v48  ;;  %v380_v2 = vadd.f32 1.0, %v756_v53  ;;  %v1063_v53 = vld [vmem:[%s914_s19 + $0xe0] sm:$0xff] }
  0x29   : > { %769 = vrcp.f32 %v472_v59  ;;  %v410_v3 = vmul.f32 %v378_v61, %v378_v61  ;;  %v381_v4 = vadd.f32 1.0, %v758_v57  ;;  %v1017_v5 = vmul.f32 1.442695, %v288_v25  ;;  %v1067_v61 = vld [vmem:[%s914_s19 + $0xe8] sm:$0xff] }
  0x2a   : > { %v760_v8 = vpop.eup %759  ;;  %v1019_v9 = vadd.f32 -1.0, %v409_v62  ;;  %v473_v12 = vadd.f32 1.0, %v409_v62  ;;  %v411_v13 = vmul.f32 %v379_v63, %v379_v63  ;;  %v412_v15 = vmul.f32 %v380_v2, %v380_v2  ;;  %v1073_v62 = vld [vmem:[%s914_s19 + $0xf8] sm:$0xff] }
  0x2b   : > { %v762_v19 = vpop.eup %761  ;;  %v531_v20 = vmul.f32 %v760_v8, %v691_v32  ;;  %v1021_v21 = vadd.f32 -1.0, %v410_v3  ;;  %v474_v26 = vadd.f32 1.0, %v410_v3  ;;  %v413_v25 = vmul.f32 %v381_v4, %v381_v4  ;;  %v1039_v32 = vld [vmem:[%s914_s19 + $0xa0] sm:$0xff] }
  0x2c   : > { %v764_v27 = vpop.eup %763  ;;  %v532_v42 = vmul.f32 %v762_v19, %v692_v38  ;;  %771 = vrcp.f32 %v473_v12  ;;  %v699_v44 = vadd.f32 -1.0, %v411_v13  ;;  %v475_v47 = vadd.f32 1.0, %v411_v13  ;;  %v1070_v38 = vld [vmem:[%s914_s19 + $0xf0] sm:$0xff] }
  0x2d   : > { %v766_v48 = vpop.eup %765  ;;  %v563_v55 = vmul.f32 %v531_v20, %v936_v16  ;;  %v533_v56 = vmul.f32 %v764_v27, %v693_v43  ;;  %773 = vrcp.f32 %v474_v26  ;;  %v700_v57 = vadd.f32 -1.0, %v412_v15 }
  0x2e   : > { %v768_v59 = vpop.eup %767  ;;  %v564_v63 = vmul.f32 %v532_v42, %v939_v17  ;;  %v534_v2 = vmul.f32 %v766_v48, %v694_v49  ;;  %775 = vrcp.f32 %v475_v47  ;;  %v476_v3 = vadd.f32 1.0, %v412_v15 }
  0x2f   : > { %v770_v4 = vpop.eup %769  ;;  %595 = vst [vmem:[%s1028_s24] sm:$0xff] %v563_v55  ;;  %v565_v16 = vmul.f32 %v533_v56, %v942_v18  ;;  %v535_v43 = vmul.f32 %v768_v59, %v695_v54  ;;  %v701_v8 = vadd.f32 -1.0, %v413_v25  ;;  %v477_v12 = vadd.f32 1.0, %v413_v25 }
  0x30   : > { %596 = vst [vmem:[%s1028_s24 + $0x8] sm:$0xff] %v564_v63  ;;  %v566_v13 = vmul.f32 %v534_v2, %v948_v22  ;;  %v536_v19 = vmul.f32 %v770_v4, %v696_v58  ;;  %777 = vrcp.f32 %v476_v3  ;;  %v1082_v17 = vadd.f32 %v919_v1, %v1006_v10 }
  0x31   : > { %597 = vst [vmem:[%s1028_s24 + $0x10] sm:$0xff] %v565_v16  ;;  %v567_v49 = vmul.f32 %v535_v43, %v951_v23  ;;  %779 = vrcp.f32 %v477_v12  ;;  %v1088_v18 = vadd.f32 %v919_v1, %v1009_v11  ;;  %v223_v54 = vmul.f32 %v906_v0, %v187_v28 }
  0x32   : > { %v772_v15 = vpop.eup %771  ;;  %598 = vst [vmem:[%s1028_s24 + $0x18] sm:$0xff] %v566_v13  ;;  %v568_v22 = vmul.f32 %v536_v19, %v954_v24  ;;  %781 = vpow2.f32 %v1011_v14  ;;  %v289_v10 = vmin.f32 %v1082_v17, 20.0  ;;  %v224_v58 = vmul.f32 %v906_v0, %v188_v30 }
  0x33   : > { %v774_v20 = vpop.eup %773  ;;  %599 = vst [vmem:[%s1028_s24 + $0x20] sm:$0xff] %v567_v49  ;;  %v537_v23 = vmul.f32 %v772_v15, %v1019_v9  ;;  %783 = vpow2.f32 %v1015_v29  ;;  %v290_v11 = vmin.f32 %v1088_v18, 20.0  ;;  %v1101_v26 = vadd.f32 %v919_v1, %v223_v54 }
  0x34   : > { %v776_v25 = vpop.eup %775  ;;  %600 = vst [vmem:[%s1028_s24 + $0x28] sm:$0xff] %v568_v22  ;;  %v538_v24 = vmul.f32 %v774_v20, %v1021_v21  ;;  %785 = vpow2.f32 %v1017_v5  ;;  %v335_v14 = vmul.f32 1.442695, %v289_v10  ;;  %v1107_v27 = vadd.f32 %v919_v1, %v224_v58 }
  0x35   : > { %v569_v9 = vmul.f32 %v537_v23, %v963_v31  ;;  %v539_v29 = vmul.f32 %v776_v25, %v699_v44  ;;  %v337_v28 = vmul.f32 1.442695, %v290_v11  ;;  %v291_v30 = vmin.f32 %v1101_v26, 20.0 }
  0x36   : > { %v778_v42 = vpop.eup %777  ;;  %v570_v47 = vmul.f32 %v538_v24, %v969_v35  ;;  %787 = vpow2.f32 %v335_v14  ;;  %v292_v21 = vmin.f32 %v1107_v27, 20.0  ;;  %v225_v5 = vmul.f32 %v906_v0, %v1033_v33 }
  0x37   : > { %v780_v48 = vpop.eup %779  ;;  %601 = vst [vmem:[%s1028_s24 + $0x30] sm:$0xff] %v569_v9  ;;  %v571_v55 = vmul.f32 %v539_v29, %v978_v45  ;;  %v540_v31 = vmul.f32 %v778_v42, %v700_v57  ;;  %789 = vpow2.f32 %v337_v28  ;;  %v339_v44 = vmul.f32 1.442695, %v291_v30 }
  0x38   : > { %v782_v56 = vpop.eup %781  ;;  %602 = vst [vmem:[%s1028_s24 + $0x38] sm:$0xff] %v570_v47  ;;  %v541_v59 = vmul.f32 %v780_v48, %v701_v8  ;;  %v341_v63 = vmul.f32 1.442695, %v292_v21  ;;  %v1119_v35 = vadd.f32 %v919_v1, %v225_v5  ;;  %v226_v2 = vmul.f32 %v906_v0, %v1036_v34 }
  0x39   : > { %v784_v3 = vpop.eup %783  ;;  %603 = vst [vmem:[%s1028_s24 + $0x40] sm:$0xff] %v571_v55  ;;  %v572_v33 = vmul.f32 %v540_v31, %v981_v46  ;;  %v382_v45 = vadd.f32 1.0, %v782_v56  ;;  %791 = vpow2.f32 %v339_v44  ;;  %v227_v57 = vmul.f32 %v906_v0, %v1039_v32 }
  0x3a   : > { %v786_v4 = vpop.eup %785  ;;  %v573_v16 = vmul.f32 %v541_v59, %v986_v51  ;;  %v383_v43 = vadd.f32 1.0, %v784_v3  ;;  %793 = vpow2.f32 %v341_v63  ;;  %v293_v8 = vmin.f32 %v1119_v35, 20.0 }
  0x3b   : > { %604 = vst [vmem:[%s1028_s24 + $0x48] sm:$0xff] %v572_v33  ;;  %v414_v12 = vmul.f32 %v382_v45, %v382_v45  ;;  %v384_v34 = vadd.f32 1.0, %v786_v4  ;;  %v1131_v13 = vadd.f32 %v919_v1, %v226_v2  ;;  %v1134_v46 = vadd.f32 %v919_v1, %v227_v57 }
  0x3c   : > { %v788_v19 = vpop.eup %787  ;;  %605 = vst [vmem:[%s1028_s24 + $0x50] sm:$0xff] %v573_v16  ;;  %v415_v49 = vmul.f32 %v383_v43, %v383_v43  ;;  %v343_v32 = vmul.f32 1.442695, %v293_v8  ;;  %v228_v51 = vmul.f32 %v906_v0, %v1042_v36  ;;  %v229_v54 = vmul.f32 %v906_v0, %v1045_v37 }
  0x3d   : > { %v790_v15 = vpop.eup %789  ;;  %v702_v22 = vadd.f32 -1.0, %v414_v12  ;;  %v478_v10 = vadd.f32 1.0, %v414_v12  ;;  %v416_v58 = vmul.f32 %v384_v34, %v384_v34  ;;  %v385_v20 = vadd.f32 1.0, %v788_v19 }
  0x3e   : > { %v703_v23 = vadd.f32 -1.0, %v415_v49  ;;  %v479_v11 = vadd.f32 1.0, %v415_v49  ;;  %v386_v25 = vadd.f32 1.0, %v790_v15  ;;  %795 = vpow2.f32 %v343_v32 }
  0x3f   : > { %v792_v24 = vpop.eup %791  ;;  %797 = vrcp.f32 %v478_v10  ;;  %v704_v14 = vadd.f32 -1.0, %v416_v58  ;;  %v480_v9 = vadd.f32 1.0, %v416_v58  ;;  %v417_v29 = vmul.f32 %v385_v20, %v385_v20 }
  0x40   : > { %v794_v28 = vpop.eup %793  ;;  %799 = vrcp.f32 %v479_v11  ;;  %v418_v36 = vmul.f32 %v386_v25, %v386_v25  ;;  %v387_v30 = vadd.f32 1.0, %v792_v24  ;;  %v294_v37 = vmin.f32 %v1131_v13, 20.0 }
  0x41   : > { %801 = vrcp.f32 %v480_v9  ;;  %v705_v42 = vadd.f32 -1.0, %v417_v29  ;;  %v481_v47 = vadd.f32 1.0, %v417_v29  ;;  %v388_v21 = vadd.f32 1.0, %v794_v28 }
  0x42   : > { %v706_v5 = vadd.f32 -1.0, %v418_v36  ;;  %v482_v48 = vadd.f32 1.0, %v418_v36  ;;  %v419_v55 = vmul.f32 %v387_v30, %v387_v30  ;;  %v345_v31 = vmul.f32 1.442695, %v294_v37 }
  0x43   : > { %803 = vrcp.f32 %v481_v47  ;;  %v420_v44 = vmul.f32 %v388_v21, %v388_v21  ;;  %v295_v56 = vmin.f32 %v1134_v46, 20.0  ;;  %v1144_v59 = vadd.f32 %v919_v1, %v228_v51 }
  0x44   : > { %v796_v63 = vpop.eup %795  ;;  %805 = vrcp.f32 %v482_v48  ;;  %v707_v2 = vadd.f32 -1.0, %v419_v55  ;;  %v483_v3 = vadd.f32 1.0, %v419_v55  ;;  %v1147_v33 = vadd.f32 %v919_v1, %v229_v54 }
  0x45   : > { %v798_v45 = vpop.eup %797  ;;  %v708_v57 = vadd.f32 -1.0, %v420_v44  ;;  %v484_v4 = vadd.f32 1.0, %v420_v44  ;;  %v389_v16 = vadd.f32 1.0, %v796_v63  ;;  %807 = vpow2.f32 %v345_v31 }
  0x46   : > { %v800_v43 = vpop.eup %799  ;;  %v542_v8 = vmul.f32 %v798_v45, %v702_v22  ;;  %809 = vrcp.f32 %v483_v3  ;;  %v347_v12 = vmul.f32 1.442695, %v295_v56  ;;  %v296_v34 = vmin.f32 %v1144_v59, 20.0 }
  0x47   : > { %v802_v19 = vpop.eup %801  ;;  %v543_v49 = vmul.f32 %v800_v43, %v703_v23  ;;  %811 = vrcp.f32 %v484_v4  ;;  %v421_v32 = vmul.f32 %v389_v16, %v389_v16  ;;  %v297_v51 = vmin.f32 %v1147_v33, 20.0 }
  0x48   : > { %v574_v54 = vmul.f32 %v542_v8, %v994_v60  ;;  %v544_v15 = vmul.f32 %v802_v19, %v704_v14  ;;  %813 = vpow2.f32 %v347_v12  ;;  %v349_v10 = vmul.f32 1.442695, %v296_v34 }
  0x49   : > { %v804_v58 = vpop.eup %803  ;;  %v575_v22 = vmul.f32 %v543_v49, %v1000_v6  ;;  %v709_v20 = vadd.f32 -1.0, %v421_v32  ;;  %v485_v11 = vadd.f32 1.0, %v421_v32  ;;  %v351_v25 = vmul.f32 1.442695, %v297_v51 }
  0x4a   : > { %v806_v24 = vpop.eup %805  ;;  %606 = vst [vmem:[%s1028_s24 + $0x58] sm:$0xff] %v574_v54  ;;  %v576_v23 = vmul.f32 %v544_v15, %v1003_v7  ;;  %v545_v9 = vmul.f32 %v804_v58, %v705_v42  ;;  %815 = vpow2.f32 %v349_v10  ;;  %v230_v60 = vmul.f32 %v906_v0, %v1048_v39 }
  0x4b   : > { %v808_v29 = vpop.eup %807  ;;  %607 = vst [vmem:[%s1028_s24 + $0x60] sm:$0xff] %v575_v22  ;;  %v546_v14 = vmul.f32 %v806_v24, %v706_v5  ;;  %817 = vrcp.f32 %v485_v11  ;;  %v231_v6 = vmul.f32 %v906_v0, %v1051_v40  ;;  %v232_v28 = vmul.f32 %v906_v0, %v1054_v41 }
  0x4c   : > { %v810_v36 = vpop.eup %809  ;;  %608 = vst [vmem:[%s1028_s24 + $0x68] sm:$0xff] %v576_v23  ;;  %v577_v7 = vmul.f32 %v545_v9, %v1082_v17  ;;  %v390_v30 = vadd.f32 1.0, %v808_v29  ;;  %819 = vpow2.f32 %v351_v25  ;;  %v1165_v39 = vadd.f32 %v919_v1, %v230_v60 }
  0x4d   : > { %v812_v37 = vpop.eup %811  ;;  %v578_v42 = vmul.f32 %v546_v14, %v1088_v18  ;;  %v547_v47 = vmul.f32 %v810_v36, %v707_v2  ;;  %v1169_v21 = vadd.f32 %v919_v1, %v231_v6  ;;  %v1172_v40 = vadd.f32 %v919_v1, %v232_v28 }
  0x4e   : > { %v814_v41 = vpop.eup %813  ;;  %609 = vst [vmem:[%s1028_s24 + $0x70] sm:$0xff] %v577_v7  ;;  %v548_v5 = vmul.f32 %v812_v37, %v708_v57  ;;  %v422_v17 = vmul.f32 %v390_v30, %v390_v30  ;;  %v298_v48 = vmin.f32 %v1165_v39, 20.0  ;;  %v233_v55 = vmul.f32 %v906_v0, %v1057_v50 }
  0x4f   : > { %610 = vst [vmem:[%s1028_s24 + $0x78] sm:$0xff] %v578_v42  ;;  %v579_v18 = vmul.f32 %v547_v47, %v1101_v26  ;;  %v391_v31 = vadd.f32 1.0, %v814_v41  ;;  %v299_v44 = vmin.f32 %v1169_v21, 20.0  ;;  %v300_v56 = vmin.f32 %v1172_v40, 20.0 }
  0x50   : > { %v816_v63 = vpop.eup %815  ;;  %v580_v2 = vmul.f32 %v548_v5, %v1107_v27  ;;  %v486_v3 = vadd.f32 1.0, %v422_v17  ;;  %v353_v45 = vmul.f32 1.442695, %v298_v48  ;;  %v710_v4 = vadd.f32 -1.0, %v422_v17 }
  0x51   : > { %v818_v57 = vpop.eup %817  ;;  %611 = vst [vmem:[%s1028_s24 + $0x80] sm:$0xff] %v579_v18  ;;  %v423_v16 = vmul.f32 %v391_v31, %v391_v31  ;;  %v392_v43 = vadd.f32 1.0, %v816_v63  ;;  %v355_v50 = vmul.f32 1.442695, %v299_v44  ;;  %v1186_v26 = vadd.f32 %v919_v1, %v233_v55 }
  0x52   : > { %v820_v8 = vpop.eup %819  ;;  %612 = vst [vmem:[%s1028_s24 + $0x88] sm:$0xff] %v580_v2  ;;  %v549_v12 = vmul.f32 %v818_v57, %v709_v20  ;;  %821 = vrcp.f32 %v486_v3  ;;  %v234_v34 = vmul.f32 %v906_v0, %v1060_v52  ;;  %v357_v32 = vmul.f32 1.442695, %v300_v56 }
  0x53   : > { %v487_v27 = vadd.f32 1.0, %v423_v16  ;;  %v424_v19 = vmul.f32 %v392_v43, %v392_v43  ;;  %v393_v49 = vadd.f32 1.0, %v820_v8  ;;  %823 = vpow2.f32 %v353_v45 }
  0x54   : > { %v581_v51 = vmul.f32 %v549_v12, %v1119_v35  ;;  %v301_v54 = vmin.f32 %v1186_v26, 20.0  ;;  %v1193_v15 = vadd.f32 %v919_v1, %v234_v34  ;;  %v711_v10 = vadd.f32 -1.0, %v423_v16 }
  0x55   : > { %825 = vrcp.f32 %v487_v27  ;;  %v488_v58 = vadd.f32 1.0, %v424_v19  ;;  %v425_v22 = vmul.f32 %v393_v49, %v393_v49  ;;  %v235_v11 = vmul.f32 %v906_v0, %v1063_v53 }
  0x56   : > { %613 = vst [vmem:[%s1028_s24 + $0x90] sm:$0xff] %v581_v51  ;;  %827 = vpow2.f32 %v355_v50  ;;  %v359_v20 = vmul.f32 1.442695, %v301_v54  ;;  %v302_v52 = vmin.f32 %v1193_v15, 20.0  ;;  %v712_v25 = vadd.f32 -1.0, %v424_v19 }
  0x57   : > { %829 = vrcp.f32 %v488_v58  ;;  %v489_v35 = vadd.f32 1.0, %v425_v22  ;;  %v236_v24 = vmul.f32 %v906_v0, %v1067_v61  ;;  %v1202_v60 = vadd.f32 %v919_v1, %v235_v11 }
  0x58   : > { %v822_v23 = vpop.eup %821  ;;  %831 = vpow2.f32 %v357_v32  ;;  %v361_v9 = vmul.f32 1.442695, %v302_v52  ;;  %v237_v29 = vmul.f32 %v906_v0, %v1070_v38  ;;  %v238_v53 = vmul.f32 %v906_v0, %v1073_v62 }
  0x59   : > { %v550_v14 = vmul.f32 %v822_v23, %v710_v4  ;;  %833 = vrcp.f32 %v489_v35  ;;  %v1207_v6 = vadd.f32 %v919_v1, %v236_v24  ;;  %v824_v28 = vpop.eup %823  ;;  %v713_v61 = vadd.f32 -1.0, %v425_v22 }
  0x5a   : > { %835 = vpow2.f32 %v359_v20  ;;  %v303_v36 = vmin.f32 %v1202_v60, 20.0  ;;  %v1213_v7 = vadd.f32 %v919_v1, %v237_v29  ;;  %v394_v37 = vadd.f32 1.0, %v824_v28 }
  0x5b   : > { %v826_v30 = vpop.eup %825  ;;  %v582_v38 = vmul.f32 %v550_v14, %v1131_v13  ;;  %837 = vpow2.f32 %v361_v9  ;;  %v304_v42 = vmin.f32 %v1207_v6, 20.0  ;;  %v1219_v62 = vadd.f32 %v919_v1, %v238_v53 }
  0x5c   : > { %v828_v47 = vpop.eup %827  ;;  %v551_v41 = vmul.f32 %v826_v30, %v711_v10  ;;  %v363_v5 = vmul.f32 1.442695, %v303_v36  ;;  %v305_v0 = vmin.f32 %v1213_v7, 20.0  ;;  %v426_v48 = vmul.f32 %v394_v37, %v394_v37 }
  0x5d   : > { %v830_v17 = vpop.eup %829  ;;  %614 = vst [vmem:[%s1028_s24 + $0x98] sm:$0xff] %v582_v38  ;;  %v395_v55 = vadd.f32 1.0, %v828_v47  ;;  %v365_v18 = vmul.f32 1.442695, %v304_v42  ;;  %v306_v16 = vmin.f32 %v1219_v62, 20.0 }
  0x5e   : > { %v832_v31 = vpop.eup %831  ;;  %v583_v13 = vmul.f32 %v551_v41, %v1134_v46  ;;  %v552_v44 = vmul.f32 %v830_v17, %v712_v25  ;;  %839 = vpow2.f32 %v363_v5  ;;  %v367_v56 = vmul.f32 1.442695, %v305_v0 }
  0x5f   : > { %v834_v63 = vpop.eup %833  ;;  %v490_v2 = vadd.f32 1.0, %v426_v48  ;;  %v427_v3 = vmul.f32 %v395_v55, %v395_v55  ;;  %v396_v45 = vadd.f32 1.0, %v832_v31  ;;  %841 = vpow2.f32 %v365_v18 }
  0x60   : > { %v836_v57 = vpop.eup %835  ;;  %615 = vst [vmem:[%s1028_s24 + $0xa0] sm:$0xff] %v583_v13  ;;  %v584_v1 = vmul.f32 %v552_v44, %v1144_v59  ;;  %v553_v4 = vmul.f32 %v834_v63, %v713_v61  ;;  %v369_v19 = vmul.f32 1.442695, %v306_v16  ;;  %v714_v59 = vadd.f32 -1.0, %v426_v48 }
  0x61   : > { %v838_v43 = vpop.eup %837  ;;  %843 = vrcp.f32 %v490_v2  ;;  %v491_v46 = vadd.f32 1.0, %v427_v3  ;;  %v428_v50 = vmul.f32 %v396_v45, %v396_v45  ;;  %v397_v12 = vadd.f32 1.0, %v836_v57 }
  0x62   : > { %616 = vst [vmem:[%s1028_s24 + $0xa8] sm:$0xff] %v584_v1  ;;  %v585_v8 = vmul.f32 %v553_v4, %v1147_v33  ;;  %v398_v34 = vadd.f32 1.0, %v838_v43  ;;  %845 = vpow2.f32 %v367_v56  ;;  %v715_v58 = vadd.f32 -1.0, %v427_v3 }
  0x63   : > { %847 = vrcp.f32 %v491_v46  ;;  %v492_v27 = vadd.f32 1.0, %v428_v50  ;;  %v429_v32 = vmul.f32 %v397_v12, %v397_v12  ;;  %v716_v24 = vadd.f32 -1.0, %v428_v50 }
  0x64   : > { %v840_v49 = vpop.eup %839  ;;  %617 = vst [vmem:[%s1028_s24 + $0xb0] sm:$0xff] %v585_v8  ;;  %v430_v51 = vmul.f32 %v398_v34, %v398_v34 }
  0x65   : > { %849 = vrcp.f32 %v492_v27  ;;  %v399_v54 = vadd.f32 1.0, %v840_v49  ;;  %v842_v10 = vpop.eup %841  ;;  %v493_v22 = vadd.f32 1.0, %v429_v32  ;;  %v717_v36 = vadd.f32 -1.0, %v429_v32 }
  0x66   : > { %v494_v20 = vadd.f32 1.0, %v430_v51  ;;  %v400_v33 = vadd.f32 1.0, %v842_v10  ;;  %851 = vpow2.f32 %v369_v19  ;;  %v718_v42 = vadd.f32 -1.0, %v430_v51 }
  0x67   : > { %v844_v52 = vpop.eup %843  ;;  %v431_v11 = vmul.f32 %v399_v54, %v399_v54  ;;  %853 = vrcp.f32 %v493_v22 }
  0x68   : > { %v846_v25 = vpop.eup %845  ;;  %v554_v35 = vmul.f32 %v844_v52, %v714_v59  ;;  %855 = vrcp.f32 %v494_v20  ;;  %v432_v29 = vmul.f32 %v400_v33, %v400_v33 }
  0x69   : > { %v848_v23 = vpop.eup %847  ;;  %v495_v9 = vadd.f32 1.0, %v431_v11  ;;  %v401_v28 = vadd.f32 1.0, %v846_v25 }
  0x6a   : > { %v586_v14 = vmul.f32 %v554_v35, %v1165_v39  ;;  %v555_v53 = vmul.f32 %v848_v23, %v715_v58  ;;  %v496_v30 = vadd.f32 1.0, %v432_v29  ;;  %v719_v39 = vadd.f32 -1.0, %v431_v11 }
  0x6b   : > { %v850_v61 = vpop.eup %849  ;;  %857 = vrcp.f32 %v495_v9  ;;  %v433_v47 = vmul.f32 %v401_v28, %v401_v28  ;;  %v720_v13 = vadd.f32 -1.0, %v432_v29 }
  0x6c   : > { %618 = vst [vmem:[%s1028_s24 + $0xb8] sm:$0xff] %v586_v14  ;;  %v587_v38 = vmul.f32 %v555_v53, %v1169_v21  ;;  %v556_v37 = vmul.f32 %v850_v61, %v716_v24  ;;  %v852_v41 = vpop.eup %851  ;;  %859 = vrcp.f32 %v496_v30 }
  0x6d   : > { %v854_v5 = vpop.eup %853  ;;  %v497_v17 = vadd.f32 1.0, %v433_v47  ;;  %v402_v48 = vadd.f32 1.0, %v852_v41  ;;  %v721_v45 = vadd.f32 -1.0, %v433_v47 }
  0x6e   : > { %619 = vst [vmem:[%s1028_s24 + $0xc0] sm:$0xff] %v587_v38  ;;  %v588_v0 = vmul.f32 %v556_v37, %v1172_v40  ;;  %v856_v55 = vpop.eup %855  ;;  %v557_v18 = vmul.f32 %v854_v5, %v717_v36 }
  0x6f   : > { %v558_v31 = vmul.f32 %v856_v55, %v718_v42  ;;  %861 = vrcp.f32 %v497_v17  ;;  %v434_v21 = vmul.f32 %v402_v48, %v402_v48 }
  0x70   : > { %620 = vst [vmem:[%s1028_s24 + $0xc8] sm:$0xff] %v588_v0  ;;  %v589_v56 = vmul.f32 %v557_v18, %v1186_v26 }
  0x71   : > { %v858_v44 = vpop.eup %857  ;;  %v590_v63 = vmul.f32 %v558_v31, %v1193_v15  ;;  %v498_v2 = vadd.f32 1.0, %v434_v21  ;;  %v722_v43 = vadd.f32 -1.0, %v434_v21 }
  0x72   : > { %v559_v40 = vmul.f32 %v858_v44, %v719_v39  ;;  %v860_v3 = vpop.eup %859  ;;  %621 = vst [vmem:[%s1028_s24 + $0xd0] sm:$0xff] %v589_v56 }
  0x73   : > { %622 = vst [vmem:[%s1028_s24 + $0xd8] sm:$0xff] %v590_v63  ;;  %v560_v1 = vmul.f32 %v860_v3, %v720_v13  ;;  %863 = vrcp.f32 %v498_v2 }
  0x74   : > { %v591_v57 = vmul.f32 %v559_v40, %v1202_v60 }
  0x75   : > { %v862_v4 = vpop.eup %861  ;;  %v592_v16 = vmul.f32 %v560_v1, %v1207_v6 }
  0x76   : > { %623 = vst [vmem:[%s1028_s24 + $0xe0] sm:$0xff] %v591_v57  ;;  %v561_v26 = vmul.f32 %v862_v4, %v721_v45 }
  0x77   : > { %624 = vst [vmem:[%s1028_s24 + $0xe8] sm:$0xff] %v592_v16 }
  0x78   : > { %v593_v15 = vmul.f32 %v561_v26, %v1213_v7 }
  0x79   : > { %v864_v46 = vpop.eup %863 }
  0x7a   : > { %625 = vst [vmem:[%s1028_s24 + $0xf0] sm:$0xff] %v593_v15  ;;  %v562_v50 = vmul.f32 %v864_v46, %v722_v43 }
  0x7c   : > { %v594_v8 = vmul.f32 %v562_v50, %v1219_v62 }
  0x7e   : > { %626 = vst [vmem:[%s1028_s24 + $0xf8] sm:$0xff] %v594_v8 }
  0x7f PF: > { %s13_s12 = sadd.s32 1, %s871_s12  }
  0x80   : > { %p10_p4 = scmp.ge.s32.totalorder %s13_s12, 4  }
  0x82   :  { %12 = sbr.rel (!%p10_p4) target bundleno = 1 (0x1), region = 62 }

// kernel: conv_bn_act.2
= control target key start
LH: loop header
LB: loop body
LE: loop exit
PB: predicated region body
PF: predicated region fallthrough
CT: control target
= control target key end

     0   :  { %s4456_s12 = smov 0   ;;  %s5987_s0 = inlined_call_operand.vmem [shape: bf16[2,18,18,4], index: 0, kind: input, shape index: {}]   ;;  %s5988_s1 = inlined_call_operand.vmem [shape: bf16[36,128], index: 1, kind: input, shape index: {}]   ;;  %s5989_s2 = inlined_call_operand.vmem [shape: f32[2,256,128], index: 2, kind: output, shape index: {0}]   ;;  %s5990_s3 = inlined_call_operand.vmem [shape: f32[2,2,128], index: 3, kind: output, shape index: {1}]  }
   0x1 LB: > { %s3852_s13 = sadd.s32 4294967295, %s4426_s12   ;;  %p3856_p0 = scmp.ge.s32.totalorder %s4426_s12, 1  ;;  %s4426_s12 = sphi %s4456_s12, %s14_s12  }
   0x2   : > { %p140_p1 = scmp.lt.s32.totalorder %s4426_s12, 3 }
   0x4   : > { %p141_p2 = pnand %p3856_p0, %p140_p1 }
   0x5   : > { %p168_p3 = scmp.lt.s32.totalorder (!%p141_p2), %s3852_s13, 1  ;;  %s4428_s18 = smov (!%p141_p2), 4  }
   0x6   : > { %144 = sbr.rel (%p141_p2) target bundleno = 987 (0x3db), region = 28  ;;  %s4429_s19 = smov (!%p141_p2), 8  }
   0x7   : > { %s4430_s20 = smov (!%p141_p2), 12   ;;  %s4431_s21 = smov (!%p141_p2), 16  }
   0x8   : > { %s4432_s22 = smov (!%p141_p2), 20   ;;  %s4433_s23 = smov (!%p141_p2), 24  }
   0x9   : > { %s4434_s24 = smov (!%p141_p2), 28   ;;  %s4435_s25 = smov (!%p141_p2), 32  }
   0xb   : > { %s5996_s13 = smov (!%p168_p3, %s3852_s13), 1  ;;  %vm266_vm0 = vsmask.f32 3328  ;;  %vm267_vm1 = vsmask.f32 7440  ;;  %vm833_vm3 = vcmask 1042432  }
   0xc   : > { %s4403_s14 = smul.u32 216, %s5996_s13  ;;  %vm4481_vm2 = vmor %vm266_vm0, %vm267_vm1  ;;  %vm834_vm4 = vcmask 1046532   ;;  %vm185_vm5 = vcmask 27648   ;;  %vm299_vm7 = vcmask 60448   ;;  %vm849_vm8 = vcmask 93248   ;;  %s4375_s5 = sshll.u32 %s5996_s13, 8 }
   0xd   : > { %vm4656_vm6 = vmor %vm833_vm3, %vm834_vm4  ;;  %vm1177_vm9 = vcmask 126048   ;;  %vm1394_vm10 = vcmask 158848   ;;  %vm1941_vm11 = vcmask 191648   ;;  %vm3532_vm12 = vcmask 1041408   ;;  %s5848_s8 = scalar_lea.vmem %s5989_s2, %s4375_s5  ;;  %s3860_s9 = sshll.u32 %s5996_s13, 1 }
   0xe   : > { %s4470_s17 = scalar_lea.vmem %s5987_s0, %s4403_s14  ;;  %vm2269_vm13 = vcmask 224448   ;;  %vm2486_vm14 = vcmask 257248   ;;  %vm3033_vm15 = vcmask 290048   ;;  %vm3483_vm0 = vcmask 293888   ;;  %s181_s14 = scalar_lea.vmem %s5990_s3, %s3860_s9 }
   0xf   : > { %v3891_v0 = vld [vmem:[%s4470_s17 + $0xc] sm:$0xf]  ;;  %v3892_v1 = vld [vmem:[%s4470_s17 + $0x10] sm:$0xf]  ;;  %v263_v2 = vld [vmem:[%s4470_s17] sm:$0xf] }
  0x10   : > { %v306_v3 = vshrl.u32 %v3891_v0, 16  ;;  %v309_v4 = vshll.u32 %v3891_v0, 16  ;;  %v315_v5 = vshll.u32 %v3892_v1, 16  ;;  %v319_v6 = vshrl.u32 %v3892_v1, 16  ;;  %v264_v7 = vld [vmem:[%s4470_s17 + $0x4] sm:$0xf] }
  0x11   : > { %v270_v8 = vshrl.u32 %v263_v2, 16  ;;  %v273_v9 = vshll.u32 %v263_v2, 16  ;;  %v279_v10 = vshll.u32 %v264_v7, 16  ;;  %v283_v11 = vshrl.u32 %v264_v7, 16  ;;  %v3893_v12 = vld [vmem:[%s4470_s17 + $0x14] sm:$0x1] }
  0x12   : > { %v308_v13 = vrot.slane %v306_v3, 4  ;;  %v311_v14 = vrot.slane %v309_v4, 5  ;;  %v317_v15 = vrot.slane %v315_v5, 5  ;;  %v321_v16 = vrot.slane %v319_v6, 4  ;;  %v265_v17 = vld [vmem:[%s4470_s17 + $0x8] sm:$0x1] }
  0x13   : > { %v272_v18 = vrot.slane %v270_v8, 4  ;;  %v275_v19 = vrot.slane %v273_v9, 5  ;;  %v285_v20 = vrot.slane %v283_v11, 4  ;;  %v3898_v21 = vld [vmem:[%s4470_s17 + $0x28] sm:$0xf]  ;;  %v325_v24 = vshll.u32 %v3893_v12, 16 }
  0x14   : > { %v312_v22 = vor.u32 %v311_v14, %v308_v13  ;;  %v322_v23 = vor.u32 %v321_v16, %v317_v15  ;;  %v281_v27 = vrot.slane %v279_v10, 5  ;;  %v385_v28 = vshll.u32 %v3898_v21, 16  ;;  %v3897_v30 = vld [vmem:[%s4470_s17 + $0x24] sm:$0xf]  ;;  %v3894_v35 = vld [vmem:[%s4470_s17 + $0x18] sm:$0xf] }
  0x15   : > { %v276_v26 = vor.u32 %v275_v19, %v272_v18  ;;  %v389_v29 = vshrl.u32 %v3898_v21, 16  ;;  %v289_v32 = vshll.u32 %v265_v17, 16  ;;  %v327_v38 = vrot.slane %v325_v24, 5  ;;  %v3895_v40 = vld [vmem:[%s4470_s17 + $0x1c] sm:$0xf] }
  0x16   : > { %v313_v31 = vrot.slane %v312_v22, 4  ;;  %v286_v34 = vor.u32 %v285_v20, %v281_v27  ;;  %v323_v37 = vrot.slane %v322_v23, 4  ;;  %v376_v39 = vshrl.u32 %v3897_v30, 16  ;;  %v3899_v42 = vld [vmem:[%s4470_s17 + $0x2c] sm:$0x1] }
  0x17   : > { %v277_v33 = vrot.slane %v276_v26, 4  ;;  %v4494_v43 = vrot.slane %v385_v28, 5  ;;  %v391_v44 = vrot.slane %v389_v29, 4  ;;  %v379_v45 = vshll.u32 %v3897_v30, 16  ;;  %v3903_v50 = vld [vmem:[%s4470_s17 + $0x3c] sm:$0xf] }
  0x18   : > { %v318_v36 = vsel %vm4481_vm2, %v313_v31, %v317_v15  ;;  %v291_v46 = vrot.slane %v289_v32, 5  ;;  %v378_v47 = vrot.slane %v376_v39, 4  ;;  %v341_v48 = vshrl.u32 %v3894_v35, 16  ;;  %v3901_v58 = vld [vmem:[%s4470_s17 + $0x34] sm:$0xf] }
  0x19   : > { %329 = vrot.lane.b32.xlu1 %v318_v36, %s4428_s18  ;;  %v282_v41 = vsel %vm4481_vm2, %v277_v33, %v281_v27  ;;  %v344_v49 = vshll.u32 %v3894_v35, 16  ;;  %v287_v51 = vrot.slane %v286_v34, 4  ;;  %v381_v52 = vrot.slane %v379_v45, 5  ;;  %v3896_v6 = vld [vmem:[%s4470_s17 + $0x20] sm:$0x1] }
  0x1a   : > { %293 = vrot.lane.b32.xlu0 %v282_v41, %s4428_s18  ;;  %v350_v53 = vshll.u32 %v3895_v40, 16  ;;  %v354_v54 = vshrl.u32 %v3895_v40, 16  ;;  %v395_v55 = vshll.u32 %v3899_v42, 16  ;;  %v343_v56 = vrot.slane %v341_v48, 4  ;;  %v3904_v15 = vld [vmem:[%s4470_s17 + $0x40] sm:$0xf] }
  0x1b   : > { %v346_v57 = vrot.slane %v344_v49, 5  ;;  %v392_v59 = vor.u32 %v391_v44, %v4494_v43  ;;  %v446_v61 = vshrl.u32 %v3903_v50, 16  ;;  %v449_v62 = vshll.u32 %v3903_v50, 16  ;;  %v3902_v16 = vld [vmem:[%s4470_s17 + $0x38] sm:$0x1] }
  0x1c   : > { %v356_v60 = vrot.slane %v354_v54, 4  ;;  %v328_v63 = vsel %vm4481_vm2, %v323_v37, %v327_v38  ;;  %v382_v0 = vor.u32 %v381_v52, %v378_v47  ;;  %v352_v2 = vrot.slane %v350_v53, 5  ;;  %v3907_v20 = vld [vmem:[%s4470_s17 + $0x4c] sm:$0xf]  ;;  %v3900_v21 = vld [vmem:[%s4470_s17 + $0x30] sm:$0xf] }
  0x1d   : > { %v347_v1 = vor.u32 %v346_v57, %v343_v56  ;;  %v292_v3 = vsel %vm4481_vm2, %v287_v51, %v291_v46  ;;  %v420_v4 = vshll.u32 %v3901_v58, 16  ;;  %v424_v5 = vshrl.u32 %v3901_v58, 16  ;;  %v3906_v24 = vld [vmem:[%s4470_s17 + $0x48] sm:$0xf]  ;;  %v3912_v47 = vld [vmem:[%s4470_s17 + $0x60] sm:$0xf] }
  0x1e   : > { %v397_v7 = vrot.slane %v395_v55, 5  ;;  %v393_v9 = vrot.slane %v392_v59, 4  ;;  %v448_v10 = vrot.slane %v446_v61, 4  ;;  %v451_v11 = vrot.slane %v449_v62, 5  ;;  %v3908_v49 = vld [vmem:[%s4470_s17 + $0x50] sm:$0x1] }
  0x1f   : > { %v348_v8 = vrot.slane %v347_v1, 4  ;;  %v357_v12 = vor.u32 %v356_v60, %v352_v2  ;;  %v383_v13 = vrot.slane %v382_v0, 4  ;;  %v360_v17 = vshll.u32 %v3896_v6, 16  ;;  %v3910_v53 = vld [vmem:[%s4470_s17 + $0x58] sm:$0xf] }
  0x20   : > { %v4512_v18 = vrot.slane %v420_v4, 5  ;;  %v426_v19 = vrot.slane %v424_v5, 4  ;;  %v398_v26 = vsel %vm4481_vm2, %v393_v9, %v397_v7  ;;  %v452_v27 = vor.u32 %v451_v11, %v448_v10  ;;  %v3905_v58 = vld [vmem:[%s4470_s17 + $0x44] sm:$0x1]  ;;  %v3916_v11 = vld [vmem:[%s4470_s17 + $0x70] sm:$0xf] }
  0x21   : > { %331 = vrot.lane.b32.xlu1 %v328_v63, %s4428_s18  ;;  %v353_v14 = vsel %vm4481_vm2, %v348_v8, %v352_v2  ;;  %v358_v22 = vrot.slane %v357_v12, 4  ;;  %v362_v23 = vrot.slane %v360_v17, 5  ;;  %v455_v28 = vshll.u32 %v3904_v15, 16  ;;  %v3909_v2 = vld [vmem:[%s4470_s17 + $0x54] sm:$0xf] }
  0x22   : > { %295 = vrot.lane.b32.xlu0 %v292_v3, %s4428_s18  ;;  %364 = vrot.lane.b32.xlu2 %v353_v14, %s4428_s18  ;;  %v430_v29 = vshll.u32 %v3902_v16, 16  ;;  %v388_v30 = vsel %vm4481_vm2, %v383_v13, %v4494_v43  ;;  %v490_v31 = vshll.u32 %v3907_v20, 16  ;;  %v494_v32 = vshrl.u32 %v3907_v20, 16  ;;  %v3913_v6 = vld [vmem:[%s4470_s17 + $0x64] sm:$0xf] }
  0x23   : > { %v411_v33 = vshrl.u32 %v3900_v21, 16  ;;  %v427_v34 = vor.u32 %v426_v19, %v4512_v18  ;;  %v481_v35 = vshrl.u32 %v3906_v24, 16  ;;  %v484_v36 = vshll.u32 %v3906_v24, 16  ;;  %v3915_v20 = vld [vmem:[%s4470_s17 + $0x6c] sm:$0xf] }
  0x24   : > { %v414_v37 = vshll.u32 %v3900_v21, 16  ;;  %v459_v38 = vshrl.u32 %v3904_v15, 16  ;;  %v363_v39 = vsel %vm4481_vm2, %v358_v22, %v362_v23  ;;  %v457_v41 = vrot.slane %v455_v28, 5  ;;  %v3911_v15 = vld [vmem:[%s4470_s17 + $0x5c] sm:$0x1] }
  0x25   : > { %v413_v40 = vrot.slane %v411_v33, 4  ;;  %v453_v43 = vrot.slane %v452_v27, 4  ;;  %v432_v44 = vrot.slane %v430_v29, 5  ;;  %v4527_v45 = vrot.slane %v490_v31, 5 }
  0x26   : > { %v416_v42 = vrot.slane %v414_v37, 5  ;;  %v496_v46 = vrot.slane %v494_v32, 4  ;;  %v428_v48 = vrot.slane %v427_v34, 4  ;;  %v483_v50 = vrot.slane %v481_v35, 4 }
  0x27   : > { %v486_v51 = vrot.slane %v484_v36, 5  ;;  %v461_v54 = vrot.slane %v459_v38, 4  ;;  %v551_v56 = vshrl.u32 %v3912_v47, 16  ;;  %v554_v57 = vshll.u32 %v3912_v47, 16  ;;  %v3919_v47 = vld [vmem:[%s4470_s17 + $0x7c] sm:$0xf] }
  0x28   : > { %v417_v52 = vor.u32 %v416_v42, %v413_v40  ;;  %v458_v59 = vsel %vm4481_vm2, %v453_v43, %v457_v41  ;;  %v497_v60 = vor.u32 %v496_v46, %v4527_v45  ;;  %v500_v61 = vshll.u32 %v3908_v49, 16  ;;  %v3921_v42 = vld [vmem:[%s4470_s17 + $0x84] sm:$0xf]  ;;  %v3914_v49 = vld [vmem:[%s4470_s17 + $0x68] sm:$0x1] }
  0x29   : > { %401 = vrot.lane.b32.xlu1 %v398_v26, %s4428_s18  ;;  %v433_v62 = vsel %vm4481_vm2, %v428_v48, %v432_v44  ;;  %v487_v63 = vor.u32 %v486_v51, %v483_v50  ;;  %v525_v0 = vshll.u32 %v3910_v53, 16  ;;  %v529_v1 = vshrl.u32 %v3910_v53, 16 }
  0x2a   : > { %399 = vrot.lane.b32.xlu0 %v388_v30, %s4428_s18  ;;  %366 = vrot.lane.b32.xlu2 %v363_v39, %s4428_s18  ;;  %v418_v55 = vrot.slane %v417_v52, 4  ;;  %v462_v4 = vor.u32 %v461_v54, %v457_v41  ;;  %v465_v5 = vshll.u32 %v3905_v58, 16  ;;  %v553_v7 = vrot.slane %v551_v56, 4  ;;  %v3917_v41 = vld [vmem:[%s4470_s17 + $0x74] sm:$0x1] }
  0x2b   : > { %v556_v8 = vrot.slane %v554_v57, 5  ;;  %v498_v9 = vrot.slane %v497_v60, 4  ;;  %v502_v10 = vrot.slane %v500_v61, 5  ;;  %v516_v12 = vshrl.u32 %v3909_v2, 16  ;;  %v3918_v54 = vld [vmem:[%s4470_s17 + $0x78] sm:$0xf] }
  0x2c   : > { %v423_v3 = vsel %vm4481_vm2, %v418_v55, %v4512_v18  ;;  %v519_v13 = vshll.u32 %v3909_v2, 16  ;;  %v488_v14 = vrot.slane %v487_v63, 4  ;;  %v4549_v16 = vrot.slane %v525_v0, 5 }
  0x2d   : > { %v531_v17 = vrot.slane %v529_v1, 4  ;;  %v463_v18 = vrot.slane %v462_v4, 4  ;;  %v467_v19 = vrot.slane %v465_v5, 5  ;;  %v518_v21 = vrot.slane %v516_v12, 4  ;;  %v3922_v4 = vld [vmem:[%s4470_s17 + $0x88] sm:$0xf] }
  0x2e   : > { %v521_v22 = vrot.slane %v519_v13, 5  ;;  %v557_v23 = vor.u32 %v556_v8, %v553_v7  ;;  %v560_v24 = vshll.u32 %v3913_v6, 16  ;;  %v595_v26 = vshll.u32 %v3916_v11, 16 }
  0x2f   : > { %v599_v27 = vshrl.u32 %v3916_v11, 16  ;;  %v503_v28 = vsel %vm4481_vm2, %v498_v9, %v502_v10  ;;  %v535_v29 = vshll.u32 %v3911_v15, 16  ;;  %v493_v30 = vsel %vm4481_vm2, %v488_v14, %v4527_v45  ;;  %v3925_v9 = vld [vmem:[%s4470_s17 + $0x94] sm:$0xf]  ;;  %v3920_v11 = vld [vmem:[%s4470_s17 + $0x80] sm:$0x1] }
  0x30   : > { %v532_v31 = vor.u32 %v531_v17, %v4549_v16  ;;  %v586_v32 = vshrl.u32 %v3915_v20, 16  ;;  %v589_v33 = vshll.u32 %v3915_v20, 16  ;;  %v564_v34 = vshrl.u32 %v3913_v6, 16  ;;  %v3924_v14 = vld [vmem:[%s4470_s17 + $0x90] sm:$0xf] }
  0x31   : > { %469 = vrot.lane.b32.xlu1 %v458_v59, %s4428_s18  ;;  %v468_v35 = vsel %vm4481_vm2, %v463_v18, %v467_v19  ;;  %v522_v36 = vor.u32 %v521_v22, %v518_v21  ;;  %v558_v37 = vrot.slane %v557_v23, 4  ;;  %v562_v38 = vrot.slane %v560_v24, 5 }
  0x32   : > { %436 = vrot.lane.b32.xlu0 %v433_v62, %s4428_s18  ;;  %434 = vrot.lane.b32.xlu2 %v423_v3, %s4428_s18  ;;  %v4561_v39 = vrot.slane %v595_v26, 5  ;;  %v601_v40 = vrot.slane %v599_v27, 4  ;;  %v533_v43 = vrot.slane %v532_v31, 4  ;;  %v537_v44 = vrot.slane %v535_v29, 5 }
  0x33   : > { %v588_v45 = vrot.slane %v586_v32, 4  ;;  %v591_v46 = vrot.slane %v589_v33, 5  ;;  %v523_v48 = vrot.slane %v522_v36, 4  ;;  %v566_v50 = vrot.slane %v564_v34, 4 }
  0x34   : > { %v563_v51 = vsel %vm4481_vm2, %v558_v37, %v562_v38  ;;  %v602_v52 = vor.u32 %v601_v40, %v4561_v39  ;;  %v605_v53 = vshll.u32 %v3917_v41, 16  ;;  %v656_v55 = vshrl.u32 %v3921_v42, 16  ;;  %v3926_v37 = vld [vmem:[%s4470_s17 + $0x98] sm:$0x1]  ;;  %v3930_v40 = vld [vmem:[%s4470_s17 + $0xa8] sm:$0xf] }
  0x35   : > { %v659_v56 = vshll.u32 %v3921_v42, 16  ;;  %v630_v57 = vshll.u32 %v3919_v47, 16  ;;  %v634_v58 = vshrl.u32 %v3919_v47, 16  ;;  %v538_v59 = vsel %vm4481_vm2, %v533_v43, %v537_v44  ;;  %v3928_v42 = vld [vmem:[%s4470_s17 + $0xa0] sm:$0xf] }
  0x36   : > { %v592_v60 = vor.u32 %v591_v46, %v588_v45  ;;  %v570_v61 = vshll.u32 %v3914_v49, 16  ;;  %v528_v62 = vsel %vm4481_vm2, %v523_v48, %v4549_v16  ;;  %v567_v63 = vor.u32 %v566_v50, %v562_v38  ;;  %v3923_v43 = vld [vmem:[%s4470_s17 + $0x8c] sm:$0x1]  ;;  %v3927_v47 = vld [vmem:[%s4470_s17 + $0x9c] sm:$0xf] }
  0x37   : > { %v621_v0 = vshrl.u32 %v3918_v54, 16  ;;  %v624_v1 = vshll.u32 %v3918_v54, 16  ;;  %v603_v2 = vrot.slane %v602_v52, 4  ;;  %v607_v3 = vrot.slane %v605_v53, 5 }
  0x38   : > { %v658_v5 = vrot.slane %v656_v55, 4  ;;  %v661_v6 = vrot.slane %v659_v56, 5  ;;  %v4581_v7 = vrot.slane %v630_v57, 5  ;;  %v636_v8 = vrot.slane %v634_v58, 4 }
  0x39   : > { %506 = vrot.lane.b32.xlu1 %v503_v28, %s4428_s18  ;;  %v593_v10 = vrot.slane %v592_v60, 4  ;;  %v568_v12 = vrot.slane %v567_v63, 4  ;;  %v572_v13 = vrot.slane %v570_v61, 5  ;;  %v623_v15 = vrot.slane %v621_v0, 4 }
  0x3a   : > { %504 = vrot.lane.b32.xlu0 %v493_v30, %s4428_s18  ;;  %471 = vrot.lane.b32.xlu2 %v468_v35, %s4428_s18  ;;  %v626_v16 = vrot.slane %v624_v1, 5  ;;  %v665_v17 = vshll.u32 %v3922_v4, 16  ;;  %v700_v18 = vshll.u32 %v3925_v9, 16  ;;  %v704_v19 = vshrl.u32 %v3925_v9, 16  ;;  %v3929_v1 = vld [vmem:[%s4470_s17 + $0xa4] sm:$0x1] }
  0x3b   : > { %v608_v20 = vsel %vm4481_vm2, %v603_v2, %v607_v3  ;;  %v662_v21 = vor.u32 %v661_v6, %v658_v5  ;;  %v637_v22 = vor.u32 %v636_v8, %v4581_v7  ;;  %v640_v23 = vshll.u32 %v3920_v11, 16  ;;  %v3934_v5 = vld [vmem:[%s4470_s17 + $0xb8] sm:$0xf]  ;;  %v3933_v8 = vld [vmem:[%s4470_s17 + $0xb4] sm:$0xf] }
  0x3c   : > { %v598_v24 = vsel %vm4481_vm2, %v593_v10, %v4561_v39  ;;  %v691_v26 = vshrl.u32 %v3924_v14, 16  ;;  %v694_v27 = vshll.u32 %v3924_v14, 16  ;;  %v669_v28 = vshrl.u32 %v3922_v4, 16 }
  0x3d   : > { %v573_v29 = vsel %vm4481_vm2, %v568_v12, %v572_v13  ;;  %v627_v30 = vor.u32 %v626_v16, %v623_v15  ;;  %v4596_v31 = vrot.slane %v700_v18, 5  ;;  %v706_v32 = vrot.slane %v704_v19, 4 }
  0x3e   : > { %v663_v33 = vrot.slane %v662_v21, 4  ;;  %v667_v34 = vrot.slane %v665_v17, 5  ;;  %v638_v35 = vrot.slane %v637_v22, 4  ;;  %v642_v36 = vrot.slane %v640_v23, 5 }
  0x3f   : > { %v693_v38 = vrot.slane %v691_v26, 4  ;;  %v696_v39 = vrot.slane %v694_v27, 5  ;;  %v628_v41 = vrot.slane %v627_v30, 4  ;;  %v671_v44 = vrot.slane %v669_v28, 4 }
  0x40   : > { %v707_v45 = vor.u32 %v706_v32, %v4596_v31  ;;  %v710_v46 = vshll.u32 %v3926_v37, 16  ;;  %v668_v48 = vsel %vm4481_vm2, %v663_v33, %v667_v34  ;;  %v643_v49 = vsel %vm4481_vm2, %v638_v35, %v642_v36  ;;  %v3932_v36 = vld [vmem:[%s4470_s17 + $0xb0] sm:$0x1] }
  0x41   : > { %574 = vrot.lane.b32.xlu1 %v563_v51, %s4428_s18  ;;  %v761_v50 = vshrl.u32 %v3930_v40, 16  ;;  %v764_v51 = vshll.u32 %v3930_v40, 16  ;;  %v697_v52 = vor.u32 %v696_v39, %v693_v38  ;;  %v735_v53 = vshll.u32 %v3928_v42, 16 }
  0x42   : > { %541 = vrot.lane.b32.xlu0 %v538_v59, %s4428_s18  ;;  %539 = vrot.lane.b32.xlu2 %v528_v62, %s4428_s18  ;;  %v739_v54 = vshrl.u32 %v3928_v42, 16  ;;  %v675_v55 = vshll.u32 %v3923_v43, 16  ;;  %v633_v56 = vsel %vm4481_vm2, %v628_v41, %v4581_v7  ;;  %v672_v57 = vor.u32 %v671_v44, %v667_v34  ;;  %v3931_v62 = vld [vmem:[%s4470_s17 + $0xac] sm:$0xf] }
  0x43   : > { %v726_v58 = vshrl.u32 %v3927_v47, 16  ;;  %v729_v59 = vshll.u32 %v3927_v47, 16  ;;  %v708_v60 = vrot.slane %v707_v45, 4  ;;  %v712_v61 = vrot.slane %v710_v46, 5 }
  0x44   : > { %v763_v63 = vrot.slane %v761_v50, 4  ;;  %v766_v0 = vrot.slane %v764_v51, 5  ;;  %v698_v2 = vrot.slane %v697_v52, 4  ;;  %v737_v3 = vrot.slane %v735_v53, 5  ;;  %v3937_v51 = vld [vmem:[%s4470_s17 + $0xc] sm:$0xe] }
  0x45   : > { %v741_v4 = vrot.slane %v739_v54, 4  ;;  %v673_v6 = vrot.slane %v672_v57, 4  ;;  %v677_v7 = vrot.slane %v675_v55, 5  ;;  %v728_v9 = vrot.slane %v726_v58, 4  ;;  %v3938_v53 = vld [vmem:[%s4470_s17 + $0x10] sm:$0xf] }
  0x46   : > { %v731_v10 = vrot.slane %v729_v59, 5  ;;  %v713_v11 = vsel %vm4481_vm2, %v708_v60, %v712_v61  ;;  %v770_v12 = vshll.u32 %v3931_v62, 16  ;;  %v767_v13 = vor.u32 %v766_v0, %v763_v63  ;;  %v829_v54 = vld [vmem:[%s4470_s17 + $0x8] sm:$0x1]  ;;  %v827_v61 = vld [vmem:[%s4470_s17] sm:$0xe] }
  0x47   : > { %v745_v14 = vshll.u32 %v3929_v1, 16  ;;  %v805_v15 = vshll.u32 %v3934_v5, 16  ;;  %v809_v16 = vshrl.u32 %v3934_v5, 16  ;;  %v703_v17 = vsel %vm4481_vm2, %v698_v2, %v4596_v31  ;;  %v3935_v31 = vld [vmem:[%s4470_s17 + $0xbc] sm:$0x1] }
  0x48   : > { %v742_v18 = vor.u32 %v741_v4, %v737_v3  ;;  %v796_v19 = vshrl.u32 %v3933_v8, 16  ;;  %v774_v21 = vshrl.u32 %v3931_v62, 16  ;;  %v678_v22 = vsel %vm4481_vm2, %v673_v6, %v677_v7  ;;  %v3942_v63 = vld [vmem:[%s4470_s17 + $0x1c] sm:$0xf]  ;;  %v3863_v0 = vld [vmem:[%s4470_s17 + $0x18] sm:$0xf] }
  0x49   : > { %611 = vrot.lane.b32.xlu1 %v608_v20, %s4428_s18  ;;  %v799_v20 = vshll.u32 %v3933_v8, 16  ;;  %v732_v23 = vor.u32 %v731_v10, %v728_v9  ;;  %v772_v26 = vrot.slane %v770_v12, 5  ;;  %v807_v27 = vrot.slane %v805_v15, 5  ;;  %196 = vst.msk [vmem:[#allocation2 + $0x10] sm:$0xf] %vm185_vm5, %v3863_v0 }
  0x4a   : > { %609 = vrot.lane.b32.xlu0 %v598_v24, %s4428_s18  ;;  %576 = vrot.lane.b32.xlu2 %v573_v29, %s4428_s18  ;;  %v768_v24 = vrot.slane %v767_v13, 4  ;;  %v811_v28 = vrot.slane %v809_v16, 4  ;;  %v743_v29 = vrot.slane %v742_v18, 4  ;;  %v747_v30 = vrot.slane %v745_v14, 5  ;;  %v3861_v2 = vld [vmem:[%s4470_s17 + $0xc] sm:$0xf] }
  0x4b   : > { %v798_v32 = vrot.slane %v796_v19, 4  ;;  %v801_v33 = vrot.slane %v799_v20, 5  ;;  %v733_v34 = vrot.slane %v732_v23, 4  ;;  %v776_v35 = vrot.slane %v774_v21, 4  ;;  %191 = vst.msk [vmem:[#allocation2 + $0x8] sm:$0xf] %vm185_vm5, %v3861_v2 }
  0x4c   : > { %v773_v37 = vsel %vm4481_vm2, %v768_v24, %v772_v26  ;;  %v812_v38 = vor.u32 %v811_v28, %v807_v27  ;;  %v815_v39 = vshll.u32 %v3935_v31, 16  ;;  %v748_v40 = vsel %vm4481_vm2, %v743_v29, %v747_v30  ;;  %v3943_v6 = vld [vmem:[%s4470_s17 + $0x20] sm:$0x1]  ;;  %v3941_v9 = vld [vmem:[%s4470_s17 + $0x18] sm:$0xe] }
  0x4d   : > { %v802_v41 = vor.u32 %v801_v33, %v798_v32  ;;  %v738_v42 = vsel %vm4481_vm2, %v733_v34, %v737_v3  ;;  %v777_v43 = vor.u32 %v776_v35, %v772_v26  ;;  %v780_v44 = vshll.u32 %v3932_v36, 16  ;;  %v183_v3 = vld [vmem:[%s4470_s17] sm:$0xf]  ;;  %v3939_v12 = vld [vmem:[%s4470_s17 + $0x14] sm:$0x1] }
  0x4e   : > { %v813_v45 = vrot.slane %v812_v38, 4  ;;  %v817_v46 = vrot.slane %v815_v39, 5  ;;  %v3940_v58 = vrot.slane %v3937_v51, 9  ;;  %v860_v59 = vrot.slane %v3938_v53, 5  ;;  %186 = vst.msk [vmem:[#allocation2] sm:$0xf] %vm185_vm5, %v183_v3 }
  0x4f   : > { %v803_v47 = vrot.slane %v802_v41, 4  ;;  %v782_v50 = vrot.slane %v780_v44, 5  ;;  %v841_v60 = vrot.slane %v829_v54, 5  ;;  %v3936_v4 = vrot.slane %v827_v61, 9  ;;  %v3946_v15 = vld [vmem:[%s4470_s17 + $0x28] sm:$0xf] }
  0x50   : > { %v818_v52 = vsel %vm4481_vm2, %v813_v45, %v817_v46  ;;  %v861_v5 = vsel %vm4656_vm6, %v3940_v58, %v860_v59  ;;  %v881_v7 = vrot.slane %v3942_v63, 5  ;;  %v3944_v14 = vrot.slane %v3941_v9, 9  ;;  %v3864_v16 = vld [vmem:[%s4470_s17 + $0x1c] sm:$0xf]  ;;  %v184_v18 = vld [vmem:[%s4470_s17 + $0x4] sm:$0xf] }
  0x51   : > { %679 = vrot.lane.b32.xlu1 %v668_v48, %s4428_s18  ;;  %v828_v48 = vld [vmem:[%s4470_s17 + $0x4] sm:$0xf]  ;;  %197 = vst.msk [vmem:[#allocation2 + $0x14] sm:$0xf] %vm185_vm5, %v3864_v16  ;;  %v862_v19 = vrot.slane %v860_v59, 4  ;;  %v863_v20 = vrot.slane %v3939_v12, 5 }
  0x52   : > { %646 = vrot.lane.b32.xlu0 %v643_v49, %s4428_s18  ;;  %644 = vrot.lane.b32.xlu2 %v633_v56, %s4428_s18  ;;  %v778_v49 = vrot.slane %v777_v43, 4  ;;  %v838_v55 = vrot.slane %v828_v48, 5  ;;  %v808_v56 = vsel %vm4481_vm2, %v803_v47, %v807_v27  ;;  %v883_v13 = vrot.slane %v881_v7, 4  ;;  %187 = vst.msk [vmem:[#allocation2 + $0x4] sm:$0xf] %vm185_vm5, %v184_v18 }
  0x53   : > { %v3950_v23 = vld [vmem:[%s4470_s17 + $0x34] sm:$0xf]  ;;  %v902_v24 = vrot.slane %v3946_v15, 5  ;;  %v882_v26 = vsel %vm4656_vm6, %v3944_v14, %v881_v7  ;;  %v3947_v27 = vld [vmem:[%s4470_s17 + $0x2c] sm:$0x1]  ;;  %v864_v28 = vsel %vm4656_vm6, %v862_v19, %v863_v20  ;;  %vm3763_vm1 = vcmask 1040384  }
  0x54   : > { %v783_v57 = vsel %vm4481_vm2, %v778_v49, %v782_v50  ;;  %v840_v62 = vrot.slane %v838_v55, 4  ;;  %v839_v10 = vsel %vm4656_vm6, %v3936_v4, %v838_v55  ;;  %v923_v30 = vrot.slane %v3950_v23, 5  ;;  %v3945_v31 = vld [vmem:[%s4470_s17 + $0x24] sm:$0xe]  ;;  %v3954_v34 = vld [vmem:[%s4470_s17 + $0x40] sm:$0xf] }
  0x55   : > { %v904_v32 = vrot.slane %v902_v24, 4  ;;  %v905_v33 = vrot.slane %v3947_v27, 5  ;;  %v3867_v35 = vld [vmem:[%s4470_s17 + $0x30] sm:$0xf]  ;;  %v3866_v36 = vld [vmem:[%s4470_s17 + $0x28] sm:$0xf] }
  0x56   : > { %v842_v8 = vsel %vm4656_vm6, %v840_v62, %v841_v60  ;;  %206 = vst.msk [vmem:[#allocation2 + $0x20] sm:$0xf] %vm185_vm5, %v3867_v35  ;;  %v3948_v38 = vrot.slane %v3945_v31, 9  ;;  %v944_v41 = vrot.slane %v3954_v34, 5  ;;  %v3955_v43 = vld [vmem:[%s4470_s17 + $0x44] sm:$0x1] }
  0x57   : > { %202 = vst.msk [vmem:[#allocation2 + $0x1c] sm:$0xf] %vm185_vm5, %v3866_v36  ;;  %v3953_v44 = vld [vmem:[%s4470_s17 + $0x3c] sm:$0xe]  ;;  %v3951_v46 = vld [vmem:[%s4470_s17 + $0x38] sm:$0x1] }
  0x58   : > { %v903_v45 = vsel %vm4656_vm6, %v3948_v38, %v902_v24  ;;  %v946_v47 = vrot.slane %v944_v41, 4  ;;  %v947_v48 = vrot.slane %v3955_v43, 5  ;;  %v3956_v49 = vrot.slane %v3953_v44, 9  ;;  %v3870_v50 = vld [vmem:[%s4470_s17 + $0x40] sm:$0xf] }
  0x59   : > { %716 = vrot.lane.b32.xlu1 %v713_v11, %s4428_s18  ;;  %v884_v11 = vrot.slane %v3943_v6, 5  ;;  %212 = vst.msk [vmem:[#allocation2 + $0x2c] sm:$0xf] %vm185_vm5, %v3870_v50  ;;  %v3869_v51 = vld [vmem:[%s4470_s17 + $0x3c] sm:$0xf]  ;;  %v925_v54 = vrot.slane %v923_v30, 4 }
  0x5a   : > { %714 = vrot.lane.b32.xlu0 %v703_v17, %s4428_s18  ;;  %681 = vrot.lane.b32.xlu2 %v678_v22, %s4428_s18  ;;  %v3862_v17 = vld [vmem:[%s4470_s17 + $0x10] sm:$0xf]  ;;  %v3958_v53 = vld [vmem:[%s4470_s17 + $0x4c] sm:$0xf]  ;;  %v926_v55 = vrot.slane %v3951_v46, 5  ;;  %v945_v58 = vsel %vm4656_vm6, %v3956_v49, %v944_v41 }
  0x5b   : > { %192 = vst.msk [vmem:[#allocation2 + $0xc] sm:$0xf] %vm185_vm5, %v3862_v17  ;;  %v885_v21 = vsel %vm4656_vm6, %v883_v13, %v884_v11  ;;  %v3949_v22 = vld [vmem:[%s4470_s17 + $0x30] sm:$0xe]  ;;  %v3961_v59 = vld [vmem:[%s4470_s17 + $0x54] sm:$0xe] }
  0x5c   : > { %v3952_v29 = vrot.slane %v3949_v22, 9  ;;  %211 = vst.msk [vmem:[#allocation2 + $0x28] sm:$0xf] %vm185_vm5, %v3869_v51  ;;  %v3962_v60 = vld [vmem:[%s4470_s17 + $0x58] sm:$0xf]  ;;  %v965_v61 = vrot.slane %v3958_v53, 5  ;;  %v927_v63 = vsel %vm4656_vm6, %v925_v54, %v926_v55 }
  0x5d   : > { %v3959_v62 = vld [vmem:[%s4470_s17 + $0x50] sm:$0x1]  ;;  %v3957_v0 = vld [vmem:[%s4470_s17 + $0x48] sm:$0xe]  ;;  %v3964_v2 = vrot.slane %v3961_v59, 9  ;;  %v986_v3 = vrot.slane %v3962_v60, 5 }
  0x5e   : > { %v3873_v4 = vld [vmem:[%s4470_s17 + $0x54] sm:$0xf]  ;;  %v967_v6 = vrot.slane %v965_v61, 4  ;;  %v968_v7 = vrot.slane %v3959_v62, 5  ;;  %v3872_v11 = vld [vmem:[%s4470_s17 + $0x4c] sm:$0xf] }
  0x5f   : > { %221 = vst.msk [vmem:[#allocation2 + $0x38] sm:$0xf] %vm185_vm5, %v3873_v4  ;;  %v3871_v13 = vld [vmem:[%s4470_s17 + $0x48] sm:$0xf]  ;;  %v987_v14 = vsel %vm4656_vm6, %v3964_v2, %v986_v3  ;;  %v3965_v18 = vld [vmem:[%s4470_s17 + $0x60] sm:$0xe] }
  0x60   : > { %v969_v16 = vsel %vm4656_vm6, %v967_v6, %v968_v7  ;;  %v3967_v17 = vld [vmem:[%s4470_s17 + $0x68] sm:$0x1]  ;;  %217 = vst.msk [vmem:[#allocation2 + $0x34] sm:$0xf] %vm185_vm5, %v3872_v11  ;;  %v3963_v20 = vld [vmem:[%s4470_s17 + $0x5c] sm:$0x1] }
  0x61   : > { %784 = vrot.lane.b32.xlu1 %v773_v37, %s4428_s18  ;;  %v3865_v37 = vld [vmem:[%s4470_s17 + $0x24] sm:$0xf]  ;;  %216 = vst.msk [vmem:[#allocation2 + $0x30] sm:$0xf] %vm185_vm5, %v3871_v13  ;;  %v1010_v22 = vrot.slane %v3967_v17, 5 }
  0x62   : > { %751 = vrot.lane.b32.xlu0 %v748_v40, %s4428_s18  ;;  %749 = vrot.lane.b32.xlu2 %v738_v42, %s4428_s18  ;;  %201 = vst.msk [vmem:[#allocation2 + $0x18] sm:$0xf] %vm185_vm5, %v3865_v37  ;;  %v924_v40 = vsel %vm4656_vm6, %v3952_v29, %v923_v30  ;;  %v906_v42 = vsel %vm4656_vm6, %v904_v32, %v905_v33  ;;  %v3876_v23 = vld [vmem:[%s4470_s17 + $0x64] sm:$0xf]  ;;  %v3970_v27 = vld [vmem:[%s4470_s17 + $0x70] sm:$0xf] }
  0x63   : > { %227 = vst.msk [vmem:[#allocation2 + $0x44] sm:$0xf] %vm185_vm5, %v3876_v23  ;;  %v988_v29 = vrot.slane %v986_v3, 4  ;;  %v989_v30 = vrot.slane %v3963_v20, 5  ;;  %v3875_v31 = vld [vmem:[%s4470_s17 + $0x60] sm:$0xf] }
  0x64   : > { %v3874_v33 = vld [vmem:[%s4470_s17 + $0x58] sm:$0xf]  ;;  %v3974_v37 = vld [vmem:[%s4470_s17 + $0x7c] sm:$0xf]  ;;  %v1028_v38 = vrot.slane %v3970_v27, 5 }
  0x65   : > { %v3973_v35 = vld [vmem:[%s4470_s17 + $0x78] sm:$0xe]  ;;  %226 = vst.msk [vmem:[#allocation2 + $0x40] sm:$0xf] %vm185_vm5, %v3875_v31  ;;  %v3969_v41 = vld [vmem:[%s4470_s17 + $0x6c] sm:$0xe] }
  0x66   : > { %222 = vst.msk [vmem:[#allocation2 + $0x3c] sm:$0xf] %vm185_vm5, %v3874_v33  ;;  %v1049_v43 = vrot.slane %v3974_v37, 5  ;;  %v3879_v44 = vld [vmem:[%s4470_s17 + $0x78] sm:$0xf]  ;;  %v1030_v46 = vrot.slane %v1028_v38, 4 }
  0x67   : > { %236 = vst.msk [vmem:[#allocation2 + $0x50] sm:$0xf] %vm185_vm5, %v3879_v44  ;;  %v3972_v50 = vrot.slane %v3969_v41, 9  ;;  %v3878_v51 = vld [vmem:[%s4470_s17 + $0x70] sm:$0xf] }
  0x68   : > { %v3877_v53 = vld [vmem:[%s4470_s17 + $0x6c] sm:$0xf]  ;;  %232 = vst.msk [vmem:[#allocation2 + $0x4c] sm:$0xf] %vm185_vm5, %v3878_v51  ;;  %v3975_v60 = vld [vmem:[%s4470_s17 + $0x80] sm:$0x1] }
  0x69   : > { %821 = vrot.lane.b32.xlu1 %v818_v52, %s4428_s18  ;;  %v3868_v52 = vld [vmem:[%s4470_s17 + $0x34] sm:$0xf]  ;;  %v1029_v59 = vsel %vm4656_vm6, %v3972_v50, %v1028_v38  ;;  %231 = vst.msk [vmem:[#allocation2 + $0x48] sm:$0xf] %vm185_vm5, %v3877_v53  ;;  %v1052_v6 = vrot.slane %v3975_v60, 5 }
  0x6a   : > { %819 = vrot.lane.b32.xlu0 %v808_v56, %s4428_s18  ;;  %786 = vrot.lane.b32.xlu2 %v783_v57, %s4428_s18  ;;  %207 = vst.msk [vmem:[#allocation2 + $0x24] sm:$0xf] %vm185_vm5, %v3868_v52  ;;  %v948_v57 = vsel %vm4656_vm6, %v946_v47, %v947_v48  ;;  %v3978_v48 = vld [vmem:[%s4470_s17 + $0x88] sm:$0xf]  ;;  %v3982_v3 = vld [vmem:[%s4470_s17 + $0x94] sm:$0xf] }
  0x6b   : > { %v1070_v55 = vrot.slane %v3978_v48, 5  ;;  %v3881_v7 = vld [vmem:[%s4470_s17 + $0x84] sm:$0xf]  ;;  %v3985_v11 = vld [vmem:[%s4470_s17 + $0x9c] sm:$0xe] }
  0x6c   : > { %v3986_v13 = vld [vmem:[%s4470_s17 + $0xa0] sm:$0xf]  ;;  %241 = vst.msk [vmem:[#allocation2 + $0x58] sm:$0xf] %vm185_vm5, %v3881_v7  ;;  %v3981_v17 = vld [vmem:[%s4470_s17 + $0x90] sm:$0xe] }
  0x6d   : > { %v3885_v20 = vld [vmem:[%s4470_s17 + $0x9c] sm:$0xf]  ;;  %v3984_v27 = vrot.slane %v3981_v17, 9  ;;  %v3987_v37 = vld [vmem:[%s4470_s17 + $0xa4] sm:$0x1] }
  0x6e   : > { %251 = vst.msk [vmem:[#allocation2 + $0x68] sm:$0xf] %vm185_vm5, %v3885_v20  ;;  %v3995_v53 = vld [vmem:[%s4470_s17 + $0xbc] sm:$0x1] }
  0x6f   : > { %v4000_v7 = vld [vmem:[%s4470_s17 + $0x1c] sm:$0xf] }
  0x70   : > { %v4005_v20 = vld [vmem:[%s4470_s17 + $0x3c] sm:$0xf] }
  0x71   : > { %865 = vrot.lane.b32.xlu1 %v861_v5, %s4429_s19 }
  0x72   : > { %845 = vrot.lane.b32.xlu0 %v842_v8, %s4429_s19  ;;  %843 = vrot.lane.b32.xlu2 %v839_v10, %s4429_s19  ;;  %v3966_v8 = vld [vmem:[%s4470_s17 + $0x64] sm:$0xf]  ;;  %v3960_v10 = vrot.slane %v3957_v0, 9 }
  0x73   : > { %v1007_v15 = vrot.slane %v3966_v8, 5 }
  0x74   : > { %v966_v19 = vsel %vm4656_vm6, %v3960_v10, %v965_v61  ;;  %v1072_v61 = vrot.slane %v1070_v55, 4 }
  0x79   : > { %888 = vrot.lane.b32.xlu1 %v885_v21, %s4429_s19  ;;  %v1009_v21 = vrot.slane %v1007_v15, 4 }
  0x7a   : > { %886 = vrot.lane.b32.xlu0 %v882_v26, %s4429_s19  ;;  %867 = vrot.lane.b32.xlu2 %v864_v28, %s4429_s19  ;;  %v3968_v26 = vrot.slane %v3965_v18, 9  ;;  %v3988_v18 = vrot.slane %v3985_v11, 9 }
  0x7b   : > { %v1011_v34 = vsel %vm4656_vm6, %v1009_v21, %v1010_v22 }
  0x7c   : > { %v365_v39 = vpop.permute.xlu2 %364  ;;  %v1008_v36 = vsel %vm4656_vm6, %v3968_v26, %v1007_v15  ;;  %v3983_v15 = vld [vmem:[%s4470_s17 + $0x98] sm:$0x1] }
  0x7d   : > { %370 = vst.msk [vmem:[#allocation2 + $0x10] sm:$0xf] %vm299_vm7, %v365_v39  ;;  %v3971_v39 = vld [vmem:[%s4470_s17 + $0x74] sm:$0x1]  ;;  %v1094_v23 = vrot.slane %v3983_v15, 5 }
  0x7e   : > { %v1031_v47 = vrot.slane %v3971_v39, 5  ;;  %v4001_v15 = vld [vmem:[%s4470_s17 + $0x24] sm:$0xf] }
  0x81   : > { %928 = vrot.lane.b32.xlu1 %v924_v40, %s4429_s19  ;;  %v990_v40 = vsel %vm4656_vm6, %v988_v29, %v989_v30  ;;  %v3883_v30 = vld [vmem:[%s4470_s17 + $0x90] sm:$0xf] }
  0x82   : > { %909 = vrot.lane.b32.xlu0 %v906_v42, %s4429_s19  ;;  %907 = vrot.lane.b32.xlu2 %v903_v45, %s4429_s19  ;;  %v3976_v42 = vrot.slane %v3973_v35, 9  ;;  %v3989_v35 = vld [vmem:[%s4470_s17 + $0xa8] sm:$0xe]  ;;  %246 = vst.msk [vmem:[#allocation2 + $0x60] sm:$0xf] %vm185_vm5, %v3883_v30 }
  0x84   : > { %v367_v56 = vpop.permute.xlu2 %366  ;;  %v1050_v54 = vsel %vm4656_vm6, %v3976_v42, %v1049_v43  ;;  %v3992_v42 = vrot.slane %v3989_v35, 9 }
  0x85   : > { %371 = vst.msk [vmem:[#allocation2 + $0x14] sm:$0xf] %vm299_vm7, %v367_v56  ;;  %v1032_v56 = vsel %vm4656_vm6, %v1030_v46, %v1031_v47  ;;  %v1115_v46 = vrot.slane %v3987_v37, 5  ;;  %v3887_v47 = vld [vmem:[%s4470_s17 + $0xa8] sm:$0xf] }
  0x86   : > { %256 = vst.msk [vmem:[#allocation2 + $0x70] sm:$0xf] %vm185_vm5, %v3887_v47 }
  0x89   : > { %951 = vrot.lane.b32.xlu1 %v948_v57, %s4429_s19  ;;  %v3979_v57 = vld [vmem:[%s4470_s17 + $0x8c] sm:$0x1] }
  0x8a   : > { %949 = vrot.lane.b32.xlu0 %v945_v58, %s4429_s19  ;;  %930 = vrot.lane.b32.xlu2 %v927_v63, %s4429_s19  ;;  %v3977_v58 = vld [vmem:[%s4470_s17 + $0x84] sm:$0xe]  ;;  %v1073_v62 = vrot.slane %v3979_v57, 5  ;;  %v3882_v63 = vld [vmem:[%s4470_s17 + $0x88] sm:$0xf] }
  0x8b   : > { %v330_v5 = vpop.permute.xlu1 %329  ;;  %v3980_v2 = vrot.slane %v3977_v58, 9  ;;  %242 = vst.msk [vmem:[#allocation2 + $0x5c] sm:$0xf] %vm185_vm5, %v3882_v63  ;;  %v1157_v58 = vrot.slane %v3995_v53, 5  ;;  %v3889_v63 = vld [vmem:[%s4470_s17 + $0xb4] sm:$0xf] }
  0x8c   : > { %335 = vst.msk [vmem:[#allocation2 + $0x8] sm:$0xf] %vm299_vm7, %v330_v5  ;;  %v294_v9 = vpop.permute.xlu0 %293  ;;  %v435_v12 = vpop.permute.xlu2 %434  ;;  %v1051_v5 = vrot.slane %v1049_v43, 4  ;;  %v1074_v10 = vsel %vm4656_vm6, %v1072_v61, %v1073_v62  ;;  %v3994_v43 = vld [vmem:[%s4470_s17 + $0xb8] sm:$0xf] }
  0x8d   : > { %300 = vst.msk [vmem:[#allocation2] sm:$0xf] %vm299_vm7, %v294_v9  ;;  %v3880_v9 = vld [vmem:[%s4470_s17 + $0x7c] sm:$0xf]  ;;  %v3890_v61 = vld [vmem:[%s4470_s17 + $0xb8] sm:$0xf] }
  0x8e   : > { %440 = vst.msk [vmem:[#allocation2 + $0x20] sm:$0xf] %vm299_vm7, %v435_v12  ;;  %v1071_v12 = vsel %vm4656_vm6, %v3980_v2, %v1070_v55  ;;  %v3993_v55 = vld [vmem:[%s4470_s17 + $0xb4] sm:$0xe]  ;;  %v4030_v53 = vld [vmem:[%s4470_s17 + $0x10] sm:$0xf] }
  0x8f   : > { %237 = vst.msk [vmem:[#allocation2 + $0x54] sm:$0xf] %vm185_vm5, %v3880_v9  ;;  %v3996_v60 = vrot.slane %v3993_v55, 9  ;;  %v3998_v9 = vld [vmem:[%s4470_s17 + $0x10] sm:$0xf] }
  0x90   : > { %262 = vst.msk [vmem:[#allocation2 + $0x7c] sm:$0xf] %vm185_vm5, %v3890_v61  ;;  %v4023_v61 = vld [vmem:[%s4470_s17 + $0xa8] sm:$0xf] }
  0x91   : > { %991 = vrot.lane.b32.xlu1 %v987_v14, %s4429_s19  ;;  %v1091_v14 = vrot.slane %v3982_v3, 5  ;;  %261 = vst.msk [vmem:[#allocation2 + $0x78] sm:$0xf] %vm185_vm5, %v3889_v63 }
  0x92   : > { %972 = vrot.lane.b32.xlu0 %v969_v16, %s4429_s19  ;;  %970 = vrot.lane.b32.xlu2 %v966_v19, %s4429_s19  ;;  %v1053_v16 = vsel %vm4656_vm6, %v1051_v5, %v1052_v6  ;;  %v1112_v19 = vrot.slane %v3986_v13, 5  ;;  %v4003_v13 = vld [vmem:[%s4470_s17 + $0x30] sm:$0xf] }
  0x93   : > { %v332_v24 = vpop.permute.xlu1 %331  ;;  %v1093_v22 = vrot.slane %v1091_v14, 4 }
  0x94   : > { %336 = vst.msk [vmem:[#allocation2 + $0xc] sm:$0xf] %vm299_vm7, %v332_v24  ;;  %v296_v28 = vpop.permute.xlu0 %295  ;;  %v472_v32 = vpop.permute.xlu2 %471  ;;  %v3990_v24 = vld [vmem:[%s4470_s17 + $0xac] sm:$0xf]  ;;  %v1113_v31 = vsel %vm4656_vm6, %v3988_v18, %v1112_v19 }
  0x95   : > { %301 = vst.msk [vmem:[#allocation2 + $0x4] sm:$0xf] %vm299_vm7, %v296_v28  ;;  %v3884_v28 = vld [vmem:[%s4470_s17 + $0x94] sm:$0xf]  ;;  %v1095_v33 = vsel %vm4656_vm6, %v1093_v22, %v1094_v23 }
  0x96   : > { %476 = vst.msk [vmem:[#allocation2 + $0x2c] sm:$0xf] %vm299_vm7, %v472_v32  ;;  %v1133_v32 = vrot.slane %v3990_v24, 5 }
  0x97   : > { %247 = vst.msk [vmem:[#allocation2 + $0x64] sm:$0xf] %vm185_vm5, %v3884_v28  ;;  %v4007_v28 = vld [vmem:[%s4470_s17 + $0x48] sm:$0xf] }
  0x98   : > { %v1135_v38 = vrot.slane %v1133_v32, 4  ;;  %v1134_v51 = vsel %vm4656_vm6, %v3992_v42, %v1133_v32  ;;  %v4012_v32 = vld [vmem:[%s4470_s17 + $0x64] sm:$0xf] }
  0x99   : > { %1014 = vrot.lane.b32.xlu1 %v1011_v34, %s4429_s19  ;;  %v3991_v34 = vld [vmem:[%s4470_s17 + $0xb0] sm:$0x1] }
  0x9a   : > { %1012 = vrot.lane.b32.xlu0 %v1008_v36, %s4429_s19  ;;  %993 = vrot.lane.b32.xlu2 %v990_v40, %s4429_s19  ;;  %v1092_v36 = vsel %vm4656_vm6, %v3984_v27, %v1091_v14  ;;  %v1136_v39 = vrot.slane %v3991_v34, 5  ;;  %v3888_v40 = vld [vmem:[%s4470_s17 + $0xac] sm:$0xf]  ;;  %v4002_v14 = vld [vmem:[%s4470_s17 + $0x28] sm:$0xf] }
  0x9b   : > { %v402_v45 = vpop.permute.xlu1 %401  ;;  %257 = vst.msk [vmem:[#allocation2 + $0x74] sm:$0xf] %vm185_vm5, %v3888_v40  ;;  %v4008_v27 = vld [vmem:[%s4470_s17 + $0x4c] sm:$0xf]  ;;  %v4010_v34 = vld [vmem:[%s4470_s17 + $0x58] sm:$0xf] }
  0x9c   : > { %406 = vst.msk [vmem:[#allocation2 + $0x1c] sm:$0xf] %vm299_vm7, %v402_v45  ;;  %v400_v49 = vpop.permute.xlu0 %399  ;;  %v540_v52 = vpop.permute.xlu2 %539  ;;  %v1114_v45 = vrot.slane %v1112_v19, 4  ;;  %v1137_v50 = vsel %vm4656_vm6, %v1135_v38, %v1136_v39  ;;  %v4006_v19 = vld [vmem:[%s4470_s17 + $0x40] sm:$0xf] }
  0x9d   : > { %405 = vst.msk [vmem:[#allocation2 + $0x18] sm:$0xf] %vm299_vm7, %v400_v49  ;;  %v3886_v49 = vld [vmem:[%s4470_s17 + $0xa0] sm:$0xf]  ;;  %v4015_v38 = vld [vmem:[%s4470_s17 + $0x78] sm:$0xf] }
  0x9e   : > { %545 = vst.msk [vmem:[#allocation2 + $0x38] sm:$0xf] %vm299_vm7, %v540_v52  ;;  %v1154_v52 = vrot.slane %v3994_v43, 5  ;;  %v4014_v39 = vld [vmem:[%s4470_s17 + $0x70] sm:$0xf] }
  0x9f   : > { %252 = vst.msk [vmem:[#allocation2 + $0x6c] sm:$0xf] %vm185_vm5, %v3886_v49  ;;  %v4013_v40 = vld [vmem:[%s4470_s17 + $0x6c] sm:$0xf] }
  0xa0   : > { %v1156_v57 = vrot.slane %v1154_v52, 4  ;;  %v1155_v3 = vsel %vm4656_vm6, %v3996_v60, %v1154_v52  ;;  %v4019_v52 = vld [vmem:[%s4470_s17 + $0x90] sm:$0xf]  ;;  %v4024_v60 = vld [vmem:[%s4470_s17 + $0xac] sm:$0xf] }
  0xa1   : > { %1054 = vrot.lane.b32.xlu1 %v1050_v54, %s4429_s19  ;;  %v1116_v54 = vsel %vm4656_vm6, %v1114_v45, %v1115_v46  ;;  %v4017_v45 = vld [vmem:[%s4470_s17 + $0x84] sm:$0xf]  ;;  %v4016_v46 = vld [vmem:[%s4470_s17 + $0x7c] sm:$0xf] }
  0xa2   : > { %1035 = vrot.lane.b32.xlu0 %v1032_v56, %s4429_s19  ;;  %1033 = vrot.lane.b32.xlu2 %v1029_v59, %s4429_s19  ;;  %v1158_v2 = vsel %vm4656_vm6, %v1156_v57, %v1157_v58  ;;  %v1374_v58 = vshll.u32 %v4030_v53, 16 }
  0xa3   : > { %v470_v0 = vpop.permute.xlu1 %469 }
  0xa4   : > { %475 = vst.msk [vmem:[#allocation2 + $0x28] sm:$0xf] %vm299_vm7, %v470_v0  ;;  %v437_v4 = vpop.permute.xlu0 %436  ;;  %v577_v8 = vpop.permute.xlu2 %576  ;;  %v3997_v0 = vld [vmem:[%s4470_s17 + $0xc] sm:$0xf] }
  0xa5   : > { %441 = vst.msk [vmem:[#allocation2 + $0x24] sm:$0xf] %vm299_vm7, %v437_v4 }
  0xa6   : > { %581 = vst.msk [vmem:[#allocation2 + $0x44] sm:$0xf] %vm299_vm7, %v577_v8  ;;  %v3999_v8 = vld [vmem:[%s4470_s17 + $0x18] sm:$0xf] }
  0xa9   : > { %1077 = vrot.lane.b32.xlu1 %v1074_v10, %s4429_s19 }
  0xaa   : > { %1075 = vrot.lane.b32.xlu0 %v1071_v12, %s4429_s19  ;;  %1056 = vrot.lane.b32.xlu2 %v1053_v16, %s4429_s19 }
  0xab   : > { %v507_v21 = vpop.permute.xlu1 %506 }
  0xac   : > { %511 = vst.msk [vmem:[#allocation2 + $0x34] sm:$0xf] %vm299_vm7, %v507_v21  ;;  %v505_v26 = vpop.permute.xlu0 %504  ;;  %v645_v29 = vpop.permute.xlu2 %644  ;;  %v4004_v21 = vld [vmem:[%s4470_s17 + $0x34] sm:$0xf] }
  0xad   : > { %510 = vst.msk [vmem:[#allocation2 + $0x30] sm:$0xf] %vm299_vm7, %v505_v26  ;;  %v4009_v26 = vld [vmem:[%s4470_s17 + $0x54] sm:$0xf] }
  0xae   : > { %650 = vst.msk [vmem:[#allocation2 + $0x50] sm:$0xf] %vm299_vm7, %v645_v29 }
  0xb1   : > { %1117 = vrot.lane.b32.xlu1 %v1113_v31, %s4429_s19 }
  0xb2   : > { %1098 = vrot.lane.b32.xlu0 %v1095_v33, %s4429_s19  ;;  %1096 = vrot.lane.b32.xlu2 %v1092_v36, %s4429_s19  ;;  %v4011_v33 = vld [vmem:[%s4470_s17 + $0x60] sm:$0xf] }
  0xb3   : > { %v575_v41 = vpop.permute.xlu1 %574 }
  0xb4   : > { %580 = vst.msk [vmem:[#allocation2 + $0x40] sm:$0xf] %vm299_vm7, %v575_v41  ;;  %v542_v44 = vpop.permute.xlu0 %541  ;;  %v682_v48 = vpop.permute.xlu2 %681 }
  0xb5   : > { %546 = vst.msk [vmem:[#allocation2 + $0x3c] sm:$0xf] %vm299_vm7, %v542_v44  ;;  %v4018_v44 = vld [vmem:[%s4470_s17 + $0x88] sm:$0xf] }
  0xb6   : > { %686 = vst.msk [vmem:[#allocation2 + $0x5c] sm:$0xf] %vm299_vm7, %v682_v48 }
  0xb9   : > { %1140 = vrot.lane.b32.xlu1 %v1137_v50, %s4429_s19  ;;  %v4021_v50 = vld [vmem:[%s4470_s17 + $0x9c] sm:$0xf] }
  0xba   : > { %1138 = vrot.lane.b32.xlu0 %v1134_v51, %s4429_s19  ;;  %1119 = vrot.lane.b32.xlu2 %v1116_v54, %s4429_s19  ;;  %v4020_v51 = vld [vmem:[%s4470_s17 + $0x94] sm:$0xf] }
  0xbb   : > { %v612_v56 = vpop.permute.xlu1 %611 }
  0xbc   : > { %616 = vst.msk [vmem:[#allocation2 + $0x4c] sm:$0xf] %vm299_vm7, %v612_v56  ;;  %v610_v59 = vpop.permute.xlu0 %609  ;;  %v750_v62 = vpop.permute.xlu2 %749  ;;  %v4029_v56 = vld [vmem:[%s4470_s17 + $0xc] sm:$0xf] }
  0xbd   : > { %615 = vst.msk [vmem:[#allocation2 + $0x48] sm:$0xf] %vm299_vm7, %v610_v59  ;;  %v1378_v59 = vshrl.u32 %v4030_v53, 16  ;;  %v1368_v63 = vshll.u32 %v4029_v56, 16  ;;  %v4028_v53 = vld [vmem:[%s4470_s17 + $0xc4] sm:$0xf] }
  0xbe   : > { %755 = vst.msk [vmem:[#allocation2 + $0x68] sm:$0xf] %vm299_vm7, %v750_v62  ;;  %v1365_v62 = vshrl.u32 %v4029_v56, 16 }
  0xc1   : > { %1171 = vrot.lane.b32.xlu1 %v3997_v0, %s4430_s20  ;;  %v4022_v0 = vld [vmem:[%s4470_s17 + $0xa0] sm:$0xf] }
  0xc2   : > { %1161 = vrot.lane.b32.xlu0 %v1158_v2, %s4429_s19  ;;  %1159 = vrot.lane.b32.xlu2 %v1155_v3, %s4429_s19  ;;  %v4968_v2 = vrot.slane %v1374_v58, 5  ;;  %v1380_v3 = vrot.slane %v1378_v59, 4 }
  0xc3   : > { %v680_v4 = vpop.permute.xlu1 %679 }
  0xc4   : > { %685 = vst.msk [vmem:[#allocation2 + $0x58] sm:$0xf] %vm299_vm7, %v680_v4  ;;  %v647_v5 = vpop.permute.xlu0 %646  ;;  %v787_v6 = vpop.permute.xlu2 %786  ;;  %v4031_v4 = vld [vmem:[%s4470_s17 + $0x14] sm:$0x1] }
  0xc5   : > { %651 = vst.msk [vmem:[#allocation2 + $0x54] sm:$0xf] %vm299_vm7, %v647_v5 }
  0xc6   : > { %791 = vst.msk [vmem:[#allocation2 + $0x74] sm:$0xf] %vm299_vm7, %v787_v6  ;;  %v1367_v6 = vrot.slane %v1365_v62, 4  ;;  %v4044_v62 = vld [vmem:[%s4470_s17 + $0x48] sm:$0xf] }
  0xc9   : > { %1186 = vrot.lane.b32.xlu1 %v4000_v7, %s4430_s20  ;;  %v1370_v7 = vrot.slane %v1368_v63, 5 }
  0xca   : > { %1184 = vrot.lane.b32.xlu0 %v3999_v8, %s4430_s20  ;;  %1173 = vrot.lane.b32.xlu2 %v3998_v9, %s4430_s20  ;;  %v4035_v8 = vld [vmem:[%s4470_s17 + $0x24] sm:$0xf] }
  0xcb   : > { %v717_v10 = vpop.permute.xlu1 %716 }
  0xcc   : > { %721 = vst.msk [vmem:[#allocation2 + $0x64] sm:$0xf] %vm299_vm7, %v717_v10  ;;  %v715_v11 = vpop.permute.xlu0 %714  ;;  %v844_v12 = vpop.permute.xlu2 %843  ;;  %v4033_v10 = vld [vmem:[%s4470_s17 + $0x1c] sm:$0xf] }
  0xcd   : > { %720 = vst.msk [vmem:[#allocation2 + $0x60] sm:$0xf] %vm299_vm7, %v715_v11  ;;  %v1381_v11 = vor.u32 %v1380_v3, %v4968_v2  ;;  %v4042_v3 = vld [vmem:[%s4470_s17 + $0x40] sm:$0xf] }
  0xce   : > { %850 = vst.msk [vmem:[#allocation2] sm:$0xf] %vm849_vm8, %v844_v12  ;;  %v1384_v12 = vshll.u32 %v4031_v4, 16 }
  0xd1   : > { %1208 = vrot.lane.b32.xlu1 %v4003_v13, %s4430_s20 }
  0xd2   : > { %1198 = vrot.lane.b32.xlu0 %v4002_v14, %s4430_s20  ;;  %1196 = vrot.lane.b32.xlu2 %v4001_v15, %s4430_s20  ;;  %v4032_v14 = vld [vmem:[%s4470_s17 + $0x18] sm:$0xf]  ;;  %v4027_v15 = vld [vmem:[%s4470_s17 + $0xc0] sm:$0xf] }
  0xd3   : > { %v785_v16 = vpop.permute.xlu1 %784 }
  0xd4   : > { %790 = vst.msk [vmem:[#allocation2 + $0x70] sm:$0xf] %vm299_vm7, %v785_v16  ;;  %v752_v17 = vpop.permute.xlu0 %751  ;;  %v868_v18 = vpop.permute.xlu2 %867  ;;  %v1436_v16 = vshrl.u32 %v4035_v8, 16 }
  0xd5   : > { %756 = vst.msk [vmem:[#allocation2 + $0x6c] sm:$0xf] %vm299_vm7, %v752_v17  ;;  %v1439_v17 = vshll.u32 %v4035_v8, 16 }
  0xd6   : > { %872 = vst.msk [vmem:[#allocation2 + $0xc] sm:$0xf] %vm849_vm8, %v868_v18  ;;  %v4026_v18 = vld [vmem:[%s4470_s17 + $0xb8] sm:$0xf] }
  0xd9   : > { %1222 = vrot.lane.b32.xlu1 %v4006_v19, %s4430_s20  ;;  %v1371_v19 = vor.u32 %v1370_v7, %v1367_v6  ;;  %v4041_v7 = vld [vmem:[%s4470_s17 + $0x3c] sm:$0xf] }
  0xda   : > { %1220 = vrot.lane.b32.xlu0 %v4005_v20, %s4430_s20  ;;  %1210 = vrot.lane.b32.xlu2 %v4004_v21, %s4430_s20  ;;  %v1410_v20 = vshll.u32 %v4033_v10, 16  ;;  %v1414_v21 = vshrl.u32 %v4033_v10, 16 }
  0xdb   : > { %v822_v22 = vpop.permute.xlu1 %821 }
  0xdc   : > { %826 = vst.msk [vmem:[#allocation2 + $0x7c] sm:$0xf] %vm299_vm7, %v822_v22  ;;  %v820_v23 = vpop.permute.xlu0 %819  ;;  %v908_v24 = vpop.permute.xlu2 %907  ;;  %v4025_v22 = vld [vmem:[%s4470_s17 + $0xb4] sm:$0xf] }
  0xdd   : > { %825 = vst.msk [vmem:[#allocation2 + $0x78] sm:$0xf] %vm299_vm7, %v820_v23  ;;  %v1401_v23 = vshrl.u32 %v4032_v14, 16 }
  0xde   : > { %913 = vst.msk [vmem:[#allocation2 + $0x18] sm:$0xf] %vm849_vm8, %v908_v24  ;;  %v1404_v24 = vshll.u32 %v4032_v14, 16 }
  0xe1   : > { %1244 = vrot.lane.b32.xlu1 %v4009_v26, %s4430_s20  ;;  %v1382_v26 = vrot.slane %v1381_v11, 4 }
  0xe2   : > { %1234 = vrot.lane.b32.xlu0 %v4008_v27, %s4430_s20  ;;  %1232 = vrot.lane.b32.xlu2 %v4007_v28, %s4430_s20  ;;  %v1386_v27 = vrot.slane %v1384_v12, 5  ;;  %v1438_v28 = vrot.slane %v1436_v16, 4  ;;  %v1541_v12 = vshrl.u32 %v4044_v62, 16  ;;  %v1515_v16 = vshll.u32 %v4042_v3, 16 }
  0xe3   : > { %v866_v29 = vpop.permute.xlu1 %865 }
  0xe4   : > { %871 = vst.msk [vmem:[#allocation2 + $0x8] sm:$0xf] %vm849_vm8, %v866_v29  ;;  %v846_v30 = vpop.permute.xlu0 %845  ;;  %v931_v31 = vpop.permute.xlu2 %930  ;;  %v1441_v29 = vrot.slane %v1439_v17, 5  ;;  %v1519_v17 = vshrl.u32 %v4042_v3, 16 }
  0xe5   : > { %851 = vst.msk [vmem:[#allocation2 + $0x4] sm:$0xf] %vm849_vm8, %v846_v30  ;;  %v4039_v30 = vld [vmem:[%s4470_s17 + $0x34] sm:$0xf] }
  0xe6   : > { %935 = vst.msk [vmem:[#allocation2 + $0x24] sm:$0xf] %vm849_vm8, %v931_v31  ;;  %v4038_v31 = vld [vmem:[%s4470_s17 + $0x30] sm:$0xf] }
  0xe9   : > { %1258 = vrot.lane.b32.xlu1 %v4012_v32, %s4430_s20 }
  0xea   : > { %1256 = vrot.lane.b32.xlu0 %v4011_v33, %s4430_s20  ;;  %1246 = vrot.lane.b32.xlu2 %v4010_v34, %s4430_s20  ;;  %v1372_v33 = vrot.slane %v1371_v19, 4  ;;  %v4036_v34 = vld [vmem:[%s4470_s17 + $0x28] sm:$0xf]  ;;  %v4048_v19 = vld [vmem:[%s4470_s17 + $0x58] sm:$0xf] }
  0xeb   : > { %v889_v35 = vpop.permute.xlu1 %888 }
  0xec   : > { %893 = vst.msk [vmem:[#allocation2 + $0x14] sm:$0xf] %vm849_vm8, %v889_v35  ;;  %v887_v36 = vpop.permute.xlu0 %886  ;;  %v971_v37 = vpop.permute.xlu2 %970  ;;  %v4989_v35 = vrot.slane %v1410_v20, 5  ;;  %v1506_v20 = vshrl.u32 %v4041_v7, 16 }
  0xed   : > { %892 = vst.msk [vmem:[#allocation2 + $0x10] sm:$0xf] %vm849_vm8, %v887_v36  ;;  %v1416_v36 = vrot.slane %v1414_v21, 4  ;;  %v1509_v21 = vshll.u32 %v4041_v7, 16  ;;  %v4051_v7 = vld [vmem:[%s4470_s17 + $0x64] sm:$0xf] }
  0xee   : > { %976 = vst.msk [vmem:[#allocation2 + $0x30] sm:$0xf] %vm849_vm8, %v971_v37 }
  0xf1   : > { %1280 = vrot.lane.b32.xlu1 %v4015_v38, %s4430_s20  ;;  %v4034_v38 = vld [vmem:[%s4470_s17 + $0x20] sm:$0x1] }
  0xf2   : > { %1270 = vrot.lane.b32.xlu0 %v4014_v39, %s4430_s20  ;;  %1268 = vrot.lane.b32.xlu2 %v4013_v40, %s4430_s20  ;;  %v1403_v39 = vrot.slane %v1401_v23, 4  ;;  %v1406_v40 = vrot.slane %v1404_v24, 5 }
  0xf3   : > { %v929_v41 = vpop.permute.xlu1 %928 }
  0xf4   : > { %934 = vst.msk [vmem:[#allocation2 + $0x20] sm:$0xf] %vm849_vm8, %v929_v41  ;;  %v910_v42 = vpop.permute.xlu0 %909  ;;  %v994_v43 = vpop.permute.xlu2 %993 }
  0xf5   : > { %914 = vst.msk [vmem:[#allocation2 + $0x1c] sm:$0xf] %vm849_vm8, %v910_v42  ;;  %v1480_v42 = vshll.u32 %v4039_v30, 16 }
  0xf6   : > { %998 = vst.msk [vmem:[#allocation2 + $0x3c] sm:$0xf] %vm849_vm8, %v994_v43  ;;  %v1484_v43 = vshrl.u32 %v4039_v30, 16  ;;  %v1543_v30 = vrot.slane %v1541_v12, 4 }
  0xf8   : > { %v1486_v56 = vrot.slane %v1484_v43, 4 }
  0xf9   : > { %1294 = vrot.lane.b32.xlu1 %v4018_v44, %s4430_s20  ;;  %v1471_v44 = vshrl.u32 %v4038_v31, 16 }
  0xfa   : > { %1292 = vrot.lane.b32.xlu0 %v4017_v45, %s4430_s20  ;;  %1282 = vrot.lane.b32.xlu2 %v4016_v46, %s4430_s20  ;;  %v1474_v45 = vshll.u32 %v4038_v31, 16  ;;  %v1387_v46 = vsel %vm4481_vm2, %v1382_v26, %v1386_v27 }
  0xfb   : > { %v952_v47 = vpop.permute.xlu1 %951 }
  0xfc   : > { %956 = vst.msk [vmem:[#allocation2 + $0x2c] sm:$0xf] %vm849_vm8, %v952_v47  ;;  %v950_v48 = vpop.permute.xlu0 %949  ;;  %v1034_v49 = vpop.permute.xlu2 %1033  ;;  %v1442_v47 = vor.u32 %v1441_v29, %v1438_v28  ;;  %v1476_v58 = vrot.slane %v1474_v45, 5  ;;  %v4045_v29 = vld [vmem:[%s4470_s17 + $0x4c] sm:$0xf] }
  0xfd   : > { %955 = vst.msk [vmem:[#allocation2 + $0x28] sm:$0xf] %vm849_vm8, %v950_v48  ;;  %v1445_v48 = vshll.u32 %v4036_v34, 16 }
  0xfe   : > { %1039 = vst.msk [vmem:[#allocation2 + $0x48] sm:$0xf] %vm849_vm8, %v1034_v49  ;;  %v1377_v49 = vsel %vm4481_vm2, %v1372_v33, %v4968_v2  ;;  %v1443_v59 = vrot.slane %v1442_v47, 4  ;;  %v5028_v33 = vrot.slane %v1515_v16, 5 }
 0x101   : > { %1316 = vrot.lane.b32.xlu1 %v4021_v50, %s4430_s20  ;;  %v1417_v50 = vor.u32 %v1416_v36, %v4989_v35  ;;  %v1585_v36 = vshll.u32 %v4048_v19, 16 }
 0x102   : > { %1306 = vrot.lane.b32.xlu0 %v4020_v51, %s4430_s20  ;;  %1304 = vrot.lane.b32.xlu2 %v4019_v52, %s4430_s20  ;;  %v1420_v51 = vshll.u32 %v4034_v38, 16  ;;  %v1449_v52 = vshrl.u32 %v4036_v34, 16  ;;  %v1521_v34 = vrot.slane %v1519_v17, 4  ;;  %v4047_v38 = vld [vmem:[%s4470_s17 + $0x54] sm:$0xf]  ;;  %v1620_v17 = vshll.u32 %v4051_v7, 16 }
 0x103   : > { %v992_v54 = vpop.permute.xlu1 %991 }
 0x104   : > { %997 = vst.msk [vmem:[#allocation2 + $0x38] sm:$0xf] %vm849_vm8, %v992_v54  ;;  %v973_v55 = vpop.permute.xlu0 %972  ;;  %v1057_v57 = vpop.permute.xlu2 %1056  ;;  %v1407_v54 = vor.u32 %v1406_v40, %v1403_v39  ;;  %v1422_v2 = vrot.slane %v1420_v51, 5  ;;  %v1451_v6 = vrot.slane %v1449_v52, 4  ;;  %v1508_v39 = vrot.slane %v1506_v20, 4 }
 0x105   : > { %977 = vst.msk [vmem:[#allocation2 + $0x34] sm:$0xf] %vm849_vm8, %v973_v55  ;;  %v5003_v55 = vrot.slane %v1480_v42, 5  ;;  %v1511_v40 = vrot.slane %v1509_v21, 5  ;;  %v1576_v51 = vshrl.u32 %v4047_v38, 16  ;;  %v5041_v52 = vrot.slane %v1585_v36, 5 }
 0x106   : > { %1061 = vst.msk [vmem:[#allocation2 + $0x54] sm:$0xf] %vm849_vm8, %v1057_v57  ;;  %v1473_v57 = vrot.slane %v1471_v44, 4 }
 0x107   : > { %v1487_v8 = vor.u32 %v1486_v56, %v5003_v55  ;;  %v1512_v56 = vor.u32 %v1511_v40, %v1508_v39 }
 0x108   : > { %v1477_v10 = vor.u32 %v1476_v58, %v1473_v57  ;;  %v1554_v57 = vshrl.u32 %v4045_v29, 16 }
 0x109   : > { %1330 = vrot.lane.b32.xlu1 %v4024_v60, %s4430_s20  ;;  %v1447_v60 = vrot.slane %v1445_v48, 5  ;;  %v1488_v26 = vrot.slane %v1487_v8, 4 }
 0x10a   : > { %1328 = vrot.lane.b32.xlu0 %v4023_v61, %s4430_s20  ;;  %1318 = vrot.lane.b32.xlu2 %v4022_v0, %s4430_s20  ;;  %v4040_v61 = vld [vmem:[%s4470_s17 + $0x38] sm:$0x1]  ;;  %v1418_v0 = vrot.slane %v1417_v50, 4  ;;  %v1478_v28 = vrot.slane %v1477_v10, 4 }
 0x10b   : > { %v1015_v5 = vpop.permute.xlu1 %1014  ;;  %v1448_v14 = vsel %vm4481_vm2, %v1443_v59, %v1447_v60  ;;  %v1452_v23 = vor.u32 %v1451_v6, %v1447_v60  ;;  %v4053_v60 = vld [vmem:[%s4470_s17 + $0x6c] sm:$0xf]  ;;  %v1513_v6 = vrot.slane %v1512_v56, 4 }
 0x10c   : > { %1019 = vst.msk [vmem:[#allocation2 + $0x44] sm:$0xf] %vm849_vm8, %v1015_v5  ;;  %v1013_v9 = vpop.permute.xlu0 %1012  ;;  %v1097_v13 = vpop.permute.xlu2 %1096  ;;  %v1408_v5 = vrot.slane %v1407_v54, 4  ;;  %v1483_v45 = vsel %vm4481_vm2, %v1478_v28, %v5003_v55  ;;  %v1579_v54 = vshll.u32 %v4047_v38, 16  ;;  %v4049_v55 = vld [vmem:[%s4470_s17 + $0x5c] sm:$0x1] }
 0x10d   : > { %1018 = vst.msk [vmem:[#allocation2 + $0x40] sm:$0xf] %vm849_vm8, %v1013_v9  ;;  %v1490_v9 = vshll.u32 %v4040_v61, 16  ;;  %v1453_v42 = vrot.slane %v1452_v23, 4  ;;  %v1649_v10 = vshll.u32 %v4053_v60, 16 }
 0x10e   : > { %1102 = vst.msk [vmem:[#allocation2 + $0x60] sm:$0xf] %vm849_vm8, %v1097_v13  ;;  %v4037_v13 = vld [vmem:[%s4470_s17 + $0x2c] sm:$0x1]  ;;  %v4052_v38 = vld [vmem:[%s4470_s17 + $0x68] sm:$0x1] }
 0x10f   : > { %v1455_v24 = vshll.u32 %v4037_v13, 16  ;;  %v1492_v27 = vrot.slane %v1490_v9, 5  ;;  %v1646_v9 = vshrl.u32 %v4053_v60, 16  ;;  %v4046_v13 = vld [vmem:[%s4470_s17 + $0x50] sm:$0x1] }
 0x111   : > { %1353 = vrot.lane.b32.xlu1 %v4027_v15, %s4430_s20  ;;  %v1544_v15 = vshll.u32 %v4044_v62, 16  ;;  %v1457_v43 = vrot.slane %v1455_v24, 5  ;;  %v1493_v44 = vsel %vm4481_vm2, %v1488_v26, %v1492_v27  ;;  %v1560_v24 = vshll.u32 %v4046_v13, 16 }
 0x112   : > { %1342 = vrot.lane.b32.xlu0 %v4026_v18, %s4430_s20  ;;  %1340 = vrot.lane.b32.xlu2 %v4025_v22, %s4430_s20  ;;  %v1423_v18 = vsel %vm4481_vm2, %v1418_v0, %v1422_v2  ;;  %v1413_v22 = vsel %vm4481_vm2, %v1408_v5, %v4989_v35  ;;  %v1589_v35 = vshrl.u32 %v4048_v19, 16  ;;  %v1578_v0 = vrot.slane %v1576_v51, 4 }
 0x113   : > { %v1055_v32 = vpop.permute.xlu1 %1054  ;;  %v1546_v31 = vrot.slane %v1544_v15, 5  ;;  %v1458_v58 = vsel %vm4481_vm2, %v1453_v42, %v1457_v43  ;;  %v1581_v5 = vrot.slane %v1579_v54, 5  ;;  %v1648_v28 = vrot.slane %v1646_v9, 4  ;;  %v4059_v9 = vld [vmem:[%s4470_s17 + $0x84] sm:$0xf] }
 0x114   : > { %1060 = vst.msk [vmem:[#allocation2 + $0x50] sm:$0xf] %vm849_vm8, %v1055_v32  ;;  %v1036_v37 = vpop.permute.xlu0 %1035  ;;  %v1120_v41 = vpop.permute.xlu2 %1119  ;;  %v4043_v32 = vld [vmem:[%s4470_s17 + $0x44] sm:$0x1] }
 0x115   : > { %1040 = vst.msk [vmem:[#allocation2 + $0x4c] sm:$0xf] %vm849_vm8, %v1036_v37  ;;  %v1547_v48 = vor.u32 %v1546_v31, %v1543_v30  ;;  %v1525_v50 = vshll.u32 %v4043_v32, 16  ;;  %v1582_v21 = vor.u32 %v1581_v5, %v1578_v0  ;;  %v5066_v30 = vrot.slane %v1620_v17, 5  ;;  %v4057_v32 = vld [vmem:[%s4470_s17 + $0x7c] sm:$0xf] }
 0x116   : > { %1124 = vst.msk [vmem:[#allocation2 + $0x6c] sm:$0xf] %vm849_vm8, %v1120_v41  ;;  %v4060_v5 = vld [vmem:[%s4470_s17 + $0x88] sm:$0xf] }
 0x117   : > { %v1548_v61 = vrot.slane %v1547_v48, 4 }
 0x119   : > { %1390 = vrot.lane.b32.xlu1 %v1387_v46, %s4431_s21  ;;  %v1550_v46 = vshll.u32 %v4045_v29, 16  ;;  %v1651_v29 = vrot.slane %v1649_v10, 5 }
 0x11a   : > { %1388 = vrot.lane.b32.xlu0 %v1377_v49, %s4431_s21  ;;  %1355 = vrot.lane.b32.xlu2 %v4028_v53, %s4430_s20  ;;  %v1522_v49 = vor.u32 %v1521_v34, %v5028_v33  ;;  %v1591_v53 = vrot.slane %v1589_v35, 4  ;;  %v4056_v34 = vld [vmem:[%s4470_s17 + $0x78] sm:$0xf]  ;;  %v4054_v35 = vld [vmem:[%s4470_s17 + $0x70] sm:$0xf] }
 0x11b   : > { %v1078_v63 = vpop.permute.xlu1 %1077  ;;  %v1552_v59 = vrot.slane %v1550_v46, 5  ;;  %v1694_v46 = vshrl.u32 %v4057_v32, 16  ;;  %v1684_v48 = vshll.u32 %v4056_v34, 16  ;;  %v1659_v56 = vshrl.u32 %v4054_v35, 16 }
 0x11c   : > { %1082 = vst.msk [vmem:[#allocation2 + $0x5c] sm:$0xf] %vm849_vm8, %v1078_v63  ;;  %v1076_v4 = vpop.permute.xlu0 %1075  ;;  %v1160_v11 = vpop.permute.xlu2 %1159  ;;  %v1523_v62 = vrot.slane %v1522_v49, 4  ;;  %v1527_v63 = vrot.slane %v1525_v50, 5  ;;  %v1592_v3 = vor.u32 %v1591_v53, %v5041_v52  ;;  %v1652_v49 = vor.u32 %v1651_v29, %v1648_v28 }
 0x11d   : > { %1081 = vst.msk [vmem:[#allocation2 + $0x58] sm:$0xf] %vm849_vm8, %v1076_v4  ;;  %v1595_v4 = vshll.u32 %v4049_v55, 16  ;;  %v1553_v15 = vsel %vm4481_vm2, %v1548_v61, %v1552_v59  ;;  %v1655_v50 = vshll.u32 %v4054_v35, 16  ;;  %v1630_v53 = vshll.u32 %v4052_v38, 16 }
 0x11e   : > { %1165 = vst.msk [vmem:[#allocation2 + $0x78] sm:$0xf] %vm849_vm8, %v1160_v11  ;;  %v1556_v11 = vrot.slane %v1554_v57, 4  ;;  %v1528_v16 = vsel %vm4481_vm2, %v1523_v62, %v1527_v63  ;;  %v1593_v19 = vrot.slane %v1592_v3, 4  ;;  %v1686_v61 = vrot.slane %v1684_v48, 5 }
 0x11f   : > { %v1597_v20 = vrot.slane %v1595_v4, 5  ;;  %v1653_v62 = vrot.slane %v1652_v49, 4  ;;  %v1657_v63 = vrot.slane %v1655_v50, 5  ;;  %v1632_v0 = vrot.slane %v1630_v53, 5  ;;  %v4062_v4 = vld [vmem:[%s4470_s17 + $0x90] sm:$0xf] }
 0x120   : > { %v1557_v23 = vor.u32 %v1556_v11, %v1552_v59  ;;  %v1696_v59 = vrot.slane %v1694_v46, 4  ;;  %v1751_v17 = vshrl.u32 %v4062_v4, 16 }
 0x121   : > { %1459 = vrot.lane.b32.xlu1 %v1448_v14, %s4431_s21  ;;  %v4050_v14 = vld [vmem:[%s4470_s17 + $0x60] sm:$0xf] }
 0x122   : > { %1426 = vrot.lane.b32.xlu0 %v1423_v18, %s4431_s21  ;;  %1424 = vrot.lane.b32.xlu2 %v1413_v22, %s4431_s21  ;;  %v1624_v18 = vshrl.u32 %v4051_v7, 16  ;;  %v1518_v22 = vsel %vm4481_vm2, %v1513_v6, %v5028_v33  ;;  %v1611_v26 = vshrl.u32 %v4050_v14, 16  ;;  %v1614_v27 = vshll.u32 %v4050_v14, 16  ;;  %v4055_v14 = vld [vmem:[%s4470_s17 + $0x74] sm:$0x1] }
 0x123   : > { %v1118_v37 = vpop.permute.xlu1 %1117  ;;  %v1598_v33 = vsel %vm4481_vm2, %v1593_v19, %v1597_v20  ;;  %v1558_v40 = vrot.slane %v1557_v23, 4  ;;  %v1725_v19 = vshll.u32 %v4060_v5, 16  ;;  %v1729_v20 = vshrl.u32 %v4060_v5, 16 }
 0x124   : > { %1123 = vst.msk [vmem:[#allocation2 + $0x68] sm:$0xf] %vm849_vm8, %v1118_v37  ;;  %v1099_v41 = vpop.permute.xlu0 %1098  ;;  %v1174_v47 = vpop.permute.xlu2 %1173  ;;  %v1626_v31 = vrot.slane %v1624_v18, 4  ;;  %v1583_v37 = vrot.slane %v1582_v21, 4  ;;  %v1613_v42 = vrot.slane %v1611_v26, 4  ;;  %v1616_v43 = vrot.slane %v1614_v27, 5 }
 0x125   : > { %1103 = vst.msk [vmem:[#allocation2 + $0x64] sm:$0xf] %vm849_vm8, %v1099_v41  ;;  %v1562_v41 = vrot.slane %v1560_v24, 5  ;;  %v1754_v18 = vshll.u32 %v4062_v4, 16  ;;  %v1716_v21 = vshrl.u32 %v4059_v9, 16  ;;  %v1665_v26 = vshll.u32 %v4055_v14, 16 }
 0x126   : > { %1179 = vst.msk [vmem:[#allocation2 + $0x4] sm:$0xf] %vm1177_vm9, %v1174_v47  ;;  %v1681_v47 = vshrl.u32 %v4056_v34, 16  ;;  %v1627_v51 = vor.u32 %v1626_v31, %v5066_v30  ;;  %v1588_v54 = vsel %vm4481_vm2, %v1583_v37, %v5041_v52  ;;  %v1753_v31 = vrot.slane %v1751_v17, 4  ;;  %v4066_v34 = vld [vmem:[%s4470_s17 + $0xa0] sm:$0xf] }
 0x127   : > { %v1563_v57 = vsel %vm4481_vm2, %v1558_v40, %v1562_v41  ;;  %v4063_v37 = vld [vmem:[%s4470_s17 + $0x94] sm:$0xf]  ;;  %v5111_v35 = vrot.slane %v1725_v19, 5  ;;  %v1718_v38 = vrot.slane %v1716_v21, 4  ;;  %v4061_v41 = vld [vmem:[%s4470_s17 + $0x8c] sm:$0x1] }
 0x128   : > { %v1683_v60 = vrot.slane %v1681_v47, 4  ;;  %v1628_v52 = vrot.slane %v1627_v51, 4  ;;  %v1799_v46 = vshrl.u32 %v4066_v34, 16  ;;  %v1760_v51 = vshll.u32 %v4063_v37, 16  ;;  %v4064_v14 = vld [vmem:[%s4470_s17 + $0x98] sm:$0x1] }
 0x129   : > { %1496 = vrot.lane.b32.xlu1 %v1493_v44, %s4431_s21 }
 0x12a   : > { %1494 = vrot.lane.b32.xlu0 %v1483_v45, %s4431_s21  ;;  %1461 = vrot.lane.b32.xlu2 %v1458_v58, %s4431_s21  ;;  %v1690_v45 = vshll.u32 %v4057_v32, 16  ;;  %v1617_v58 = vor.u32 %v1616_v43, %v1613_v42  ;;  %v1756_v32 = vrot.slane %v1754_v18, 5  ;;  %v1667_v43 = vrot.slane %v1665_v26, 5 }
 0x12b   : > { %v1141_v2 = vpop.permute.xlu1 %1140 }
 0x12c   : > { %1145 = vst.msk [vmem:[#allocation2 + $0x74] sm:$0xf] %vm849_vm8, %v1141_v2  ;;  %v1139_v8 = vpop.permute.xlu0 %1138  ;;  %v1197_v12 = vpop.permute.xlu2 %1196  ;;  %v5085_v55 = vrot.slane %v1690_v45, 5  ;;  %v4058_v2 = vld [vmem:[%s4470_s17 + $0x80] sm:$0x1]  ;;  %v1618_v7 = vrot.slane %v1617_v58, 4  ;;  %v1757_v50 = vor.u32 %v1756_v32, %v1753_v31 }
 0x12d   : > { %1144 = vst.msk [vmem:[#allocation2 + $0x70] sm:$0xf] %vm849_vm8, %v1139_v8  ;;  %v1661_v8 = vrot.slane %v1659_v56, 4  ;;  %v1700_v11 = vshll.u32 %v4058_v2, 16  ;;  %v1795_v45 = vshll.u32 %v4066_v34, 16  ;;  %v1735_v56 = vshll.u32 %v4061_v41, 16 }
 0x12e   : > { %1202 = vst.msk [vmem:[#allocation2 + $0x10] sm:$0xf] %vm1177_vm9, %v1197_v12  ;;  %v1697_v10 = vor.u32 %v1696_v59, %v5085_v55  ;;  %v1687_v12 = vor.u32 %v1686_v61, %v1683_v60  ;;  %v1623_v23 = vsel %vm4481_vm2, %v1618_v7, %v5066_v30  ;;  %v1731_v30 = vrot.slane %v1729_v20, 4  ;;  %v4067_v60 = vld [vmem:[%s4470_s17 + $0xa4] sm:$0x1] }
 0x12f   : > { %v1662_v24 = vor.u32 %v1661_v8, %v1657_v63  ;;  %v1702_v28 = vrot.slane %v1700_v11, 5  ;;  %v1764_v58 = vshrl.u32 %v4063_v37, 16  ;;  %v5127_v61 = vrot.slane %v1795_v45, 5  ;;  %v4072_v32 = vld [vmem:[%s4470_s17 + $0xb8] sm:$0xf] }
 0x130   : > { %v1698_v27 = vrot.slane %v1697_v10, 4  ;;  %v1688_v29 = vrot.slane %v1687_v12, 4  ;;  %v1737_v4 = vrot.slane %v1735_v56, 5  ;;  %v1805_v8 = vshll.u32 %v4067_v60, 16 }
 0x131   : > { %1564 = vrot.lane.b32.xlu1 %v1553_v15, %s4431_s21  ;;  %v1658_v15 = vsel %vm4481_vm2, %v1653_v62, %v1657_v63  ;;  %v1663_v42 = vrot.slane %v1662_v24, 4  ;;  %v1801_v62 = vrot.slane %v1799_v46, 4  ;;  %v1766_v10 = vrot.slane %v1764_v58, 4 }
 0x132   : > { %1531 = vrot.lane.b32.xlu0 %v1528_v16, %s4431_s21  ;;  %1529 = vrot.lane.b32.xlu2 %v1518_v22, %s4431_s21  ;;  %v1633_v16 = vsel %vm4481_vm2, %v1628_v52, %v1632_v0  ;;  %v1719_v22 = vshll.u32 %v4059_v9, 16  ;;  %v1703_v49 = vsel %vm4481_vm2, %v1698_v27, %v1702_v28  ;;  %v1693_v53 = vsel %vm4481_vm2, %v1688_v29, %v5085_v55  ;;  %v4069_v9 = vld [vmem:[%s4470_s17 + $0xac] sm:$0xf] }
 0x133   : > { %v1172_v36 = vpop.permute.xlu1 %1171  ;;  %v1668_v59 = vsel %vm4481_vm2, %v1663_v42, %v1667_v43  ;;  %v1758_v55 = vrot.slane %v1757_v50, 4  ;;  %v1762_v0 = vrot.slane %v1760_v51, 5  ;;  %v1802_v11 = vor.u32 %v1801_v62, %v5127_v61 }
 0x134   : > { %1178 = vst.msk [vmem:[#allocation2] sm:$0xf] %vm1177_vm9, %v1172_v36  ;;  %v1162_v39 = vpop.permute.xlu0 %1161  ;;  %v1211_v44 = vpop.permute.xlu2 %1210  ;;  %v4065_v36 = vld [vmem:[%s4470_s17 + $0x9c] sm:$0xf]  ;;  %v1830_v21 = vshll.u32 %v4069_v9, 16  ;;  %v1770_v24 = vshll.u32 %v4064_v14, 16 }
 0x135   : > { %1166 = vst.msk [vmem:[#allocation2 + $0x7c] sm:$0xf] %vm849_vm8, %v1162_v39  ;;  %v1721_v39 = vrot.slane %v1719_v22, 5  ;;  %v1786_v47 = vshrl.u32 %v4065_v36, 16  ;;  %v1789_v48 = vshll.u32 %v4065_v36, 16  ;;  %v1834_v22 = vshrl.u32 %v4069_v9, 16 }
 0x136   : > { %1215 = vst.msk [vmem:[#allocation2 + $0x1c] sm:$0xf] %vm1177_vm9, %v1211_v44  ;;  %v1803_v28 = vrot.slane %v1802_v11, 4  ;;  %v1807_v29 = vrot.slane %v1805_v8, 5  ;;  %v1772_v42 = vrot.slane %v1770_v24, 5  ;;  %v1869_v58 = vshrl.u32 %v4072_v32, 16 }
 0x137   : > { %v1788_v63 = vrot.slane %v1786_v47, 4  ;;  %v1791_v52 = vrot.slane %v1789_v48, 5  ;;  %v4078_v24 = vld [vmem:[%s4470_s17 + $0x10] sm:$0xf] }
 0x138   : > { %v1808_v45 = vsel %vm4481_vm2, %v1803_v28, %v1807_v29  ;;  %v1871_v8 = vrot.slane %v1869_v58, 4 }
 0x139   : > { %1601 = vrot.lane.b32.xlu1 %v1598_v33, %s4431_s21  ;;  %v1792_v12 = vor.u32 %v1791_v52, %v1788_v63 }
 0x13a   : > { %1599 = vrot.lane.b32.xlu0 %v1588_v54, %s4431_s21  ;;  %1566 = vrot.lane.b32.xlu2 %v1563_v57, %s4431_s21  ;;  %v1732_v54 = vor.u32 %v1731_v30, %v5111_v35  ;;  %v1722_v57 = vor.u32 %v1721_v39, %v1718_v38  ;;  %v1836_v30 = vrot.slane %v1834_v22, 4  ;;  %v4075_v38 = vld [vmem:[%s4470_s17 + $0xc4] sm:$0xf]  ;;  %v4074_v39 = vld [vmem:[%s4470_s17 + $0xc0] sm:$0xf] }
 0x13b   : > { %v1187_v3 = vpop.permute.xlu1 %1186  ;;  %v1793_v31 = vrot.slane %v1792_v12, 4  ;;  %v1900_v50 = vshll.u32 %v4075_v38, 16  ;;  %v1904_v51 = vshrl.u32 %v4075_v38, 16  ;;  %v1891_v56 = vshrl.u32 %v4074_v39, 16 }
 0x13c   : > { %1191 = vst.msk [vmem:[#allocation2 + $0xc] sm:$0xf] %vm1177_vm9, %v1187_v3  ;;  %v1185_v6 = vpop.permute.xlu0 %1184  ;;  %v1233_v13 = vpop.permute.xlu2 %1232  ;;  %v1733_v3 = vrot.slane %v1732_v54, 4  ;;  %v1723_v5 = vrot.slane %v1722_v57, 4  ;;  %v1894_v57 = vshll.u32 %v4074_v39, 16 }
 0x13d   : > { %1190 = vst.msk [vmem:[#allocation2 + $0x8] sm:$0xf] %vm1177_vm9, %v1185_v6  ;;  %v4071_v6 = vld [vmem:[%s4470_s17 + $0xb4] sm:$0xf]  ;;  %v1798_v46 = vsel %vm4481_vm2, %v1793_v31, %v5127_v61  ;;  %v1902_v63 = vrot.slane %v1900_v50, 5  ;;  %v1906_v52 = vrot.slane %v1904_v51, 4 }
 0x13e   : > { %1238 = vst.msk [vmem:[#allocation2 + $0x28] sm:$0xf] %vm1177_vm9, %v1233_v13  ;;  %v1856_v17 = vshrl.u32 %v4071_v6, 16  ;;  %v1859_v18 = vshll.u32 %v4071_v6, 16  ;;  %v1738_v19 = vsel %vm4481_vm2, %v1733_v3, %v1737_v4  ;;  %v1728_v20 = vsel %vm4481_vm2, %v1723_v5, %v5111_v35  ;;  %v4076_v3 = vld [vmem:[%s4470_s17 + $0xc8] sm:$0x1] }
 0x13f   : > { %v1832_v35 = vrot.slane %v1830_v21, 5  ;;  %v1893_v4 = vrot.slane %v1891_v56, 4  ;;  %v1896_v5 = vrot.slane %v1894_v57, 5  ;;  %v1907_v12 = vor.u32 %v1906_v52, %v1902_v63  ;;  %v4085_v50 = vld [vmem:[%s4470_s17 + $0x24] sm:$0xe] }
 0x140   : > { %v1858_v34 = vrot.slane %v1856_v17, 4  ;;  %v1861_v36 = vrot.slane %v1859_v18, 5  ;;  %v4088_v58 = vrot.slane %v4085_v50, 9 }
 0x141   : > { %1669 = vrot.lane.b32.xlu1 %v1658_v15, %s4431_s21  ;;  %v4068_v15 = vld [vmem:[%s4470_s17 + $0xa8] sm:$0xf] }
 0x142   : > { %1636 = vrot.lane.b32.xlu0 %v1633_v16, %s4431_s21  ;;  %1634 = vrot.lane.b32.xlu2 %v1623_v23, %s4431_s21  ;;  %v1763_v16 = vsel %vm4481_vm2, %v1758_v55, %v1762_v0  ;;  %v1767_v23 = vor.u32 %v1766_v10, %v1762_v0  ;;  %v1821_v26 = vshrl.u32 %v4068_v15, 16  ;;  %v1824_v27 = vshll.u32 %v4068_v15, 16  ;;  %v4073_v10 = vld [vmem:[%s4470_s17 + $0xbc] sm:$0x1] }
 0x143   : > { %v1209_v33 = vpop.permute.xlu1 %1208  ;;  %v1862_v48 = vor.u32 %v1861_v36, %v1858_v34  ;;  %v1897_v15 = vor.u32 %v1896_v5, %v1893_v4  ;;  %v1875_v18 = vshll.u32 %v4073_v10, 16  ;;  %v4082_v34 = vld [vmem:[%s4470_s17 + $0x1c] sm:$0xf]  ;;  %v1930_v36 = vrot.slane %v4078_v24, 5  ;;  %v4091_v4 = vld [vmem:[%s4470_s17 + $0x38] sm:$0x1] }
 0x144   : > { %1214 = vst.msk [vmem:[#allocation2 + $0x18] sm:$0xf] %vm1177_vm9, %v1209_v33  ;;  %v1199_v40 = vpop.permute.xlu0 %1198  ;;  %v1247_v44 = vpop.permute.xlu2 %1246  ;;  %v4070_v33 = vld [vmem:[%s4470_s17 + $0xb0] sm:$0x1]  ;;  %v1768_v41 = vrot.slane %v1767_v23, 4  ;;  %v1823_v43 = vrot.slane %v1821_v26, 4 }
 0x145   : > { %1203 = vst.msk [vmem:[#allocation2 + $0x14] sm:$0xf] %vm1177_vm9, %v1199_v40  ;;  %v1840_v54 = vshll.u32 %v4070_v33, 16  ;;  %v1863_v61 = vrot.slane %v1862_v48, 4  ;;  %v1898_v22 = vrot.slane %v1897_v15, 4  ;;  %v1952_v38 = vrot.slane %v4082_v34, 5 }
 0x146   : > { %1251 = vst.msk [vmem:[#allocation2 + $0x34] sm:$0xf] %vm1177_vm9, %v1247_v44  ;;  %v1826_v44 = vrot.slane %v1824_v27, 5  ;;  %v1877_v27 = vrot.slane %v1875_v18, 5  ;;  %v4079_v33 = vld [vmem:[%s4470_s17 + $0x14] sm:$0x1] }
 0x147   : > { %v1903_v31 = vsel %vm4481_vm2, %v1898_v22, %v1902_v63  ;;  %v4095_v22 = vld [vmem:[%s4470_s17 + $0x44] sm:$0x1] }
 0x148   : > { %v1827_v60 = vor.u32 %v1826_v44, %v1823_v43 }
 0x149   : > { %1706 = vrot.lane.b32.xlu1 %v1703_v49, %s4431_s21  ;;  %v1865_v49 = vshll.u32 %v4072_v32, 16  ;;  %v4081_v32 = vld [vmem:[%s4470_s17 + $0x18] sm:$0xe] }
 0x14a   : > { %1704 = vrot.lane.b32.xlu0 %v1693_v53, %s4431_s21  ;;  %1671 = vrot.lane.b32.xlu2 %v1668_v59, %s4431_s21  ;;  %v1837_v53 = vor.u32 %v1836_v30, %v1832_v35  ;;  %v1773_v59 = vsel %vm4481_vm2, %v1768_v41, %v1772_v42  ;;  %v4084_v30 = vrot.slane %v4081_v32, 9  ;;  %v1933_v41 = vrot.slane %v4079_v33, 5  ;;  %v4086_v42 = vld [vmem:[%s4470_s17 + $0x28] sm:$0xf] }
 0x14b   : > { %v1223_v2 = vpop.permute.xlu1 %1222  ;;  %v1867_v62 = vrot.slane %v1865_v49, 5  ;;  %v4087_v49 = vld [vmem:[%s4470_s17 + $0x2c] sm:$0x1]  ;;  %v2018_v32 = vrot.slane %v4095_v22, 5 }
 0x14c   : > { %1227 = vst.msk [vmem:[#allocation2 + $0x24] sm:$0xf] %vm1177_vm9, %v1223_v2  ;;  %v1221_v7 = vpop.permute.xlu0 %1220  ;;  %v1269_v13 = vpop.permute.xlu2 %1268  ;;  %v1838_v0 = vrot.slane %v1837_v53, 4  ;;  %v1842_v2 = vrot.slane %v1840_v54, 5  ;;  %v4083_v53 = vld [vmem:[%s4470_s17 + $0x20] sm:$0x1] }
 0x14d   : > { %1226 = vst.msk [vmem:[#allocation2 + $0x20] sm:$0xf] %vm1177_vm9, %v1221_v7  ;;  %v1828_v7 = vrot.slane %v1827_v60, 4  ;;  %v1868_v11 = vsel %vm4481_vm2, %v1863_v61, %v1867_v62  ;;  %v1872_v17 = vor.u32 %v1871_v8, %v1867_v62  ;;  %v1976_v56 = vrot.slane %v4087_v49, 5  ;;  %v4090_v60 = vld [vmem:[%s4470_s17 + $0x34] sm:$0xf] }
 0x14e   : > { %1274 = vst.msk [vmem:[#allocation2 + $0x40] sm:$0xf] %vm1177_vm9, %v1269_v13  ;;  %v1910_v13 = vshll.u32 %v4076_v3, 16  ;;  %v1843_v14 = vsel %vm4481_vm2, %v1838_v0, %v1842_v2  ;;  %v1954_v61 = vrot.slane %v1952_v38, 4  ;;  %v1955_v62 = vrot.slane %v4083_v53, 5 }
 0x14f   : > { %v1873_v26 = vrot.slane %v1872_v17, 4  ;;  %v4093_v0 = vld [vmem:[%s4470_s17 + $0x3c] sm:$0xe]  ;;  %v4094_v2 = vld [vmem:[%s4470_s17 + $0x40] sm:$0xf]  ;;  %v1994_v3 = vrot.slane %v4090_v60, 5 }
 0x150   : > { %v1956_v5 = vsel %vm4656_vm6, %v1954_v61, %v1955_v62  ;;  %v2015_v8 = vrot.slane %v4094_v2, 5 }
 0x151   : > { %1774 = vrot.lane.b32.xlu1 %v1763_v16, %s4431_s21  ;;  %v1833_v16 = vsel %vm4481_vm2, %v1828_v7, %v1832_v35  ;;  %v4077_v35 = vld [vmem:[%s4470_s17 + $0xc] sm:$0xe]  ;;  %v4096_v7 = vrot.slane %v4093_v0, 9  ;;  %v1996_v10 = vrot.slane %v1994_v3, 4 }
 0x152   : > { %1741 = vrot.lane.b32.xlu0 %v1738_v19, %s4431_s21  ;;  %1739 = vrot.lane.b32.xlu2 %v1728_v20, %s4431_s21  ;;  %v1908_v19 = vrot.slane %v1907_v12, 4  ;;  %v1912_v20 = vrot.slane %v1910_v13, 5  ;;  %v4080_v44 = vrot.slane %v4077_v35, 9  ;;  %v4098_v12 = vld [vmem:[%s4470_s17 + $0x4c] sm:$0xf] }
 0x153   : > { %v1245_v37 = vpop.permute.xlu1 %1244  ;;  %v2036_v17 = vrot.slane %v4098_v12, 5  ;;  %v4106_v35 = vld [vmem:[%s4470_s17 + $0x64] sm:$0xf] }
 0x154   : > { %1250 = vst.msk [vmem:[#allocation2 + $0x30] sm:$0xf] %vm1177_vm9, %v1245_v37  ;;  %v1235_v40 = vpop.permute.xlu0 %1234  ;;  %v1283_v47 = vpop.permute.xlu2 %1282  ;;  %v1913_v29 = vsel %vm4481_vm2, %v1908_v19, %v1912_v20  ;;  %v1878_v37 = vsel %vm4481_vm2, %v1873_v26, %v1877_v27  ;;  %v1931_v51 = vsel %vm4656_vm6, %v4080_v44, %v1930_v36  ;;  %v4099_v19 = vld [vmem:[%s4470_s17 + $0x50] sm:$0x1]  ;;  %v4097_v20 = vld [vmem:[%s4470_s17 + $0x48] sm:$0xe] }
 0x155   : > { %1239 = vst.msk [vmem:[#allocation2 + $0x2c] sm:$0xf] %vm1177_vm9, %v1235_v40  ;;  %v1932_v40 = vrot.slane %v1930_v36, 4  ;;  %v2039_v24 = vrot.slane %v4099_v19, 5  ;;  %v4100_v27 = vrot.slane %v4097_v20, 9 }
 0x156   : > { %1287 = vst.msk [vmem:[#allocation2 + $0x4c] sm:$0xf] %vm1177_vm9, %v1283_v47  ;;  %v1973_v47 = vrot.slane %v4086_v42, 5  ;;  %v2078_v42 = vrot.slane %v4106_v35, 5 }
 0x157   : > { %v1934_v48 = vsel %vm4656_vm6, %v1932_v40, %v1933_v41  ;;  %v2037_v33 = vsel %vm4656_vm6, %v4100_v27, %v2036_v17  ;;  %v4101_v40 = vld [vmem:[%s4470_s17 + $0x54] sm:$0xe]  ;;  %v4119_v27 = vld [vmem:[%s4470_s17 + $0x8c] sm:$0x1] }
 0x158   : > { %v1975_v54 = vrot.slane %v1973_v47, 4 }
 0x159   : > { %1811 = vrot.lane.b32.xlu1 %v1808_v45, %s4431_s21 }
 0x15a   : > { %1809 = vrot.lane.b32.xlu0 %v1798_v46, %s4431_s21  ;;  %1776 = vrot.lane.b32.xlu2 %v1773_v59, %s4431_s21  ;;  %v1953_v46 = vsel %vm4656_vm6, %v4084_v30, %v1952_v38  ;;  %v1977_v52 = vsel %vm4656_vm6, %v1975_v54, %v1976_v56  ;;  %v4103_v38 = vld [vmem:[%s4470_s17 + $0x5c] sm:$0x1]  ;;  %v4111_v54 = vld [vmem:[%s4470_s17 + $0x74] sm:$0x1] }
 0x15b   : > { %v1259_v55 = vpop.permute.xlu1 %1258  ;;  %v4109_v56 = vld [vmem:[%s4470_s17 + $0x6c] sm:$0xe]  ;;  %v2102_v60 = vrot.slane %v4111_v54, 5  ;;  %v4173_v54 = vld [vmem:[%s4470_s17 + $0x18] sm:$0xf] }
 0x15c   : > { %1263 = vst.msk [vmem:[#allocation2 + $0x3c] sm:$0xf] %vm1177_vm9, %v1259_v55  ;;  %v1257_v6 = vpop.permute.xlu0 %1256  ;;  %v1305_v9 = vpop.permute.xlu2 %1304  ;;  %v1974_v55 = vsel %vm4656_vm6, %v4088_v58, %v1973_v47  ;;  %v4107_v58 = vld [vmem:[%s4470_s17 + $0x68] sm:$0x1]  ;;  %v4112_v62 = vrot.slane %v4109_v56, 9 }
 0x15d   : > { %1262 = vst.msk [vmem:[#allocation2 + $0x38] sm:$0xf] %vm1177_vm9, %v1257_v6  ;;  %v4089_v6 = vld [vmem:[%s4470_s17 + $0x30] sm:$0xe]  ;;  %v2081_v0 = vrot.slane %v4107_v58, 5 }
 0x15e   : > { %1310 = vst.msk [vmem:[#allocation2 + $0x58] sm:$0xf] %vm1177_vm9, %v1305_v9 }
 0x161   : > { %1879 = vrot.lane.b32.xlu1 %v1868_v11, %s4431_s21  ;;  %v1997_v11 = vrot.slane %v4091_v4, 5 }
 0x162   : > { %1846 = vrot.lane.b32.xlu0 %v1843_v14, %s4431_s21  ;;  %1844 = vrot.lane.b32.xlu2 %v1833_v16, %s4431_s21  ;;  %v4092_v14 = vrot.slane %v4089_v6, 9  ;;  %v2016_v16 = vsel %vm4656_vm6, %v4096_v7, %v2015_v8  ;;  %v4118_v6 = vld [vmem:[%s4470_s17 + $0x88] sm:$0xf] }
 0x163   : > { %v1281_v21 = vpop.permute.xlu1 %1280  ;;  %v1998_v18 = vsel %vm4656_vm6, %v1996_v10, %v1997_v11  ;;  %v4113_v10 = vld [vmem:[%s4470_s17 + $0x78] sm:$0xe]  ;;  %v2141_v12 = vrot.slane %v4118_v6, 5 }
 0x164   : > { %1286 = vst.msk [vmem:[#allocation2 + $0x48] sm:$0xf] %vm1177_vm9, %v1281_v21  ;;  %v1271_v23 = vpop.permute.xlu0 %1270  ;;  %v1319_v28 = vpop.permute.xlu2 %1318  ;;  %v1995_v21 = vsel %vm4656_vm6, %v4092_v14, %v1994_v3 }
 0x165   : > { %1275 = vst.msk [vmem:[#allocation2 + $0x44] sm:$0xf] %vm1177_vm9, %v1271_v23  ;;  %v2038_v23 = vrot.slane %v2036_v17, 4 }
 0x166   : > { %1323 = vst.msk [vmem:[#allocation2 + $0x64] sm:$0xf] %vm1177_vm9, %v1319_v28 }
 0x167   : > { %v2040_v36 = vsel %vm4656_vm6, %v2038_v23, %v2039_v24  ;;  %v4123_v23 = vld [vmem:[%s4470_s17 + $0x98] sm:$0x1]  ;;  %v4121_v24 = vld [vmem:[%s4470_s17 + $0x90] sm:$0xe] }
 0x169   : > { %1916 = vrot.lane.b32.xlu1 %v1913_v29, %s4431_s21  ;;  %v4102_v29 = vld [vmem:[%s4470_s17 + $0x58] sm:$0xf] }
 0x16a   : > { %1914 = vrot.lane.b32.xlu0 %v1903_v31, %s4431_s21  ;;  %1881 = vrot.lane.b32.xlu2 %v1878_v37, %s4431_s21  ;;  %v2017_v31 = vrot.slane %v2015_v8, 4  ;;  %v4105_v37 = vld [vmem:[%s4470_s17 + $0x60] sm:$0xe]  ;;  %v2057_v30 = vrot.slane %v4102_v29, 5  ;;  %v4115_v8 = vld [vmem:[%s4470_s17 + $0x80] sm:$0x1] }
 0x16b   : > { %v1295_v39 = vpop.permute.xlu1 %1294  ;;  %v4108_v41 = vrot.slane %v4105_v37, 9  ;;  %v2165_v29 = vrot.slane %v4123_v23, 5  ;;  %v2144_v37 = vrot.slane %v4119_v27, 5 }
 0x16c   : > { %1299 = vst.msk [vmem:[#allocation2 + $0x54] sm:$0xf] %vm1177_vm9, %v1295_v39  ;;  %v1293_v43 = vpop.permute.xlu0 %1292  ;;  %v1341_v45 = vpop.permute.xlu2 %1340  ;;  %v2019_v39 = vsel %vm4656_vm6, %v2017_v31, %v2018_v32  ;;  %v2059_v44 = vrot.slane %v2057_v30, 4  ;;  %v4124_v32 = vrot.slane %v4121_v24, 9 }
 0x16d   : > { %1298 = vst.msk [vmem:[#allocation2 + $0x50] sm:$0xf] %vm1177_vm9, %v1293_v43  ;;  %v2079_v50 = vsel %vm4656_vm6, %v4108_v41, %v2078_v42 }
 0x16e   : > { %1346 = vst.msk [vmem:[#allocation2 + $0x70] sm:$0xf] %vm1177_vm9, %v1341_v45  ;;  %v2060_v45 = vrot.slane %v4103_v38, 5 }
 0x170   : > { %v2061_v53 = vsel %vm4656_vm6, %v2059_v44, %v2060_v45  ;;  %v4125_v44 = vld [vmem:[%s4470_s17 + $0x9c] sm:$0xe] }
 0x171   : > { %1957 = vrot.lane.b32.xlu1 %v1953_v46, %s4432_s22  ;;  %v4110_v46 = vld [vmem:[%s4470_s17 + $0x70] sm:$0xf] }
 0x172   : > { %1937 = vrot.lane.b32.xlu0 %v1934_v48, %s4432_s22  ;;  %1935 = vrot.lane.b32.xlu2 %v1931_v51, %s4432_s22  ;;  %v4104_v48 = vrot.slane %v4101_v40, 9  ;;  %v2099_v51 = vrot.slane %v4110_v46, 5  ;;  %v4130_v40 = vld [vmem:[%s4470_s17 + $0xac] sm:$0xf] }
 0x173   : > { %v1317_v57 = vpop.permute.xlu1 %1316  ;;  %v2204_v46 = vrot.slane %v4130_v40, 5  ;;  %v4177_v40 = vld [vmem:[%s4470_s17 + $0x28] sm:$0xf] }
 0x174   : > { %1322 = vst.msk [vmem:[#allocation2 + $0x60] sm:$0xf] %vm1177_vm9, %v1317_v57  ;;  %v1307_v59 = vpop.permute.xlu0 %1306  ;;  %v1356_v63 = vpop.permute.xlu2 %1355  ;;  %v2058_v57 = vsel %vm4656_vm6, %v4104_v48, %v2057_v30  ;;  %v2100_v4 = vsel %vm4656_vm6, %v4112_v62, %v2099_v51  ;;  %v2460_v62 = vshll.u32 %v4173_v54, 16 }
 0x175   : > { %1311 = vst.msk [vmem:[#allocation2 + $0x5c] sm:$0xf] %vm1177_vm9, %v1307_v59  ;;  %v2101_v59 = vrot.slane %v2099_v51, 4 }
 0x176   : > { %1360 = vst.msk [vmem:[#allocation2 + $0x7c] sm:$0xf] %vm1177_vm9, %v1356_v63 }
 0x177   : > { %v2103_v3 = vsel %vm4656_vm6, %v2101_v59, %v2102_v60 }
 0x179   : > { %1980 = vrot.lane.b32.xlu1 %v1977_v52, %s4432_s22  ;;  %v4114_v52 = vld [vmem:[%s4470_s17 + $0x7c] sm:$0xf] }
 0x17a   : > { %1978 = vrot.lane.b32.xlu0 %v1974_v55, %s4432_s22  ;;  %1959 = vrot.lane.b32.xlu2 %v1956_v5, %s4432_s22  ;;  %v2080_v55 = vrot.slane %v2078_v42, 4  ;;  %v4117_v5 = vld [vmem:[%s4470_s17 + $0x84] sm:$0xe]  ;;  %v2120_v7 = vrot.slane %v4114_v52, 5  ;;  %v4127_v42 = vld [vmem:[%s4470_s17 + $0xa4] sm:$0x1] }
 0x17b   : > { %v1331_v9 = vpop.permute.xlu1 %1330  ;;  %v4120_v11 = vrot.slane %v4117_v5, 9  ;;  %v5340_v52 = vld [vmem:[%s4470_s17 + $0xb8] sm:$0xf] }
 0x17c   : > { %1335 = vst.msk [vmem:[#allocation2 + $0x6c] sm:$0xf] %vm1177_vm9, %v1331_v9  ;;  %v1329_v13 = vpop.permute.xlu0 %1328  ;;  %v1425_v15 = vpop.permute.xlu2 %1424  ;;  %v2082_v9 = vsel %vm4656_vm6, %v2080_v55, %v2081_v0  ;;  %v2122_v14 = vrot.slane %v2120_v7, 4  ;;  %v4131_v0 = vld [vmem:[%s4470_s17 + $0xb0] sm:$0x1]  ;;  %v2225_v6 = vrot.slane %v5340_v52, 5 }
 0x17d   : > { %1334 = vst.msk [vmem:[#allocation2 + $0x68] sm:$0xf] %vm1177_vm9, %v1329_v13  ;;  %v2142_v20 = vsel %vm4656_vm6, %v4120_v11, %v2141_v12  ;;  %v2206_v11 = vrot.slane %v2204_v46, 4 }
 0x17e   : > { %1430 = vst.msk [vmem:[#allocation2 + $0x8] sm:$0xf] %vm1394_vm10, %v1425_v15  ;;  %v2123_v15 = vrot.slane %v4115_v8, 5 }
 0x180   : > { %v2124_v22 = vsel %vm4656_vm6, %v2122_v14, %v2123_v15  ;;  %v4141_v14 = vld [vmem:[%s4470_s17 + $0x18] sm:$0xf] }
 0x181   : > { %2020 = vrot.lane.b32.xlu1 %v2016_v16, %s4432_s22  ;;  %v4122_v16 = vld [vmem:[%s4470_s17 + $0x94] sm:$0xf] }
 0x182   : > { %2001 = vrot.lane.b32.xlu0 %v1998_v18, %s4432_s22  ;;  %1999 = vrot.lane.b32.xlu2 %v1995_v21, %s4432_s22  ;;  %v4116_v18 = vrot.slane %v4113_v10, 9  ;;  %v2162_v21 = vrot.slane %v4122_v16, 5 }
 0x183   : > { %v1354_v26 = vpop.permute.xlu1 %1353 }
 0x184   : > { %1359 = vst.msk [vmem:[#allocation2 + $0x78] sm:$0xf] %vm1177_vm9, %v1354_v26  ;;  %v1343_v28 = vpop.permute.xlu0 %1342  ;;  %v1462_v34 = vpop.permute.xlu2 %1461  ;;  %v2121_v26 = vsel %vm4656_vm6, %v4116_v18, %v2120_v7  ;;  %v2163_v38 = vsel %vm4656_vm6, %v4124_v32, %v2162_v21  ;;  %v4175_v7 = vld [vmem:[%s4470_s17 + $0x20] sm:$0x1] }
 0x185   : > { %1347 = vst.msk [vmem:[#allocation2 + $0x74] sm:$0xf] %vm1177_vm9, %v1343_v28  ;;  %v2164_v28 = vrot.slane %v2162_v21, 4  ;;  %v2476_v16 = vshll.u32 %v4175_v7, 16  ;;  %v4223_v32 = vld [vmem:[%s4470_s17 + $0x20] sm:$0x1] }
 0x186   : > { %1466 = vst.msk [vmem:[#allocation2 + $0x14] sm:$0xf] %vm1394_vm10, %v1462_v34 }
 0x187   : > { %v2166_v30 = vsel %vm4656_vm6, %v2164_v28, %v2165_v29  ;;  %v2478_v21 = vrot.slane %v2476_v16, 5  ;;  %v4226_v16 = vld [vmem:[%s4470_s17 + $0x28] sm:$0xf] }
 0x189   : > { %2043 = vrot.lane.b32.xlu1 %v2040_v36, %s4432_s22  ;;  %v4126_v36 = vld [vmem:[%s4470_s17 + $0xa0] sm:$0xf] }
 0x18a   : > { %2041 = vrot.lane.b32.xlu0 %v2037_v33, %s4432_s22  ;;  %2022 = vrot.lane.b32.xlu2 %v2019_v39, %s4432_s22  ;;  %v2143_v33 = vrot.slane %v2141_v12, 4  ;;  %v4129_v39 = vld [vmem:[%s4470_s17 + $0xa8] sm:$0xe]  ;;  %v2183_v41 = vrot.slane %v4126_v36, 5  ;;  %v2207_v12 = vrot.slane %v4131_v0, 5 }
 0x18b   : > { %v1391_v43 = vpop.permute.xlu1 %1390  ;;  %v4132_v45 = vrot.slane %v4129_v39, 9  ;;  %v4221_v36 = vld [vmem:[%s4470_s17 + $0x18] sm:$0xe]  ;;  %v4150_v0 = vld [vmem:[%s4470_s17 + $0x4c] sm:$0xf] }
 0x18c   : > { %1396 = vst.msk [vmem:[#allocation2 + $0x4] sm:$0xf] %vm1394_vm10, %v1391_v43  ;;  %v1389_v47 = vpop.permute.xlu0 %1388  ;;  %v1530_v49 = vpop.permute.xlu2 %1529  ;;  %v2145_v43 = vsel %vm4656_vm6, %v2143_v33, %v2144_v37  ;;  %v2185_v48 = vrot.slane %v2183_v41, 4  ;;  %v4224_v39 = vrot.slane %v4221_v36, 9 }
 0x18d   : > { %1395 = vst.msk [vmem:[#allocation2] sm:$0xf] %vm1394_vm10, %v1389_v47 }
 0x18e   : > { %1535 = vst.msk [vmem:[#allocation2 + $0x20] sm:$0xf] %vm1394_vm10, %v1530_v49  ;;  %v2186_v49 = vrot.slane %v4127_v42, 5  ;;  %v4176_v42 = vld [vmem:[%s4470_s17 + $0x24] sm:$0xf] }
 0x190   : > { %v2187_v60 = vsel %vm4656_vm6, %v2185_v48, %v2186_v49  ;;  %v2506_v48 = vshrl.u32 %v4177_v40, 16 }
 0x191   : > { %2083 = vrot.lane.b32.xlu1 %v2079_v50, %s4432_s22  ;;  %v4174_v50 = vld [vmem:[%s4470_s17 + $0x1c] sm:$0xf] }
 0x192   : > { %2064 = vrot.lane.b32.xlu0 %v2061_v53, %s4432_s22  ;;  %2062 = vrot.lane.b32.xlu2 %v2058_v57, %s4432_s22  ;;  %v4128_v53 = vrot.slane %v4125_v44, 9  ;;  %v2205_v57 = vsel %vm4656_vm6, %v4132_v45, %v2204_v46  ;;  %v2466_v58 = vshll.u32 %v4174_v50, 16  ;;  %v2470_v59 = vshrl.u32 %v4174_v50, 16 }
 0x193   : > { %v1460_v61 = vpop.permute.xlu1 %1459  ;;  %v2493_v50 = vshrl.u32 %v4176_v42, 16 }
 0x194   : > { %1465 = vst.msk [vmem:[#allocation2 + $0x10] sm:$0xf] %vm1394_vm10, %v1460_v61  ;;  %v1427_v63 = vpop.permute.xlu0 %1426  ;;  %v1567_v2 = vpop.permute.xlu2 %1566  ;;  %v2457_v61 = vshrl.u32 %v4173_v54, 16  ;;  %v2184_v55 = vsel %vm4656_vm6, %v4128_v53, %v2183_v41 }
 0x195   : > { %1431 = vst.msk [vmem:[#allocation2 + $0xc] sm:$0xf] %vm1394_vm10, %v1427_v63  ;;  %v4133_v63 = vld [vmem:[%s4470_s17 + $0xb4] sm:$0xe] }
 0x196   : > { %1571 = vst.msk [vmem:[#allocation2 + $0x2c] sm:$0xf] %vm1394_vm10, %v1567_v2  ;;  %v2468_v2 = vrot.slane %v2466_v58, 5  ;;  %v4136_v5 = vrot.slane %v4133_v63, 9  ;;  %v2459_v8 = vrot.slane %v2457_v61, 4 }
 0x197   : > { %v4178_v61 = vld [vmem:[%s4470_s17 + $0x2c] sm:$0x1] }
 0x198   : > { %v2512_v7 = vshll.u32 %v4178_v61, 16 }
 0x199   : > { %2106 = vrot.lane.b32.xlu1 %v2103_v3, %s4432_s22  ;;  %v2472_v3 = vrot.slane %v2470_v59, 4  ;;  %v2508_v59 = vrot.slane %v2506_v48, 4 }
 0x19a   : > { %2104 = vrot.lane.b32.xlu0 %v2100_v4, %s4432_s22  ;;  %2085 = vrot.lane.b32.xlu2 %v2082_v9, %s4432_s22  ;;  %v2462_v9 = vrot.slane %v2460_v62, 5  ;;  %v2495_v62 = vrot.slane %v2493_v50, 4 }
 0x19b   : > { %v1497_v13 = vpop.permute.xlu1 %1496  ;;  %v2473_v15 = vor.u32 %v2472_v3, %v2468_v2 }
 0x19c   : > { %1501 = vst.msk [vmem:[#allocation2 + $0x1c] sm:$0xf] %vm1394_vm10, %v1497_v13  ;;  %v1495_v17 = vpop.permute.xlu0 %1494  ;;  %v1635_v19 = vpop.permute.xlu2 %1634  ;;  %v2463_v18 = vor.u32 %v2462_v9, %v2459_v8  ;;  %v4144_v9 = vld [vmem:[%s4470_s17 + $0x28] sm:$0xf] }
 0x19d   : > { %1500 = vst.msk [vmem:[#allocation2 + $0x18] sm:$0xf] %vm1394_vm10, %v1495_v17  ;;  %v2226_v17 = vsel %vm4656_vm6, %v4136_v5, %v2225_v6 }
 0x19e   : > { %1640 = vst.msk [vmem:[#allocation2 + $0x38] sm:$0xf] %vm1394_vm10, %v1635_v19  ;;  %v2208_v19 = vsel %vm4656_vm6, %v2206_v11, %v2207_v12  ;;  %v2464_v23 = vrot.slane %v2463_v18, 4 }
 0x1a0   : > { %v2469_v29 = vsel %vm4481_vm2, %v2464_v23, %v2468_v2  ;;  %v3044_v23 = vrot.slane %v4226_v16, 5 }
 0x1a1   : > { %2146 = vrot.lane.b32.xlu1 %v2142_v20, %s4432_s22  ;;  %v2474_v20 = vrot.slane %v2473_v15, 4  ;;  %v2514_v15 = vrot.slane %v2512_v7, 5 }
 0x1a2   : > { %2127 = vrot.lane.b32.xlu0 %v2124_v22, %s4432_s22  ;;  %2125 = vrot.lane.b32.xlu2 %v2121_v26, %s4432_s22  ;;  %v4222_v26 = vld [vmem:[%s4470_s17 + $0x1c] sm:$0xf] }
 0x1a3   : > { %v1565_v31 = vpop.permute.xlu1 %1564  ;;  %v2479_v28 = vsel %vm4481_vm2, %v2474_v20, %v2478_v21  ;;  %v4187_v21 = vld [vmem:[%s4470_s17 + $0x50] sm:$0x1] }
 0x1a4   : > { %1570 = vst.msk [vmem:[#allocation2 + $0x28] sm:$0xf] %vm1394_vm10, %v1565_v31  ;;  %v1532_v34 = vpop.permute.xlu0 %1531  ;;  %v1672_v35 = vpop.permute.xlu2 %1671  ;;  %v3022_v31 = vrot.slane %v4222_v26, 5  ;;  %v4227_v26 = vld [vmem:[%s4470_s17 + $0x2c] sm:$0x1] }
 0x1a5   : > { %1536 = vst.msk [vmem:[#allocation2 + $0x24] sm:$0xf] %vm1394_vm10, %v1532_v34  ;;  %v4142_v34 = vld [vmem:[%s4470_s17 + $0x1c] sm:$0xf] }
 0x1a6   : > { %1676 = vst.msk [vmem:[#allocation2 + $0x44] sm:$0xf] %vm1394_vm10, %v1672_v35  ;;  %v3024_v37 = vrot.slane %v3022_v31, 4  ;;  %v3025_v35 = vrot.slane %v4223_v32, 5  ;;  %v3023_v49 = vsel %vm4656_vm6, %v4224_v39, %v3022_v31  ;;  %v2617_v31 = vshll.u32 %v4187_v21, 16 }
 0x1a7   : > { %v3046_v32 = vrot.slane %v3044_v23, 4 }
 0x1a8   : > { %v3026_v46 = vsel %vm4656_vm6, %v3024_v37, %v3025_v35  ;;  %v4238_v37 = vld [vmem:[%s4470_s17 + $0x4c] sm:$0xf]  ;;  %v4198_v35 = vld [vmem:[%s4470_s17 + $0x7c] sm:$0xf]  ;;  %v2619_v39 = vrot.slane %v2617_v31, 5 }
 0x1a9   : > { %2169 = vrot.lane.b32.xlu1 %v2166_v30, %s4432_s22  ;;  %v4185_v30 = vld [vmem:[%s4470_s17 + $0x48] sm:$0xf]  ;;  %v4179_v31 = vld [vmem:[%s4470_s17 + $0x30] sm:$0xf] }
 0x1aa   : > { %2167 = vrot.lane.b32.xlu0 %v2163_v38, %s4432_s22  ;;  %2148 = vrot.lane.b32.xlu2 %v2145_v43, %s4432_s22  ;;  %v4143_v43 = vld [vmem:[%s4470_s17 + $0x24] sm:$0xf]  ;;  %v2598_v44 = vshrl.u32 %v4185_v30, 16  ;;  %v2601_v45 = vshll.u32 %v4185_v30, 16 }
 0x1ab   : > { %v1602_v47 = vpop.permute.xlu1 %1601 }
 0x1ac   : > { %1606 = vst.msk [vmem:[#allocation2 + $0x34] sm:$0xf] %vm1394_vm10, %v1602_v47  ;;  %v1600_v51 = vpop.permute.xlu0 %1599  ;;  %v1740_v56 = vpop.permute.xlu2 %1739  ;;  %v2502_v47 = vshll.u32 %v4177_v40, 16  ;;  %v2600_v53 = vrot.slane %v2598_v44, 4  ;;  %v2603_v54 = vrot.slane %v2601_v45, 5  ;;  %v2751_v44 = vshrl.u32 %v4198_v35, 16 }
 0x1ad   : > { %1605 = vst.msk [vmem:[#allocation2 + $0x30] sm:$0xf] %vm1394_vm10, %v1600_v51  ;;  %v2496_v51 = vshll.u32 %v4176_v42, 16  ;;  %v4197_v40 = vld [vmem:[%s4470_s17 + $0x78] sm:$0xf] }
 0x1ae   : > { %1745 = vst.msk [vmem:[#allocation2 + $0x50] sm:$0xf] %vm1394_vm10, %v1740_v56  ;;  %v2504_v58 = vrot.slane %v2502_v47, 5  ;;  %v2604_v2 = vor.u32 %v2603_v54, %v2600_v53  ;;  %v2738_v47 = vshrl.u32 %v4197_v40, 16  ;;  %v2741_v48 = vshll.u32 %v4197_v40, 16 }
 0x1af   : > { %v2498_v63 = vrot.slane %v2496_v51, 5  ;;  %v4237_v51 = vld [vmem:[%s4470_s17 + $0x48] sm:$0xe]  ;;  %v2753_v54 = vrot.slane %v2751_v44, 4 }
 0x1b0   : > { %v2509_v5 = vor.u32 %v2508_v59, %v2504_v58  ;;  %v2605_v11 = vrot.slane %v2604_v2, 4  ;;  %v4199_v59 = vld [vmem:[%s4470_s17 + $0x80] sm:$0x1]  ;;  %v2743_v61 = vrot.slane %v2741_v48, 5 }
 0x1b1   : > { %2209 = vrot.lane.b32.xlu1 %v2205_v57, %s4432_s22  ;;  %v4186_v57 = vld [vmem:[%s4470_s17 + $0x4c] sm:$0xf] }
 0x1b2   : > { %2190 = vrot.lane.b32.xlu0 %v2187_v60, %s4432_s22  ;;  %2188 = vrot.lane.b32.xlu2 %v2184_v55, %s4432_s22  ;;  %v2607_v3 = vshll.u32 %v4186_v57, 16  ;;  %v2611_v8 = vshrl.u32 %v4186_v57, 16 }
 0x1b3   : > { %v1670_v4 = vpop.permute.xlu1 %1669 }
 0x1b4   : > { %1675 = vst.msk [vmem:[#allocation2 + $0x40] sm:$0xf] %vm1394_vm10, %v1670_v4  ;;  %v1637_v10 = vpop.permute.xlu0 %1636  ;;  %v1777_v13 = vpop.permute.xlu2 %1776  ;;  %v4149_v4 = vld [vmem:[%s4470_s17 + $0x48] sm:$0xf]  ;;  %v2609_v12 = vrot.slane %v2607_v3, 5  ;;  %v2757_v3 = vshll.u32 %v4199_v59, 16 }
 0x1b5   : > { %1641 = vst.msk [vmem:[#allocation2 + $0x3c] sm:$0xf] %vm1394_vm10, %v1637_v10  ;;  %v2499_v10 = vor.u32 %v2498_v63, %v2495_v62  ;;  %v4240_v63 = vrot.slane %v4237_v51, 9  ;;  %v4152_v51 = vld [vmem:[%s4470_s17 + $0x58] sm:$0xf] }
 0x1b6   : > { %1781 = vst.msk [vmem:[#allocation2 + $0x5c] sm:$0xf] %vm1394_vm10, %v1777_v13 }
 0x1b7   : > { %v2500_v18 = vrot.slane %v2499_v10, 4 }
 0x1b9   : > { %2263 = vrot.lane.b32.xlu1 %v4141_v14, %s4433_s23  ;;  %v2510_v14 = vrot.slane %v2509_v5, 4 }
 0x1ba   : > { %2230 = vrot.lane.b32.xlu0 %v2226_v17, %s4432_s22  ;;  %2211 = vrot.lane.b32.xlu2 %v2208_v19, %s4432_s22  ;;  %v2613_v19 = vrot.slane %v2611_v8, 4 }
 0x1bb   : > { %v1707_v22 = vpop.permute.xlu1 %1706 }
 0x1bc   : > { %1711 = vst.msk [vmem:[#allocation2 + $0x4c] sm:$0xf] %vm1394_vm10, %v1707_v22  ;;  %v1705_v24 = vpop.permute.xlu0 %1704  ;;  %v1845_v27 = vpop.permute.xlu2 %1844  ;;  %v2610_v22 = vsel %vm4481_vm2, %v2605_v11, %v2609_v12 }
 0x1bd   : > { %1710 = vst.msk [vmem:[#allocation2 + $0x48] sm:$0xf] %vm1394_vm10, %v1705_v24  ;;  %v2515_v24 = vsel %vm4481_vm2, %v2510_v14, %v2514_v15 }
 0x1be   : > { %1850 = vst.msk [vmem:[#allocation2 + $0x68] sm:$0xf] %vm1394_vm10, %v1845_v27  ;;  %v4225_v27 = vld [vmem:[%s4470_s17 + $0x24] sm:$0xe] }
 0x1c1   : > { %2482 = vrot.lane.b32.xlu1 %v2479_v28, %s4434_s24  ;;  %v2505_v28 = vsel %vm4481_vm2, %v2500_v18, %v2504_v58  ;;  %v4255_v18 = vld [vmem:[%s4470_s17 + $0x80] sm:$0x1] }
 0x1c2   : > { %2480 = vrot.lane.b32.xlu0 %v2469_v29, %s4434_s24  ;;  %2265 = vrot.lane.b32.xlu2 %v4142_v34, %s4433_s23  ;;  %v2614_v29 = vor.u32 %v2613_v19, %v2609_v12  ;;  %v3047_v34 = vrot.slane %v4227_v26, 5  ;;  %v4158_v19 = vld [vmem:[%s4470_s17 + $0x7c] sm:$0xf] }
 0x1c3   : > { %v1775_v33 = vpop.permute.xlu1 %1774 }
 0x1c4   : > { %1780 = vst.msk [vmem:[#allocation2 + $0x58] sm:$0xf] %vm1394_vm10, %v1775_v33  ;;  %v1742_v38 = vpop.permute.xlu0 %1741  ;;  %v1882_v41 = vpop.permute.xlu2 %1881  ;;  %v4228_v33 = vrot.slane %v4225_v27, 9  ;;  %v3048_v42 = vsel %vm4656_vm6, %v3046_v32, %v3047_v34  ;;  %v4145_v32 = vld [vmem:[%s4470_s17 + $0x30] sm:$0xf] }
 0x1c5   : > { %1746 = vst.msk [vmem:[#allocation2 + $0x54] sm:$0xf] %vm1394_vm10, %v1742_v38  ;;  %v2615_v38 = vrot.slane %v2614_v29, 4 }
 0x1c6   : > { %1886 = vst.msk [vmem:[#allocation2 + $0x74] sm:$0xf] %vm1394_vm10, %v1882_v41  ;;  %v3045_v45 = vsel %vm4656_vm6, %v4228_v33, %v3044_v23  ;;  %v3194_v23 = vrot.slane %v4255_v18, 5 }
 0x1c7   : > { %v2620_v50 = vsel %vm4481_vm2, %v2615_v38, %v2619_v39  ;;  %v2528_v38 = vshrl.u32 %v4179_v31, 16  ;;  %v2531_v39 = vshll.u32 %v4179_v31, 16 }
 0x1c9   : > { %2276 = vrot.lane.b32.xlu1 %v4143_v43, %s4433_s23  ;;  %v2747_v43 = vshll.u32 %v4198_v35, 16  ;;  %v2530_v48 = vrot.slane %v2528_v38, 4 }
 0x1ca   : > { %3029 = vrot.lane.b32.xlu0 %v3026_v46, %s4435_s25  ;;  %3027 = vrot.lane.b32.xlu2 %v3023_v49, %s4435_s25  ;;  %v3107_v46 = vrot.slane %v4238_v37, 5  ;;  %v4239_v49 = vld [vmem:[%s4470_s17 + $0x50] sm:$0x1] }
 0x1cb   : > { %v1812_v56 = vpop.permute.xlu1 %1811  ;;  %v2749_v53 = vrot.slane %v2747_v43, 5  ;;  %v3110_v58 = vrot.slane %v4239_v49, 5  ;;  %v4189_v43 = vld [vmem:[%s4470_s17 + $0x58] sm:$0xf]  ;;  %v2533_v49 = vrot.slane %v2531_v39, 5 }
 0x1cc   : > { %1816 = vst.msk [vmem:[#allocation2 + $0x64] sm:$0xf] %vm1394_vm10, %v1812_v56  ;;  %v1810_v60 = vpop.permute.xlu0 %1809  ;;  %v1936_v55 = vpop.permute.xlu2 %1935  ;;  %v3109_v57 = vrot.slane %v3107_v46, 4  ;;  %v3108_v7 = vsel %vm4656_vm6, %v4240_v63, %v3107_v46  ;;  %v2646_v59 = vshrl.u32 %v4189_v43, 16 }
 0x1cd   : > { %1815 = vst.msk [vmem:[#allocation2 + $0x60] sm:$0xf] %vm1394_vm10, %v1810_v60  ;;  %v2740_v60 = vrot.slane %v2738_v47, 4  ;;  %v2754_v2 = vor.u32 %v2753_v54, %v2749_v53  ;;  %v4181_v47 = vld [vmem:[%s4470_s17 + $0x38] sm:$0x1]  ;;  %v2642_v54 = vshll.u32 %v4189_v43, 16 }
 0x1ce   : > { %1942 = vst.msk [vmem:[#allocation2] sm:$0xf] %vm1941_vm11, %v1936_v55  ;;  %v3387_v43 = vld [vmem:[%s5988_s1 + $0x10] sm:$0x3] }
 0x1cf   : > { %v2744_v5 = vor.u32 %v2743_v61, %v2740_v60  ;;  %v2755_v8 = vrot.slane %v2754_v2, 4  ;;  %v4146_v60 = vld [vmem:[%s4470_s17 + $0x34] sm:$0xf]  ;;  %v2534_v61 = vor.u32 %v2533_v49, %v2530_v48  ;;  %v2644_v63 = vrot.slane %v2642_v54, 5 }
 0x1d1   : > { %2314 = vrot.lane.b32.xlu1 %v4150_v0, %s4433_s23  ;;  %v4157_v0 = vld [vmem:[%s4470_s17 + $0x78] sm:$0xf]  ;;  %v2745_v11 = vrot.slane %v2744_v5, 4  ;;  %v2535_v5 = vrot.slane %v2534_v61, 4  ;;  %v4210_v61 = vld [vmem:[%s4470_s17 + $0xac] sm:$0xf] }
 0x1d2   : > { %2312 = vrot.lane.b32.xlu0 %v4149_v4, %s4433_s23  ;;  %2278 = vrot.lane.b32.xlu2 %v4144_v9, %s4433_s23  ;;  %v3111_v4 = vsel %vm4656_vm6, %v3109_v57, %v3110_v58  ;;  %v2759_v9 = vrot.slane %v2757_v3, 5  ;;  %v2547_v58 = vshll.u32 %v4181_v47, 16  ;;  %v4230_v3 = vld [vmem:[%s4470_s17 + $0x34] sm:$0xf]  ;;  %v3477_v47 = vunpack.c.l.b16 %v3387_v43 }
 0x1d3   : > { %v1880_v13 = vpop.permute.xlu1 %1879  ;;  %v2750_v16 = vsel %vm4481_vm2, %v2745_v11, %v2749_v53  ;;  %v3065_v11 = vrot.slane %v4230_v3, 5 }
 0x1d4   : > { %1885 = vst.msk [vmem:[#allocation2 + $0x70] sm:$0xf] %vm1394_vm10, %v1880_v13  ;;  %v1847_v17 = vpop.permute.xlu0 %1846  ;;  %v1960_v20 = vpop.permute.xlu2 %1959  ;;  %v4254_v13 = vld [vmem:[%s4470_s17 + $0x7c] sm:$0xf]  ;;  %v2760_v15 = vsel %vm4481_vm2, %v2755_v8, %v2759_v9  ;;  %v2549_v2 = vrot.slane %v2547_v58, 5 }
 0x1d5   : > { %1851 = vst.msk [vmem:[#allocation2 + $0x6c] sm:$0xf] %vm1394_vm10, %v1847_v17  ;;  %v3191_v17 = vrot.slane %v4254_v13, 5  ;;  %v4190_v9 = vld [vmem:[%s4470_s17 + $0x5c] sm:$0x1]  ;;  %v3067_v18 = vrot.slane %v3065_v11, 4 }
 0x1d6   : > { %1964 = vst.msk [vmem:[#allocation2 + $0xc] sm:$0xf] %vm1941_vm11, %v1960_v20  ;;  %v4253_v20 = vld [vmem:[%s4470_s17 + $0x78] sm:$0xe]  ;;  %v4231_v13 = vld [vmem:[%s4470_s17 + $0x38] sm:$0x1] }
 0x1d7   : > { %v4256_v27 = vrot.slane %v4253_v20, 9 }
 0x1d9   : > { %2621 = vrot.lane.b32.xlu1 %v2610_v22, %s4434_s24  ;;  %v3193_v22 = vrot.slane %v3191_v17, 4 }
 0x1da   : > { %2518 = vrot.lane.b32.xlu0 %v2515_v24, %s4434_s24  ;;  %2516 = vrot.lane.b32.xlu2 %v2505_v28, %s4434_s24  ;;  %v4188_v24 = vld [vmem:[%s4470_s17 + $0x54] sm:$0xf] }
 0x1db   : > { %v1917_v36 = vpop.permute.xlu1 %1916  ;;  %v4180_v28 = vld [vmem:[%s4470_s17 + $0x34] sm:$0xf]  ;;  %v2633_v34 = vshrl.u32 %v4188_v24, 16  ;;  %v3195_v33 = vsel %vm4656_vm6, %v3193_v22, %v3194_v23  ;;  %v4242_v23 = vld [vmem:[%s4470_s17 + $0x58] sm:$0xf] }
 0x1dc   : > { %1921 = vst.msk [vmem:[#allocation2 + $0x7c] sm:$0xf] %vm1394_vm10, %v1917_v36  ;;  %v1915_v30 = vpop.permute.xlu0 %1914  ;;  %v2000_v41 = vpop.permute.xlu2 %1999  ;;  %v2636_v36 = vshll.u32 %v4188_v24, 16  ;;  %v2537_v37 = vshll.u32 %v4180_v28, 16  ;;  %v2541_v35 = vshrl.u32 %v4180_v28, 16  ;;  %v3128_v31 = vrot.slane %v4242_v23, 5 }
 0x1dd   : > { %1920 = vst.msk [vmem:[#allocation2 + $0x78] sm:$0xf] %vm1394_vm10, %v1915_v30  ;;  %v3192_v30 = vsel %vm4656_vm6, %v4256_v27, %v3191_v17  ;;  %v2635_v40 = vrot.slane %v2633_v34, 4  ;;  %v2652_v17 = vshll.u32 %v4190_v9, 16  ;;  %v2887_v9 = vshll.u32 %v4210_v61, 16 }
 0x1de   : > { %2005 = vst.msk [vmem:[#allocation2 + $0x18] sm:$0xf] %vm1941_vm11, %v2000_v41  ;;  %v2638_v41 = vrot.slane %v2636_v36, 5  ;;  %v2539_v44 = vrot.slane %v2537_v37, 5  ;;  %v4241_v36 = vld [vmem:[%s4470_s17 + $0x54] sm:$0xe] }
 0x1df   : > { %v3130_v37 = vrot.slane %v3128_v31, 4  ;;  %v4244_v39 = vrot.slane %v4241_v36, 9  ;;  %v4257_v36 = vld [vmem:[%s4470_s17 + $0x84] sm:$0xe] }
 0x1e0   : > { %v2639_v53 = vor.u32 %v2638_v41, %v2635_v40  ;;  %v4201_v40 = vld [vmem:[%s4470_s17 + $0x88] sm:$0xf] }
 0x1e1   : > { %3051 = vrot.lane.b32.xlu1 %v3048_v42, %s4435_s25  ;;  %v2782_v49 = vshll.u32 %v4201_v40, 16 }
 0x1e2   : > { %3049 = vrot.lane.b32.xlu0 %v3045_v45, %s4435_s25  ;;  %2623 = vrot.lane.b32.xlu2 %v2620_v50, %s4434_s24  ;;  %v2543_v45 = vrot.slane %v2541_v35, 4 }
 0x1e3   : > { %v1958_v56 = vpop.permute.xlu1 %1957 }
 0x1e4   : > { %1963 = vst.msk [vmem:[#allocation2 + $0x8] sm:$0xf] %vm1941_vm11, %v1958_v56  ;;  %v1938_v62 = vpop.permute.xlu0 %1937  ;;  %v2023_v55 = vpop.permute.xlu2 %2022  ;;  %v4151_v56 = vld [vmem:[%s4470_s17 + $0x54] sm:$0xf]  ;;  %v2544_v57 = vor.u32 %v2543_v45, %v2539_v44 }
 0x1e5   : > { %1943 = vst.msk [vmem:[#allocation2 + $0x4] sm:$0xf] %vm1941_vm11, %v1938_v62  ;;  %v2640_v62 = vrot.slane %v2639_v53, 4 }
 0x1e6   : > { %2027 = vst.msk [vmem:[#allocation2 + $0x24] sm:$0xf] %vm1941_vm11, %v2023_v55 }
 0x1e9   : > { %2360 = vrot.lane.b32.xlu1 %v4157_v0, %s4433_s23  ;;  %v2545_v0 = vrot.slane %v2544_v57, 4 }
 0x1ea   : > { %3114 = vrot.lane.b32.xlu0 %v3111_v4, %s4435_s25  ;;  %3112 = vrot.lane.b32.xlu2 %v3108_v7, %s4435_s25  ;;  %v2648_v7 = vrot.slane %v2646_v59, 4 }
 0x1eb   : > { %v1981_v10 = vpop.permute.xlu1 %1980 }
 0x1ec   : > { %1985 = vst.msk [vmem:[#allocation2 + $0x14] sm:$0xf] %vm1941_vm11, %v1981_v10  ;;  %v1979_v12 = vpop.permute.xlu0 %1978  ;;  %v2063_v14 = vpop.permute.xlu2 %2062  ;;  %v2645_v10 = vsel %vm4481_vm2, %v2640_v62, %v2644_v63  ;;  %v5535_v62 = vrot.slane %v2782_v49, 5  ;;  %v4271_v49 = vld [vmem:[%s4470_s17 + $0xb0] sm:$0x1] }
 0x1ed   : > { %1984 = vst.msk [vmem:[#allocation2 + $0x10] sm:$0xf] %vm1941_vm11, %v1979_v12  ;;  %v2550_v12 = vsel %vm4481_vm2, %v2545_v0, %v2549_v2  ;;  %v4202_v0 = vld [vmem:[%s4470_s17 + $0x8c] sm:$0x1] }
 0x1ee   : > { %2068 = vst.msk [vmem:[#allocation2 + $0x30] sm:$0xf] %vm1941_vm11, %v2063_v14  ;;  %v4229_v14 = vld [vmem:[%s4470_s17 + $0x30] sm:$0xe] }
 0x1f1   : > { %2763 = vrot.lane.b32.xlu1 %v2760_v15, %s4434_s24  ;;  %v2540_v15 = vsel %vm4481_vm2, %v2535_v5, %v2539_v44  ;;  %v4159_v44 = vld [vmem:[%s4470_s17 + $0x84] sm:$0xf]  ;;  %v4393_v5 = vld [vmem:[%s5988_s1 + $0x8] sm:$0xff] }
 0x1f2   : > { %2761 = vrot.lane.b32.xlu0 %v2750_v16, %s4434_s24  ;;  %2362 = vrot.lane.b32.xlu2 %v4158_v19, %s4433_s23  ;;  %v2649_v16 = vor.u32 %v2648_v7, %v2644_v63  ;;  %v3068_v19 = vrot.slane %v4231_v13, 5  ;;  %v4166_v7 = vld [vmem:[%s4470_s17 + $0xac] sm:$0xf]  ;;  %v2891_v13 = vshrl.u32 %v4210_v61, 16 }
 0x1f3   : > { %v2021_v21 = vpop.permute.xlu1 %2020 }
 0x1f4   : > { %2026 = vst.msk [vmem:[#allocation2 + $0x20] sm:$0xf] %vm1941_vm11, %v2021_v21  ;;  %v2002_v26 = vpop.permute.xlu0 %2001  ;;  %v2086_v29 = vpop.permute.xlu2 %2085  ;;  %v4232_v21 = vrot.slane %v4229_v14, 9  ;;  %v2650_v24 = vrot.slane %v2649_v16, 4  ;;  %v3069_v28 = vsel %vm4656_vm6, %v3067_v18, %v3068_v19  ;;  %v4160_v14 = vld [vmem:[%s4470_s17 + $0x88] sm:$0xf] }
 0x1f5   : > { %2006 = vst.msk [vmem:[#allocation2 + $0x1c] sm:$0xf] %vm1941_vm11, %v2002_v26  ;;  %v2654_v26 = vrot.slane %v2652_v17, 5  ;;  %v4392_v16 = vld [vmem:[%s5988_s1] sm:$0xff]  ;;  %v2889_v18 = vrot.slane %v2887_v9, 5 }
 0x1f6   : > { %2090 = vst.msk [vmem:[#allocation2 + $0x3c] sm:$0xf] %vm1941_vm11, %v2086_v29  ;;  %v3066_v29 = vsel %vm4656_vm6, %v4232_v21, %v3065_v11 }
 0x1f7   : > { %v2655_v34 = vsel %vm4481_vm2, %v2650_v24, %v2654_v26  ;;  %v2893_v26 = vrot.slane %v2891_v13, 4 }
 0x1f9   : > { %2288 = vrot.lane.b32.xlu1 %v4145_v32, %s4433_s23  ;;  %v4243_v32 = vld [vmem:[%s4470_s17 + $0x5c] sm:$0x1] }
 0x1fa   : > { %3198 = vrot.lane.b32.xlu0 %v3195_v33, %s4435_s25  ;;  %3196 = vrot.lane.b32.xlu2 %v3192_v30, %s4435_s25  ;;  %v3131_v35 = vrot.slane %v4243_v32, 5  ;;  %v4209_v30 = vld [vmem:[%s4470_s17 + $0xa8] sm:$0xf] }
 0x1fb   : > { %v2044_v42 = vpop.permute.xlu1 %2043  ;;  %v2878_v45 = vshrl.u32 %v4209_v30, 16 }
 0x1fc   : > { %2048 = vst.msk [vmem:[#allocation2 + $0x2c] sm:$0xf] %vm1941_vm11, %v2044_v42  ;;  %v2042_v46 = vpop.permute.xlu0 %2041  ;;  %v2126_v50 = vpop.permute.xlu2 %2125  ;;  %v4200_v42 = vld [vmem:[%s4470_s17 + $0x84] sm:$0xf]  ;;  %v3132_v48 = vsel %vm4656_vm6, %v3130_v37, %v3131_v35  ;;  %v2894_v37 = vor.u32 %v2893_v26, %v2889_v18 }
 0x1fd   : > { %2047 = vst.msk [vmem:[#allocation2 + $0x28] sm:$0xf] %vm1941_vm11, %v2042_v46  ;;  %v2881_v46 = vshll.u32 %v4209_v30, 16  ;;  %v2773_v53 = vshrl.u32 %v4200_v42, 16  ;;  %v2776_v54 = vshll.u32 %v4200_v42, 16  ;;  %v2880_v57 = vrot.slane %v2878_v45, 4 }
 0x1fe   : > { %2131 = vst.msk [vmem:[#allocation2 + $0x48] sm:$0xf] %vm1941_vm11, %v2126_v50  ;;  %v2786_v50 = vshrl.u32 %v4201_v40, 16  ;;  %v4260_v40 = vrot.slane %v4257_v36, 9  ;;  %v4270_v42 = vld [vmem:[%s4470_s17 + $0xac] sm:$0xf] }
 0x1ff   : > { %v2883_v58 = vrot.slane %v2881_v46, 5  ;;  %v2775_v2 = vrot.slane %v2773_v53, 4  ;;  %v2778_v3 = vrot.slane %v2776_v54, 5  ;;  %v2895_v43 = vrot.slane %v2894_v37, 4  ;;  %v4234_v37 = vld [vmem:[%s4470_s17 + $0x40] sm:$0xf] }
 0x200   : > { %v2788_v63 = vrot.slane %v2786_v50, 4 }
 0x201   : > { %2326 = vrot.lane.b32.xlu1 %v4152_v51, %s4433_s23  ;;  %v3129_v51 = vsel %vm4656_vm6, %v4244_v39, %v3128_v31 }
 0x202   : > { %2324 = vrot.lane.b32.xlu0 %v4151_v56, %s4433_s23  ;;  %2290 = vrot.lane.b32.xlu2 %v4146_v60, %s4433_s23  ;;  %v3480_v56 = vpack.c.b16 %v3477_v47, %v3477_v47  ;;  %v2789_v11 = vor.u32 %v2788_v63, %v5535_v62  ;;  %v4147_v63 = vld [vmem:[%s4470_s17 + $0x3c] sm:$0xf] }
 0x203   : > { %v2084_v55 = vpop.permute.xlu1 %2083 }
 0x204   : > { %2089 = vst.msk [vmem:[#allocation2 + $0x38] sm:$0xf] %vm1941_vm11, %v2084_v55  ;;  %v2065_v4 = vpop.permute.xlu0 %2064  ;;  %v2149_v8 = vpop.permute.xlu2 %2148  ;;  %v3534_v59 = vsel %vm3532_vm12, %v3480_v56, 0  ;;  %v3278_v56 = vrot.slane %v4271_v49, 5 }
 0x205   : > { %2069 = vst.msk [vmem:[#allocation2 + $0x34] sm:$0xf] %vm1941_vm11, %v2065_v4  ;;  %3541 = vmatpush.bf16.msra.mxu0 %v3534_v59  ;;  %4394 = vmatpush.bf16.msra.mxu1 %v3534_v59 }
 0x206   : > { %2153 = vst.msk [vmem:[#allocation2 + $0x54] sm:$0xf] %vm1941_vm11, %v2149_v8  ;;  %4395 = vmatpush.bf16.msra.mxu2 %v3534_v59  ;;  %4396 = vmatpush.bf16.msra.mxu3 %v3534_v59  ;;  %v2884_v8 = vor.u32 %v2883_v58, %v2880_v57  ;;  %v4191_v57 = vld [vmem:[%s4470_s17 + $0x60] sm:$0xf] }
 0x208   : > { %v2885_v17 = vrot.slane %v2884_v8, 4 }
 0x209   : > { %2656 = vrot.lane.b32.xlu1 %v2645_v10, %s4434_s24  ;;  %v4165_v10 = vld [vmem:[%s4470_s17 + $0xa8] sm:$0xf]  ;;  %3542 = vmatpush.bf16.msra.mxu0 %v4393_v5 }
 0x20a   : > { %2553 = vrot.lane.b32.xlu0 %v2550_v12, %s4434_s24  ;;  %2551 = vrot.lane.b32.xlu2 %v2540_v15, %s4434_s24  ;;  %v2792_v12 = vshll.u32 %v4202_v0, 16  ;;  %v2779_v15 = vor.u32 %v2778_v3, %v2775_v2  ;;  %v2671_v0 = vshll.u32 %v4191_v57, 16 }
 0x20b   : > { %v2107_v20 = vpop.permute.xlu1 %2106  ;;  %4397 = vmatpush.bf16.msra.mxu1 %v4393_v5  ;;  %4398 = vmatpush.bf16.msra.mxu2 %v4393_v5 }
 0x20c   : > { %2111 = vst.msk [vmem:[#allocation2 + $0x44] sm:$0xf] %vm1941_vm11, %v2107_v20  ;;  %v2105_v22 = vpop.permute.xlu0 %2104  ;;  %v2189_v27 = vpop.permute.xlu2 %2188  ;;  %4399 = vmatpush.bf16.msra.mxu3 %v4393_v5  ;;  %v2790_v20 = vrot.slane %v2789_v11, 4  ;;  %v2794_v21 = vrot.slane %v2792_v12, 5  ;;  %v2780_v24 = vrot.slane %v2779_v15, 4 }
 0x20d   : > { %2110 = vst.msk [vmem:[#allocation2 + $0x40] sm:$0xf] %vm1941_vm11, %v2105_v22  ;;  %v4258_v22 = vld [vmem:[%s4470_s17 + $0x88] sm:$0xf]  ;;  %3543 = vmatpush.bf16.msra.mxu0 %v4392_v16  ;;  %v4192_v12 = vld [vmem:[%s4470_s17 + $0x64] sm:$0xf] }
 0x20e   : > { %2194 = vst.msk [vmem:[#allocation2 + $0x60] sm:$0xf] %vm1941_vm11, %v2189_v27  ;;  %v3212_v31 = vrot.slane %v4258_v22, 5  ;;  %v2795_v32 = vsel %vm4481_vm2, %v2790_v20, %v2794_v21  ;;  %v4154_v20 = vld [vmem:[%s4470_s17 + $0x64] sm:$0xf]  ;;  %v2677_v22 = vshll.u32 %v4192_v12, 16 }
 0x20f   : > { %4400 = vmatpush.bf16.msra.mxu1 %v4392_v16  ;;  %4401 = vmatpush.bf16.msra.mxu2 %v4392_v16 }
 0x210   : > { %4402 = vmatpush.bf16.msra.mxu3 %v4392_v16  ;;  %v3214_v30 = vrot.slane %v3212_v31, 4  ;;  %v3213_v47 = vsel %vm4656_vm6, %v4260_v40, %v3212_v31  ;;  %v4184_v16 = vld [vmem:[%s4470_s17 + $0x44] sm:$0x1] }
 0x211   : > { %3072 = vrot.lane.b32.xlu1 %v3069_v28, %s4435_s25  ;;  %v4211_v28 = vld [vmem:[%s4470_s17 + $0xb0] sm:$0x1]  ;;  %v2582_v26 = vshll.u32 %v4184_v16, 16 }
 0x212   : > { %3070 = vrot.lane.b32.xlu0 %v3066_v29, %s4435_s25  ;;  %2658 = vrot.lane.b32.xlu2 %v2655_v34, %s4434_s24  ;;  %v2890_v29 = vsel %vm4481_vm2, %v2885_v17, %v2889_v18  ;;  %v4259_v34 = vld [vmem:[%s4470_s17 + $0x8c] sm:$0x1]  ;;  %v2897_v35 = vshll.u32 %v4211_v28, 16  ;;  %v4148_v28 = vld [vmem:[%s4470_s17 + $0x40] sm:$0xf] }
 0x213   : > { %v2147_v33 = vpop.permute.xlu1 %2146 }
 0x214   : > { %2152 = vst.msk [vmem:[#allocation2 + $0x50] sm:$0xf] %vm1941_vm11, %v2147_v33  ;;  %v2128_v38 = vpop.permute.xlu0 %2127  ;;  %v2212_v41 = vpop.permute.xlu2 %2211  ;;  %v2785_v33 = vsel %vm4481_vm2, %v2780_v24, %v5535_v62  ;;  %v4182_v62 = vld [vmem:[%s4470_s17 + $0x3c] sm:$0xf] }
 0x215   : > { %2132 = vst.msk [vmem:[#allocation2 + $0x4c] sm:$0xf] %vm1941_vm11, %v2128_v38  ;;  %v3215_v38 = vrot.slane %v4259_v34, 5  ;;  %v2566_v8 = vshll.u32 %v4182_v62, 16 }
 0x216   : > { %2216 = vst.msk [vmem:[#allocation2 + $0x6c] sm:$0xf] %vm1941_vm11, %v2212_v41 }
 0x217   : > { %v3216_v46 = vsel %vm4656_vm6, %v3214_v30, %v3215_v38  ;;  %v2568_v18 = vrot.slane %v2566_v8, 5 }
 0x219   : > { %2372 = vrot.lane.b32.xlu1 %v4159_v44, %s4433_s23  ;;  %v2899_v44 = vrot.slane %v2897_v35, 5 }
 0x21a   : > { %3135 = vrot.lane.b32.xlu0 %v3132_v48, %s4435_s25  ;;  %3133 = vrot.lane.b32.xlu2 %v3129_v51, %s4435_s25  ;;  %v3275_v48 = vrot.slane %v4270_v42, 5  ;;  %v4269_v51 = vld [vmem:[%s4470_s17 + $0xa8] sm:$0xe] }
 0x21b   : > { %v2170_v60 = vpop.permute.xlu1 %2169  ;;  %v2900_v50 = vsel %vm4481_vm2, %v2895_v43, %v2899_v44  ;;  %v4272_v59 = vrot.slane %v4269_v51, 9  ;;  %v3086_v43 = vrot.slane %v4234_v37, 5  ;;  %v4168_v37 = vld [vmem:[%s4470_s17 + $0xb8] sm:$0xf] }
 0x21c   : > { %2174 = vst.msk [vmem:[#allocation2 + $0x5c] sm:$0xf] %vm1941_vm11, %v2170_v60  ;;  %v2168_v55 = vpop.permute.xlu0 %2167  ;;  %v2266_v4 = vpop.permute.xlu2 %2265  ;;  %v3277_v54 = vrot.slane %v3275_v48, 4  ;;  %v4183_v60 = vld [vmem:[%s4470_s17 + $0x40] sm:$0xf] }
 0x21d   : > { %2173 = vst.msk [vmem:[#allocation2 + $0x58] sm:$0xf] %vm1941_vm11, %v2168_v55  ;;  %v2668_v55 = vshrl.u32 %v4191_v57, 16  ;;  %v2572_v3 = vshll.u32 %v4183_v60, 16  ;;  %v3276_v5 = vsel %vm4656_vm6, %v4272_v59, %v3275_v48  ;;  %v4246_v57 = vld [vmem:[%s4470_s17 + $0x64] sm:$0xf] }
 0x21e   : > { %2271 = vst.msk [vmem:[#allocation2 + $0x4] sm:$0xf] %vm2269_vm13, %v2266_v4  ;;  %v3279_v2 = vsel %vm4656_vm6, %v3277_v54, %v3278_v56  ;;  %v2576_v4 = vshrl.u32 %v4183_v60, 16 }
 0x21f   : > { %v2670_v9 = vrot.slane %v2668_v55, 4  ;;  %v2574_v13 = vrot.slane %v2572_v3, 5  ;;  %v4247_v55 = vld [vmem:[%s4470_s17 + $0x68] sm:$0x1] }
 0x221   : > { %2410 = vrot.lane.b32.xlu1 %v4166_v7, %s4433_s23  ;;  %v2563_v7 = vshrl.u32 %v4182_v62, 16 }
 0x222   : > { %2408 = vrot.lane.b32.xlu0 %v4165_v10, %s4433_s23  ;;  %2374 = vrot.lane.b32.xlu2 %v4160_v14, %s4433_s23  ;;  %v2673_v10 = vrot.slane %v2671_v0, 5  ;;  %v2578_v14 = vrot.slane %v2576_v4, 4 }
 0x223   : > { %v2210_v19 = vpop.permute.xlu1 %2209  ;;  %v2565_v17 = vrot.slane %v2563_v7, 4  ;;  %v4212_v7 = vld [vmem:[%s4470_s17 + $0xb4] sm:$0xf] }
 0x224   : > { %2215 = vst.msk [vmem:[#allocation2 + $0x68] sm:$0xf] %vm1941_vm11, %v2210_v19  ;;  %v2191_v23 = vpop.permute.xlu0 %2190  ;;  %v3028_v27 = vpop.permute.xlu2 %3027  ;;  %v2674_v21 = vor.u32 %v2673_v10, %v2670_v9  ;;  %v2579_v24 = vor.u32 %v2578_v14, %v2574_v13  ;;  %v4204_v10 = vld [vmem:[%s4470_s17 + $0x94] sm:$0xf]  ;;  %v2913_v14 = vshrl.u32 %v4212_v7, 16 }
 0x225   : > { %2195 = vst.msk [vmem:[#allocation2 + $0x64] sm:$0xf] %vm1941_vm11, %v2191_v23  ;;  %v4153_v23 = vld [vmem:[%s4470_s17 + $0x60] sm:$0xf] }
 0x226   : > { %v2675_v31 = vrot.slane %v2674_v21, 4  ;;  %v2580_v36 = vrot.slane %v2579_v24, 4 }
 0x229   : > { %2901 = vrot.lane.b32.xlu1 %v2890_v29, %s4434_s24  ;;  %v2569_v29 = vor.u32 %v2568_v18, %v2565_v17  ;;  %v2817_v17 = vshll.u32 %v4204_v10, 16  ;;  %v2821_v18 = vshrl.u32 %v4204_v10, 16 }
 0x22a   : > { %2798 = vrot.lane.b32.xlu0 %v2795_v32, %s4434_s24  ;;  %2796 = vrot.lane.b32.xlu2 %v2785_v33, %s4434_s24  ;;  %v2679_v32 = vrot.slane %v2677_v22, 5  ;;  %v2584_v33 = vrot.slane %v2582_v26, 5  ;;  %v2915_v22 = vrot.slane %v2913_v14, 4  ;;  %v4213_v26 = vld [vmem:[%s4470_s17 + $0xb8] sm:$0xf] }
 0x22b   : > { %v2264_v39 = vpop.permute.xlu1 %2263  ;;  %v2570_v38 = vrot.slane %v2569_v29, 4  ;;  %v2823_v29 = vrot.slane %v2821_v18, 4 }
 0x22c   : > { %2270 = vst.msk [vmem:[#allocation2] sm:$0xf] %vm2269_vm13, %v2264_v39  ;;  %v2231_v41 = vpop.permute.xlu0 %2230  ;;  %v2279_v45 = vpop.permute.xlu2 %2278  ;;  %v2680_v42 = vsel %vm4481_vm2, %v2675_v31, %v2679_v32  ;;  %v2585_v44 = vsel %vm4481_vm2, %v2580_v36, %v2584_v33 }
 0x22d   : > { %2236 = vst.msk [vmem:[#allocation2 + $0x70] sm:$0xf] %vm1941_vm11, %v2231_v41  ;;  %v4193_v41 = vld [vmem:[%s4470_s17 + $0x68] sm:$0x1] }
 0x22e   : > { %2283 = vst.msk [vmem:[#allocation2 + $0xc] sm:$0xf] %vm2269_vm13, %v2279_v45  ;;  %v4235_v45 = vld [vmem:[%s4470_s17 + $0x44] sm:$0x1]  ;;  %v2687_v49 = vshll.u32 %v4193_v41, 16  ;;  %v2926_v41 = vshrl.u32 %v4213_v26, 16 }
 0x22f   : > { %v3089_v51 = vrot.slane %v4235_v45, 5 }
 0x230   : > { %v2689_v59 = vrot.slane %v2687_v49, 5  ;;  %v4262_v49 = vld [vmem:[%s4470_s17 + $0x94] sm:$0xf] }
 0x231   : > { %3219 = vrot.lane.b32.xlu1 %v3216_v46, %s4435_s25  ;;  %v4233_v46 = vld [vmem:[%s4470_s17 + $0x3c] sm:$0xe] }
 0x232   : > { %3217 = vrot.lane.b32.xlu0 %v3213_v47, %s4435_s25  ;;  %2903 = vrot.lane.b32.xlu2 %v2900_v50, %s4434_s24  ;;  %v2575_v47 = vsel %vm4481_vm2, %v2570_v38, %v2574_v13  ;;  %v3088_v50 = vrot.slane %v3086_v43, 4  ;;  %v4236_v54 = vrot.slane %v4233_v46, 9  ;;  %v4161_v13 = vld [vmem:[%s4470_s17 + $0x90] sm:$0xf]  ;;  %v4167_v38 = vld [vmem:[%s4470_s17 + $0xb4] sm:$0xf] }
 0x233   : > { %v2483_v53 = vpop.permute.xlu1 %2482 }
 0x234   : > { %2488 = vst.msk [vmem:[#allocation2 + $0x4] sm:$0xf] %vm2486_vm14, %v2483_v53  ;;  %v2481_v58 = vpop.permute.xlu0 %2480  ;;  %v2517_v61 = vpop.permute.xlu2 %2516  ;;  %v3087_v62 = vsel %vm4656_vm6, %v4236_v54, %v3086_v43  ;;  %v2928_v54 = vrot.slane %v2926_v41, 4 }
 0x235   : > { %2487 = vst.msk [vmem:[#allocation2] sm:$0xf] %vm2486_vm14, %v2481_v58 }
 0x236   : > { %3034 = vst.msk [vmem:[#allocation2] sm:$0xf] %vm3033_vm15, %v3028_v27  ;;  %v2681_v27 = vshrl.u32 %v4192_v12, 16  ;;  %v4203_v12 = vld [vmem:[%s4470_s17 + $0x90] sm:$0xf] }
 0x237   : > { %v2811_v21 = vshll.u32 %v4203_v12, 16 }
 0x238   : > { %v2683_v39 = vrot.slane %v2681_v27, 4  ;;  %v4205_v27 = vld [vmem:[%s4470_s17 + $0x98] sm:$0x1] }
 0x239   : > { %2300 = vrot.lane.b32.xlu1 %v4147_v63, %s4433_s23  ;;  %v3149_v63 = vrot.slane %v4246_v57, 5  ;;  %v2813_v36 = vrot.slane %v2811_v21, 5  ;;  %v4214_v57 = vld [vmem:[%s4470_s17 + $0xbc] sm:$0x1] }
 0x23a   : > { %3282 = vrot.lane.b32.xlu0 %v3279_v2, %s4435_s25  ;;  %3280 = vrot.lane.b32.xlu2 %v3276_v5, %s4435_s25  ;;  %v2684_v48 = vor.u32 %v2683_v39, %v2679_v32  ;;  %v4245_v2 = vld [vmem:[%s4470_s17 + $0x60] sm:$0xe]  ;;  %v3152_v5 = vrot.slane %v4247_v55, 5  ;;  %v4275_v21 = vld [vmem:[%s4470_s17 + $0xbc] sm:$0x1] }
 0x23b   : > { %v2277_v11 = vpop.permute.xlu1 %2276  ;;  %v3151_v4 = vrot.slane %v3149_v63, 4  ;;  %v4248_v9 = vrot.slane %v4245_v2, 9 }
 0x23c   : > { %2282 = vst.msk [vmem:[#allocation2 + $0x8] sm:$0xf] %vm2269_vm13, %v2277_v11  ;;  %v3030_v15 = vpop.permute.xlu0 %3029  ;;  %v2624_v19 = vpop.permute.xlu2 %2623  ;;  %v2685_v58 = vrot.slane %v2684_v48, 4 }
 0x23d   : > { %3035 = vst.msk [vmem:[#allocation2 + $0x4] sm:$0xf] %vm3033_vm15, %v3030_v15  ;;  %v2916_v15 = vshll.u32 %v4212_v7, 16  ;;  %v3153_v16 = vsel %vm4656_vm6, %v3151_v4, %v3152_v5  ;;  %v4274_v7 = vld [vmem:[%s4470_s17 + $0xb8] sm:$0xf] }
 0x23e   : > { %2522 = vst.msk [vmem:[#allocation2 + $0x8] sm:$0xf] %vm2486_vm14, %v2517_v61  ;;  %v3090_v61 = vsel %vm4656_vm6, %v3088_v50, %v3089_v51  ;;  %v2690_v0 = vsel %vm4481_vm2, %v2685_v58, %v2689_v59  ;;  %v3233_v59 = vrot.slane %v4262_v49, 5  ;;  %v3296_v18 = vrot.slane %v4274_v7, 5 }
 0x240   : > { %v3235_v2 = vrot.slane %v3233_v59, 4 }
 0x241   : > { %2338 = vrot.lane.b32.xlu1 %v4154_v20, %s4433_s23  ;;  %v2808_v20 = vshrl.u32 %v4203_v12, 16  ;;  %v4194_v12 = vld [vmem:[%s4470_s17 + $0x6c] sm:$0xf] }
 0x242   : > { %2336 = vrot.lane.b32.xlu0 %v4153_v23, %s4433_s23  ;;  %2302 = vrot.lane.b32.xlu2 %v4148_v28, %s4433_s23  ;;  %v2918_v23 = vrot.slane %v2916_v15, 5  ;;  %v2819_v28 = vrot.slane %v2817_v17, 5 }
 0x243   : > { %v2315_v34 = vpop.permute.xlu1 %2314 }
 0x244   : > { %2319 = vst.msk [vmem:[#allocation2 + $0x24] sm:$0xf] %vm2269_vm13, %v2315_v34  ;;  %v2313_v35 = vpop.permute.xlu0 %2312  ;;  %v4376_v30 = vld [vmem:[#allocation2] sm:$0xff]  ;;  %v3113_v40 = vpop.permute.xlu2 %3112  ;;  %v2810_v34 = vrot.slane %v2808_v20, 4  ;;  %v2824_v39 = vor.u32 %v2823_v29, %v2819_v28  ;;  %v2706_v20 = vshll.u32 %v4194_v12, 16  ;;  %v3299_v29 = vrot.slane %v4275_v21, 5 }
 0x245   : > { %2318 = vst.msk [vmem:[#allocation2 + $0x20] sm:$0xf] %vm2269_vm13, %v2313_v35  ;;  %4357 = vmatmul.msk.bf16.vlgmr.msra.gmra.mxu0 %vm3483_vm0, %v4376_v30  ;;  %v2919_v35 = vor.u32 %v2918_v23, %v2915_v22  ;;  %v2922_v30 = vshll.u32 %v4213_v26, 16  ;;  %v4273_v23 = vld [vmem:[%s4470_s17 + $0xb4] sm:$0xe] }
 0x246   : > { %2628 = vst.msk [vmem:[#allocation2 + $0x24] sm:$0xf] %vm2486_vm14, %v2624_v19  ;;  %v3150_v19 = vsel %vm4656_vm6, %v4248_v9, %v3149_v63  ;;  %v2814_v43 = vor.u32 %v2813_v36, %v2810_v34  ;;  %v2708_v34 = vrot.slane %v2706_v20, 5  ;;  %v4215_v21 = vld [vmem:[%s4470_s17 + $0xc0] sm:$0xf] }
 0x247   : > { %v2924_v45 = vrot.slane %v2922_v30, 5  ;;  %v4155_v30 = vld [vmem:[%s4470_s17 + $0x6c] sm:$0xf] }
 0x249   : > { %2691 = vrot.lane.b32.xlu1 %v2680_v42, %s4434_s24  ;;  %v4162_v42 = vld [vmem:[%s4470_s17 + $0x94] sm:$0xf]  ;;  %v2929_v55 = vor.u32 %v2928_v54, %v2924_v45 }
 0x24a   : > { %2588 = vrot.lane.b32.xlu0 %v2585_v44, %s4434_s24  ;;  %2586 = vrot.lane.b32.xlu2 %v2575_v47, %s4434_s24  ;;  %v2920_v44 = vrot.slane %v2919_v35, 4  ;;  %v2825_v47 = vrot.slane %v2824_v39, 4 }
 0x24b   : > { %v2622_v53 = vpop.permute.xlu1 %2621  ;;  %v2930_v10 = vrot.slane %v2929_v55, 4  ;;  %v4207_v55 = vld [vmem:[%s4470_s17 + $0xa0] sm:$0xf] }
 0x24c   : > { %2627 = vst.msk [vmem:[#allocation2 + $0x20] sm:$0xf] %vm2486_vm14, %v2622_v53  ;;  %v2519_v56 = vpop.permute.xlu0 %2518  ;;  %v2363_v60 = vpop.permute.xlu2 %2362  ;;  %v2815_v53 = vrot.slane %v2814_v43, 4  ;;  %v2925_v58 = vsel %vm4481_vm2, %v2920_v44, %v2924_v45 }
 0x24d   : > { %2523 = vst.msk [vmem:[#allocation2 + $0xc] sm:$0xf] %vm2486_vm14, %v2519_v56 }
 0x24e   : > { %3118 = vst.msk [vmem:[#allocation2 + $0x20] sm:$0xf] %vm3033_vm15, %v3113_v40  ;;  %v2827_v40 = vshll.u32 %v4205_v27, 16  ;;  %v2820_v63 = vsel %vm4481_vm2, %v2815_v53, %v2819_v28  ;;  %v3298_v28 = vrot.slane %v3296_v18, 4  ;;  %v4135_v53 = vld [vmem:[%s4470_s17 + $0xbc] sm:$0x1] }
 0x24f   : > { %2367 = vst.msk [vmem:[#allocation2 + $0x44] sm:$0xf] %vm2269_vm13, %v2363_v60 }
 0x250   : > { %v2829_v48 = vrot.slane %v2827_v40, 5  ;;  %v3300_v40 = vsel %vm4656_vm6, %v3298_v28, %v3299_v29 }
 0x251   : > { %3093 = vrot.lane.b32.xlu1 %v3090_v61, %s4435_s25  ;;  %v4263_v61 = vld [vmem:[%s4470_s17 + $0x98] sm:$0x1] }
 0x252   : > { %3091 = vrot.lane.b32.xlu0 %v3087_v62, %s4435_s25  ;;  %2693 = vrot.lane.b32.xlu2 %v2690_v0, %s4434_s24  ;;  %v2830_v60 = vsel %vm4481_vm2, %v2825_v47, %v2829_v48  ;;  %v4261_v62 = vld [vmem:[%s4470_s17 + $0x90] sm:$0xe]  ;;  %v2932_v0 = vshll.u32 %v4214_v57, 16 }
 0x253   : > { %v3052_v3 = vpop.permute.xlu1 %3051  ;;  %v4264_v5 = vrot.slane %v4261_v62, 9  ;;  %v4250_v48 = vld [vmem:[%s4470_s17 + $0x70] sm:$0xf] }
 0x254   : > { %3056 = vst.msk [vmem:[#allocation2 + $0xc] sm:$0xf] %vm3033_vm15, %v3052_v3  ;;  %v3050_v8 = vpop.permute.xlu0 %3049  ;;  %v3197_v11 = vpop.permute.xlu2 %3196  ;;  %v3236_v3 = vrot.slane %v4263_v61, 5  ;;  %v3170_v54 = vrot.slane %v4250_v48, 5  ;;  %v4156_v57 = vld [vmem:[%s4470_s17 + $0x70] sm:$0xf] }
 0x255   : > { %3055 = vst.msk [vmem:[#allocation2 + $0x8] sm:$0xf] %vm3033_vm15, %v3050_v8  ;;  %v4195_v8 = vld [vmem:[%s4470_s17 + $0x70] sm:$0xf]  ;;  %v3234_v17 = vsel %vm4656_vm6, %v4264_v5, %v3233_v59  ;;  %v2227_v59 = vrot.slane %v2225_v6, 4  ;;  %v2852_v6 = vshll.u32 %v4207_v55, 16 }
 0x256   : > { %v3237_v14 = vsel %vm4656_vm6, %v3235_v2, %v3236_v3  ;;  %v2712_v15 = vshll.u32 %v4195_v8, 16  ;;  %v3172_v62 = vrot.slane %v3170_v54, 4  ;;  %v4206_v3 = vld [vmem:[%s4470_s17 + $0x9c] sm:$0xf]  ;;  %v2856_v5 = vshrl.u32 %v4207_v55, 16 }
 0x257   : > { %v4266_v48 = vld [vmem:[%s4470_s17 + $0xa0] sm:$0xf] }
 0x259   : > { %2384 = vrot.lane.b32.xlu1 %v4161_v13, %s4433_s23 }
 0x25a   : > { %3156 = vrot.lane.b32.xlu0 %v3153_v16, %s4435_s25  ;;  %3154 = vrot.lane.b32.xlu2 %v3150_v19, %s4435_s25  ;;  %v2716_v16 = vshrl.u32 %v4195_v8, 16  ;;  %v2703_v19 = vshrl.u32 %v4194_v12, 16  ;;  %v2843_v8 = vshrl.u32 %v4206_v3, 16  ;;  %v2858_v12 = vrot.slane %v2856_v5, 4 }
 0x25b   : > { %v2361_v24 = vpop.permute.xlu1 %2360 }
 0x25c   : > { %2366 = vst.msk [vmem:[#allocation2 + $0x40] sm:$0xf] %vm2269_vm13, %v2361_v24  ;;  %v3115_v31 = vpop.permute.xlu0 %3114  ;;  %v4377_v32 = vld [vmem:[#allocation2 + $0x8] sm:$0xff]  ;;  %v2291_v33 = vpop.permute.xlu2 %2290  ;;  %v2714_v24 = vrot.slane %v2712_v15, 5  ;;  %v2718_v26 = vrot.slane %v2716_v16, 4  ;;  %v2845_v15 = vrot.slane %v2843_v8, 4 }
 0x25d   : > { %3119 = vst.msk [vmem:[#allocation2 + $0x24] sm:$0xf] %vm3033_vm15, %v3115_v31  ;;  %4358 = vmatmul.msk.bf16.gmra.mxu0 %vm3483_vm0, %v4377_v32  ;;  %v4196_v31 = vld [vmem:[%s4470_s17 + $0x74] sm:$0x1]  ;;  %v2705_v32 = vrot.slane %v2703_v19, 4 }
 0x25e   : > { %2295 = vst.msk [vmem:[#allocation2 + $0x14] sm:$0xf] %vm2269_vm13, %v2291_v33  ;;  %v2722_v39 = vshll.u32 %v4196_v31, 16  ;;  %v4216_v19 = vld [vmem:[%s4470_s17 + $0xc4] sm:$0xf] }
 0x25f   : > { %v2709_v41 = vor.u32 %v2708_v34, %v2705_v32  ;;  %v2957_v28 = vshll.u32 %v4216_v19, 16  ;;  %v2961_v29 = vshrl.u32 %v4216_v19, 16  ;;  %v4163_v31 = vld [vmem:[%s4470_s17 + $0x9c] sm:$0xf]  ;;  %v2948_v32 = vshrl.u32 %v4215_v21, 16 }
 0x260   : > { %v2724_v44 = vrot.slane %v2722_v39, 5  ;;  %v2951_v34 = vshll.u32 %v4215_v21, 16 }
 0x261   : > { %2422 = vrot.lane.b32.xlu1 %v4168_v37, %s4433_s23  ;;  %v4276_v37 = vrot.slane %v4273_v23, 9  ;;  %v2963_v39 = vrot.slane %v2961_v29, 4 }
 0x262   : > { %2420 = vrot.lane.b32.xlu0 %v4167_v38, %s4433_s23  ;;  %2386 = vrot.lane.b32.xlu2 %v4162_v42, %s4433_s23  ;;  %v2719_v38 = vor.u32 %v2718_v26, %v2714_v24  ;;  %v4164_v26 = vld [vmem:[%s4470_s17 + $0xa0] sm:$0xf] }
 0x263   : > { %v2764_v46 = vpop.permute.xlu1 %2763  ;;  %v3297_v42 = vsel %vm4656_vm6, %v4276_v37, %v3296_v18 }
 0x264   : > { %2768 = vst.msk [vmem:[#allocation2 + $0x44] sm:$0xf] %vm2486_vm14, %v2764_v46  ;;  %v2762_v50 = vpop.permute.xlu0 %2761  ;;  %v4380_v51 = vld [vmem:[#allocation2 + $0x20] sm:$0xff]  ;;  %v2552_v56 = vpop.permute.xlu2 %2551  ;;  %v2720_v43 = vrot.slane %v2719_v38, 4  ;;  %v2710_v46 = vrot.slane %v2709_v41, 4  ;;  %v2959_v38 = vrot.slane %v2957_v28, 5 }
 0x265   : > { %2767 = vst.msk [vmem:[#allocation2 + $0x40] sm:$0xf] %vm2486_vm14, %v2762_v50  ;;  %4361 = vmatmul.msk.bf16.vlgmr.msra.gmra.mxu1 %vm3483_vm0, %v4380_v51 }
 0x266   : > { %3202 = vst.msk [vmem:[#allocation2 + $0x40] sm:$0xf] %vm3033_vm15, %v3197_v11  ;;  %v2934_v11 = vrot.slane %v2932_v0, 5  ;;  %v2725_v50 = vsel %vm4481_vm2, %v2720_v43, %v2724_v44  ;;  %v2715_v51 = vsel %vm4481_vm2, %v2710_v46, %v2714_v24  ;;  %v2953_v43 = vrot.slane %v2951_v34, 5 }
 0x268   : > { %v2935_v22 = vsel %vm4481_vm2, %v2930_v10, %v2934_v11  ;;  %v2854_v11 = vrot.slane %v2852_v6, 5  ;;  %v4267_v6 = vld [vmem:[%s4470_s17 + $0xa4] sm:$0x1] }
 0x269   : > { %2936 = vrot.lane.b32.xlu1 %v2925_v58, %s4434_s24  ;;  %v4249_v58 = vld [vmem:[%s4470_s17 + $0x6c] sm:$0xe] }
 0x26a   : > { %2833 = vrot.lane.b32.xlu0 %v2830_v60, %s4434_s24  ;;  %2831 = vrot.lane.b32.xlu2 %v2820_v63, %s4434_s24  ;;  %v2228_v60 = vrot.slane %v4135_v53, 5  ;;  %v4252_v2 = vrot.slane %v4249_v58, 9  ;;  %v2859_v23 = vor.u32 %v2858_v12, %v2854_v11 }
 0x26b   : > { %v2289_v4 = vpop.permute.xlu1 %2288 }
 0x26c   : > { %2294 = vst.msk [vmem:[#allocation2 + $0x10] sm:$0xf] %vm2269_vm13, %v2289_v4  ;;  %v3199_v9 = vpop.permute.xlu0 %3198  ;;  %v2659_v13 = vpop.permute.xlu2 %2658  ;;  %v2229_v52 = vsel %vm4656_vm6, %v2227_v59, %v2228_v60  ;;  %v3171_v10 = vsel %vm4656_vm6, %v4252_v2, %v3170_v54  ;;  %v4278_v60 = vld [vmem:[%s4470_s17 + $0xc4] sm:$0xf] }
 0x26d   : > { %3203 = vst.msk [vmem:[#allocation2 + $0x44] sm:$0xf] %vm3033_vm15, %v3199_v9  ;;  %v2846_v9 = vshll.u32 %v4206_v3, 16  ;;  %v4279_v3 = vld [vmem:[%s4470_s17 + $0xc8] sm:$0x1] }
 0x26e   : > { %2557 = vst.msk [vmem:[#allocation2 + $0x10] sm:$0xf] %vm2486_vm14, %v2552_v56  ;;  %v4251_v56 = vld [vmem:[%s4470_s17 + $0x74] sm:$0x1] }
 0x26f   : > { %v3173_v63 = vrot.slane %v4251_v56, 5  ;;  %v2848_v16 = vrot.slane %v2846_v9, 5  ;;  %v3254_v56 = vrot.slane %v4266_v48, 5 }
 0x271   : > { %3240 = vrot.lane.b32.xlu1 %v3237_v14, %s4435_s25  ;;  %v3174_v7 = vsel %vm4656_vm6, %v3172_v62, %v3173_v63  ;;  %v4208_v14 = vld [vmem:[%s4470_s17 + $0xa4] sm:$0x1]  ;;  %v3256_v12 = vrot.slane %v3254_v56, 4 }
 0x272   : > { %3238 = vrot.lane.b32.xlu0 %v3234_v17, %s4435_s25  ;;  %2938 = vrot.lane.b32.xlu2 %v2935_v22, %s4434_s24  ;;  %v4169_v22 = vld [vmem:[%s4470_s17 + $0xc0] sm:$0xf]  ;;  %v2862_v24 = vshll.u32 %v4208_v14, 16  ;;  %v4218_v14 = vld [vmem:[%s4470_s17 + $0xcc] sm:$0xf] }
 0x273   : > { %v2327_v27 = vpop.permute.xlu1 %2326  ;;  %v2983_v21 = vshrl.u32 %v4218_v14, 16 }
 0x274   : > { %2331 = vst.msk [vmem:[#allocation2 + $0x2c] sm:$0xf] %vm2269_vm13, %v2327_v27  ;;  %v2325_v36 = vpop.permute.xlu0 %2324  ;;  %v4384_v33 = vld [vmem:[#allocation2 + $0x40] sm:$0xff]  ;;  %v3134_v35 = vpop.permute.xlu2 %3133  ;;  %v2849_v27 = vor.u32 %v2848_v16, %v2845_v15  ;;  %v4219_v16 = vld [vmem:[%s4470_s17 + $0xd0] sm:$0xf] }
 0x275   : > { %2330 = vst.msk [vmem:[#allocation2 + $0x28] sm:$0xf] %vm2269_vm13, %v2325_v36  ;;  %4365 = vmatmul.msk.bf16.vlgmr.msra.gmra.mxu2 %vm3483_vm0, %v4384_v33  ;;  %v2860_v36 = vrot.slane %v2859_v23, 4  ;;  %v2864_v33 = vrot.slane %v2862_v24, 5  ;;  %v4139_v23 = vld [vmem:[%s4470_s17 + $0xc8] sm:$0x1] }
 0x276   : > { %2663 = vst.msk [vmem:[#allocation2 + $0x2c] sm:$0xf] %vm2486_vm14, %v2659_v13  ;;  %v2985_v34 = vrot.slane %v2983_v21, 4 }
 0x279   : > { %2348 = vrot.lane.b32.xlu1 %v4155_v30, %s4433_s23  ;;  %v4217_v30 = vld [vmem:[%s4470_s17 + $0xc8] sm:$0x1] }
 0x27a   : > { %3303 = vrot.lane.b32.xlu0 %v3300_v40, %s4435_s25  ;;  %3301 = vrot.lane.b32.xlu2 %v3297_v42, %s4435_s25  ;;  %v2950_v42 = vrot.slane %v2948_v32, 4  ;;  %v2249_v32 = vrot.slane %v4139_v23, 5 }
 0x27b   : > { %v2657_v45 = vpop.permute.xlu1 %2656 }
 0x27c   : > { %2662 = vst.msk [vmem:[#allocation2 + $0x28] sm:$0xf] %vm2486_vm14, %v2657_v45  ;;  %v2554_v47 = vpop.permute.xlu0 %2553  ;;  %v2375_v49 = vpop.permute.xlu2 %2374  ;;  %v2865_v45 = vsel %vm4481_vm2, %v2860_v36, %v2864_v33  ;;  %v2954_v53 = vor.u32 %v2953_v43, %v2950_v42  ;;  %v4220_v33 = vld [vmem:[%s4470_s17 + $0xd4] sm:$0x1] }
 0x27d   : > { %2558 = vst.msk [vmem:[#allocation2 + $0x14] sm:$0xf] %vm2486_vm14, %v2554_v47  ;;  %v4265_v47 = vld [vmem:[%s4470_s17 + $0x9c] sm:$0xe]  ;;  %v3002_v42 = vshll.u32 %v4220_v33, 16 }
 0x27e   : > { %3139 = vst.msk [vmem:[#allocation2 + $0x28] sm:$0xf] %vm3033_vm15, %v3134_v35  ;;  %v2850_v35 = vrot.slane %v2849_v27, 4  ;;  %v4268_v54 = vrot.slane %v4265_v47, 9  ;;  %v2955_v62 = vrot.slane %v2954_v53, 4 }
 0x27f   : > { %2379 = vst.msk [vmem:[#allocation2 + $0x4c] sm:$0xf] %vm2269_vm13, %v2375_v49  ;;  %v2964_v49 = vor.u32 %v2963_v39, %v2959_v38  ;;  %v4137_v27 = vld [vmem:[%s4470_s17 + $0xc0] sm:$0xe]  ;;  %v3004_v47 = vrot.slane %v3002_v42, 5 }
 0x280   : > { %v2855_v46 = vsel %vm4481_vm2, %v2850_v35, %v2854_v11  ;;  %v3255_v55 = vsel %vm4656_vm6, %v4268_v54, %v3254_v56  ;;  %v4282_v53 = vld [vmem:[%s4470_s17 + $0xd0] sm:$0xf] }
 0x281   : > { %2728 = vrot.lane.b32.xlu1 %v2725_v50, %s4434_s24  ;;  %v2967_v50 = vshll.u32 %v4217_v30, 16  ;;  %v2965_v58 = vrot.slane %v2964_v49, 4 }
 0x282   : > { %2726 = vrot.lane.b32.xlu0 %v2715_v51, %s4434_s24  ;;  %2350 = vrot.lane.b32.xlu2 %v4156_v57, %s4433_s23  ;;  %v4170_v51 = vld [vmem:[%s4470_s17 + $0xc4] sm:$0xf] }
 0x283   : > { %v3073_v61 = vpop.permute.xlu1 %3072  ;;  %v2969_v59 = vrot.slane %v2967_v50, 5 }
 0x284   : > { %3077 = vst.msk [vmem:[#allocation2 + $0x14] sm:$0xf] %vm3033_vm15, %v3073_v61  ;;  %v3071_v0 = vpop.permute.xlu0 %3070  ;;  %v2797_v4 = vpop.permute.xlu2 %2796 }
 0x285   : > { %3076 = vst.msk [vmem:[#allocation2 + $0x10] sm:$0xf] %vm3033_vm15, %v3071_v0  ;;  %v3317_v0 = vrot.slane %v4278_v60, 5  ;;  %v2970_v2 = vsel %vm4481_vm2, %v2965_v58, %v2969_v59  ;;  %v3338_v58 = vrot.slane %v4282_v53, 5  ;;  %v4283_v59 = vld [vmem:[%s4470_s17 + $0xd4] sm:$0x1] }
 0x286   : > { %v4172_v60 = vld [vmem:[%s4470_s17 + $0xd0] sm:$0xf] }
 0x287   : > { %v3319_v5 = vrot.slane %v3317_v0, 4 }
 0x289   : > { %2232 = vrot.lane.b32.xlu1 %v2229_v52, %s4432_s22  ;;  %v2960_v52 = vsel %vm4481_vm2, %v2955_v62, %v2959_v38  ;;  %v4140_v38 = vrot.slane %v4137_v27, 9 }
 0x28a   : > { %3177 = vrot.lane.b32.xlu0 %v3174_v7, %s4435_s25  ;;  %3175 = vrot.lane.b32.xlu2 %v3171_v10, %s4435_s25  ;;  %v3320_v7 = vrot.slane %v4279_v3, 5  ;;  %v4138_v10 = vld [vmem:[%s4470_s17 + $0xc4] sm:$0xf] }
 0x28b   : > { %v2373_v13 = vpop.permute.xlu1 %2372 }
 0x28c   : > { %2378 = vst.msk [vmem:[#allocation2 + $0x48] sm:$0xf] %vm2269_vm13, %v2373_v13  ;;  %v3136_v17 = vpop.permute.xlu0 %3135  ;;  %v4378_v18 = vld [vmem:[#allocation2 + $0x10] sm:$0xff]  ;;  %v2904_v20 = vpop.permute.xlu2 %2903  ;;  %v3257_v13 = vrot.slane %v4267_v6, 5 }
 0x28d   : > { %3140 = vst.msk [vmem:[#allocation2 + $0x2c] sm:$0xf] %vm3033_vm15, %v3136_v17  ;;  %4359 = vmatmul.msk.bf16.gmra.mxu0 %vm3483_vm0, %v4378_v18  ;;  %v3321_v17 = vsel %vm4656_vm6, %v3319_v5, %v3320_v7  ;;  %v2996_v18 = vshrl.u32 %v4219_v16, 16 }
 0x28e   : > { %2802 = vst.msk [vmem:[#allocation2 + $0x48] sm:$0xf] %vm2486_vm14, %v2797_v4  ;;  %v4277_v4 = vld [vmem:[%s4470_s17 + $0xc0] sm:$0xe]  ;;  %v3258_v24 = vsel %vm4656_vm6, %v3256_v12, %v3257_v13 }
 0x28f   : > { %v4280_v9 = vrot.slane %v4277_v4, 9  ;;  %v2998_v28 = vrot.slane %v2996_v18, 4 }
 0x291   : > { %2432 = vrot.lane.b32.xlu1 %v4169_v22, %s4433_s23  ;;  %v3318_v19 = vsel %vm4656_vm6, %v4280_v9, %v3317_v0  ;;  %v2986_v22 = vshll.u32 %v4218_v14, 16 }
 0x292   : > { %2398 = vrot.lane.b32.xlu0 %v4164_v26, %s4433_s23  ;;  %2396 = vrot.lane.b32.xlu2 %v4163_v31, %s4433_s23  ;;  %v2992_v26 = vshll.u32 %v4219_v16, 16 }
 0x293   : > { %v2411_v37 = vpop.permute.xlu1 %2410  ;;  %v2988_v36 = vrot.slane %v2986_v22, 5 }
 0x294   : > { %2415 = vst.msk [vmem:[#allocation2 + $0x64] sm:$0xf] %vm2269_vm13, %v2411_v37  ;;  %v2409_v40 = vpop.permute.xlu0 %2408  ;;  %v4381_v41 = vld [vmem:[#allocation2 + $0x28] sm:$0xff]  ;;  %v3281_v44 = vpop.permute.xlu2 %3280  ;;  %v2994_v30 = vrot.slane %v2992_v26, 5 }
 0x295   : > { %2414 = vst.msk [vmem:[#allocation2 + $0x60] sm:$0xf] %vm2269_vm13, %v2409_v40  ;;  %4362 = vmatmul.msk.bf16.gmra.mxu1 %vm3483_vm0, %v4381_v41  ;;  %v4171_v40 = vld [vmem:[%s4470_s17 + $0xcc] sm:$0xf] }
 0x296   : > { %2908 = vst.msk [vmem:[#allocation2 + $0x64] sm:$0xf] %vm2486_vm14, %v2904_v20  ;;  %v2246_v20 = vrot.slane %v4138_v10, 5  ;;  %v2999_v41 = vor.u32 %v2998_v28, %v2994_v30 }
 0x298   : > { %v2248_v31 = vrot.slane %v2246_v20, 4 }
 0x299   : > { %2868 = vrot.lane.b32.xlu1 %v2865_v45, %s4434_s24  ;;  %v2247_v45 = vsel %vm4656_vm6, %v4140_v38, %v2246_v20 }
 0x29a   : > { %2866 = vrot.lane.b32.xlu0 %v2855_v46, %s4434_s24  ;;  %2434 = vrot.lane.b32.xlu2 %v4170_v51, %s4433_s23  ;;  %v2250_v43 = vsel %vm4656_vm6, %v2248_v31, %v2249_v32  ;;  %v3000_v46 = vrot.slane %v2999_v41, 4 }
 0x29b   : > { %v2902_v57 = vpop.permute.xlu1 %2901 }
 0x29c   : > { %2907 = vst.msk [vmem:[#allocation2 + $0x60] sm:$0xf] %vm2486_vm14, %v2902_v57  ;;  %v2799_v61 = vpop.permute.xlu0 %2798  ;;  %v2303_v63 = vpop.permute.xlu2 %2302  ;;  %v3005_v56 = vsel %vm4481_vm2, %v3000_v46, %v3004_v47 }
 0x29d   : > { %2803 = vst.msk [vmem:[#allocation2 + $0x4c] sm:$0xf] %vm2486_vm14, %v2799_v61  ;;  %v4281_v61 = vld [vmem:[%s4470_s17 + $0xcc] sm:$0xe] }
 0x29e   : > { %3286 = vst.msk [vmem:[#allocation2 + $0x60] sm:$0xf] %vm3033_vm15, %v3281_v44  ;;  %v2989_v44 = vor.u32 %v2988_v36, %v2985_v34 }
 0x29f   : > { %2307 = vst.msk [vmem:[#allocation2 + $0x1c] sm:$0xf] %vm2269_vm13, %v2303_v63  ;;  %v3340_v63 = vrot.slane %v3338_v58, 4 }
 0x2a0   : > { %v2990_v49 = vrot.slane %v2989_v44, 4 }
 0x2a1   : > { %3259 = vrot.lane.b32.xlu1 %v3255_v55, %s4435_s25  ;;  %v3341_v55 = vrot.slane %v4283_v59, 5 }
 0x2a2   : > { %2973 = vrot.lane.b32.xlu0 %v2970_v2, %s4434_s24  ;;  %2971 = vrot.lane.b32.xlu2 %v2960_v52, %s4434_s24  ;;  %v2995_v57 = vsel %vm4481_vm2, %v2990_v49, %v2994_v30  ;;  %v4284_v2 = vrot.slane %v4281_v61, 9 }
 0x2a3   : > { %v3220_v8 = vpop.permute.xlu1 %3219  ;;  %v3342_v3 = vsel %vm4656_vm6, %v3340_v63, %v3341_v55 }
 0x2a4   : > { %3224 = vst.msk [vmem:[#allocation2 + $0x4c] sm:$0xf] %vm3033_vm15, %v3220_v8  ;;  %v3218_v11 = vpop.permute.xlu0 %3217  ;;  %v2587_v15 = vpop.permute.xlu2 %2586  ;;  %v3339_v4 = vsel %vm4656_vm6, %v4284_v2, %v3338_v58 }
 0x2a5   : > { %3223 = vst.msk [vmem:[#allocation2 + $0x48] sm:$0xf] %vm3033_vm15, %v3218_v11 }
 0x2a9   : > { %3324 = vrot.lane.b32.xlu1 %v3321_v17, %s4435_s25 }
 0x2aa   : > { %3322 = vrot.lane.b32.xlu0 %v3318_v19, %s4435_s25  ;;  %3261 = vrot.lane.b32.xlu2 %v3258_v24, %s4435_s25 }
 0x2ab   : > { %v2301_v29 = vpop.permute.xlu1 %2300 }
 0x2ac   : > { %2306 = vst.msk [vmem:[#allocation2 + $0x18] sm:$0xf] %vm2269_vm13, %v2301_v29  ;;  %v3283_v37 = vpop.permute.xlu0 %3282  ;;  %v4385_v35 = vld [vmem:[#allocation2 + $0x48] sm:$0xff]  ;;  %v2694_v39 = vpop.permute.xlu2 %2693 }
 0x2ad   : > { %3287 = vst.msk [vmem:[#allocation2 + $0x64] sm:$0xf] %vm3033_vm15, %v3283_v37  ;;  %4366 = vmatmul.msk.bf16.gmra.mxu2 %vm3483_vm0, %v4385_v35 }
 0x2ae   : > { %2592 = vst.msk [vmem:[#allocation2 + $0x18] sm:$0xf] %vm2486_vm14, %v2587_v15 }
 0x2b1   : > { %2445 = vrot.lane.b32.xlu1 %v4171_v40, %s4433_s23 }
 0x2b2   : > { %2253 = vrot.lane.b32.xlu0 %v2250_v43, %s4432_s22  ;;  %2251 = vrot.lane.b32.xlu2 %v2247_v45, %s4432_s22 }
 0x2b3   : > { %v2339_v48 = vpop.permute.xlu1 %2338 }
 0x2b4   : > { %2343 = vst.msk [vmem:[#allocation2 + $0x34] sm:$0xf] %vm2269_vm13, %v2339_v48  ;;  %v2337_v50 = vpop.permute.xlu0 %2336  ;;  %v4388_v51 = vld [vmem:[#allocation2 + $0x60] sm:$0xff]  ;;  %v3155_v54 = vpop.permute.xlu2 %3154 }
 0x2b5   : > { %2342 = vst.msk [vmem:[#allocation2 + $0x30] sm:$0xf] %vm2269_vm13, %v2337_v50  ;;  %4369 = vmatmul.msk.bf16.vlgmr.msra.gmra.mxu3 %vm3483_vm0, %v4388_v51 }
 0x2b6   : > { %2698 = vst.msk [vmem:[#allocation2 + $0x34] sm:$0xf] %vm2486_vm14, %v2694_v39 }
 0x2b9   : > { %3008 = vrot.lane.b32.xlu1 %v3005_v56, %s4434_s24 }
 0x2ba   : > { %3006 = vrot.lane.b32.xlu0 %v2995_v57, %s4434_s24  ;;  %2447 = vrot.lane.b32.xlu2 %v4172_v60, %s4433_s23 }
 0x2bb   : > { %v2692_v62 = vpop.permute.xlu1 %2691 }
 0x2bc   : > { %2697 = vst.msk [vmem:[#allocation2 + $0x30] sm:$0xf] %vm2486_vm14, %v2692_v62  ;;  %v2589_v0 = vpop.permute.xlu0 %2588  ;;  %v2387_v25 = vpop.permute.xlu2 %2386 }
 0x2bd   : > { %2593 = vst.msk [vmem:[#allocation2 + $0x1c] sm:$0xf] %vm2486_vm14, %v2589_v0 }
 0x2be   : > { %3160 = vst.msk [vmem:[#allocation2 + $0x30] sm:$0xf] %vm3033_vm15, %v3155_v54 }
 0x2bf   : > { %2391 = vst.msk [vmem:[#allocation2 + $0x54] sm:$0xf] %vm2269_vm13, %v2387_v25 }
 0x2c2   : > { %3345 = vrot.lane.b32.xlu0 %v3342_v3, %s4435_s25  ;;  %v3545_v6 = vpop.f32.mrf.mxu0  ;;  %3343 = vrot.lane.b32.xlu2 %v3339_v4, %s4435_s25 }
 0x2c3   : > { %v3094_v52 = vpop.permute.xlu1 %3093  ;;  %3625 = vst [vmem:[%s5848_s8] sm:$0xff] %v3545_v6  ;;  %v3694_v9 = vmul.f32 %v3545_v6, %v3545_v6 }
 0x2c4   : > { %3098 = vst.msk [vmem:[#allocation2 + $0x1c] sm:$0xf] %vm3033_vm15, %v3094_v52  ;;  %v3092_v5 = vpop.permute.xlu0 %3091  ;;  %v2832_v1 = vpop.permute.xlu2 %2831 }
 0x2c5   : > { %3097 = vst.msk [vmem:[#allocation2 + $0x18] sm:$0xf] %vm3033_vm15, %v3092_v5 }
 0x2ca   : > { %v3547_v8 = vpop.f32.mrf.mxu0 }
 0x2cb   : > { %v2385_v7 = vpop.permute.xlu1 %2384  ;;  %v3657_v11 = vadd.f32 %v3547_v8, %v3545_v6  ;;  %v3695_v12 = vmul.f32 %v3547_v8, %v3547_v8  ;;  %3626 = vst [vmem:[%s5848_s8 + $0x8] sm:$0xff] %v3547_v8 }
 0x2cc   : > { %2390 = vst.msk [vmem:[#allocation2 + $0x50] sm:$0xf] %vm2269_vm13, %v2385_v7  ;;  %v3157_v10 = vpop.permute.xlu0 %3156  ;;  %v4379_v13 = vld [vmem:[#allocation2 + $0x18] sm:$0xff]  ;;  %v2939_v14 = vpop.permute.xlu2 %2938 }
 0x2cd   : > { %3161 = vst.msk [vmem:[#allocation2 + $0x34] sm:$0xf] %vm3033_vm15, %v3157_v10  ;;  %v3726_v15 = vadd.f32 %v3695_v12, %v3694_v9  ;;  %4360 = vmatmul.msk.bf16.gmra.mxu0 %vm3483_vm0, %v4379_v13 }
 0x2ce   : > { %2837 = vst.msk [vmem:[#allocation2 + $0x50] sm:$0xf] %vm2486_vm14, %v2832_v1 }
 0x2d3   : > { %v2423_v16 = vpop.permute.xlu1 %2422 }
 0x2d4   : > { %2427 = vst.msk [vmem:[#allocation2 + $0x6c] sm:$0xf] %vm2269_vm13, %v2423_v16  ;;  %v2421_v17 = vpop.permute.xlu0 %2420  ;;  %v4382_v18 = vld [vmem:[#allocation2 + $0x30] sm:$0xff]  ;;  %v3302_v19 = vpop.permute.xlu2 %3301 }
 0x2d5   : > { %2426 = vst.msk [vmem:[#allocation2 + $0x68] sm:$0xf] %vm2269_vm13, %v2421_v17  ;;  %4363 = vmatmul.msk.bf16.gmra.mxu1 %vm3483_vm0, %v4382_v18 }
 0x2d6   : > { %2943 = vst.msk [vmem:[#allocation2 + $0x6c] sm:$0xf] %vm2486_vm14, %v2939_v14 }
 0x2da   : > { %v3550_v21 = vpop.f32.mrf.mxu0 }
 0x2db   : > { %v2937_v20 = vpop.permute.xlu1 %2936  ;;  %v3658_v23 = vadd.f32 %v3657_v11, %v3550_v21  ;;  %v3696_v24 = vmul.f32 %v3550_v21, %v3550_v21  ;;  %3627 = vst [vmem:[%s5848_s8 + $0x10] sm:$0xff] %v3550_v21 }
 0x2dc   : > { %2942 = vst.msk [vmem:[#allocation2 + $0x68] sm:$0xf] %vm2486_vm14, %v2937_v20  ;;  %v2834_v22 = vpop.permute.xlu0 %2833  ;;  %v2351_v26 = vpop.permute.xlu2 %2350 }
 0x2dd   : > { %2838 = vst.msk [vmem:[#allocation2 + $0x54] sm:$0xf] %vm2486_vm14, %v2834_v22  ;;  %v3727_v27 = vadd.f32 %v3726_v15, %v3696_v24 }
 0x2de   : > { %3307 = vst.msk [vmem:[#allocation2 + $0x68] sm:$0xf] %vm3033_vm15, %v3302_v19 }
 0x2df   : > { %2355 = vst.msk [vmem:[#allocation2 + $0x3c] sm:$0xf] %vm2269_vm13, %v2351_v26 }
 0x2e2   : > { %v3552_v29 = vpop.f32.mrf.mxu0  ;;  %v5869_v36 = vpop.f32.mrf.mxu1 }
 0x2e3   : > { %v3241_v28 = vpop.permute.xlu1 %3240  ;;  %v3659_v32 = vadd.f32 %v3658_v23, %v3552_v29  ;;  %v3697_v34 = vmul.f32 %v3552_v29, %v3552_v29  ;;  %3628 = vst [vmem:[%s5848_s8 + $0x18] sm:$0xff] %v3552_v29  ;;  %v3702_v29 = vmul.f32 %v5869_v36, %v5869_v36 }
 0x2e4   : > { %3245 = vst.msk [vmem:[#allocation2 + $0x54] sm:$0xf] %vm3033_vm15, %v3241_v28  ;;  %v3239_v31 = vpop.permute.xlu0 %3238  ;;  %v3176_v33 = vpop.permute.xlu2 %3175 }
 0x2e5   : > { %3244 = vst.msk [vmem:[#allocation2 + $0x50] sm:$0xf] %vm3033_vm15, %v3239_v31  ;;  %v3728_v37 = vadd.f32 %v3727_v27, %v3697_v34 }
 0x2e6   : > { %3633 = vst [vmem:[%s5848_s8 + $0x40] sm:$0xff] %v5869_v36 }
 0x2ea   : > { %v5876_v38 = vpop.f32.mrf.mxu1 }
 0x2eb   : > { %v2349_v35 = vpop.permute.xlu1 %2348  ;;  %3634 = vst [vmem:[%s5848_s8 + $0x48] sm:$0xff] %v5876_v38  ;;  %v3703_v34 = vmul.f32 %v5876_v38, %v5876_v38 }
 0x2ec   : > { %2354 = vst.msk [vmem:[#allocation2 + $0x38] sm:$0xf] %vm2269_vm13, %v2349_v35  ;;  %v3304_v30 = vpop.permute.xlu0 %3303  ;;  %v4386_v39 = vld [vmem:[#allocation2 + $0x50] sm:$0xff]  ;;  %v2397_v40 = vpop.permute.xlu2 %2396 }
 0x2ed   : > { %3308 = vst.msk [vmem:[#allocation2 + $0x6c] sm:$0xf] %vm3033_vm15, %v3304_v30  ;;  %4367 = vmatmul.msk.bf16.gmra.mxu2 %vm3483_vm0, %v4386_v39 }
 0x2ee   : > { %2402 = vst.msk [vmem:[#allocation2 + $0x58] sm:$0xf] %vm2269_vm13, %v2397_v40 }
 0x2f3   : > { %v2729_v41 = vpop.permute.xlu1 %2728 }
 0x2f4   : > { %2733 = vst.msk [vmem:[#allocation2 + $0x3c] sm:$0xf] %vm2486_vm14, %v2729_v41  ;;  %v2727_v42 = vpop.permute.xlu0 %2726  ;;  %v4389_v43 = vld [vmem:[#allocation2 + $0x68] sm:$0xff]  ;;  %v2435_v44 = vpop.permute.xlu2 %2434 }
 0x2f5   : > { %2732 = vst.msk [vmem:[#allocation2 + $0x38] sm:$0xf] %vm2486_vm14, %v2727_v42  ;;  %4370 = vmatmul.msk.bf16.gmra.mxu3 %vm3483_vm0, %v4389_v43 }
 0x2f6   : > { %3181 = vst.msk [vmem:[#allocation2 + $0x38] sm:$0xf] %vm3033_vm15, %v3176_v33 }
 0x2f8   : > { %v5887_v45 = vpop.f32.mrf.mxu2 }
 0x2f9   : > { %3641 = vst [vmem:[%s5848_s8 + $0x80] sm:$0xff] %v5887_v45 }
 0x2fb   : > { %v2233_v46 = vpop.permute.xlu1 %2232 }
 0x2fc   : > { %2237 = vst.msk [vmem:[#allocation2 + $0x74] sm:$0xf] %vm1941_vm11, %v2233_v46  ;;  %v3178_v47 = vpop.permute.xlu0 %3177  ;;  %v2972_v48 = vpop.permute.xlu2 %2971 }
 0x2fd   : > { %3182 = vst.msk [vmem:[#allocation2 + $0x3c] sm:$0xf] %vm3033_vm15, %v3178_v47 }
 0x2fe   : > { %2439 = vst.msk [vmem:[#allocation2 + $0x74] sm:$0xf] %vm2269_vm13, %v2435_v44 }
 0x300   : > { %v5894_v49 = vpop.f32.mrf.mxu2 }
 0x301   : > { %3642 = vst [vmem:[%s5848_s8 + $0x88] sm:$0xff] %v5894_v49 }
 0x303   : > { %v2433_v50 = vpop.permute.xlu1 %2432 }
 0x304   : > { %2438 = vst.msk [vmem:[#allocation2 + $0x70] sm:$0xf] %vm2269_vm13, %v2433_v50  ;;  %v2399_v51 = vpop.permute.xlu0 %2398  ;;  %v4383_v53 = vld [vmem:[#allocation2 + $0x38] sm:$0xff]  ;;  %v3262_v54 = vpop.permute.xlu2 %3261 }
 0x305   : > { %2403 = vst.msk [vmem:[#allocation2 + $0x5c] sm:$0xf] %vm2269_vm13, %v2399_v51  ;;  %4364 = vmatmul.msk.bf16.gmra.mxu1 %vm3483_vm0, %v4383_v53 }
 0x306   : > { %2977 = vst.msk [vmem:[#allocation2 + $0x70] sm:$0xf] %vm2486_vm14, %v2972_v48 }
 0x30a   : > { %v3555_v57 = vpop.f32.mrf.mxu0 }
 0x30b   : > { %v2869_v56 = vpop.permute.xlu1 %2868  ;;  %v3660_v59 = vadd.f32 %v3659_v32, %v3555_v57  ;;  %v3698_v60 = vmul.f32 %v3555_v57, %v3555_v57  ;;  %3629 = vst [vmem:[%s5848_s8 + $0x20] sm:$0xff] %v3555_v57 }
 0x30c   : > { %2873 = vst.msk [vmem:[#allocation2 + $0x5c] sm:$0xf] %vm2486_vm14, %v2869_v56  ;;  %v2867_v58 = vpop.permute.xlu0 %2866  ;;  %v2252_v61 = vpop.permute.xlu2 %2251 }
 0x30d   : > { %2872 = vst.msk [vmem:[#allocation2 + $0x58] sm:$0xf] %vm2486_vm14, %v2867_v58  ;;  %v3729_v62 = vadd.f32 %v3728_v37, %v3698_v60 }
 0x30e   : > { %3266 = vst.msk [vmem:[#allocation2 + $0x5c] sm:$0xf] %vm3033_vm15, %v3262_v54 }
 0x30f   : > { %2257 = vst.msk [vmem:[#allocation2 + $0x78] sm:$0xf] %vm1941_vm11, %v2252_v61 }
 0x312   : > { %v3557_v55 = vpop.f32.mrf.mxu0  ;;  %v3570_v3 = vpop.f32.mrf.mxu1 }
 0x313   : > { %v3260_v63 = vpop.permute.xlu1 %3259  ;;  %v3661_v2 = vadd.f32 %v3660_v59, %v3557_v55  ;;  %v3699_v25 = vmul.f32 %v3557_v55, %v3557_v55  ;;  %3630 = vst [vmem:[%s5848_s8 + $0x28] sm:$0xff] %v3557_v55  ;;  %v3704_v35 = vmul.f32 %v3570_v3, %v3570_v3  ;;  %v3710_v55 = vmul.f32 %v5887_v45, %v5887_v45 }
 0x314   : > { %3265 = vst.msk [vmem:[#allocation2 + $0x58] sm:$0xf] %vm3033_vm15, %v3260_v63  ;;  %v2974_v0 = vpop.permute.xlu0 %2973  ;;  %v2448_v7 = vpop.permute.xlu2 %2447 }
 0x315   : > { %2978 = vst.msk [vmem:[#allocation2 + $0x74] sm:$0xf] %vm2486_vm14, %v2974_v0  ;;  %v3730_v4 = vadd.f32 %v3729_v62, %v3699_v25  ;;  %v3711_v25 = vmul.f32 %v5894_v49, %v5894_v49 }
 0x316   : > { %3635 = vst [vmem:[%s5848_s8 + $0x50] sm:$0xff] %v3570_v3 }
 0x31a   : > { %v3572_v1 = vpop.f32.mrf.mxu1 }
 0x31b   : > { %v3325_v52 = vpop.permute.xlu1 %3324  ;;  %v4387_v6 = vld [vmem:[#allocation2 + $0x58] sm:$0xff]  ;;  %3636 = vst [vmem:[%s5848_s8 + $0x58] sm:$0xff] %v3572_v1  ;;  %v3705_v41 = vmul.f32 %v3572_v1, %v3572_v1 }
 0x31c   : > { %3329 = vst.msk [vmem:[#allocation2 + $0x74] sm:$0xf] %vm3033_vm15, %v3325_v52  ;;  %v3323_v5 = vpop.permute.xlu0 %3322  ;;  %4368 = vmatmul.msk.bf16.gmra.mxu2 %vm3483_vm0, %v4387_v6  ;;  %v3344_v12 = vpop.permute.xlu2 %3343 }
 0x31d   : > { %3328 = vst.msk [vmem:[#allocation2 + $0x70] sm:$0xf] %vm3033_vm15, %v3323_v5 }
 0x323   : > { %v2446_v8 = vpop.permute.xlu1 %2445 }
 0x324   : > { %v2254_v9 = vpop.permute.xlu0 %2253  ;;  %v4390_v10 = vld [vmem:[#allocation2 + $0x70] sm:$0xff]  ;;  %2451 = vst.msk [vmem:[#allocation2 + $0x78] sm:$0xf] %vm2269_vm13, %v2446_v8 }
 0x325   : > { %2258 = vst.msk [vmem:[#allocation2 + $0x7c] sm:$0xf] %vm1941_vm11, %v2254_v9  ;;  %4371 = vmatmul.msk.bf16.gmra.mxu3 %vm3483_vm0, %v4390_v10 }
 0x326   : > { %2452 = vst.msk [vmem:[#allocation2 + $0x7c] sm:$0xf] %vm2269_vm13, %v2448_v7 }
 0x32b   : > { %v3009_v11 = vpop.permute.xlu1 %3008 }
 0x32c   : > { %v3007_v13 = vpop.permute.xlu0 %3006  ;;  %3013 = vst.msk [vmem:[#allocation2 + $0x7c] sm:$0xf] %vm2486_vm14, %v3009_v11 }
 0x32d   : > { %3012 = vst.msk [vmem:[#allocation2 + $0x78] sm:$0xf] %vm2486_vm14, %v3007_v13 }
 0x32e   : > { %3349 = vst.msk [vmem:[#allocation2 + $0x78] sm:$0xf] %vm3033_vm15, %v3344_v12 }
 0x330   : > { %v5922_v14 = vpop.f32.mrf.mxu2 }
 0x331   : > { %3643 = vst [vmem:[%s5848_s8 + $0x90] sm:$0xff] %v5922_v14  ;;  %v3712_v52 = vmul.f32 %v5922_v14, %v5922_v14 }
 0x334   : > { %v3346_v15 = vpop.permute.xlu0 %3345 }
 0x335   : > { %3350 = vst.msk [vmem:[#allocation2 + $0x7c] sm:$0xf] %vm3033_vm15, %v3346_v15 }
 0x338   : > { %v5927_v16 = vpop.f32.mrf.mxu2  ;;  %v5929_v17 = vpop.f32.mrf.mxu3 }
 0x339   : > { %3644 = vst [vmem:[%s5848_s8 + $0x98] sm:$0xff] %v5927_v16 }
 0x33a   : > { %3649 = vst [vmem:[%s5848_s8 + $0xc0] sm:$0xff] %v5929_v17 }
 0x33c   : > { %v4391_v18 = vld [vmem:[#allocation2 + $0x78] sm:$0xff] }
 0x33d   : > { %4372 = vmatmul.msk.bf16.gmra.mxu3 %vm3483_vm0, %v4391_v18 }
 0x340   : > { %v5936_v19 = vpop.f32.mrf.mxu3 }
 0x341   : > { %3650 = vst [vmem:[%s5848_s8 + $0xc8] sm:$0xff] %v5936_v19 }
 0x34a   : > { %v3560_v20 = vpop.f32.mrf.mxu0 }
 0x34b   : > { %3631 = vst [vmem:[%s5848_s8 + $0x30] sm:$0xff] %v3560_v20  ;;  %v3662_v21 = vadd.f32 %v3661_v2, %v3560_v20  ;;  %v3700_v22 = vmul.f32 %v3560_v20, %v3560_v20 }
 0x34d   : > { %v3731_v23 = vadd.f32 %v3730_v4, %v3700_v22 }
 0x352   : > { %v3562_v24 = vpop.f32.mrf.mxu0  ;;  %v3575_v26 = vpop.f32.mrf.mxu1 }
 0x353   : > { %3632 = vst [vmem:[%s5848_s8 + $0x38] sm:$0xff] %v3562_v24  ;;  %v3663_v27 = vadd.f32 %v3662_v21, %v3562_v24  ;;  %v3701_v28 = vmul.f32 %v3562_v24, %v3562_v24  ;;  %v3706_v44 = vmul.f32 %v3575_v26, %v3575_v26 }
 0x354   : > { %3637 = vst [vmem:[%s5848_s8 + $0x60] sm:$0xff] %v3575_v26 }
 0x355   : > { %v3664_v31 = vadd.f32 %v3663_v27, %v5869_v36  ;;  %v3732_v32 = vadd.f32 %v3731_v23, %v3701_v28  ;;  %v3719_v28 = vmul.f32 %v5936_v19, %v5936_v19 }
 0x357   : > { %v3665_v33 = vadd.f32 %v3664_v31, %v5876_v38  ;;  %v3733_v37 = vadd.f32 %v3732_v32, %v3702_v29 }
 0x359   : > { %v3734_v30 = vadd.f32 %v3733_v37, %v3703_v34  ;;  %v3666_v39 = vadd.f32 %v3665_v33, %v3570_v3 }
 0x35a   : > { %v3577_v40 = vpop.f32.mrf.mxu1 }
 0x35b   : > { %v3667_v42 = vadd.f32 %v3666_v39, %v3572_v1  ;;  %v3735_v43 = vadd.f32 %v3734_v30, %v3704_v35  ;;  %3638 = vst [vmem:[%s5848_s8 + $0x68] sm:$0xff] %v3577_v40  ;;  %v3707_v38 = vmul.f32 %v3577_v40, %v3577_v40  ;;  %v3713_v1 = vmul.f32 %v5927_v16, %v5927_v16 }
 0x35d   : > { %v3668_v36 = vadd.f32 %v3667_v42, %v3575_v26  ;;  %v3736_v46 = vadd.f32 %v3735_v43, %v3705_v41 }
 0x35f   : > { %v3737_v47 = vadd.f32 %v3736_v46, %v3706_v44  ;;  %v3669_v48 = vadd.f32 %v3668_v36, %v3577_v40 }
 0x361   : > { %v3738_v50 = vadd.f32 %v3737_v47, %v3707_v38 }
 0x370   : > { %v3595_v51 = vpop.f32.mrf.mxu2 }
 0x371   : > { %3645 = vst [vmem:[%s5848_s8 + $0xa0] sm:$0xff] %v3595_v51  ;;  %v3714_v8 = vmul.f32 %v3595_v51, %v3595_v51 }
 0x378   : > { %v3597_v53 = vpop.f32.mrf.mxu2  ;;  %v3610_v54 = vpop.f32.mrf.mxu3 }
 0x379   : > { %3646 = vst [vmem:[%s5848_s8 + $0xa8] sm:$0xff] %v3597_v53  ;;  %v3715_v12 = vmul.f32 %v3597_v53, %v3597_v53  ;;  %v3720_v32 = vmul.f32 %v3610_v54, %v3610_v54 }
 0x37a   : > { %3651 = vst [vmem:[%s5848_s8 + $0xd0] sm:$0xff] %v3610_v54 }
 0x380   : > { %v3612_v56 = vpop.f32.mrf.mxu3 }
 0x381   : > { %3652 = vst [vmem:[%s5848_s8 + $0xd8] sm:$0xff] %v3612_v56  ;;  %v3721_v37 = vmul.f32 %v3612_v56, %v3612_v56 }
 0x382   : > { %v3580_v57 = vpop.f32.mrf.mxu1 }
 0x383   : > { %3639 = vst [vmem:[%s5848_s8 + $0x70] sm:$0xff] %v3580_v57  ;;  %v3708_v58 = vmul.f32 %v3580_v57, %v3580_v57  ;;  %v3670_v59 = vadd.f32 %v3669_v48, %v3580_v57 }
 0x385   : > { %v3739_v61 = vadd.f32 %v3738_v50, %v3708_v58 }
 0x38a   : > { %v3582_v60 = vpop.f32.mrf.mxu1 }
 0x38b   : > { %3640 = vst [vmem:[%s5848_s8 + $0x78] sm:$0xff] %v3582_v60  ;;  %v3671_v62 = vadd.f32 %v3670_v59, %v3582_v60  ;;  %v3709_v63 = vmul.f32 %v3582_v60, %v3582_v60 }
 0x38d   : > { %v3672_v0 = vadd.f32 %v3671_v62, %v5887_v45  ;;  %v3740_v2 = vadd.f32 %v3739_v61, %v3709_v63 }
 0x38f   : > { %v3673_v3 = vadd.f32 %v3672_v0, %v5894_v49  ;;  %v3741_v4 = vadd.f32 %v3740_v2, %v3710_v55 }
 0x391   : > { %v3674_v6 = vadd.f32 %v3673_v3, %v5922_v14  ;;  %v3742_v5 = vadd.f32 %v3741_v4, %v3711_v25 }
 0x393   : > { %v3743_v7 = vadd.f32 %v3742_v5, %v3712_v52  ;;  %v3675_v45 = vadd.f32 %v3674_v6, %v5927_v16  ;;  %v3718_v16 = vmul.f32 %v5929_v17, %v5929_v17 }
 0x395   : > { %v3676_v9 = vadd.f32 %v3675_v45, %v3595_v51  ;;  %v3744_v10 = vadd.f32 %v3743_v7, %v3713_v1 }
 0x397   : > { %v3745_v11 = vadd.f32 %v3744_v10, %v3714_v8  ;;  %v3677_v13 = vadd.f32 %v3676_v9, %v3597_v53 }
 0x399   : > { %v3746_v14 = vadd.f32 %v3745_v11, %v3715_v12 }
 0x39f   : > { %v3600_v49 = vpop.f32.mrf.mxu2 }
 0x3a0   : > { %3647 = vst [vmem:[%s5848_s8 + $0xb0] sm:$0xff] %v3600_v49  ;;  %v3716_v15 = vmul.f32 %v3600_v49, %v3600_v49  ;;  %v3678_v18 = vadd.f32 %v3677_v13, %v3600_v49 }
 0x3a2   : > { %v3747_v21 = vadd.f32 %v3746_v14, %v3716_v15 }
 0x3a7   : > { %v3602_v20 = vpop.f32.mrf.mxu2 }
 0x3a8   : > { %3648 = vst [vmem:[%s5848_s8 + $0xb8] sm:$0xff] %v3602_v20  ;;  %v3679_v22 = vadd.f32 %v3678_v18, %v3602_v20  ;;  %v3717_v23 = vmul.f32 %v3602_v20, %v3602_v20  ;;  %v3615_v24 = vpop.f32.mrf.mxu3 }
 0x3a9   : > { %3653 = vst [vmem:[%s5848_s8 + $0xe0] sm:$0xff] %v3615_v24  ;;  %v3722_v42 = vmul.f32 %v3615_v24, %v3615_v24 }
 0x3aa   : > { %v3680_v26 = vadd.f32 %v3679_v22, %v5929_v17  ;;  %v3748_v27 = vadd.f32 %v3747_v21, %v3717_v23 }
 0x3ac   : > { %v3681_v29 = vadd.f32 %v3680_v26, %v5936_v19  ;;  %v3749_v31 = vadd.f32 %v3748_v27, %v3718_v16 }
 0x3ae   : > { %v3750_v34 = vadd.f32 %v3749_v31, %v3719_v28  ;;  %v3682_v33 = vadd.f32 %v3681_v29, %v3610_v54 }
 0x3b0   : > { %v3683_v35 = vadd.f32 %v3682_v33, %v3612_v56  ;;  %v3751_v30 = vadd.f32 %v3750_v34, %v3720_v32  ;;  %v3617_v39 = vpop.f32.mrf.mxu3 }
 0x3b1   : > { %3654 = vst [vmem:[%s5848_s8 + $0xe8] sm:$0xff] %v3617_v39  ;;  %v3723_v44 = vmul.f32 %v3617_v39, %v3617_v39 }
 0x3b2   : > { %v3752_v40 = vadd.f32 %v3751_v30, %v3721_v37  ;;  %v3684_v17 = vadd.f32 %v3683_v35, %v3615_v24 }
 0x3b4   : > { %v3753_v43 = vadd.f32 %v3752_v40, %v3722_v42  ;;  %v3685_v36 = vadd.f32 %v3684_v17, %v3617_v39 }
 0x3b6   : > { %v3754_v19 = vadd.f32 %v3753_v43, %v3723_v44 }
 0x3c0   : > { %v3620_v41 = vpop.f32.mrf.mxu3 }
 0x3c1   : > { %3655 = vst [vmem:[%s5848_s8 + $0xf0] sm:$0xff] %v3620_v41  ;;  %v3724_v46 = vmul.f32 %v3620_v41, %v3620_v41  ;;  %v3686_v47 = vadd.f32 %v3685_v36, %v3620_v41 }
 0x3c3   : > { %v3755_v38 = vadd.f32 %v3754_v19, %v3724_v46 }
 0x3c8   : > { %v3622_v48 = vpop.f32.mrf.mxu3 }
 0x3c9   : > { %3656 = vst [vmem:[%s5848_s8 + $0xf8] sm:$0xff] %v3622_v48  ;;  %v3687_v50 = vadd.f32 %v3686_v47, %v3622_v48  ;;  %v3725_v51 = vmul.f32 %v3622_v48, %v3622_v48 }
 0x3cb   : > { %v3688_v53 = vrot.slane %v3687_v50, 4  ;;  %v3756_v54 = vadd.f32 %v3755_v38, %v3725_v51 }
 0x3cd   : > { %v3689_v56 = vadd.f32 %v3688_v53, %v3687_v50  ;;  %v3757_v57 = vrot.slane %v3756_v54, 4 }
 0x3cf   : > { %v3690_v58 = vrot.slane %v3689_v56, 2  ;;  %v3758_v59 = vadd.f32 %v3757_v57, %v3756_v54 }
 0x3d1   : > { %v3691_v60 = vadd.f32 %v3690_v58, %v3689_v56  ;;  %v3759_v61 = vrot.slane %v3758_v59, 2 }
 0x3d3   : > { %v3692_v62 = vrot.slane %v3691_v60, 1  ;;  %v3760_v63 = vadd.f32 %v3759_v61, %v3758_v59 }
 0x3d5   : > { %v3761_v55 = vrot.slane %v3760_v63, 1  ;;  %v3693_v0 = vadd.f32 %v3692_v62, %v3691_v60 }
 0x3d7   : > { %v3762_v2 = vadd.f32 %v3761_v55, %v3760_v63 }
 0x3d9   : > { %v3764_v25 = vsel %vm3763_vm1, %v3693_v0, %v3762_v2 }
 0x3da   : > { %3765 = vst [vmem:[%s181_s14] sm:$0x3] %v3764_v25 }
 0x3db PF: > { %s14_s12 = sadd.s32 1, %s4426_s12  }
 0x3dc   : > { %p11_p4 = scmp.ge.s32.totalorder %s14_s12, 4  }
 0x3de   :  { %13 = sbr.rel (!%p11_p4) target bundleno = 1 (0x1), region = 87 }

</bundles_post_ra>
